<compile_context>
chip_gen: v7x
topology: tpu7x:2x2x1
jax: 0.10.0
libtpu: 0.0.40
codegen_flags: <defaults>
</compile_context>

<pallas_src>
import math
from functools import partial

import jax
import jax.numpy as jnp
from jax import lax
from jax.experimental import pallas as pl
from jax.experimental.pallas import tpu as pltpu

_MAX_SEED_TILE = 32           # seeds per grid step (32*K*K edges per step max)
_MAX_TABLE_BYTES = 4 << 20    # guard for the VMEM-resident-table gather path
_COMPILER_PARAMS = pltpu.CompilerParams(
    dimension_semantics=("parallel",),
    vmem_limit_bytes=32 * 1024 * 1024,
)


def _round_up(x, m):
    return ((x + m - 1) // m) * m


def _seed_tile(s):
    # >= 2 grid steps whenever there is enough work (v7x dual-TC sharding),
    # capped so per-step one-hot intermediates stay small.
    half = _round_up((s + 1) // 2, 8)
    return max(8, min(_MAX_SEED_TILE, half))


def _pad_rows(x, n_pad):
    pad = n_pad - x.shape[0]
    if pad == 0:
        return x
    return jnp.pad(x, [(0, pad)] + [(0, 0)] * (x.ndim - 1))


def _pad_table(tbl):
    # Pad vocab to a multiple of 128 -> lane-dense one-hot & MXU contraction.
    v, _ = tbl.shape
    vp = _round_up(v, 128)
    return tbl if vp == v else jnp.pad(tbl, ((0, vp - v), (0, 0)))


# ----------------------------------------------------------------------------
# In-kernel helpers
# ----------------------------------------------------------------------------
def _onehot(idx_col, rows, vocab, weight=None):
    """idx_col: (rows, 1) int32 -> (rows, vocab) f32 one-hot (optionally scaled)."""
    iota = lax.broadcasted_iota(jnp.int32, (rows, vocab), 1)
    oh = (idx_col == iota).astype(jnp.float32)
    if weight is not None:
        oh = oh * weight
    return oh


# ----------------------------------------------------------------------------
# Pallas kernels
# ----------------------------------------------------------------------------
def _fused_two_hop_kernel(lam_ref, node_tbl_ref, edge_tbl_ref,
                          idx0_src_ref, idx0_rel_ref, sc0_ref,
                          idx1_self_ref, idx1_rel_ref, sc1_ref,
                          seed_ref, other_ref, o_ref):
    """Two chained GCN blocks (msg_GCN/msg_Global + reduce_GCN), residual adds
    and the final lambda mix, with all table gathers done in-VMEM."""
    node_tbl = node_tbl_ref[...]                      # (Vn, D)
    edge_tbl = edge_tbl_ref[...]                      # (Vr, D)
    vn, d = node_tbl.shape
    vr = edge_tbl.shape[0]
    e0 = idx0_src_ref.shape[0]                        # Ts*K*K edges (block 0)
    e1 = idx1_self_ref.shape[0]                       # Ts*K   edges (block 1)
    ts = seed_ref.shape[0]                            # Ts seeds
    k = e1 // ts

    # ---- block 0 : layer0 -> layer1  (scale folded into the src one-hot) ----
    src0 = jnp.dot(_onehot(idx0_src_ref[...], e0, vn, sc0_ref[...]), node_tbl,
                   preferred_element_type=jnp.float32)            # (e0, D)
    rel0 = jnp.dot(_onehot(idx0_rel_ref[...], e0, vr), edge_tbl,
                   preferred_element_type=jnp.float32)            # (e0, D)
    red0 = jnp.sum((src0 * rel0).reshape(e1, k, d), axis=1)       # (e1, D)
    self1 = jnp.dot(_onehot(idx1_self_ref[...], e1, vn), node_tbl,
                    preferred_element_type=jnp.float32)           # (e1, D)
    layer1 = red0 + self1                                         # residual add

    # ---- block 1 : layer1 -> seeds ----
    rel1 = jnp.dot(_onehot(idx1_rel_ref[...], e1, vr), edge_tbl,
                   preferred_element_type=jnp.float32)            # (e1, D)
    m1 = layer1 * rel1 * sc1_ref[...]                             # (e1, D)
    red1 = jnp.sum(m1.reshape(ts, k, d), axis=1)                  # (Ts, D)
    self2 = jnp.dot(_onehot(seed_ref[...], ts, vn), node_tbl,
                    preferred_element_type=jnp.float32)           # (Ts, D)

    lam = lam_ref[0]
    o_ref[...] = other_ref[...] * lam + (red1 + self2) * (1.0 - lam)


def _rel_one_hop_kernel(lam2_ref, edge_tbl_ref, idx_ref, sc_ref, seed_ref, o_ref):
    """Relation branch (msg_rel/reduce_rel + lambda_2 mix) as a single MXU
    matmul: out = (lam2 * scale_weighted_onehot + (1-lam2) * onehot(seed)) @ W."""
    edge_tbl = edge_tbl_ref[...]                      # (Vr, D)
    vr = edge_tbl.shape[0]
    e0 = idx_ref.shape[0]                             # Tr*K edges
    tr = seed_ref.shape[0]
    k = e0 // tr

    w_edges = _onehot(idx_ref[...], e0, vr, sc_ref[...])          # (e0, Vr)
    w_red = jnp.sum(w_edges.reshape(tr, k, vr), axis=1)           # (Tr, Vr)
    w_self = _onehot(seed_ref[...], tr, vr)                       # (Tr, Vr)
    lam2 = lam2_ref[0]
    mix = w_red * lam2 + w_self * (1.0 - lam2)
    o_ref[...] = jnp.dot(mix, edge_tbl, preferred_element_type=jnp.float32)


# ----------------------------------------------------------------------------
# Pallas wrappers
# ----------------------------------------------------------------------------
def _fused_two_hop_call(lam, node_tbl, edge_tbl, idx0_src, idx0_rel, sc0,
                        idx1_self, idx1_rel, sc1, seed_idx, other, ts, k):
    sp = seed_idx.shape[0]
    d = node_tbl.shape[1]
    tbl_spec = lambda shp: pl.BlockSpec(shp, lambda i: (0, 0))
    row_spec = lambda rows: pl.BlockSpec((rows, 1), lambda i: (i, 0))
    return pl.pallas_call(
        _fused_two_hop_kernel,
        out_shape=jax.ShapeDtypeStruct((sp, d), jnp.float32),
        grid=(sp // ts,),
        in_specs=[
            pl.BlockSpec(memory_space=pltpu.MemorySpace.SMEM),   # lambda
            tbl_spec(node_tbl.shape),                            # node table
            tbl_spec(edge_tbl.shape),                            # edge table
            row_spec(ts * k * k),                                # block0 src idx
            row_spec(ts * k * k),                                # block0 rel idx
            row_spec(ts * k * k),                                # block0 scale
            row_spec(ts * k),                                    # layer1 self idx
            row_spec(ts * k),                                    # block1 rel idx
            row_spec(ts * k),                                    # block1 scale
            row_spec(ts),                                        # seed idx
            pl.BlockSpec((ts, d), lambda i: (i, 0)),             # mix "other"
        ],
        out_specs=pl.BlockSpec((ts, d), lambda i: (i, 0)),
        compiler_params=_COMPILER_PARAMS,
    )(lam, node_tbl, edge_tbl, idx0_src, idx0_rel, sc0,
      idx1_self, idx1_rel, sc1, seed_idx, other)


def _rel_one_hop_call(lam2, edge_tbl, idx, sc, seed_idx, tr, k):
    rp = seed_idx.shape[0]
    d = edge_tbl.shape[1]
    return pl.pallas_call(
        _rel_one_hop_kernel,
        out_shape=jax.ShapeDtypeStruct((rp, d), jnp.float32),
        grid=(rp // tr,),
        in_specs=[
            pl.BlockSpec(memory_space=pltpu.MemorySpace.SMEM),   # lambda_2
            pl.BlockSpec(edge_tbl.shape, lambda i: (0, 0)),      # edge table
            pl.BlockSpec((tr * k, 1), lambda i: (i, 0)),         # neighbor idx
            pl.BlockSpec((tr * k, 1), lambda i: (i, 0)),         # scale
            pl.BlockSpec((tr, 1), lambda i: (i, 0)),             # seed idx
        ],
        out_specs=pl.BlockSpec((tr, d), lambda i: (i, 0)),
        compiler_params=_COMPILER_PARAMS,
    )(lam2, edge_tbl, idx, sc, seed_idx)


# ----------------------------------------------------------------------------
# Plain-JAX glue (parameter init, synthetic sampling, padding) — all under jit
# ----------------------------------------------------------------------------
def xavier_normal(key, shape):
    fan_in, fan_out = shape
    std = (2.0 / (fan_in + fan_out)) ** 0.5
    return std * jax.random.normal(key, shape, dtype=jnp.float32)


def out_degree_sqrt_per_edge(src_ids, vocab):
    # sqrt(out-degree of each edge's source node within the sampled block)
    flat = src_ids.reshape(-1)
    counts = jnp.zeros((vocab,), jnp.float32).at[flat].add(1.0)
    return jnp.sqrt(counts[src_ids])


def two_hop_gcn(seed_ids, node_tbl, edge_tbl, K, key, other=None, lam=None):
    """2-hop node-flow GCN (msg_GCN/msg_Global + reduce_GCN) with synthetic
    fixed-fan-in K sampling, fully fused into one Pallas kernel.  If `other`
    is given, the final lambda mix is fused as well."""
    S = seed_ids.shape[0]
    Vn, D = node_tbl.shape
    Vr = edge_tbl.shape[0]
    inv_in = 1.0 / math.sqrt(K)                       # fixed fan-in => in-deg K
    k1, k2, k3, k4 = jax.random.split(key, 4)
    layer1_src = jax.random.randint(k1, (S, K), 0, Vn)       # layer1 nodes
    layer0_src = jax.random.randint(k2, (S * K, K), 0, Vn)   # block0 sources
    rel0 = jax.random.randint(k3, (S * K, K), 0, Vr)
    rel1 = jax.random.randint(k4, (S, K), 0, Vr)

    scale0 = inv_in / out_degree_sqrt_per_edge(layer0_src, Vn)   # (S*K, K)
    scale1 = inv_in / out_degree_sqrt_per_edge(layer1_src, Vn)   # (S, K)

    Ts = _seed_tile(S)
    Sp = _round_up(S, Ts)

    idx0_src = _pad_rows(layer0_src.reshape(S * K * K, 1), Sp * K * K)
    idx0_rel = _pad_rows(rel0.reshape(S * K * K, 1), Sp * K * K)
    sc0 = _pad_rows(scale0.reshape(S * K * K, 1), Sp * K * K)
    idx1_self = _pad_rows(layer1_src.reshape(S * K, 1), Sp * K)
    idx1_rel = _pad_rows(rel1.reshape(S * K, 1), Sp * K)
    sc1 = _pad_rows(scale1.reshape(S * K, 1), Sp * K)
    seed2 = _pad_rows(seed_ids.reshape(S, 1).astype(jnp.int32), Sp)

    if other is None:
        other = jnp.zeros((S, D), jnp.float32)
        lam = jnp.zeros((1,), jnp.float32)
    other_p = _pad_rows(other, Sp)

    node_p = _pad_table(node_tbl)
    edge_p = _pad_table(edge_tbl)
    assert node_p.size * 4 <= _MAX_TABLE_BYTES and edge_p.size * 4 <= _MAX_TABLE_BYTES

    out = _fused_two_hop_call(lam, node_p, edge_p, idx0_src, idx0_rel, sc0,
                              idx1_self, idx1_rel, sc1, seed2, other_p, Ts, K)
    return out[:S]


def rel_one_hop_gcn(rel_seed, edge_tbl, K, key, lam2):
    """1-hop relation GCN (msg_rel/reduce_rel) with the lambda_2 mix fused."""
    R = rel_seed.shape[0]
    Vr, D = edge_tbl.shape
    layer0 = jax.random.randint(key, (R, K), 0, Vr)
    scale = (1.0 / math.sqrt(K)) / out_degree_sqrt_per_edge(layer0, Vr)

    Tr = _seed_tile(R)
    Rp = _round_up(R, Tr)
    idx = _pad_rows(layer0.reshape(R * K, 1), Rp * K)
    sc = _pad_rows(scale.reshape(R * K, 1), Rp * K)
    seed = _pad_rows(rel_seed.reshape(R, 1).astype(jnp.int32), Rp)

    edge_p = _pad_table(edge_tbl)
    assert edge_p.size * 4 <= _MAX_TABLE_BYTES
    out = _rel_one_hop_call(lam2, edge_p, idx, sc, seed, Tr, K)
    return out[:R]


@partial(jax.jit, static_argnames=("time_num", "K"))
def forward(params, seed_nodes, relation_batch, lam, lam2, key, *, time_num, K):
    B = seed_nodes.shape[0]
    kg, kn, kr = jax.random.split(key, 3)

    # ---- Global (time-aggregated entity) 2-hop GCN on Glob_g ----
    original_nodes = seed_nodes // time_num
    Global_seed, Global_seed_idx = jnp.unique(
        original_nodes, return_inverse=True, size=B, fill_value=0)
    Glob_n = two_hop_gcn(Global_seed, params["glob_node_W"], params["edge_W"],
                         K, kg)

    # ---- Temporal node 2-hop GCN on g; seed layer fused with lambda mix ----
    #   n = Glob_n[Global_seed_idx] * lambda_ + (reduced + self) * (1 - lambda_)
    n = two_hop_gcn(seed_nodes, params["node_W"], params["edge_W"], K, kn,
                    other=Glob_n[Global_seed_idx], lam=lam)

    # ---- Relation 1-hop GCN on Rel_g (msg_rel has no relation factor) ----
    #   e = reduced * lambda_2 + edge_emb[seed] * (1 - lambda_2)
    rel_seed, rel_seed_idx = jnp.unique(
        relation_batch, return_inverse=True, size=B, fill_value=0)
    e = rel_one_hop_gcn(rel_seed, params["edge_W"], K, kr, lam2)

    return n, e[rel_seed_idx]


# ----------------------------------------------------------------------------
if __name__ == "__main__":
    entity_num, time_num, relation_num = 32, 4, 16
    emb_dim = 128
    neighbor_batch_size = 8   # fixed neighbor fan-in K
    batch = 16                # number of seed nodes
    aT_ratio, rel_ratio = 0.4, 0.3

    root = jax.random.PRNGKey(0)
    k_g, k_n, k_e, k_seed, k_rel, k_graph = jax.random.split(root, 6)

    # Deterministic xavier-normal parameter init (shapes from __init__).
    params = {
        "glob_node_W": xavier_normal(k_g, (entity_num, emb_dim)),
        "node_W": xavier_normal(k_n, (entity_num * time_num, emb_dim)),
        "edge_W": xavier_normal(k_e, (relation_num, emb_dim)),
    }

    seed_nodes = jax.random.randint(k_seed, (batch,), 0, entity_num * time_num)
    relation_batch = jax.random.randint(k_rel, (batch,), 0, relation_num)
    lam = jnp.asarray([aT_ratio], jnp.float32)    # self.lambda_
    lam2 = jnp.asarray([rel_ratio], jnp.float32)  # self.lambda_2

    n, e = forward(params, seed_nodes, relation_batch, lam, lam2, k_graph,
                   time_num=time_num, K=neighbor_batch_size)
    jax.block_until_ready((n, e))

    assert n.shape == (batch, emb_dim) and n.dtype == jnp.float32
    assert e.shape == (batch, emb_dim) and e.dtype == jnp.float32
    assert bool(jnp.all(jnp.isfinite(n))) and bool(jnp.all(jnp.isfinite(e)))
    print("KERNEL_OK")
</pallas_src>

<mosaic_0001>
module attributes {stable_mosaic.version = 11 : i64} {
  func.func private @main(%arg0: i32) attributes {dimension_semantics = [#tpu.dimension_semantics<core_parallel>], iteration_bounds = array<i64: 2>, tpu.core_type = #tpu.core_type<sc_scalar_subcore>, window_params = []} {
    return
  }
}

module attributes {stable_mosaic.version = 11 : i64} {
  func.func private @main(%arg0: i32) attributes {dimension_semantics = [#tpu.dimension_semantics<core_parallel>], iteration_bounds = array<i64: 2>, tpu.core_type = #tpu.core_type<sc_scalar_subcore>, window_params = []} {
    return
  }
}

module attributes {stable_mosaic.version = 11 : i64} {
  func.func @_rel_one_hop_kernel(%arg0: i32, %arg1: memref<1xf32, #tpu.memory_space<smem>>, %arg2: memref<128x128xf32, #tpu.memory_space<vmem>>, %arg3: memref<64x1xi32, #tpu.memory_space<vmem>>, %arg4: memref<64x1xf32, #tpu.memory_space<vmem>>, %arg5: memref<8x1xi32, #tpu.memory_space<vmem>>, %arg6: memref<8x128xf32, #tpu.memory_space<vmem>>) attributes {dimension_semantics = [#tpu.dimension_semantics<parallel>], iteration_bounds = array<i64: 2>, scalar_prefetch = 0 : i64, scratch_operands = 0 : i64, tpu.core_type = #tpu.core_type<tc>, window_params = [{transform_indices = @transform_0, window_bounds = array<i64: 1>}, {pipeline_mode = #tpu.pipeline_mode<synchronous>, transform_indices = @transform_1, window_bounds = array<i64: 128, 128>}, {transform_indices = @transform_2, window_bounds = array<i64: 64, 1>}, {transform_indices = @transform_3, window_bounds = array<i64: 64, 1>}, {transform_indices = @transform_4, window_bounds = array<i64: 8, 1>}, {transform_indices = @transform_5, window_bounds = array<i64: 8, 128>}]} {
    %c0 = arith.constant 0 : index
    %c0_0 = arith.constant 0 : index
    %0 = vector.load %arg2[%c0, %c0_0] : memref<128x128xf32, #tpu.memory_space<vmem>>, vector<128x128xf32>
    %c0_1 = arith.constant 0 : index
    %c0_2 = arith.constant 0 : index
    %1 = vector.load %arg3[%c0_1, %c0_2] : memref<64x1xi32, #tpu.memory_space<vmem>>, vector<64x1xi32>
    %c0_3 = arith.constant 0 : index
    %c0_4 = arith.constant 0 : index
    %2 = vector.load %arg4[%c0_3, %c0_4] : memref<64x1xf32, #tpu.memory_space<vmem>>, vector<64x1xf32>
    %3 = tpu.iota {dimensions = array<i32: 1>} : vector<64x128xi32>
    %4 = vector.broadcast %1 : vector<64x1xi32> to vector<64x128xi32>
    %5 = arith.cmpi eq, %4, %3 : vector<64x128xi32>
    %6 = arith.extui %5 : vector<64x128xi1> to vector<64x128xi32>
    %7 = arith.sitofp %6 : vector<64x128xi32> to vector<64x128xf32>
    %8 = vector.broadcast %2 : vector<64x1xf32> to vector<64x128xf32>
    %9 = arith.mulf %7, %8 : vector<64x128xf32>
    %10 = vector.shape_cast %9 : vector<64x128xf32> to vector<8x8x128xf32>
    %cst = arith.constant dense<0.000000e+00> : vector<8x128xf32>
    %11 = vector.multi_reduction <add>, %10, %cst [1] : vector<8x8x128xf32> to vector<8x128xf32>
    %c0_5 = arith.constant 0 : index
    %c0_6 = arith.constant 0 : index
    %12 = vector.load %arg5[%c0_5, %c0_6] : memref<8x1xi32, #tpu.memory_space<vmem>>, vector<8x1xi32>
    %13 = tpu.iota {dimensions = array<i32: 1>} : vector<8x128xi32>
    %14 = vector.broadcast %12 : vector<8x1xi32> to vector<8x128xi32>
    %15 = arith.cmpi eq, %14, %13 : vector<8x128xi32>
    %16 = arith.extui %15 : vector<8x128xi1> to vector<8x128xi32>
    %17 = arith.sitofp %16 : vector<8x128xi32> to vector<8x128xf32>
    %c0_7 = arith.constant 0 : index
    %18 = memref.load %arg1[%c0_7] : memref<1xf32, #tpu.memory_space<smem>>
    %19 = vector.broadcast %18 : f32 to vector<8x128xf32>
    %20 = arith.mulf %11, %19 : vector<8x128xf32>
    %cst_8 = arith.constant 1.000000e+00 : f32
    %21 = arith.subf %cst_8, %18 : f32
    %22 = vector.broadcast %21 : f32 to vector<8x128xf32>
    %23 = arith.mulf %17, %22 : vector<8x128xf32>
    %24 = arith.addf %20, %23 : vector<8x128xf32>
    %cst_9 = arith.constant dense<0.000000e+00> : vector<8x128xf32>
    %25 = tpu.matmul %24, %0, %cst_9 {dimension_numbers = #tpu.dot_dimension_numbers<[1], [0], [0], [1], [0, 0, 1, 1], [], []>} : vector<8x128xf32>, vector<128x128xf32>, vector<8x128xf32> -> vector<8x128xf32>
    %c0_10 = arith.constant 0 : index
    %c0_11 = arith.constant 0 : index
    %26 = vector.load %arg6[%c0_10, %c0_11] : memref<8x128xf32, #tpu.memory_space<vmem>>, vector<8x128xf32>
    tpu.vector_store %arg6[%c0_10, %c0_11], %25 {strides = array<i32>} : memref<8x128xf32, #tpu.memory_space<vmem>>, vector<8x128xf32>,
    return
  }
  func.func @transform_0(%arg0: i32) -> i32 {
    %c0_i32 = arith.constant 0 : i32
    %c0_i32_0 = arith.constant 0 : i32
    return %c0_i32 : i32
  }
  func.func @transform_1(%arg0: i32) -> (i32, i32) {
    %c0_i32 = arith.constant 0 : i32
    %c0_i32_0 = arith.constant 0 : i32
    %c0_i32_1 = arith.constant 0 : i32
    return %c0_i32, %c0_i32_0 : i32, i32
  }
  func.func @transform_2(%arg0: i32) -> (i32, i32) {
    %c0_i32 = arith.constant 0 : i32
    %c0_i32_0 = arith.constant 0 : i32
    return %arg0, %c0_i32 : i32, i32
  }
  func.func @transform_3(%arg0: i32) -> (i32, i32) {
    %c0_i32 = arith.constant 0 : i32
    %c0_i32_0 = arith.constant 0 : i32
    return %arg0, %c0_i32 : i32, i32
  }
  func.func @transform_4(%arg0: i32) -> (i32, i32) {
    %c0_i32 = arith.constant 0 : i32
    %c0_i32_0 = arith.constant 0 : i32
    return %arg0, %c0_i32 : i32, i32
  }
  func.func @transform_5(%arg0: i32) -> (i32, i32) {
    %c0_i32 = arith.constant 0 : i32
    %c0_i32_0 = arith.constant 0 : i32
    return %arg0, %c0_i32 : i32, i32
  }
}

module attributes {stable_mosaic.version = 11 : i64} {
  func.func @_fused_two_hop_kernel(%arg0: i32, %arg1: memref<1xf32, #tpu.memory_space<smem>>, %arg2: memref<128x128xf32, #tpu.memory_space<vmem>>, %arg3: memref<128x128xf32, #tpu.memory_space<vmem>>, %arg4: memref<512x1xi32, #tpu.memory_space<vmem>>, %arg5: memref<512x1xi32, #tpu.memory_space<vmem>>, %arg6: memref<512x1xf32, #tpu.memory_space<vmem>>, %arg7: memref<64x1xi32, #tpu.memory_space<vmem>>, %arg8: memref<64x1xi32, #tpu.memory_space<vmem>>, %arg9: memref<64x1xf32, #tpu.memory_space<vmem>>, %arg10: memref<8x1xi32, #tpu.memory_space<vmem>>, %arg11: memref<8x128xf32, #tpu.memory_space<vmem>>, %arg12: memref<8x128xf32, #tpu.memory_space<vmem>>) attributes {dimension_semantics = [#tpu.dimension_semantics<parallel>], iteration_bounds = array<i64: 2>, scalar_prefetch = 0 : i64, scratch_operands = 0 : i64, tpu.core_type = #tpu.core_type<tc>, window_params = [{transform_indices = @transform_0, window_bounds = array<i64: 1>}, {pipeline_mode = #tpu.pipeline_mode<synchronous>, transform_indices = @transform_1, window_bounds = array<i64: 128, 128>}, {pipeline_mode = #tpu.pipeline_mode<synchronous>, transform_indices = @transform_2, window_bounds = array<i64: 128, 128>}, {transform_indices = @transform_3, window_bounds = array<i64: 512, 1>}, {transform_indices = @transform_4, window_bounds = array<i64: 512, 1>}, {transform_indices = @transform_5, window_bounds = array<i64: 512, 1>}, {transform_indices = @transform_6, window_bounds = array<i64: 64, 1>}, {transform_indices = @transform_7, window_bounds = array<i64: 64, 1>}, {transform_indices = @transform_8, window_bounds = array<i64: 64, 1>}, {transform_indices = @transform_9, window_bounds = array<i64: 8, 1>}, {transform_indices = @transform_10, window_bounds = array<i64: 8, 128>}, {transform_indices = @transform_11, window_bounds = array<i64: 8, 128>}]} {
    %c0 = arith.constant 0 : index
    %c0_0 = arith.constant 0 : index
    %0 = vector.load %arg2[%c0, %c0_0] : memref<128x128xf32, #tpu.memory_space<vmem>>, vector<128x128xf32>
    %c0_1 = arith.constant 0 : index
    %c0_2 = arith.constant 0 : index
    %1 = vector.load %arg3[%c0_1, %c0_2] : memref<128x128xf32, #tpu.memory_space<vmem>>, vector<128x128xf32>
    %c0_3 = arith.constant 0 : index
    %c0_4 = arith.constant 0 : index
    %2 = vector.load %arg4[%c0_3, %c0_4] : memref<512x1xi32, #tpu.memory_space<vmem>>, vector<512x1xi32>
    %c0_5 = arith.constant 0 : index
    %c0_6 = arith.constant 0 : index
    %3 = vector.load %arg6[%c0_5, %c0_6] : memref<512x1xf32, #tpu.memory_space<vmem>>, vector<512x1xf32>
    %4 = tpu.iota {dimensions = array<i32: 1>} : vector<512x128xi32>
    %5 = vector.broadcast %2 : vector<512x1xi32> to vector<512x128xi32>
    %6 = arith.cmpi eq, %5, %4 : vector<512x128xi32>
    %7 = arith.extui %6 : vector<512x128xi1> to vector<512x128xi32>
    %8 = arith.sitofp %7 : vector<512x128xi32> to vector<512x128xf32>
    %9 = vector.broadcast %3 : vector<512x1xf32> to vector<512x128xf32>
    %10 = arith.mulf %8, %9 : vector<512x128xf32>
    %cst = arith.constant dense<0.000000e+00> : vector<512x128xf32>
    %11 = tpu.matmul %10, %0, %cst {dimension_numbers = #tpu.dot_dimension_numbers<[1], [0], [0], [1], [0, 0, 1, 1], [], []>} : vector<512x128xf32>, vector<128x128xf32>, vector<512x128xf32> -> vector<512x128xf32>
    %c0_7 = arith.constant 0 : index
    %c0_8 = arith.constant 0 : index
    %12 = vector.load %arg5[%c0_7, %c0_8] : memref<512x1xi32, #tpu.memory_space<vmem>>, vector<512x1xi32>
    %13 = tpu.iota {dimensions = array<i32: 1>} : vector<512x128xi32>
    %14 = vector.broadcast %12 : vector<512x1xi32> to vector<512x128xi32>
    %15 = arith.cmpi eq, %14, %13 : vector<512x128xi32>
    %16 = arith.extui %15 : vector<512x128xi1> to vector<512x128xi32>
    %17 = arith.sitofp %16 : vector<512x128xi32> to vector<512x128xf32>
    %cst_9 = arith.constant dense<0.000000e+00> : vector<512x128xf32>
    %18 = tpu.matmul %17, %1, %cst_9 {dimension_numbers = #tpu.dot_dimension_numbers<[1], [0], [0], [1], [0, 0, 1, 1], [], []>} : vector<512x128xf32>, vector<128x128xf32>, vector<512x128xf32> -> vector<512x128xf32>
    %19 = arith.mulf %11, %18 : vector<512x128xf32>
    %20 = vector.shape_cast %19 : vector<512x128xf32> to vector<64x8x128xf32>
    %cst_10 = arith.constant dense<0.000000e+00> : vector<64x128xf32>
    %21 = vector.multi_reduction <add>, %20, %cst_10 [1] : vector<64x8x128xf32> to vector<64x128xf32>
    %c0_11 = arith.constant 0 : index
    %c0_12 = arith.constant 0 : index
    %22 = vector.load %arg7[%c0_11, %c0_12] : memref<64x1xi32, #tpu.memory_space<vmem>>, vector<64x1xi32>
    %23 = tpu.iota {dimensions = array<i32: 1>} : vector<64x128xi32>
    %24 = vector.broadcast %22 : vector<64x1xi32> to vector<64x128xi32>
    %25 = arith.cmpi eq, %24, %23 : vector<64x128xi32>
    %26 = arith.extui %25 : vector<64x128xi1> to vector<64x128xi32>
    %27 = arith.sitofp %26 : vector<64x128xi32> to vector<64x128xf32>
    %cst_13 = arith.constant dense<0.000000e+00> : vector<64x128xf32>
    %28 = tpu.matmul %27, %0, %cst_13 {dimension_numbers = #tpu.dot_dimension_numbers<[1], [0], [0], [1], [0, 0, 1, 1], [], []>} : vector<64x128xf32>, vector<128x128xf32>, vector<64x128xf32> -> vector<64x128xf32>
    %29 = arith.addf %21, %28 : vector<64x128xf32>
    %c0_14 = arith.constant 0 : index
    %c0_15 = arith.constant 0 : index
    %30 = vector.load %arg8[%c0_14, %c0_15] : memref<64x1xi32, #tpu.memory_space<vmem>>, vector<64x1xi32>
    %31 = tpu.iota {dimensions = array<i32: 1>} : vector<64x128xi32>
    %32 = vector.broadcast %30 : vector<64x1xi32> to vector<64x128xi32>
    %33 = arith.cmpi eq, %32, %31 : vector<64x128xi32>
    %34 = arith.extui %33 : vector<64x128xi1> to vector<64x128xi32>
    %35 = arith.sitofp %34 : vector<64x128xi32> to vector<64x128xf32>
    %cst_16 = arith.constant dense<0.000000e+00> : vector<64x128xf32>
    %36 = tpu.matmul %35, %1, %cst_16 {dimension_numbers = #tpu.dot_dimension_numbers<[1], [0], [0], [1], [0, 0, 1, 1], [], []>} : vector<64x128xf32>, vector<128x128xf32>, vector<64x128xf32> -> vector<64x128xf32>
    %37 = arith.mulf %29, %36 : vector<64x128xf32>
    %c0_17 = arith.constant 0 : index
    %c0_18 = arith.constant 0 : index
    %38 = vector.load %arg9[%c0_17, %c0_18] : memref<64x1xf32, #tpu.memory_space<vmem>>, vector<64x1xf32>
    %39 = vector.broadcast %38 : vector<64x1xf32> to vector<64x128xf32>
    %40 = arith.mulf %37, %39 : vector<64x128xf32>
    %41 = vector.shape_cast %40 : vector<64x128xf32> to vector<8x8x128xf32>
    %cst_19 = arith.constant dense<0.000000e+00> : vector<8x128xf32>
    %42 = vector.multi_reduction <add>, %41, %cst_19 [1] : vector<8x8x128xf32> to vector<8x128xf32>
    %c0_20 = arith.constant 0 : index
    %c0_21 = arith.constant 0 : index
    %43 = vector.load %arg10[%c0_20, %c0_21] : memref<8x1xi32, #tpu.memory_space<vmem>>, vector<8x1xi32>
    %44 = tpu.iota {dimensions = array<i32: 1>} : vector<8x128xi32>
    %45 = vector.broadcast %43 : vector<8x1xi32> to vector<8x128xi32>
    %46 = arith.cmpi eq, %45, %44 : vector<8x128xi32>
    %47 = arith.extui %46 : vector<8x128xi1> to vector<8x128xi32>
    %48 = arith.sitofp %47 : vector<8x128xi32> to vector<8x128xf32>
    %cst_22 = arith.constant dense<0.000000e+00> : vector<8x128xf32>
    %49 = tpu.matmul %48, %0, %cst_22 {dimension_numbers = #tpu.dot_dimension_numbers<[1], [0], [0], [1], [0, 0, 1, 1], [], []>} : vector<8x128xf32>, vector<128x128xf32>, vector<8x128xf32> -> vector<8x128xf32>
    %c0_23 = arith.constant 0 : index
    %50 = memref.load %arg1[%c0_23] : memref<1xf32, #tpu.memory_space<smem>>
    %c0_24 = arith.constant 0 : index
    %c0_25 = arith.constant 0 : index
    %51 = vector.load %arg11[%c0_24, %c0_25] : memref<8x128xf32, #tpu.memory_space<vmem>>, vector<8x128xf32>
    %52 = vector.broadcast %50 : f32 to vector<8x128xf32>
    %53 = arith.mulf %51, %52 : vector<8x128xf32>
    %54 = arith.addf %42, %49 : vector<8x128xf32>
    %cst_26 = arith.constant 1.000000e+00 : f32
    %55 = arith.subf %cst_26, %50 : f32
    %56 = vector.broadcast %55 : f32 to vector<8x128xf32>
    %57 = arith.mulf %54, %56 : vector<8x128xf32>
    %58 = arith.addf %53, %57 : vector<8x128xf32>
    %c0_27 = arith.constant 0 : index
    %c0_28 = arith.constant 0 : index
    %59 = vector.load %arg12[%c0_27, %c0_28] : memref<8x128xf32, #tpu.memory_space<vmem>>, vector<8x128xf32>
    tpu.vector_store %arg12[%c0_27, %c0_28], %58 {strides = array<i32>} : memref<8x128xf32, #tpu.memory_space<vmem>>, vector<8x128xf32>,
    return
  }
  func.func @transform_0(%arg0: i32) -> i32 {
    %c0_i32 = arith.constant 0 : i32
    %c0_i32_0 = arith.constant 0 : i32
    return %c0_i32 : i32
  }
  func.func @transform_1(%arg0: i32) -> (i32, i32) {
    %c0_i32 = arith.constant 0 : i32
    %c0_i32_0 = arith.constant 0 : i32
    %c0_i32_1 = arith.constant 0 : i32
    return %c0_i32, %c0_i32_0 : i32, i32
  }
  func.func @transform_2(%arg0: i32) -> (i32, i32) {
    %c0_i32 = arith.constant 0 : i32
    %c0_i32_0 = arith.constant 0 : i32
    %c0_i32_1 = arith.constant 0 : i32
    return %c0_i32, %c0_i32_0 : i32, i32
  }
  func.func @transform_3(%arg0: i32) -> (i32, i32) {
    %c0_i32 = arith.constant 0 : i32
    %c0_i32_0 = arith.constant 0 : i32
    return %arg0, %c0_i32 : i32, i32
  }
  func.func @transform_4(%arg0: i32) -> (i32, i32) {
    %c0_i32 = arith.constant 0 : i32
    %c0_i32_0 = arith.constant 0 : i32
    return %arg0, %c0_i32 : i32, i32
  }
  func.func @transform_5(%arg0: i32) -> (i32, i32) {
    %c0_i32 = arith.constant 0 : i32
    %c0_i32_0 = arith.constant 0 : i32
    return %arg0, %c0_i32 : i32, i32
  }
  func.func @transform_6(%arg0: i32) -> (i32, i32) {
    %c0_i32 = arith.constant 0 : i32
    %c0_i32_0 = arith.constant 0 : i32
    return %arg0, %c0_i32 : i32, i32
  }
  func.func @transform_7(%arg0: i32) -> (i32, i32) {
    %c0_i32 = arith.constant 0 : i32
    %c0_i32_0 = arith.constant 0 : i32
    return %arg0, %c0_i32 : i32, i32
  }
  func.func @transform_8(%arg0: i32) -> (i32, i32) {
    %c0_i32 = arith.constant 0 : i32
    %c0_i32_0 = arith.constant 0 : i32
    return %arg0, %c0_i32 : i32, i32
  }
  func.func @transform_9(%arg0: i32) -> (i32, i32) {
    %c0_i32 = arith.constant 0 : i32
    %c0_i32_0 = arith.constant 0 : i32
    return %arg0, %c0_i32 : i32, i32
  }
  func.func @transform_10(%arg0: i32) -> (i32, i32) {
    %c0_i32 = arith.constant 0 : i32
    %c0_i32_0 = arith.constant 0 : i32
    return %arg0, %c0_i32 : i32, i32
  }
  func.func @transform_11(%arg0: i32) -> (i32, i32) {
    %c0_i32 = arith.constant 0 : i32
    %c0_i32_0 = arith.constant 0 : i32
    return %arg0, %c0_i32 : i32, i32
  }
}

module attributes {stable_mosaic.version = 11 : i64} {
  func.func @_fused_two_hop_kernel(%arg0: i32, %arg1: memref<1xf32, #tpu.memory_space<smem>>, %arg2: memref<128x128xf32, #tpu.memory_space<vmem>>, %arg3: memref<128x128xf32, #tpu.memory_space<vmem>>, %arg4: memref<512x1xi32, #tpu.memory_space<vmem>>, %arg5: memref<512x1xi32, #tpu.memory_space<vmem>>, %arg6: memref<512x1xf32, #tpu.memory_space<vmem>>, %arg7: memref<64x1xi32, #tpu.memory_space<vmem>>, %arg8: memref<64x1xi32, #tpu.memory_space<vmem>>, %arg9: memref<64x1xf32, #tpu.memory_space<vmem>>, %arg10: memref<8x1xi32, #tpu.memory_space<vmem>>, %arg11: memref<8x128xf32, #tpu.memory_space<vmem>>, %arg12: memref<8x128xf32, #tpu.memory_space<vmem>>) attributes {dimension_semantics = [#tpu.dimension_semantics<parallel>], iteration_bounds = array<i64: 2>, scalar_prefetch = 0 : i64, scratch_operands = 0 : i64, tpu.core_type = #tpu.core_type<tc>, window_params = [{transform_indices = @transform_0, window_bounds = array<i64: 1>}, {pipeline_mode = #tpu.pipeline_mode<synchronous>, transform_indices = @transform_1, window_bounds = array<i64: 128, 128>}, {pipeline_mode = #tpu.pipeline_mode<synchronous>, transform_indices = @transform_2, window_bounds = array<i64: 128, 128>}, {transform_indices = @transform_3, window_bounds = array<i64: 512, 1>}, {transform_indices = @transform_4, window_bounds = array<i64: 512, 1>}, {transform_indices = @transform_5, window_bounds = array<i64: 512, 1>}, {transform_indices = @transform_6, window_bounds = array<i64: 64, 1>}, {transform_indices = @transform_7, window_bounds = array<i64: 64, 1>}, {transform_indices = @transform_8, window_bounds = array<i64: 64, 1>}, {transform_indices = @transform_9, window_bounds = array<i64: 8, 1>}, {transform_indices = @transform_10, window_bounds = array<i64: 8, 128>}, {transform_indices = @transform_11, window_bounds = array<i64: 8, 128>}]} {
    %c0 = arith.constant 0 : index
    %c0_0 = arith.constant 0 : index
    %0 = vector.load %arg2[%c0, %c0_0] : memref<128x128xf32, #tpu.memory_space<vmem>>, vector<128x128xf32>
    %c0_1 = arith.constant 0 : index
    %c0_2 = arith.constant 0 : index
    %1 = vector.load %arg3[%c0_1, %c0_2] : memref<128x128xf32, #tpu.memory_space<vmem>>, vector<128x128xf32>
    %c0_3 = arith.constant 0 : index
    %c0_4 = arith.constant 0 : index
    %2 = vector.load %arg4[%c0_3, %c0_4] : memref<512x1xi32, #tpu.memory_space<vmem>>, vector<512x1xi32>
    %c0_5 = arith.constant 0 : index
    %c0_6 = arith.constant 0 : index
    %3 = vector.load %arg6[%c0_5, %c0_6] : memref<512x1xf32, #tpu.memory_space<vmem>>, vector<512x1xf32>
    %4 = tpu.iota {dimensions = array<i32: 1>} : vector<512x128xi32>
    %5 = vector.broadcast %2 : vector<512x1xi32> to vector<512x128xi32>
    %6 = arith.cmpi eq, %5, %4 : vector<512x128xi32>
    %7 = arith.extui %6 : vector<512x128xi1> to vector<512x128xi32>
    %8 = arith.sitofp %7 : vector<512x128xi32> to vector<512x128xf32>
    %9 = vector.broadcast %3 : vector<512x1xf32> to vector<512x128xf32>
    %10 = arith.mulf %8, %9 : vector<512x128xf32>
    %cst = arith.constant dense<0.000000e+00> : vector<512x128xf32>
    %11 = tpu.matmul %10, %0, %cst {dimension_numbers = #tpu.dot_dimension_numbers<[1], [0], [0], [1], [0, 0, 1, 1], [], []>} : vector<512x128xf32>, vector<128x128xf32>, vector<512x128xf32> -> vector<512x128xf32>
    %c0_7 = arith.constant 0 : index
    %c0_8 = arith.constant 0 : index
    %12 = vector.load %arg5[%c0_7, %c0_8] : memref<512x1xi32, #tpu.memory_space<vmem>>, vector<512x1xi32>
    %13 = tpu.iota {dimensions = array<i32: 1>} : vector<512x128xi32>
    %14 = vector.broadcast %12 : vector<512x1xi32> to vector<512x128xi32>
    %15 = arith.cmpi eq, %14, %13 : vector<512x128xi32>
    %16 = arith.extui %15 : vector<512x128xi1> to vector<512x128xi32>
    %17 = arith.sitofp %16 : vector<512x128xi32> to vector<512x128xf32>
    %cst_9 = arith.constant dense<0.000000e+00> : vector<512x128xf32>
    %18 = tpu.matmul %17, %1, %cst_9 {dimension_numbers = #tpu.dot_dimension_numbers<[1], [0], [0], [1], [0, 0, 1, 1], [], []>} : vector<512x128xf32>, vector<128x128xf32>, vector<512x128xf32> -> vector<512x128xf32>
    %19 = arith.mulf %11, %18 : vector<512x128xf32>
    %20 = vector.shape_cast %19 : vector<512x128xf32> to vector<64x8x128xf32>
    %cst_10 = arith.constant dense<0.000000e+00> : vector<64x128xf32>
    %21 = vector.multi_reduction <add>, %20, %cst_10 [1] : vector<64x8x128xf32> to vector<64x128xf32>
    %c0_11 = arith.constant 0 : index
    %c0_12 = arith.constant 0 : index
    %22 = vector.load %arg7[%c0_11, %c0_12] : memref<64x1xi32, #tpu.memory_space<vmem>>, vector<64x1xi32>
    %23 = tpu.iota {dimensions = array<i32: 1>} : vector<64x128xi32>
    %24 = vector.broadcast %22 : vector<64x1xi32> to vector<64x128xi32>
    %25 = arith.cmpi eq, %24, %23 : vector<64x128xi32>
    %26 = arith.extui %25 : vector<64x128xi1> to vector<64x128xi32>
    %27 = arith.sitofp %26 : vector<64x128xi32> to vector<64x128xf32>
    %cst_13 = arith.constant dense<0.000000e+00> : vector<64x128xf32>
    %28 = tpu.matmul %27, %0, %cst_13 {dimension_numbers = #tpu.dot_dimension_numbers<[1], [0], [0], [1], [0, 0, 1, 1], [], []>} : vector<64x128xf32>, vector<128x128xf32>, vector<64x128xf32> -> vector<64x128xf32>
    %29 = arith.addf %21, %28 : vector<64x128xf32>
    %c0_14 = arith.constant 0 : index
    %c0_15 = arith.constant 0 : index
    %30 = vector.load %arg8[%c0_14, %c0_15] : memref<64x1xi32, #tpu.memory_space<vmem>>, vector<64x1xi32>
    %31 = tpu.iota {dimensions = array<i32: 1>} : vector<64x128xi32>
    %32 = vector.broadcast %30 : vector<64x1xi32> to vector<64x128xi32>
    %33 = arith.cmpi eq, %32, %31 : vector<64x128xi32>
    %34 = arith.extui %33 : vector<64x128xi1> to vector<64x128xi32>
    %35 = arith.sitofp %34 : vector<64x128xi32> to vector<64x128xf32>
    %cst_16 = arith.constant dense<0.000000e+00> : vector<64x128xf32>
    %36 = tpu.matmul %35, %1, %cst_16 {dimension_numbers = #tpu.dot_dimension_numbers<[1], [0], [0], [1], [0, 0, 1, 1], [], []>} : vector<64x128xf32>, vector<128x128xf32>, vector<64x128xf32> -> vector<64x128xf32>
    %37 = arith.mulf %29, %36 : vector<64x128xf32>
    %c0_17 = arith.constant 0 : index
    %c0_18 = arith.constant 0 : index
    %38 = vector.load %arg9[%c0_17, %c0_18] : memref<64x1xf32, #tpu.memory_space<vmem>>, vector<64x1xf32>
    %39 = vector.broadcast %38 : vector<64x1xf32> to vector<64x128xf32>
    %40 = arith.mulf %37, %39 : vector<64x128xf32>
    %41 = vector.shape_cast %40 : vector<64x128xf32> to vector<8x8x128xf32>
    %cst_19 = arith.constant dense<0.000000e+00> : vector<8x128xf32>
    %42 = vector.multi_reduction <add>, %41, %cst_19 [1] : vector<8x8x128xf32> to vector<8x128xf32>
    %c0_20 = arith.constant 0 : index
    %c0_21 = arith.constant 0 : index
    %43 = vector.load %arg10[%c0_20, %c0_21] : memref<8x1xi32, #tpu.memory_space<vmem>>, vector<8x1xi32>
    %44 = tpu.iota {dimensions = array<i32: 1>} : vector<8x128xi32>
    %45 = vector.broadcast %43 : vector<8x1xi32> to vector<8x128xi32>
    %46 = arith.cmpi eq, %45, %44 : vector<8x128xi32>
    %47 = arith.extui %46 : vector<8x128xi1> to vector<8x128xi32>
    %48 = arith.sitofp %47 : vector<8x128xi32> to vector<8x128xf32>
    %cst_22 = arith.constant dense<0.000000e+00> : vector<8x128xf32>
    %49 = tpu.matmul %48, %0, %cst_22 {dimension_numbers = #tpu.dot_dimension_numbers<[1], [0], [0], [1], [0, 0, 1, 1], [], []>} : vector<8x128xf32>, vector<128x128xf32>, vector<8x128xf32> -> vector<8x128xf32>
    %c0_23 = arith.constant 0 : index
    %50 = memref.load %arg1[%c0_23] : memref<1xf32, #tpu.memory_space<smem>>
    %c0_24 = arith.constant 0 : index
    %c0_25 = arith.constant 0 : index
    %51 = vector.load %arg11[%c0_24, %c0_25] : memref<8x128xf32, #tpu.memory_space<vmem>>, vector<8x128xf32>
    %52 = vector.broadcast %50 : f32 to vector<8x128xf32>
    %53 = arith.mulf %51, %52 : vector<8x128xf32>
    %54 = arith.addf %42, %49 : vector<8x128xf32>
    %cst_26 = arith.constant 1.000000e+00 : f32
    %55 = arith.subf %cst_26, %50 : f32
    %56 = vector.broadcast %55 : f32 to vector<8x128xf32>
    %57 = arith.mulf %54, %56 : vector<8x128xf32>
    %58 = arith.addf %53, %57 : vector<8x128xf32>
    %c0_27 = arith.constant 0 : index
    %c0_28 = arith.constant 0 : index
    %59 = vector.load %arg12[%c0_27, %c0_28] : memref<8x128xf32, #tpu.memory_space<vmem>>, vector<8x128xf32>
    tpu.vector_store %arg12[%c0_27, %c0_28], %58 {strides = array<i32>} : memref<8x128xf32, #tpu.memory_space<vmem>>, vector<8x128xf32>,
    return
  }
  func.func @transform_0(%arg0: i32) -> i32 {
    %c0_i32 = arith.constant 0 : i32
    %c0_i32_0 = arith.constant 0 : i32
    return %c0_i32 : i32
  }
  func.func @transform_1(%arg0: i32) -> (i32, i32) {
    %c0_i32 = arith.constant 0 : i32
    %c0_i32_0 = arith.constant 0 : i32
    %c0_i32_1 = arith.constant 0 : i32
    return %c0_i32, %c0_i32_0 : i32, i32
  }
  func.func @transform_2(%arg0: i32) -> (i32, i32) {
    %c0_i32 = arith.constant 0 : i32
    %c0_i32_0 = arith.constant 0 : i32
    %c0_i32_1 = arith.constant 0 : i32
    return %c0_i32, %c0_i32_0 : i32, i32
  }
  func.func @transform_3(%arg0: i32) -> (i32, i32) {
    %c0_i32 = arith.constant 0 : i32
    %c0_i32_0 = arith.constant 0 : i32
    return %arg0, %c0_i32 : i32, i32
  }
  func.func @transform_4(%arg0: i32) -> (i32, i32) {
    %c0_i32 = arith.constant 0 : i32
    %c0_i32_0 = arith.constant 0 : i32
    return %arg0, %c0_i32 : i32, i32
  }
  func.func @transform_5(%arg0: i32) -> (i32, i32) {
    %c0_i32 = arith.constant 0 : i32
    %c0_i32_0 = arith.constant 0 : i32
    return %arg0, %c0_i32 : i32, i32
  }
  func.func @transform_6(%arg0: i32) -> (i32, i32) {
    %c0_i32 = arith.constant 0 : i32
    %c0_i32_0 = arith.constant 0 : i32
    return %arg0, %c0_i32 : i32, i32
  }
  func.func @transform_7(%arg0: i32) -> (i32, i32) {
    %c0_i32 = arith.constant 0 : i32
    %c0_i32_0 = arith.constant 0 : i32
    return %arg0, %c0_i32 : i32, i32
  }
  func.func @transform_8(%arg0: i32) -> (i32, i32) {
    %c0_i32 = arith.constant 0 : i32
    %c0_i32_0 = arith.constant 0 : i32
    return %arg0, %c0_i32 : i32, i32
  }
  func.func @transform_9(%arg0: i32) -> (i32, i32) {
    %c0_i32 = arith.constant 0 : i32
    %c0_i32_0 = arith.constant 0 : i32
    return %arg0, %c0_i32 : i32, i32
  }
  func.func @transform_10(%arg0: i32) -> (i32, i32) {
    %c0_i32 = arith.constant 0 : i32
    %c0_i32_0 = arith.constant 0 : i32
    return %arg0, %c0_i32 : i32, i32
  }
  func.func @transform_11(%arg0: i32) -> (i32, i32) {
    %c0_i32 = arith.constant 0 : i32
    %c0_i32_0 = arith.constant 0 : i32
    return %arg0, %c0_i32 : i32, i32
  }
}

</mosaic_0001>

<bundles_post_ra>
// kernel: forward.7
= control target key start
LH: loop header
LB: loop body
LE: loop exit
PB: predicated region body
PF: predicated region fallthrough
CT: control target
= control target key end

     0   :  { %s822_s20 = smov 0   ;;  %s953_s0 = inlined_call_operand.<no memory space> [shape: f32[1], index: 0, kind: input, shape index: {}]   ;;  %s954_s1 = inlined_call_operand.vmem [shape: f32[128,128], index: 1, kind: input, shape index: {}]   ;;  %s955_s2 = inlined_call_operand.vmem [shape: s32[128,1], index: 2, kind: input, shape index: {}]   ;;  %s956_s3 = inlined_call_operand.vmem [shape: f32[128,1], index: 3, kind: input, shape index: {}]   ;;  %s957_s4 = inlined_call_operand.vmem [shape: s32[16,1], index: 4, kind: input, shape index: {}]   ;;  %s958_s5 = inlined_call_operand.vmem [shape: f32[16,128], index: 5, kind: output, shape index: {}]  }
   0x1   :  { %10 = sst [smem:[#allocation2]] %s953_s0 }
   0x2 LB: > { %s828_s21 = sadd.s32 4294967295, %s783_s20   ;;  %p669_p0 = scmp.ge.s32.totalorder %s783_s20, 1  ;;  %s783_s20 = sphi %s822_s20, %s16_s20  }
   0x3   : > { %p209_p1 = scmp.lt.s32.totalorder %s783_s20, 3 }
   0x5   : > { %p210_p2 = pnand %p669_p0, %p209_p1 }
   0x6   : > { %s670_s22 = sshll.u32 (!%p210_p2), %s828_s21, 3  ;;  %v785_v0 = vmov (!%p210_p2), 0   ;;  %p257_p4 = scmp.lt.s32.totalorder (!%p210_p2), %s828_s21, 1  ;;  %v265_v11 = vld [vmem:[%s954_s1] sm:$0xff] (!%p210_p2)  ;;  %v266_v12 = vld [vmem:[%s954_s1 + $0x8] sm:$0xff] (!%p210_p2)  ;;  %v786_v16 = vmov (!%p210_p2), 0.0|0.0   ;;  %v297_v44 = vlaneseq (!%p210_p2) }
   0x7   : > { %213 = sbr.rel (%p210_p2) target bundleno = 409 (0x199), region = 40  ;;  %776 = vset.pattern.permute.xlu1 (!%p210_p2), %v785_v0  ;;  %775 = vset.pattern.permute.xlu0 (!%p210_p2), %v785_v0  ;;  %p246_p3 = scmp.lt.s32.totalorder (!%p210_p2), %s670_s22, 15  ;;  %v740_v15 = vpack.c.bf16 (!%p210_p2), %v266_v12, %v265_v11  ;;  %v267_v19 = vld [vmem:[%s954_s1 + $0x10] sm:$0xff] (!%p210_p2)  ;;  %v268_v20 = vld [vmem:[%s954_s1 + $0x18] sm:$0xff] (!%p210_p2)  ;;  %v269_v24 = vld [vmem:[%s954_s1 + $0x20] sm:$0xff] (!%p210_p2)  ;;  %vm787_vm0 = vmmov (!%p210_p2), 0  }
   0x8   : > { %739 = vmatprep.subr.bf16.mxu0 (!%p210_p2), %v786_v16  ;;  %v743_v21 = vpack.c.bf16 (!%p210_p2), %v268_v20, %v267_v19  ;;  %v270_v25 = vld [vmem:[%s954_s1 + $0x28] sm:$0xff] (!%p210_p2)  ;;  %v271_v28 = vld [vmem:[%s954_s1 + $0x30] sm:$0xff] (!%p210_p2)  ;;  %v272_v29 = vld [vmem:[%s954_s1 + $0x38] sm:$0xff] (!%p210_p2)  ;;  %v788_v42 = vmov (!%p210_p2), 0.0   ;;  %v918_v47 = vand.u32 (!%p210_p2), 127, %v297_v44  ;;  %s929_s17 = sld [smem:[#allocation2]] (!%p210_p2) }
   0x9   : > { %741 = vmatpush3.bf16.msra.mxu0 (!%p210_p2), %v740_v15  ;;  %v746_v26 = vpack.c.bf16 (!%p210_p2), %v270_v25, %v269_v24  ;;  %v749_v30 = vpack.c.bf16 (!%p210_p2), %v272_v29, %v271_v28  ;;  %v273_v31 = vld [vmem:[%s954_s1 + $0x40] sm:$0xff] (!%p210_p2)  ;;  %v274_v32 = vld [vmem:[%s954_s1 + $0x48] sm:$0xff] (!%p210_p2)  ;;  %v275_v34 = vld [vmem:[%s954_s1 + $0x50] sm:$0xff] (!%p210_p2)  ;;  %736 = vmatprep.mubr.msk.f32.mxu0 (!%p210_p2), %vm787_vm0, %v788_v42  ;;  %vm496_vm10 = vcmask (!%p210_p2), 1041409   ;;  %vm499_vm11 = vcmask (!%p210_p2), 1042434  }
   0xa   : > { %742 = vmatprep.subr.bf16.mxu0 (!%p210_p2), %v786_v16  ;;  %v752_v33 = vpack.c.bf16 (!%p210_p2), %v274_v32, %v273_v31  ;;  %v276_v35 = vld [vmem:[%s954_s1 + $0x58] sm:$0xff] (!%p210_p2)  ;;  %v277_v37 = vld [vmem:[%s954_s1 + $0x60] sm:$0xff] (!%p210_p2)  ;;  %v278_v38 = vld [vmem:[%s954_s1 + $0x68] sm:$0xff] (!%p210_p2)  ;;  %vm502_vm12 = vcmask (!%p210_p2), 1043459   ;;  %vm505_vm13 = vcmask (!%p210_p2), 1044484   ;;  %vm508_vm14 = vcmask (!%p210_p2), 1045509  }
   0xb   : > { %v755_v36 = vpack.c.bf16 (!%p210_p2), %v276_v35, %v275_v34  ;;  %v279_v39 = vld [vmem:[%s954_s1 + $0x70] sm:$0xff] (!%p210_p2)  ;;  %v758_v40 = vpack.c.bf16 (!%p210_p2), %v278_v38, %v277_v37  ;;  %v280_v41 = vld [vmem:[%s954_s1 + $0x78] sm:$0xff] (!%p210_p2)  ;;  %vm511_vm15 = vcmask (!%p210_p2), 1046534   ;;  %vm514_vm0 = vcmask (!%p210_p2), 1047559  }
   0xc   : > { %v761_v43 = vpack.c.bf16 (!%p210_p2), %v280_v41, %v279_v39 }
   0xd   : > { %744 = vmatpush3.bf16.msra.mxu0 (!%p210_p2), %v743_v21 }
   0xe   : > { %s960_s22 = smov (!%p246_p3, %s670_s22), 15  ;;  %s962_s21 = smov (!%p257_p4, %s828_s21), 1  ;;  %745 = vmatprep.subr.bf16.mxu0 %v786_v16 }
   0xf   : > { %s671_s0 = sshll.u32 %s960_s22, 3  ;;  %s674_s12 = sshll.u32 %s962_s21, 3 }
  0x10   : > { %s836_s25 = scalar_lea.vmem %s955_s2, %s671_s0  ;;  %s845_s28 = scalar_lea.vmem %s956_s3, %s671_s0 }
  0x11   : > { %v282_v1 = vld [vmem:[%s836_s25 + $0x8] sm:$0xff]  ;;  %v281_v2 = vld [vmem:[%s836_s25] sm:$0xff]  ;;  %v283_v3 = vld [vmem:[%s836_s25 + $0x10] sm:$0xff]  ;;  %s260_s19 = scalar_lea.vmem %s957_s4, %s674_s12  ;;  %747 = vmatpush3.bf16.msra.mxu0 %v746_v26  ;;  %s460_s18 = ssub.f32 1.0, %s929_s17 }
  0x12   : > { %303 = vperm.xlu0 %775, %v282_v1   ;;  %300 = vperm.xlu1 %776, %v281_v2   ;;  %v284_v4 = vld [vmem:[%s836_s25 + $0x18] sm:$0xff]  ;;  %v290_v5 = vld [vmem:[%s845_s28 + $0x8] sm:$0xff]  ;;  %v285_v6 = vld [vmem:[%s836_s25 + $0x20] sm:$0xff]  ;;  %s264_s0 = scalar_lea.vmem %s958_s5, %s674_s12 }
  0x13   : > { %v291_v7 = vld [vmem:[%s845_s28 + $0x10] sm:$0xff]  ;;  %v286_v8 = vld [vmem:[%s836_s25 + $0x28] sm:$0xff]  ;;  %v289_v9 = vld [vmem:[%s845_s28] sm:$0xff]  ;;  %748 = vmatprep.subr.bf16.mxu0 %v786_v16  ;;  %v461_v44 = vstv %s460_s18 }
  0x14   : > { %v292_v10 = vld [vmem:[%s845_s28 + $0x18] sm:$0xff]  ;;  %v287_v13 = vld [vmem:[%s836_s25 + $0x30] sm:$0xff]  ;;  %v293_v14 = vld [vmem:[%s845_s28 + $0x20] sm:$0xff] }
  0x15   : > { %v288_v17 = vld [vmem:[%s836_s25 + $0x38] sm:$0xff]  ;;  %v294_v18 = vld [vmem:[%s845_s28 + $0x28] sm:$0xff]  ;;  %v295_v22 = vld [vmem:[%s845_s28 + $0x30] sm:$0xff]  ;;  %750 = vmatpush3.bf16.msra.mxu0 %v749_v30 }
  0x16   : > { %306 = vperm.xlu0 %775, %v283_v3   ;;  %309 = vperm.xlu1 %776, %v284_v4   ;;  %v296_v23 = vld [vmem:[%s845_s28 + $0x38] sm:$0xff]  ;;  %v443_v27 = vld [vmem:[%s260_s19] sm:$0xff] }
  0x17   : > { %751 = vmatprep.subr.bf16.mxu0 %v786_v16 }
  0x19   : > { %753 = vmatpush3.bf16.msra.mxu0 %v752_v33 }
  0x1a   : > { %354 = vperm.xlu0 %775, %v290_v5   ;;  %312 = vperm.xlu1 %776, %v285_v6  }
  0x1b   : > { %754 = vmatprep.subr.bf16.mxu0 %v786_v16 }
  0x1d   : > { %756 = vmatpush3.bf16.msra.mxu0 %v755_v36 }
  0x1e   : > { %359 = vperm.xlu0 %775, %v291_v7   ;;  %315 = vperm.xlu1 %776, %v286_v8  }
  0x1f   : > { %757 = vmatprep.subr.bf16.mxu0 %v786_v16 }
  0x21   : > { %759 = vmatpush3.bf16.msra.mxu0 %v758_v40  ;;  %v451_v40 = vstv %s929_s17 }
  0x22   : > { %349 = vperm.xlu0 %775, %v289_v9   ;;  %364 = vperm.xlu1 %776, %v292_v10  }
  0x23   : > { %760 = vmatprep.subr.bf16.mxu0 %v786_v16 }
  0x25   : > { %762 = vmatpush3.bf16.msra.mxu0 %v761_v43 }
  0x26   : > { %318 = vperm.xlu0 %775, %v287_v13   ;;  %369 = vperm.xlu1 %776, %v293_v14  }
  0x2a   : > { %321 = vperm.xlu0 %775, %v288_v17   ;;  %374 = vperm.xlu1 %776, %v294_v18  }
  0x2e   : > { %379 = vperm.xlu0 %775, %v295_v22   ;;  %384 = vperm.xlu1 %776, %v296_v23  }
  0x32   : > { %445 = vperm.xlu0 %775, %v443_v27  }
  0x91   : > { %v304_v45 = vpop.permute.xlu0 %303  ;;  %v301_v46 = vpop.permute.xlu1 %300 }
  0x92   : > { %vm324_vm1 = vcmp.eq.s32.totalorder %v304_v45, %v918_v47  ;;  %vm323_vm3 = vcmp.eq.s32.totalorder %v301_v46, %v918_v47 }
  0x93   : > { %v677_v50 = vsel %vm324_vm1, 1.0, %v788_v42  ;;  %v676_v62 = vsel %vm323_vm3, 1.0, %v788_v42 }
  0x95   : > { %v307_v48 = vpop.permute.xlu0 %306  ;;  %v310_v49 = vpop.permute.xlu1 %309 }
  0x96   : > { %vm325_vm2 = vcmp.eq.s32.totalorder %v307_v48, %v918_v47  ;;  %vm326_vm4 = vcmp.eq.s32.totalorder %v310_v49, %v918_v47 }
  0x97   : > { %v678_v55 = vsel %vm325_vm2, 1.0, %v788_v42  ;;  %v679_v63 = vsel %vm326_vm4, 1.0, %v788_v42 }
  0x99   : > { %v355_v51 = vpop.permute.xlu0 %354  ;;  %v313_v52 = vpop.permute.xlu1 %312 }
  0x9a   : > { %v388_v53 = vmul.f32 %v677_v50, %v355_v51  ;;  %vm327_vm5 = vcmp.eq.s32.totalorder %v313_v52, %v918_v47 }
  0x9b   : > { %v680_v12 = vsel %vm327_vm5, 1.0, %v788_v42 }
  0x9c   : > { %v401_v54 = vrot.slane %v388_v53, 4 }
  0x9d   : > { %v360_v56 = vpop.permute.xlu0 %359  ;;  %v316_v57 = vpop.permute.xlu1 %315 }
  0x9e   : > { %v389_v58 = vmul.f32 %v678_v55, %v360_v56  ;;  %v402_v59 = vadd.f32 %v401_v54, %v388_v53  ;;  %vm328_vm6 = vcmp.eq.s32.totalorder %v316_v57, %v918_v47 }
  0x9f   : > { %v681_v21 = vsel %vm328_vm6, 1.0, %v788_v42 }
  0xa0   : > { %v407_v60 = vrot.slane %v389_v58, 4  ;;  %v403_v4 = vrot.slane %v402_v59, 2 }
  0xa1   : > { %v350_v61 = vpop.permute.xlu0 %349  ;;  %v365_v0 = vpop.permute.xlu1 %364 }
  0xa2   : > { %v408_v1 = vadd.f32 %v407_v60, %v389_v58  ;;  %v387_v2 = vmul.f32 %v676_v62, %v350_v61  ;;  %v390_v3 = vmul.f32 %v679_v63, %v365_v0  ;;  %v404_v14 = vadd.f32 %v403_v4, %v402_v59 }
  0xa4   : > { %v409_v5 = vrot.slane %v408_v1, 2  ;;  %v395_v6 = vrot.slane %v387_v2, 4  ;;  %v413_v7 = vrot.slane %v390_v3, 4  ;;  %v405_v26 = vrot.slane %v404_v14, 1 }
  0xa5   : > { %v319_v8 = vpop.permute.xlu0 %318  ;;  %v370_v9 = vpop.permute.xlu1 %369 }
  0xa6   : > { %v396_v10 = vadd.f32 %v395_v6, %v387_v2  ;;  %v414_v11 = vadd.f32 %v413_v7, %v390_v3  ;;  %v391_v13 = vmul.f32 %v680_v12, %v370_v9  ;;  %v410_v15 = vadd.f32 %v409_v5, %v408_v1 }
  0xa7   : > { %vm329_vm7 = vcmp.eq.s32.totalorder %v319_v8, %v918_v47  ;;  %v406_v45 = vadd.f32 %v405_v26, %v404_v14 }
  0xa8   : > { %v397_v16 = vrot.slane %v396_v10, 2  ;;  %v415_v17 = vrot.slane %v414_v11, 2  ;;  %v419_v18 = vrot.slane %v391_v13, 4  ;;  %v411_v27 = vrot.slane %v410_v15, 1 }
  0xa9   : > { %v322_v19 = vpop.permute.xlu0 %321  ;;  %v375_v20 = vpop.permute.xlu1 %374  ;;  %v682_v30 = vsel %vm329_vm7, 1.0, %v788_v42  ;;  %v453_v61 = vmul.f32 %v451_v40, %v406_v45 }
  0xaa   : > { %vm330_vm8 = vcmp.eq.s32.totalorder %v322_v19, %v918_v47  ;;  %v398_v22 = vadd.f32 %v397_v16, %v396_v10  ;;  %v416_v23 = vadd.f32 %v415_v17, %v414_v11  ;;  %v420_v24 = vadd.f32 %v419_v18, %v391_v13 }
  0xab   : > { %v392_v25 = vmul.f32 %v681_v21, %v375_v20  ;;  %v683_v32 = vsel %vm330_vm8, 1.0, %v788_v42  ;;  %v412_v46 = vadd.f32 %v411_v27, %v410_v15 }
  0xac   : > { %v421_v28 = vrot.slane %v420_v24, 2  ;;  %v399_v36 = vrot.slane %v398_v22, 1  ;;  %v417_v37 = vrot.slane %v416_v23, 1 }
  0xad   : > { %v425_v29 = vrot.slane %v392_v25, 4  ;;  %v380_v31 = vpop.permute.xlu0 %379  ;;  %v385_v33 = vpop.permute.xlu1 %384  ;;  %v454_v62 = vmul.f32 %v451_v40, %v412_v46 }
  0xae   : > { %v393_v34 = vmul.f32 %v682_v30, %v380_v31  ;;  %v394_v35 = vmul.f32 %v683_v32, %v385_v33  ;;  %v422_v38 = vadd.f32 %v421_v28, %v420_v24  ;;  %v400_v53 = vadd.f32 %v399_v36, %v398_v22 }
  0xaf   : > { %v426_v39 = vadd.f32 %v425_v29, %v392_v25  ;;  %v418_v54 = vadd.f32 %v417_v37, %v416_v23 }
  0xb0   : > { %v431_v41 = vrot.slane %v393_v34, 4  ;;  %v437_v43 = vrot.slane %v394_v35, 4  ;;  %v423_v48 = vrot.slane %v422_v38, 1 }
  0xb1   : > { %v427_v49 = vrot.slane %v426_v39, 2  ;;  %v446_v50 = vpop.permute.xlu0 %445  ;;  %v455_v7 = vmul.f32 %v451_v40, %v418_v54 }
  0xb2   : > { %v432_v51 = vadd.f32 %v431_v41, %v393_v34  ;;  %v438_v52 = vadd.f32 %v437_v43, %v394_v35  ;;  %vm447_vm9 = vcmp.eq.s32.totalorder %v446_v50, %v918_v47  ;;  %v424_v57 = vadd.f32 %v423_v48, %v422_v38 }
  0xb3   : > { %v428_v55 = vadd.f32 %v427_v49, %v426_v39  ;;  %v684_v56 = vsel %vm447_vm9, 1.0, %v788_v42  ;;  %v452_v47 = vmul.f32 %v451_v40, %v400_v53 }
  0xb4   : > { %v433_v58 = vrot.slane %v432_v51, 2  ;;  %v439_v59 = vrot.slane %v438_v52, 2  ;;  %v462_v60 = vmul.f32 %v684_v56, %v461_v44  ;;  %v456_v8 = vmul.f32 %v451_v40, %v424_v57 }
  0xb5   : > { %v429_v63 = vrot.slane %v428_v55, 1 }
  0xb6   : > { %v434_v0 = vadd.f32 %v433_v58, %v432_v51  ;;  %v440_v1 = vadd.f32 %v439_v59, %v438_v52  ;;  %v464_v2 = vrot.slane %v462_v60, 1  ;;  %v465_v3 = vrot.slane %v462_v60, 2 }
  0xb7   : > { %v430_v4 = vadd.f32 %v429_v63, %v428_v55  ;;  %v466_v5 = vrot.slane %v462_v60, 3  ;;  %v467_v6 = vrot.slane %v462_v60, 4  ;;  %v468_v11 = vrot.slane %v462_v60, 5 }
  0xb8   : > { %v435_v42 = vrot.slane %v434_v0, 1  ;;  %v441_v9 = vrot.slane %v440_v1, 1  ;;  %v480_v12 = vadd.f32 %v464_v2, %v453_v61  ;;  %v481_v13 = vadd.f32 %v465_v3, %v454_v62 }
  0xb9   : > { %v457_v10 = vmul.f32 %v451_v40, %v430_v4  ;;  %v482_v16 = vadd.f32 %v466_v5, %v455_v7  ;;  %v483_v17 = vadd.f32 %v467_v6, %v456_v8  ;;  %v479_v18 = vadd.f32 %v462_v60, %v452_v47 }
  0xba   : > { %v436_v14 = vadd.f32 %v435_v42, %v434_v0  ;;  %v442_v15 = vadd.f32 %v441_v9, %v440_v1  ;;  %v495_v20 = vrot.slane %v480_v12, 7  ;;  %v498_v21 = vrot.slane %v481_v13, 6 }
  0xbb   : > { %v484_v19 = vadd.f32 %v468_v11, %v457_v10  ;;  %v469_v24 = vrot.slane %v462_v60, 6  ;;  %v470_v25 = vrot.slane %v462_v60, 7  ;;  %v501_v27 = vrot.slane %v482_v16, 5 }
  0xbc   : > { %v458_v22 = vmul.f32 %v451_v40, %v436_v14  ;;  %v459_v23 = vmul.f32 %v451_v40, %v442_v15  ;;  %v497_v26 = vsel %vm496_vm10, %v495_v20, %v479_v18  ;;  %v504_v31 = vrot.slane %v483_v17, 4 }
  0xbd   : > { %v500_v30 = vsel %vm499_vm11, %v498_v21, %v497_v26  ;;  %v507_v33 = vrot.slane %v484_v19, 3 }
  0xbe   : > { %v485_v28 = vadd.f32 %v469_v24, %v458_v22  ;;  %v486_v29 = vadd.f32 %v470_v25, %v459_v23  ;;  %v503_v32 = vsel %vm502_vm12, %v501_v27, %v500_v30 }
  0xbf   : > { %v506_v34 = vsel %vm505_vm13, %v504_v31, %v503_v32 }
  0xc0   : > { %v510_v35 = vrot.slane %v485_v28, 2  ;;  %v513_v36 = vrot.slane %v486_v29, 1  ;;  %v509_v37 = vsel %vm508_vm14, %v507_v33, %v506_v34 }
  0xc2   : > { %v512_v38 = vsel %vm511_vm15, %v510_v35, %v509_v37 }
  0xc3   : > { %v515_v39 = vsel %vm514_vm0, %v513_v36, %v512_v38 }
  0xc4   : > { %737 = vmatmul.mubr.f32.vlgmr.msra.gmra.mrb[0].mxu0 %v515_v39 }
 0x197   : > { %v583_v40 = vpop.f32.mrb[0].mxu0 }
 0x198   : > { %587 = vst [vmem:[%s264_s0] sm:$0xff] %v583_v40  ;;  %v738_v41 = vpop.f32.mrb[1].mxu0 }
 0x199 PF: > { %s16_s20 = sadd.s32 1, %s783_s20  }
 0x19a   : > { %p13_p5 = scmp.ge.s32.totalorder %s16_s20, 4  }
 0x19c   :  { %15 = sbr.rel (!%p13_p5) target bundleno = 2 (0x2), region = 76 }

// kernel: forward.5
= control target key start
LH: loop header
LB: loop body
LE: loop exit
PB: predicated region body
PF: predicated region fallthrough
CT: control target
= control target key end

     0   :  { %s5669_s19 = smov 0   ;;  %s7658_s0 = inlined_call_operand.<no memory space> [shape: f32[1], index: 0, kind: input, shape index: {}]   ;;  %s7659_s1 = inlined_call_operand.vmem [shape: f32[128,128], index: 1, kind: input, shape index: {}]   ;;  %s7660_s2 = inlined_call_operand.vmem [shape: f32[128,128], index: 2, kind: input, shape index: {}]   ;;  %s7661_s3 = inlined_call_operand.vmem [shape: s32[1024,1], index: 3, kind: input, shape index: {}]   ;;  %s7662_s4 = inlined_call_operand.vmem [shape: s32[1024,1], index: 4, kind: input, shape index: {}]   ;;  %s7663_s5 = inlined_call_operand.vmem [shape: f32[1024,1], index: 5, kind: input, shape index: {}]   ;;  %s7664_s6 = inlined_call_operand.vmem [shape: s32[128,1], index: 6, kind: input, shape index: {}]   ;;  %s7665_s7 = inlined_call_operand.vmem [shape: s32[128,1], index: 7, kind: input, shape index: {}]   ;;  %s7666_s8 = inlined_call_operand.vmem [shape: f32[128,1], index: 8, kind: input, shape index: {}]   ;;  %s7667_s9 = inlined_call_operand.vmem [shape: s32[16,1], index: 9, kind: input, shape index: {}]   ;;  %s7668_s10 = inlined_call_operand.vmem [shape: f32[16,128], index: 10, kind: input, shape index: {}]   ;;  %s7669_s11 = inlined_call_operand.vmem [shape: f32[16,128], index: 11, kind: output, shape index: {}]  }
   0x1   :  { %16 = sst [smem:[#allocation2]] %s7658_s0 }
   0x2 LB: > { %s5675_s20 = sadd.s32 4294967295, %s5599_s19   ;;  %p4578_p0 = scmp.ge.s32.totalorder %s5599_s19, 1  ;;  %s5599_s19 = sphi %s5669_s19, %s22_s19  }
   0x3   : > { %p412_p1 = scmp.lt.s32.totalorder %s5599_s19, 3 }
   0x5   : > { %p413_p2 = pnand %p4578_p0, %p412_p1 }
   0x7   : > { %416 = sbr.rel (%p413_p2) target bundleno = 899 (0x383), region = 64 }
   0xe   : > { %s4579_s21 = sshll.u32 %s5675_s20, 6  ;;  %v5601_v0 = vmov 0   ;;  %v532_v51 = vld [vmem:[%s7659_s1] sm:$0xff]  ;;  %v533_v52 = vld [vmem:[%s7659_s1 + $0x8] sm:$0xff]  ;;  %v534_v56 = vld [vmem:[%s7659_s1 + $0x10] sm:$0xff]  ;;  %s4585_s29 = sshll.u32 %s5675_s20, 3 }
   0xf   : > { %5592 = vset.pattern.permute.xlu1 %v5601_v0  ;;  %5591 = vset.pattern.permute.xlu0 %v5601_v0  ;;  %p485_p3 = scmp.lt.s32.totalorder %s4579_s21, 127  ;;  %v5746_v55 = vpack.c.bf16 %v533_v52, %v532_v51  ;;  %v535_v57 = vld [vmem:[%s7659_s1 + $0x18] sm:$0xff]  ;;  %v536_v61 = vld [vmem:[%s7659_s1 + $0x20] sm:$0xff]  ;;  %v537_v62 = vld [vmem:[%s7659_s1 + $0x28] sm:$0xff]  ;;  %p503_p4 = scmp.lt.s32.totalorder %s4585_s29, 15 }
  0x10   : > { %v5758_v60 = vpack.c.bf16 %v535_v57, %v534_v56  ;;  %p520_p5 = scmp.lt.s32.totalorder %s5675_s20, 1 }
  0x11   : > { %s7922_s21 = smov (!%p485_p3, %s4579_s21), 127  ;;  %5427 = vmatprep.subr.bf16.mxu0 %v5746_v55  ;;  %s7924_s29 = smov (!%p503_p4, %s4585_s29), 15 }
  0x12   : > { %s5680_s0 = sshll.u32 %s7922_s21, 3  ;;  %5429 = vmatpush3.bf16.msra.mxu0 %v5746_v55  ;;  %s6399_s30 = sshll.u32 %s7924_s29, 3 }
  0x13   : > { %s5686_s24 = scalar_lea.vmem %s7661_s3, %s5680_s0  ;;  %5431 = vmatprep.subr.bf16.mxu0 %v5758_v60  ;;  %s5824_s22 = scalar_lea.vmem %s7663_s5, %s5680_s0 }
  0x14   : > { %v566_v1 = vld [vmem:[%s5686_s24 + $0x10] sm:$0xff]  ;;  %v564_v2 = vld [vmem:[%s5686_s24] sm:$0xff]  ;;  %v567_v3 = vld [vmem:[%s5686_s24 + $0x18] sm:$0xff]  ;;  %s6012_s18 = scalar_lea.vmem %s7662_s4, %s5680_s0  ;;  %s6411_s13 = scalar_lea.vmem %s7664_s6, %s6399_s30 }
  0x15   : > { %701 = vperm.xlu1 %5592, %v566_v1   ;;  %695 = vperm.xlu0 %5591, %v564_v2   ;;  %v565_v4 = vld [vmem:[%s5686_s24 + $0x8] sm:$0xff]  ;;  %v568_v6 = vld [vmem:[%s5686_s24 + $0x20] sm:$0xff]  ;;  %v571_v7 = vld [vmem:[%s5686_s24 + $0x38] sm:$0xff]  ;;  %v5770_v1 = vpack.c.bf16 %v537_v62, %v536_v61  ;;  %s6423_s16 = scalar_lea.vmem %s7665_s7, %s6399_s30  ;;  %s7926_s20 = smov (!%p520_p5, %s5675_s20), 1 }
  0x16   : > { %v569_v5 = vld [vmem:[%s5686_s24 + $0x28] sm:$0xff]  ;;  %v570_v8 = vld [vmem:[%s5686_s24 + $0x30] sm:$0xff]  ;;  %v572_v10 = vld [vmem:[%s5686_s24 + $0x40] sm:$0xff]  ;;  %5433 = vmatpush3.bf16.msra.mxu0 %v5758_v60  ;;  %s6467_s17 = sshll.u32 %s7926_s20, 3  ;;  %s6479_s23 = scalar_lea.vmem %s7666_s8, %s6399_s30 }
  0x17   : > { %v573_v9 = vld [vmem:[%s5686_s24 + $0x48] sm:$0xff]  ;;  %v575_v11 = vld [vmem:[%s5686_s24 + $0x58] sm:$0xff]  ;;  %v574_v12 = vld [vmem:[%s5686_s24 + $0x50] sm:$0xff]  ;;  %5435 = vmatprep.subr.bf16.mxu0 %v5770_v1  ;;  %s6819_s0 = sld [smem:[#allocation2]]  ;;  %s527_s29 = scalar_lea.vmem %s7668_s10, %s6467_s17 }
  0x18   : > { %v577_v13 = vld [vmem:[%s5686_s24 + $0x68] sm:$0xff]  ;;  %v576_v14 = vld [vmem:[%s5686_s24 + $0x60] sm:$0xff]  ;;  %v579_v15 = vld [vmem:[%s5686_s24 + $0x78] sm:$0xff]  ;;  %s531_s12 = scalar_lea.vmem %s7669_s11, %s6467_s17 }
  0x19   : > { %704 = vperm.xlu1 %5592, %v567_v3   ;;  %698 = vperm.xlu0 %5591, %v565_v4   ;;  %v578_v16 = vld [vmem:[%s5686_s24 + $0x70] sm:$0xff]  ;;  %v581_v17 = vld [vmem:[%s5686_s24 + $0x88] sm:$0xff]  ;;  %v580_v18 = vld [vmem:[%s5686_s24 + $0x80] sm:$0xff] }
  0x1a   : > { %v583_v19 = vld [vmem:[%s5686_s24 + $0x98] sm:$0xff]  ;;  %v582_v20 = vld [vmem:[%s5686_s24 + $0x90] sm:$0xff]  ;;  %v585_v21 = vld [vmem:[%s5686_s24 + $0xa8] sm:$0xff]  ;;  %5437 = vmatpush3.bf16.msra.mxu0 %v5770_v1 }
  0x1b   : > { %v584_v22 = vld [vmem:[%s5686_s24 + $0xa0] sm:$0xff]  ;;  %v587_v23 = vld [vmem:[%s5686_s24 + $0xb8] sm:$0xff]  ;;  %v586_v24 = vld [vmem:[%s5686_s24 + $0xb0] sm:$0xff] }
  0x1c   : > { %v589_v25 = vld [vmem:[%s5686_s24 + $0xc8] sm:$0xff]  ;;  %v588_v26 = vld [vmem:[%s5686_s24 + $0xc0] sm:$0xff]  ;;  %v591_v27 = vld [vmem:[%s5686_s24 + $0xd8] sm:$0xff] }
  0x1d   : > { %710 = vperm.xlu1 %5592, %v569_v5   ;;  %707 = vperm.xlu0 %5591, %v568_v6   ;;  %v590_v28 = vld [vmem:[%s5686_s24 + $0xd0] sm:$0xff]  ;;  %v593_v29 = vld [vmem:[%s5686_s24 + $0xe8] sm:$0xff]  ;;  %v592_v30 = vld [vmem:[%s5686_s24 + $0xe0] sm:$0xff]  ;;  %s4402_s26 = ssub.f32 1.0, %s6819_s0 }
  0x1e   : > { %v595_v31 = vld [vmem:[%s5686_s24 + $0xf8] sm:$0xff]  ;;  %v594_v32 = vld [vmem:[%s5686_s24 + $0xf0] sm:$0xff]  ;;  %v597_v33 = vld [vmem:[%s5686_s24 + $0x108] sm:$0xff] }
  0x1f   : > { %v596_v34 = vld [vmem:[%s5686_s24 + $0x100] sm:$0xff]  ;;  %v599_v35 = vld [vmem:[%s5686_s24 + $0x118] sm:$0xff]  ;;  %v598_v36 = vld [vmem:[%s5686_s24 + $0x110] sm:$0xff] }
  0x20   : > { %v601_v37 = vld [vmem:[%s5686_s24 + $0x128] sm:$0xff]  ;;  %v600_v38 = vld [vmem:[%s5686_s24 + $0x120] sm:$0xff]  ;;  %v603_v39 = vld [vmem:[%s5686_s24 + $0x138] sm:$0xff] }
  0x21   : > { %716 = vperm.xlu1 %5592, %v571_v7   ;;  %713 = vperm.xlu0 %5591, %v570_v8   ;;  %v602_v40 = vld [vmem:[%s5686_s24 + $0x130] sm:$0xff]  ;;  %v605_v41 = vld [vmem:[%s5686_s24 + $0x148] sm:$0xff]  ;;  %v604_v42 = vld [vmem:[%s5686_s24 + $0x140] sm:$0xff] }
  0x22   : > { %v607_v43 = vld [vmem:[%s5686_s24 + $0x158] sm:$0xff]  ;;  %v606_v44 = vld [vmem:[%s5686_s24 + $0x150] sm:$0xff]  ;;  %v609_v45 = vld [vmem:[%s5686_s24 + $0x168] sm:$0xff] }
  0x23   : > { %v608_v46 = vld [vmem:[%s5686_s24 + $0x160] sm:$0xff]  ;;  %v611_v47 = vld [vmem:[%s5686_s24 + $0x178] sm:$0xff]  ;;  %v610_v48 = vld [vmem:[%s5686_s24 + $0x170] sm:$0xff] }
  0x24   : > { %v613_v49 = vld [vmem:[%s5686_s24 + $0x188] sm:$0xff]  ;;  %v612_v50 = vld [vmem:[%s5686_s24 + $0x180] sm:$0xff]  ;;  %v615_v53 = vld [vmem:[%s5686_s24 + $0x198] sm:$0xff] }
  0x25   : > { %722 = vperm.xlu1 %5592, %v573_v9   ;;  %719 = vperm.xlu0 %5591, %v572_v10   ;;  %v614_v54 = vld [vmem:[%s5686_s24 + $0x190] sm:$0xff]  ;;  %v617_v58 = vld [vmem:[%s5686_s24 + $0x1a8] sm:$0xff]  ;;  %v616_v59 = vld [vmem:[%s5686_s24 + $0x1a0] sm:$0xff] }
  0x26   : > { %v619_v63 = vld [vmem:[%s5686_s24 + $0x1b8] sm:$0xff]  ;;  %v618_v0 = vld [vmem:[%s5686_s24 + $0x1b0] sm:$0xff]  ;;  %v621_v4 = vld [vmem:[%s5686_s24 + $0x1c8] sm:$0xff] }
  0x27   : > { %v538_v2 = vld [vmem:[%s7659_s1 + $0x30] sm:$0xff]  ;;  %v539_v3 = vld [vmem:[%s7659_s1 + $0x38] sm:$0xff]  ;;  %v620_v5 = vld [vmem:[%s5686_s24 + $0x1c0] sm:$0xff] }
  0x28   : > { %v5782_v6 = vpack.c.bf16 %v539_v3, %v538_v2  ;;  %v540_v7 = vld [vmem:[%s7659_s1 + $0x40] sm:$0xff]  ;;  %v541_v8 = vld [vmem:[%s7659_s1 + $0x48] sm:$0xff]  ;;  %v623_v9 = vld [vmem:[%s5686_s24 + $0x1d8] sm:$0xff] }
  0x29   : > { %728 = vperm.xlu1 %5592, %v575_v11   ;;  %725 = vperm.xlu0 %5591, %v574_v12   ;;  %v622_v10 = vld [vmem:[%s5686_s24 + $0x1d0] sm:$0xff]  ;;  %v5794_v11 = vpack.c.bf16 %v541_v8, %v540_v7 }
  0x2a   : > { %5439 = vmatprep.subr.bf16.mxu0 %v5782_v6  ;;  %v542_v12 = vld [vmem:[%s7659_s1 + $0x50] sm:$0xff] }
  0x2b   : > { %5441 = vmatpush3.bf16.msra.mxu0 %v5782_v6 }
  0x2c   : > { %5443 = vmatprep.subr.bf16.mxu0 %v5794_v11 }
  0x2d   : > { %734 = vperm.xlu1 %5592, %v577_v13   ;;  %731 = vperm.xlu0 %5591, %v576_v14   ;;  %v543_v13 = vld [vmem:[%s7659_s1 + $0x58] sm:$0xff]  ;;  %v625_v14 = vld [vmem:[%s5686_s24 + $0x1e8] sm:$0xff] }
  0x2f   : > { %5445 = vmatpush3.bf16.msra.mxu0 %v5794_v11 }
  0x31   : > { %740 = vperm.xlu1 %5592, %v579_v15   ;;  %737 = vperm.xlu0 %5591, %v578_v16   ;;  %v624_v15 = vld [vmem:[%s5686_s24 + $0x1e0] sm:$0xff]  ;;  %v5806_v16 = vpack.c.bf16 %v543_v13, %v542_v12 }
  0x33   : > { %5447 = vmatprep.subr.bf16.mxu0 %v5806_v16 }
  0x34   : > { %5449 = vmatpush3.bf16.msra.mxu0 %v5806_v16 }
  0x35   : > { %746 = vperm.xlu1 %5592, %v581_v17   ;;  %743 = vperm.xlu0 %5591, %v580_v18   ;;  %v544_v17 = vld [vmem:[%s7659_s1 + $0x60] sm:$0xff]  ;;  %v545_v18 = vld [vmem:[%s7659_s1 + $0x68] sm:$0xff] }
  0x39   : > { %752 = vperm.xlu1 %5592, %v583_v19   ;;  %749 = vperm.xlu0 %5591, %v582_v20   ;;  %v627_v19 = vld [vmem:[%s5686_s24 + $0x1f8] sm:$0xff]  ;;  %v626_v20 = vld [vmem:[%s5686_s24 + $0x1f0] sm:$0xff]  ;;  %s523_s24 = scalar_lea.vmem %s7667_s9, %s6467_s17 }
  0x3d   : > { %758 = vperm.xlu1 %5592, %v585_v21   ;;  %755 = vperm.xlu0 %5591, %v584_v22   ;;  %v5818_v21 = vpack.c.bf16 %v545_v18, %v544_v17  ;;  %v546_v22 = vld [vmem:[%s7659_s1 + $0x70] sm:$0xff]  ;;  %v548_v17 = vld [vmem:[%s7660_s2] sm:$0xff]  ;;  %v549_v18 = vld [vmem:[%s7660_s2 + $0x8] sm:$0xff] }
  0x3f   : > { %5451 = vmatprep.subr.bf16.mxu0 %v5818_v21 }
  0x40   : > { %5453 = vmatpush3.bf16.msra.mxu0 %v5818_v21 }
  0x41   : > { %764 = vperm.xlu1 %5592, %v587_v23   ;;  %761 = vperm.xlu0 %5591, %v586_v24   ;;  %v547_v23 = vld [vmem:[%s7659_s1 + $0x78] sm:$0xff]  ;;  %v629_v24 = vld [vmem:[%s5824_s22 + $0x8] sm:$0xff] }
  0x45   : > { %770 = vperm.xlu1 %5592, %v589_v25   ;;  %767 = vperm.xlu0 %5591, %v588_v26   ;;  %v628_v25 = vld [vmem:[%s5824_s22] sm:$0xff]  ;;  %v5836_v26 = vpack.c.bf16 %v547_v23, %v546_v22  ;;  %v5923_v22 = vpack.c.bf16 %v549_v18, %v548_v17  ;;  %v655_v23 = vld [vmem:[%s5824_s22 + $0xd8] sm:$0xff] }
  0x46   : > { %v663_v18 = vld [vmem:[%s5824_s22 + $0x118] sm:$0xff] }
  0x47   : > { %5455 = vmatprep.subr.bf16.mxu0 %v5836_v26  ;;  %5459 = vmatprep.subr.bf16.mxu1 %v5923_v22 }
  0x48   : > { %5457 = vmatpush3.bf16.msra.mxu0 %v5836_v26  ;;  %5461 = vmatpush3.bf16.msra.mxu1 %v5923_v22 }
  0x49   : > { %776 = vperm.xlu1 %5592, %v591_v27   ;;  %773 = vperm.xlu0 %5591, %v590_v28  }
  0x4a   : > { %5491 = vmatprep.subr.bf16.mxu0 %v5746_v55 }
  0x4d   : > { %782 = vperm.xlu1 %5592, %v593_v29   ;;  %779 = vperm.xlu0 %5591, %v592_v30   ;;  %v631_v29 = vld [vmem:[%s5824_s22 + $0x18] sm:$0xff]  ;;  %v630_v30 = vld [vmem:[%s5824_s22 + $0x10] sm:$0xff] }
  0x51   : > { %788 = vperm.xlu1 %5592, %v595_v31   ;;  %785 = vperm.xlu0 %5591, %v594_v32  }
  0x55   : > { %794 = vperm.xlu1 %5592, %v597_v33   ;;  %791 = vperm.xlu0 %5591, %v596_v34   ;;  %v633_v33 = vld [vmem:[%s5824_s22 + $0x28] sm:$0xff]  ;;  %v632_v34 = vld [vmem:[%s5824_s22 + $0x20] sm:$0xff] }
  0x59   : > { %800 = vperm.xlu1 %5592, %v599_v35   ;;  %797 = vperm.xlu0 %5591, %v598_v36  }
  0x5d   : > { %806 = vperm.xlu1 %5592, %v601_v37   ;;  %803 = vperm.xlu0 %5591, %v600_v38   ;;  %v635_v37 = vld [vmem:[%s5824_s22 + $0x38] sm:$0xff]  ;;  %v634_v38 = vld [vmem:[%s5824_s22 + $0x30] sm:$0xff] }
  0x61   : > { %812 = vperm.xlu1 %5592, %v603_v39   ;;  %809 = vperm.xlu0 %5591, %v602_v40  }
  0x65   : > { %818 = vperm.xlu1 %5592, %v605_v41   ;;  %815 = vperm.xlu0 %5591, %v604_v42   ;;  %v637_v41 = vld [vmem:[%s5824_s22 + $0x48] sm:$0xff]  ;;  %v636_v42 = vld [vmem:[%s5824_s22 + $0x40] sm:$0xff] }
  0x69   : > { %824 = vperm.xlu1 %5592, %v607_v43   ;;  %821 = vperm.xlu0 %5591, %v606_v44  }
  0x6d   : > { %830 = vperm.xlu1 %5592, %v609_v45   ;;  %827 = vperm.xlu0 %5591, %v608_v46   ;;  %v639_v45 = vld [vmem:[%s5824_s22 + $0x58] sm:$0xff]  ;;  %v638_v46 = vld [vmem:[%s5824_s22 + $0x50] sm:$0xff] }
  0x71   : > { %836 = vperm.xlu1 %5592, %v611_v47   ;;  %833 = vperm.xlu0 %5591, %v610_v48  }
  0x75   : > { %842 = vperm.xlu1 %5592, %v613_v49   ;;  %839 = vperm.xlu0 %5591, %v612_v50   ;;  %v641_v49 = vld [vmem:[%s5824_s22 + $0x68] sm:$0xff]  ;;  %v640_v50 = vld [vmem:[%s5824_s22 + $0x60] sm:$0xff] }
  0x79   : > { %848 = vperm.xlu1 %5592, %v615_v53   ;;  %845 = vperm.xlu0 %5591, %v614_v54   ;;  %v643_v53 = vld [vmem:[%s5824_s22 + $0x78] sm:$0xff]  ;;  %v642_v54 = vld [vmem:[%s5824_s22 + $0x70] sm:$0xff] }
  0x7d   : > { %854 = vperm.xlu1 %5592, %v617_v58   ;;  %851 = vperm.xlu0 %5591, %v616_v59   ;;  %v645_v58 = vld [vmem:[%s5824_s22 + $0x88] sm:$0xff]  ;;  %v644_v59 = vld [vmem:[%s5824_s22 + $0x80] sm:$0xff] }
  0x81   : > { %860 = vperm.xlu1 %5592, %v619_v63   ;;  %857 = vperm.xlu0 %5591, %v618_v0   ;;  %v647_v63 = vld [vmem:[%s5824_s22 + $0x98] sm:$0xff]  ;;  %v646_v0 = vld [vmem:[%s5824_s22 + $0x90] sm:$0xff] }
  0x85   : > { %866 = vperm.xlu1 %5592, %v621_v4   ;;  %863 = vperm.xlu0 %5591, %v620_v5   ;;  %v649_v4 = vld [vmem:[%s5824_s22 + $0xa8] sm:$0xff]  ;;  %v648_v5 = vld [vmem:[%s5824_s22 + $0xa0] sm:$0xff] }
  0x89   : > { %872 = vperm.xlu1 %5592, %v623_v9   ;;  %869 = vperm.xlu0 %5591, %v622_v10   ;;  %v651_v9 = vld [vmem:[%s5824_s22 + $0xb8] sm:$0xff]  ;;  %v650_v10 = vld [vmem:[%s5824_s22 + $0xb0] sm:$0xff] }
  0x8d   : > { %878 = vperm.xlu1 %5592, %v625_v14   ;;  %875 = vperm.xlu0 %5591, %v624_v15   ;;  %v653_v14 = vld [vmem:[%s5824_s22 + $0xc8] sm:$0xff]  ;;  %v652_v15 = vld [vmem:[%s5824_s22 + $0xc0] sm:$0xff] }
  0x91   : > { %884 = vperm.xlu1 %5592, %v627_v19   ;;  %881 = vperm.xlu0 %5591, %v626_v20  }
  0x94   : > { %v5838_v27 = vpop.permute.xlu1 %701  ;;  %v5840_v28 = vpop.permute.xlu0 %695 }
  0x95   : > { %1085 = vperm.xlu1 %5592, %v629_v24   ;;  %1080 = vperm.xlu0 %5591, %v628_v25   ;;  %v654_v24 = vld [vmem:[%s5824_s22 + $0xd0] sm:$0xff] }
  0x96   : > { %v550_v25 = vld [vmem:[%s7660_s2 + $0x10] sm:$0xff] }
  0x98   : > { %v5847_v31 = vpop.permute.xlu1 %704  ;;  %v5849_v32 = vpop.permute.xlu0 %698 }
  0x99   : > { %1095 = vperm.xlu1 %5592, %v631_v29   ;;  %1090 = vperm.xlu0 %5591, %v630_v30   ;;  %v551_v29 = vld [vmem:[%s7660_s2 + $0x18] sm:$0xff] }
  0x9c   : > { %v5853_v35 = vpop.permute.xlu1 %710  ;;  %v5855_v36 = vpop.permute.xlu0 %707 }
  0x9d   : > { %1105 = vperm.xlu1 %5592, %v633_v33   ;;  %1100 = vperm.xlu0 %5591, %v632_v34   ;;  %v5939_v34 = vpack.c.bf16 %v551_v29, %v550_v25  ;;  %v559_v25 = vld [vmem:[%s7660_s2 + $0x58] sm:$0xff] }
  0x9f   : > { %5463 = vmatprep.subr.bf16.mxu1 %v5939_v34 }
  0xa0   : > { %v5859_v39 = vpop.permute.xlu1 %716  ;;  %v5861_v40 = vpop.permute.xlu0 %713  ;;  %5465 = vmatpush3.bf16.msra.mxu1 %v5939_v34 }
  0xa1   : > { %1115 = vperm.xlu1 %5592, %v635_v37   ;;  %1110 = vperm.xlu0 %5591, %v634_v38   ;;  %v657_v37 = vld [vmem:[%s5824_s22 + $0xe8] sm:$0xff]  ;;  %v656_v38 = vld [vmem:[%s5824_s22 + $0xe0] sm:$0xff] }
  0xa4   : > { %v5865_v43 = vpop.permute.xlu1 %722  ;;  %v5867_v44 = vpop.permute.xlu0 %719 }
  0xa5   : > { %1125 = vperm.xlu1 %5592, %v637_v41   ;;  %1120 = vperm.xlu0 %5591, %v636_v42   ;;  %v552_v41 = vld [vmem:[%s7660_s2 + $0x20] sm:$0xff]  ;;  %v553_v42 = vld [vmem:[%s7660_s2 + $0x28] sm:$0xff] }
  0xa8   : > { %v5871_v47 = vpop.permute.xlu1 %728  ;;  %v5873_v48 = vpop.permute.xlu0 %725 }
  0xa9   : > { %1135 = vperm.xlu1 %5592, %v639_v45   ;;  %1130 = vperm.xlu0 %5591, %v638_v46  }
  0xac   : > { %v5877_v51 = vpop.permute.xlu1 %734  ;;  %v5879_v52 = vpop.permute.xlu0 %731 }
  0xad   : > { %1145 = vperm.xlu1 %5592, %v641_v49   ;;  %1140 = vperm.xlu0 %5591, %v640_v50   ;;  %v5955_v49 = vpack.c.bf16 %v553_v42, %v552_v41  ;;  %v659_v50 = vld [vmem:[%s5824_s22 + $0xf8] sm:$0xff]  ;;  %v665_v41 = vld [vmem:[%s5824_s22 + $0x128] sm:$0xff]  ;;  %v664_v42 = vld [vmem:[%s5824_s22 + $0x120] sm:$0xff] }
  0xaf   : > { %5467 = vmatprep.subr.bf16.mxu1 %v5955_v49 }
  0xb0   : > { %v5883_v56 = vpop.permute.xlu1 %740  ;;  %v5885_v57 = vpop.permute.xlu0 %737  ;;  %5469 = vmatpush3.bf16.msra.mxu1 %v5955_v49 }
  0xb1   : > { %1155 = vperm.xlu1 %5592, %v643_v53   ;;  %1150 = vperm.xlu0 %5591, %v642_v54   ;;  %v658_v53 = vld [vmem:[%s5824_s22 + $0xf0] sm:$0xff] }
  0xb2   : > { %v554_v54 = vld [vmem:[%s7660_s2 + $0x30] sm:$0xff] }
  0xb4   : > { %v5889_v61 = vpop.permute.xlu1 %746  ;;  %v5891_v62 = vpop.permute.xlu0 %743 }
  0xb5   : > { %1165 = vperm.xlu1 %5592, %v645_v58   ;;  %1160 = vperm.xlu0 %5591, %v644_v59   ;;  %v555_v58 = vld [vmem:[%s7660_s2 + $0x38] sm:$0xff] }
  0xb8   : > { %v5895_v2 = vpop.permute.xlu1 %752  ;;  %v5897_v3 = vpop.permute.xlu0 %749 }
  0xb9   : > { %1175 = vperm.xlu1 %5592, %v647_v63   ;;  %1170 = vperm.xlu0 %5591, %v646_v0   ;;  %v5971_v0 = vpack.c.bf16 %v555_v58, %v554_v54 }
  0xbb   : > { %5471 = vmatprep.subr.bf16.mxu1 %v5971_v0 }
  0xbc   : > { %v5901_v7 = vpop.permute.xlu1 %758  ;;  %v5903_v8 = vpop.permute.xlu0 %755  ;;  %5473 = vmatpush3.bf16.msra.mxu1 %v5971_v0 }
  0xbd   : > { %1185 = vperm.xlu1 %5592, %v649_v4   ;;  %1180 = vperm.xlu0 %5591, %v648_v5   ;;  %v661_v4 = vld [vmem:[%s5824_s22 + $0x108] sm:$0xff]  ;;  %v660_v5 = vld [vmem:[%s5824_s22 + $0x100] sm:$0xff] }
  0xc0   : > { %v5907_v12 = vpop.permute.xlu1 %764  ;;  %v5909_v13 = vpop.permute.xlu0 %761 }
  0xc1   : > { %1195 = vperm.xlu1 %5592, %v651_v9   ;;  %1190 = vperm.xlu0 %5591, %v650_v10   ;;  %v556_v9 = vld [vmem:[%s7660_s2 + $0x40] sm:$0xff]  ;;  %v557_v10 = vld [vmem:[%s7660_s2 + $0x48] sm:$0xff] }
  0xc2   : > { %v5987_v17 = vpack.c.bf16 %v557_v10, %v556_v9  ;;  %v666_v9 = vld [vmem:[%s5824_s22 + $0x130] sm:$0xff] }
  0xc3   : > { %v562_v10 = vld [vmem:[%s7660_s2 + $0x70] sm:$0xff] }
  0xc4   : > { %v5919_v19 = vpop.permute.xlu1 %770  ;;  %v5921_v20 = vpop.permute.xlu0 %767  ;;  %5475 = vmatprep.subr.bf16.mxu1 %v5987_v17 }
  0xc5   : > { %1205 = vperm.xlu1 %5592, %v653_v14   ;;  %1200 = vperm.xlu0 %5591, %v652_v15  }
  0xc6   : > { %5477 = vmatpush3.bf16.msra.mxu1 %v5987_v17 }
  0xc8   : > { %v5935_v30 = vpop.permute.xlu1 %776  ;;  %v5937_v33 = vpop.permute.xlu0 %773 }
  0xc9   : > { %1215 = vperm.xlu1 %5592, %v655_v23   ;;  %1210 = vperm.xlu0 %5591, %v654_v24   ;;  %v662_v23 = vld [vmem:[%s5824_s22 + $0x110] sm:$0xff] }
  0xca   : > { %v558_v24 = vld [vmem:[%s7660_s2 + $0x50] sm:$0xff] }
  0xcc   : > { %v5951_v45 = vpop.permute.xlu1 %782  ;;  %v5953_v46 = vpop.permute.xlu0 %779 }
  0xcd   : > { %1225 = vperm.xlu1 %5592, %v657_v37   ;;  %1220 = vperm.xlu0 %5591, %v656_v38   ;;  %v6003_v38 = vpack.c.bf16 %v559_v25, %v558_v24 }
  0xcf   : > { %7699 = vst [vmem:[#allocation3_spill] sm:$0xff] %v6003_v38  ;;  %5479 = vmatprep.subr.bf16.mxu1 %v6003_v38 }
  0xd0   : > { %v5967_v59 = vpop.permute.xlu1 %788  ;;  %v5969_v63 = vpop.permute.xlu0 %785  ;;  %5481 = vmatpush3.bf16.msra.mxu1 %v6003_v38  ;;  %v1870_v38 = vld [vmem:[%s6012_s18 + $0xb8] sm:$0xff] }
  0xd1   : > { %1235 = vperm.xlu1 %5592, %v659_v50   ;;  %1230 = vperm.xlu0 %5591, %v658_v53   ;;  %v560_v50 = vld [vmem:[%s7660_s2 + $0x60] sm:$0xff]  ;;  %v561_v53 = vld [vmem:[%s7660_s2 + $0x68] sm:$0xff] }
  0xd4   : > { %v5983_v14 = vpop.permute.xlu1 %794  ;;  %v5985_v15 = vpop.permute.xlu0 %791 }
  0xd5   : > { %1245 = vperm.xlu1 %5592, %v661_v4   ;;  %1240 = vperm.xlu0 %5591, %v660_v5   ;;  %v6025_v4 = vpack.c.bf16 %v561_v53, %v560_v50  ;;  %v1847_v5 = vld [vmem:[%s6012_s18] sm:$0xff] }
  0xd7   : > { %7700 = vst [vmem:[#allocation4_spill] sm:$0xff] %v6025_v4  ;;  %5483 = vmatprep.subr.bf16.mxu1 %v6025_v4 }
  0xd8   : > { %v5999_v29 = vpop.permute.xlu1 %800  ;;  %v6001_v37 = vpop.permute.xlu0 %797  ;;  %5485 = vmatpush3.bf16.msra.mxu1 %v6025_v4 }
  0xd9   : > { %1255 = vperm.xlu1 %5592, %v663_v18   ;;  %1250 = vperm.xlu0 %5591, %v662_v23   ;;  %v563_v18 = vld [vmem:[%s7660_s2 + $0x78] sm:$0xff] }
  0xda   : > { %v6041_v25 = vpack.c.bf16 %v563_v18, %v562_v10 }
  0xdc   : > { %v6021_v54 = vpop.permute.xlu1 %806  ;;  %v6023_v58 = vpop.permute.xlu0 %803  ;;  %7702 = vst [vmem:[#allocation6_spill] sm:$0xff] %v6041_v25  ;;  %5487 = vmatprep.subr.bf16.mxu1 %v6041_v25 }
  0xdd   : > { %1265 = vperm.xlu1 %5592, %v665_v41   ;;  %1260 = vperm.xlu0 %5591, %v664_v42   ;;  %v1849_v41 = vld [vmem:[%s6012_s18 + $0x10] sm:$0xff]  ;;  %v1848_v42 = vld [vmem:[%s6012_s18 + $0x8] sm:$0xff] }
  0xde   : > { %5489 = vmatpush3.bf16.msra.mxu1 %v6041_v25 }
  0xdf   : > { %5523 = vmatprep.subr.bf16.mxu1 %v5923_v22 }
  0xe0   : > { %v6037_v23 = vpop.permute.xlu1 %812  ;;  %v6039_v24 = vpop.permute.xlu0 %809 }
  0xe1   : > { %7701 = vst [vmem:[#allocation5_spill] sm:$0xff] %v6037_v23  ;;  %1912 = vperm.xlu1 %5592, %v1847_v5   ;;  %1270 = vperm.xlu0 %5591, %v666_v9   ;;  %v1851_v5 = vld [vmem:[%s6012_s18 + $0x20] sm:$0xff]  ;;  %v1850_v9 = vld [vmem:[%s6012_s18 + $0x18] sm:$0xff]  ;;  %v1853_v23 = vld [vmem:[%s6012_s18 + $0x30] sm:$0xff] }
  0xe4   : > { %v6047_v50 = vpop.permute.xlu1 %818  ;;  %v6049_v53 = vpop.permute.xlu0 %815 }
  0xe5   : > { %7703 = vst [vmem:[#allocation7_spill] sm:$0xff] %v6047_v50  ;;  %7704 = vst [vmem:[#allocation8_spill] sm:$0xff] %v6049_v53  ;;  %1918 = vperm.xlu1 %5592, %v1849_v41   ;;  %1915 = vperm.xlu0 %5591, %v1848_v42   ;;  %v1852_v50 = vld [vmem:[%s6012_s18 + $0x28] sm:$0xff]  ;;  %v1855_v41 = vld [vmem:[%s6012_s18 + $0x40] sm:$0xff] }
  0xe6   : > { %v1854_v42 = vld [vmem:[%s6012_s18 + $0x38] sm:$0xff] }
  0xe8   : > { %v6054_v10 = vpop.permute.xlu1 %824  ;;  %v6056_v18 = vpop.permute.xlu0 %821 }
  0xe9   : > { %7705 = vst [vmem:[#allocation9_spill] sm:$0xff] %v6054_v10  ;;  %7706 = vst [vmem:[#allocation10_spill] sm:$0xff] %v6056_v18  ;;  %1924 = vperm.xlu1 %5592, %v1851_v5   ;;  %1921 = vperm.xlu0 %5591, %v1850_v9   ;;  %v1857_v5 = vld [vmem:[%s6012_s18 + $0x50] sm:$0xff]  ;;  %v1856_v9 = vld [vmem:[%s6012_s18 + $0x48] sm:$0xff] }
  0xec   : > { %v6060_v25 = vpop.permute.xlu1 %830  ;;  %v6062_v53 = vpop.permute.xlu0 %827 }
  0xed   : > { %7707 = vst [vmem:[#allocation11_spill] sm:$0xff] %v6060_v25  ;;  %7708 = vst [vmem:[#allocation12_spill] sm:$0xff] %v6062_v53  ;;  %1930 = vperm.xlu1 %5592, %v1853_v23   ;;  %1927 = vperm.xlu0 %5591, %v1852_v50   ;;  %v1859_v23 = vld [vmem:[%s6012_s18 + $0x60] sm:$0xff]  ;;  %v1858_v50 = vld [vmem:[%s6012_s18 + $0x58] sm:$0xff] }
  0xf0   : > { %v6066_v4 = vpop.permute.xlu1 %836  ;;  %v6068_v10 = vpop.permute.xlu0 %833 }
  0xf1   : > { %7709 = vst [vmem:[#allocation13_spill] sm:$0xff] %v6066_v4  ;;  %7710 = vst [vmem:[#allocation14_spill] sm:$0xff] %v6068_v10  ;;  %1936 = vperm.xlu1 %5592, %v1855_v41   ;;  %1933 = vperm.xlu0 %5591, %v1854_v42   ;;  %v1861_v41 = vld [vmem:[%s6012_s18 + $0x70] sm:$0xff]  ;;  %v1860_v42 = vld [vmem:[%s6012_s18 + $0x68] sm:$0xff] }
  0xf4   : > { %v6072_v18 = vpop.permute.xlu1 %842  ;;  %v6074_v25 = vpop.permute.xlu0 %839 }
  0xf5   : > { %7711 = vst [vmem:[#allocation15_spill] sm:$0xff] %v6072_v18  ;;  %7712 = vst [vmem:[#allocation16_spill] sm:$0xff] %v6074_v25  ;;  %1942 = vperm.xlu1 %5592, %v1857_v5   ;;  %1939 = vperm.xlu0 %5591, %v1856_v9   ;;  %v1863_v5 = vld [vmem:[%s6012_s18 + $0x80] sm:$0xff]  ;;  %v1862_v9 = vld [vmem:[%s6012_s18 + $0x78] sm:$0xff] }
  0xf8   : > { %v6078_v53 = vpop.permute.xlu1 %848  ;;  %v6080_v4 = vpop.permute.xlu0 %845 }
  0xf9   : > { %7713 = vst [vmem:[#allocation17_spill] sm:$0xff] %v6078_v53  ;;  %7714 = vst [vmem:[#allocation18_spill] sm:$0xff] %v6080_v4  ;;  %1948 = vperm.xlu1 %5592, %v1859_v23   ;;  %1945 = vperm.xlu0 %5591, %v1858_v50   ;;  %v1865_v23 = vld [vmem:[%s6012_s18 + $0x90] sm:$0xff]  ;;  %v1864_v50 = vld [vmem:[%s6012_s18 + $0x88] sm:$0xff] }
  0xfc   : > { %v6084_v10 = vpop.permute.xlu1 %854  ;;  %v6086_v18 = vpop.permute.xlu0 %851 }
  0xfd   : > { %7715 = vst [vmem:[#allocation19_spill] sm:$0xff] %v6084_v10  ;;  %7716 = vst [vmem:[#allocation20_spill] sm:$0xff] %v6086_v18  ;;  %1954 = vperm.xlu1 %5592, %v1861_v41   ;;  %1951 = vperm.xlu0 %5591, %v1860_v42   ;;  %v1867_v41 = vld [vmem:[%s6012_s18 + $0xa0] sm:$0xff]  ;;  %v1866_v42 = vld [vmem:[%s6012_s18 + $0x98] sm:$0xff] }
 0x100   : > { %v6090_v25 = vpop.permute.xlu1 %860  ;;  %v6092_v53 = vpop.permute.xlu0 %857 }
 0x101   : > { %7717 = vst [vmem:[#allocation21_spill] sm:$0xff] %v6090_v25  ;;  %7718 = vst [vmem:[#allocation22_spill] sm:$0xff] %v6092_v53  ;;  %1960 = vperm.xlu1 %5592, %v1863_v5   ;;  %1957 = vperm.xlu0 %5591, %v1862_v9   ;;  %v692_v53 = vlaneseq  ;;  %v1869_v5 = vld [vmem:[%s6012_s18 + $0xb0] sm:$0xff]  ;;  %v1868_v9 = vld [vmem:[%s6012_s18 + $0xa8] sm:$0xff] }
 0x104   : > { %v6096_v4 = vpop.permute.xlu1 %866  ;;  %v6098_v10 = vpop.permute.xlu0 %863 }
 0x105   : > { %7719 = vst [vmem:[#allocation23_spill] sm:$0xff] %v6096_v4  ;;  %7720 = vst [vmem:[#allocation24_spill] sm:$0xff] %v6098_v10  ;;  %1966 = vperm.xlu1 %5592, %v1865_v23   ;;  %1963 = vperm.xlu0 %5591, %v1864_v50   ;;  %v6112_v23 = vand.u32 127, %v692_v53  ;;  %v1871_v50 = vld [vmem:[%s6012_s18 + $0xc0] sm:$0xff]  ;;  %v1873_v53 = vld [vmem:[%s6012_s18 + $0xd0] sm:$0xff] }
 0x107   : > { %vm886_vm0 = vcmp.eq.s32.totalorder %v5840_v28, %v6112_v23  ;;  %vm887_vm1 = vcmp.eq.s32.totalorder %v5849_v32, %v6112_v23  ;;  %vm888_vm2 = vcmp.eq.s32.totalorder %v5838_v27, %v6112_v23  ;;  %vm889_vm3 = vcmp.eq.s32.totalorder %v5847_v31, %v6112_v23 }
 0x108   : > { %v6102_v18 = vpop.permute.xlu1 %872  ;;  %v6104_v25 = vpop.permute.xlu0 %869  ;;  %vm891_vm4 = vcmp.eq.s32.totalorder %v5853_v35, %v6112_v23  ;;  %vm890_vm5 = vcmp.eq.s32.totalorder %v5855_v36, %v6112_v23  ;;  %vm893_vm6 = vcmp.eq.s32.totalorder %v5859_v39, %v6112_v23  ;;  %vm892_vm7 = vcmp.eq.s32.totalorder %v5861_v40, %v6112_v23 }
 0x109   : > { %7721 = vst [vmem:[#allocation25_spill] sm:$0xff] %v6102_v18  ;;  %7722 = vst [vmem:[#allocation26_spill] sm:$0xff] %v6104_v25  ;;  %1972 = vperm.xlu1 %5592, %v1867_v41   ;;  %1969 = vperm.xlu0 %5591, %v1866_v42   ;;  %v1872_v41 = vld [vmem:[%s6012_s18 + $0xc8] sm:$0xff]  ;;  %vm895_vm8 = vcmp.eq.s32.totalorder %v5865_v43, %v6112_v23  ;;  %vm894_vm9 = vcmp.eq.s32.totalorder %v5867_v44, %v6112_v23 }
 0x10a   : > { %vm897_vm10 = vcmp.eq.s32.totalorder %v5871_v47, %v6112_v23  ;;  %vm896_vm11 = vcmp.eq.s32.totalorder %v5873_v48, %v6112_v23  ;;  %vm899_vm12 = vcmp.eq.s32.totalorder %v5877_v51, %v6112_v23  ;;  %vm898_vm13 = vcmp.eq.s32.totalorder %v5879_v52, %v6112_v23 }
 0x10b   : > { %vm901_vm14 = vcmp.eq.s32.totalorder %v5883_v56, %v6112_v23  ;;  %vm900_vm15 = vcmp.eq.s32.totalorder %v5885_v57, %v6112_v23 }
 0x10c   : > { %v6108_v4 = vpop.permute.xlu1 %878  ;;  %v6110_v10 = vpop.permute.xlu0 %875 }
 0x10d   : > { %7723 = vst [vmem:[#allocation27_spill] sm:$0xff] %v6108_v4  ;;  %7724 = vst [vmem:[#allocation28_spill] sm:$0xff] %v6110_v10  ;;  %1978 = vperm.xlu1 %5592, %v1869_v5   ;;  %1975 = vperm.xlu0 %5591, %v1868_v9   ;;  %v5602_v5 = vmov 0.0  }
 0x10e   : > { %v4595_v9 = vsel %vm887_vm1, 1.0, %v5602_v5  ;;  %v4597_v4 = vsel %vm889_vm3, 1.0, %v5602_v5  ;;  %v4596_v31 = vsel %vm888_vm2, 1.0, %v5602_v5  ;;  %v4599_v27 = vsel %vm891_vm4, 1.0, %v5602_v5 }
 0x10f   : > { %v4601_v35 = vsel %vm893_vm6, 1.0, %v5602_v5  ;;  %v4603_v39 = vsel %vm895_vm8, 1.0, %v5602_v5  ;;  %v4605_v43 = vsel %vm897_vm10, 1.0, %v5602_v5  ;;  %v4607_v47 = vsel %vm899_vm12, 1.0, %v5602_v5 }
 0x110   : > { %v6116_v18 = vpop.permute.xlu1 %884  ;;  %v6118_v25 = vpop.permute.xlu0 %881  ;;  %v4609_v51 = vsel %vm901_vm14, 1.0, %v5602_v5  ;;  %vm902_vm1 = vcmp.eq.s32.totalorder %v5891_v62, %v6112_v23  ;;  %vm905_vm2 = vcmp.eq.s32.totalorder %v5895_v2, %v6112_v23  ;;  %vm904_vm3 = vcmp.eq.s32.totalorder %v5897_v3, %v6112_v23 }
 0x111   : > { %7725 = vst [vmem:[#allocation29_spill] sm:$0xff] %v6116_v18  ;;  %7726 = vst [vmem:[#allocation30_spill] sm:$0xff] %v6118_v25  ;;  %1984 = vperm.xlu1 %5592, %v1871_v50   ;;  %1981 = vperm.xlu0 %5591, %v1870_v38   ;;  %v4594_v25 = vsel %vm886_vm0, 1.0, %v5602_v5  ;;  %v1875_v38 = vld [vmem:[%s6012_s18 + $0xe0] sm:$0xff]  ;;  %v1874_v50 = vld [vmem:[%s6012_s18 + $0xd8] sm:$0xff]  ;;  %vm903_vm0 = vcmp.eq.s32.totalorder %v5889_v61, %v6112_v23  ;;  %vm907_vm4 = vcmp.eq.s32.totalorder %v5901_v7, %v6112_v23 }
 0x112   : > { %v4611_v56 = vsel %vm903_vm0, 1.0, %v5602_v5  ;;  %v4613_v61 = vsel %vm905_vm2, 1.0, %v5602_v5  ;;  %v671_v7 = vld [vmem:[%s5824_s22 + $0x158] sm:$0xff]  ;;  %vm909_vm6 = vcmp.eq.s32.totalorder %v5907_v12, %v6112_v23  ;;  %v4615_v2 = vsel %vm907_vm4, 1.0, %v5602_v5 }
 0x113   : > { %vm911_vm8 = vcmp.eq.s32.totalorder %v5919_v19, %v6112_v23  ;;  %v4617_v12 = vsel %vm909_vm6, 1.0, %v5602_v5  ;;  %vm913_vm10 = vcmp.eq.s32.totalorder %v5935_v30, %v6112_v23  ;;  %vm915_vm12 = vcmp.eq.s32.totalorder %v5951_v45, %v6112_v23 }
 0x114   : > { %v1086_v42 = vpop.permute.xlu1 %1085  ;;  %v1081_v18 = vpop.permute.xlu0 %1080  ;;  %v4619_v19 = vsel %vm911_vm8, 1.0, %v5602_v5  ;;  %v4621_v30 = vsel %vm913_vm10, 1.0, %v5602_v5  ;;  %vm917_vm14 = vcmp.eq.s32.totalorder %v5967_v59, %v6112_v23  ;;  %v4623_v45 = vsel %vm915_vm12, 1.0, %v5602_v5 }
 0x115   : > { %v1399_v28 = vmul.f32 %v4595_v9, %v1086_v42  ;;  %1990 = vperm.xlu1 %5592, %v1873_v53   ;;  %1987 = vperm.xlu0 %5591, %v1872_v41   ;;  %v1398_v32 = vmul.f32 %v4594_v25, %v1081_v18  ;;  %v1877_v41 = vld [vmem:[%s6012_s18 + $0xf0] sm:$0xff]  ;;  %v1876_v42 = vld [vmem:[%s6012_s18 + $0xe8] sm:$0xff]  ;;  %vm919_vm0 = vcmp.eq.s32.totalorder %v5983_v14, %v6112_v23  ;;  %v4625_v59 = vsel %vm917_vm14, 1.0, %v5602_v5 }
 0x116   : > { %vm921_vm2 = vcmp.eq.s32.totalorder %v5999_v29, %v6112_v23  ;;  %v4627_v14 = vsel %vm919_vm0, 1.0, %v5602_v5  ;;  %vm923_vm4 = vcmp.eq.s32.totalorder %v6021_v54, %v6112_v23  ;;  %vm924_vm6 = vcmp.eq.s32.totalorder %v6039_v24, %v6112_v23 }
 0x117   : > { %5079 = vmatprep.mubr.f32.mxu0 %v1398_v32  ;;  %v1879_v32 = vld [vmem:[%s6012_s18 + $0x100] sm:$0xff]  ;;  %v4629_v29 = vsel %vm921_vm2, 1.0, %v5602_v5  ;;  %v4631_v54 = vsel %vm923_vm4, 1.0, %v5602_v5  ;;  %v5603_v24 = vmov 1.0  }
 0x118   : > { %v1096_v10 = vpop.permute.xlu1 %1095  ;;  %5080 = vmatmul.mubr.f32.vlgmr.msra.gmra.mrb[0].mxu0 %v1399_v28  ;;  %v1091_v53 = vpop.permute.xlu0 %1090 }
 0x119   : > { %v1401_v25 = vmul.f32 %v4597_v4, %v1096_v10  ;;  %v1400_v18 = vmul.f32 %v4596_v31, %v1091_v53  ;;  %1996 = vperm.xlu1 %5592, %v1875_v38   ;;  %1993 = vperm.xlu0 %5591, %v1874_v50   ;;  %v4598_v4 = vsel %vm890_vm5, 1.0, %v5602_v5  ;;  %v1878_v38 = vld [vmem:[%s6012_s18 + $0xf8] sm:$0xff]  ;;  %v4600_v50 = vsel %vm892_vm7, 1.0, %v5602_v5 }
 0x11a   : > { %5493 = vmatpush3.bf16.msra.mxu0 %v5746_v55  ;;  %vm906_vm5 = vcmp.eq.s32.totalorder %v5903_v8, %v6112_v23  ;;  %vm908_vm7 = vcmp.eq.s32.totalorder %v5909_v13, %v6112_v23 }
 0x11b   : > { %5082 = vmatprep.mubr.f32.mxu0 %v1400_v18  ;;  %5495 = vmatprep.subr.bf16.mxu0 %v5758_v60  ;;  %v1881_v18 = vld [vmem:[%s6012_s18 + $0x110] sm:$0xff] }
 0x11c   : > { %v1106_v36 = vpop.permute.xlu1 %1105  ;;  %5083 = vmatmul.mubr.f32.gmra.mrb[2].mxu0 %v1401_v25  ;;  %v1101_v10 = vpop.permute.xlu0 %1100 }
 0x11d   : > { %v1403_v9 = vmul.f32 %v4599_v27, %v1106_v36  ;;  %v1402_v28 = vmul.f32 %v4598_v4, %v1101_v10  ;;  %2002 = vperm.xlu1 %5592, %v1877_v41   ;;  %1999 = vperm.xlu0 %5591, %v1876_v42   ;;  %v1880_v41 = vld [vmem:[%s6012_s18 + $0x108] sm:$0xff]  ;;  %v4602_v42 = vsel %vm894_vm9, 1.0, %v5602_v5  ;;  %v1883_v10 = vld [vmem:[%s6012_s18 + $0x120] sm:$0xff]  ;;  %vm910_vm9 = vcmp.eq.s32.totalorder %v5921_v20, %v6112_v23 }
 0x11e   : > { %5497 = vmatpush3.bf16.msra.mxu0 %v5758_v60 }
 0x11f   : > { %5085 = vmatprep.mubr.f32.mxu0 %v1402_v28  ;;  %5499 = vmatprep.subr.bf16.mxu0 %v5770_v1  ;;  %v4604_v28 = vsel %vm896_vm11, 1.0, %v5602_v5  ;;  %vm912_vm11 = vcmp.eq.s32.totalorder %v5937_v33, %v6112_v23 }
 0x120   : > { %v1116_v40 = vpop.permute.xlu1 %1115  ;;  %5086 = vmatmul.mubr.f32.gmra.mrb[4].mxu0 %v1403_v9  ;;  %v1111_v31 = vpop.permute.xlu0 %1110  ;;  %v1882_v9 = vld [vmem:[%s6012_s18 + $0x118] sm:$0xff] }
 0x121   : > { %v1405_v53 = vmul.f32 %v4601_v35, %v1116_v40  ;;  %v1404_v25 = vmul.f32 %v4600_v50, %v1111_v31  ;;  %2008 = vperm.xlu1 %5592, %v1879_v32   ;;  %2005 = vperm.xlu0 %5591, %v1878_v38   ;;  %v667_v40 = vld [vmem:[%s5824_s22 + $0x138] sm:$0xff]  ;;  %v1884_v50 = vld [vmem:[%s6012_s18 + $0x128] sm:$0xff]  ;;  %v4606_v31 = vsel %vm898_vm13, 1.0, %v5602_v5  ;;  %vm914_vm13 = vcmp.eq.s32.totalorder %v5953_v46, %v6112_v23 }
 0x122   : > { %5501 = vmatpush3.bf16.msra.mxu0 %v5770_v1 }
 0x123   : > { %5088 = vmatprep.mubr.f32.mxu0 %v1404_v25  ;;  %5503 = vmatprep.subr.bf16.mxu0 %v5782_v6 }
 0x124   : > { %v1126_v44 = vpop.permute.xlu1 %1125  ;;  %5089 = vmatmul.mubr.f32.gmra.mrb[6].mxu0 %v1405_v53  ;;  %v1121_v27 = vpop.permute.xlu0 %1120 }
 0x125   : > { %v1407_v36 = vmul.f32 %v4603_v39, %v1126_v44  ;;  %v1406_v4 = vmul.f32 %v4602_v42, %v1121_v27  ;;  %2014 = vperm.xlu1 %5592, %v1881_v18   ;;  %2011 = vperm.xlu0 %5591, %v1880_v41   ;;  %v668_v41 = vld [vmem:[%s5824_s22 + $0x140] sm:$0xff]  ;;  %v1885_v39 = vld [vmem:[%s6012_s18 + $0x130] sm:$0xff]  ;;  %v4608_v44 = vsel %vm900_vm15, 1.0, %v5602_v5  ;;  %vm916_vm15 = vcmp.eq.s32.totalorder %v5969_v63, %v6112_v23 }
 0x126   : > { %5505 = vmatpush3.bf16.msra.mxu0 %v5782_v6 }
 0x127   : > { %5091 = vmatprep.mubr.f32.mxu0 %v1406_v4  ;;  %5507 = vmatprep.subr.bf16.mxu0 %v5794_v11  ;;  %v669_v4 = vld [vmem:[%s5824_s22 + $0x148] sm:$0xff] }
 0x128   : > { %v1136_v48 = vpop.permute.xlu1 %1135  ;;  %5092 = vmatmul.mubr.f32.gmra.mrb[8].mxu0 %v1407_v36  ;;  %v1131_v32 = vpop.permute.xlu0 %1130 }
 0x129   : > { %v1409_v38 = vmul.f32 %v4605_v43, %v1136_v48  ;;  %v1408_v35 = vmul.f32 %v4604_v28, %v1131_v32  ;;  %2020 = vperm.xlu1 %5592, %v1883_v10   ;;  %2017 = vperm.xlu0 %5591, %v1882_v9   ;;  %v1886_v10 = vld [vmem:[%s6012_s18 + $0x138] sm:$0xff]  ;;  %v4610_v9 = vsel %vm902_vm1, 1.0, %v5602_v5  ;;  %v670_v32 = vld [vmem:[%s5824_s22 + $0x150] sm:$0xff]  ;;  %vm918_vm1 = vcmp.eq.s32.totalorder %v5985_v15, %v6112_v23 }
 0x12a   : > { %5509 = vmatpush3.bf16.msra.mxu0 %v5794_v11 }
 0x12b   : > { %5094 = vmatprep.mubr.f32.mxu0 %v1408_v35  ;;  %5511 = vmatprep.subr.bf16.mxu0 %v5806_v16  ;;  %v4612_v35 = vsel %vm904_vm3, 1.0, %v5602_v5  ;;  %vm920_vm3 = vcmp.eq.s32.totalorder %v6001_v37, %v6112_v23 }
 0x12c   : > { %v1146_v52 = vpop.permute.xlu1 %1145  ;;  %5095 = vmatmul.mubr.f32.gmra.mrb[10].mxu0 %v1409_v38  ;;  %v1141_v53 = vpop.permute.xlu0 %1140  ;;  %v1887_v38 = vld [vmem:[%s6012_s18 + $0x140] sm:$0xff] }
 0x12d   : > { %v1411_v25 = vmul.f32 %v4607_v47, %v1146_v52  ;;  %v1410_v18 = vmul.f32 %v4606_v31, %v1141_v53  ;;  %1275 = vperm.xlu1 %5592, %v667_v40   ;;  %2023 = vperm.xlu0 %5591, %v1884_v50   ;;  %v1888_v52 = vld [vmem:[%s6012_s18 + $0x148] sm:$0xff]  ;;  %v4614_v53 = vsel %vm906_vm5, 1.0, %v5602_v5  ;;  %vm922_vm5 = vcmp.eq.s32.totalorder %v6023_v58, %v6112_v23 }
 0x12e   : > { %5513 = vmatpush3.bf16.msra.mxu0 %v5806_v16 }
 0x12f   : > { %5097 = vmatprep.mubr.f32.mxu0 %v1410_v18  ;;  %5515 = vmatprep.subr.bf16.mxu0 %v5818_v21 }
 0x130   : > { %v1156_v57 = vpop.permute.xlu1 %1155  ;;  %5098 = vmatmul.mubr.f32.gmra.mrb[12].mxu0 %v1411_v25  ;;  %v1151_v42 = vpop.permute.xlu0 %1150 }
 0x131   : > { %v1413_v27 = vmul.f32 %v4609_v51, %v1156_v57  ;;  %v1412_v36 = vmul.f32 %v4608_v44, %v1151_v42  ;;  %1280 = vperm.xlu1 %5592, %v668_v41   ;;  %2026 = vperm.xlu0 %5591, %v1885_v39   ;;  %v672_v41 = vld [vmem:[%s5824_s22 + $0x160] sm:$0xff]  ;;  %v1889_v39 = vld [vmem:[%s6012_s18 + $0x150] sm:$0xff]  ;;  %v4616_v57 = vsel %vm908_vm7, 1.0, %v5602_v5 }
 0x132   : > { %5517 = vmatpush3.bf16.msra.mxu0 %v5818_v21 }
 0x133   : > { %5100 = vmatprep.mubr.f32.mxu0 %v1412_v36  ;;  %5519 = vmatprep.subr.bf16.mxu0 %v5836_v26  ;;  %v1890_v36 = vld [vmem:[%s6012_s18 + $0x158] sm:$0xff] }
 0x134   : > { %v1166_v62 = vpop.permute.xlu1 %1165  ;;  %5101 = vmatmul.mubr.f32.gmra.mrb[14].mxu0 %v1413_v27  ;;  %v1161_v43 = vpop.permute.xlu0 %1160  ;;  %v673_v27 = vld [vmem:[%s5824_s22 + $0x168] sm:$0xff] }
 0x135   : > { %v1415_v48 = vmul.f32 %v4611_v56, %v1166_v62  ;;  %v1414_v28 = vmul.f32 %v4610_v9, %v1161_v43  ;;  %1285 = vperm.xlu1 %5592, %v669_v4   ;;  %2029 = vperm.xlu0 %5591, %v1886_v10   ;;  %v4618_v10 = vsel %vm910_vm9, 1.0, %v5602_v5  ;;  %v674_v9 = vld [vmem:[%s5824_s22 + $0x170] sm:$0xff]  ;;  %v1891_v43 = vld [vmem:[%s6012_s18 + $0x160] sm:$0xff] }
 0x136   : > { %5521 = vmatpush3.bf16.msra.mxu0 %v5836_v26 }
 0x137   : > { %5103 = vmatprep.mubr.f32.mxu0 %v1414_v28  ;;  %v4620_v28 = vsel %vm912_vm11, 1.0, %v5602_v5 }
 0x138   : > { %v1176_v3 = vpop.permute.xlu1 %1175  ;;  %5104 = vmatmul.mubr.f32.gmra.mrb[16].mxu0 %v1415_v48  ;;  %v1171_v40 = vpop.permute.xlu0 %1170 }
 0x139   : > { %v1417_v50 = vmul.f32 %v4613_v61, %v1176_v3  ;;  %v1416_v47 = vmul.f32 %v4612_v35, %v1171_v40  ;;  %1290 = vperm.xlu1 %5592, %v670_v32   ;;  %2032 = vperm.xlu0 %5591, %v1887_v38   ;;  %v675_v61 = vld [vmem:[%s5824_s22 + $0x178] sm:$0xff]  ;;  %v1892_v3 = vld [vmem:[%s6012_s18 + $0x168] sm:$0xff]  ;;  %v4622_v40 = vsel %vm914_vm13, 1.0, %v5602_v5 }
 0x13b   : > { %5106 = vmatprep.mubr.f32.mxu0 %v1416_v47 }
 0x13c   : > { %v1186_v31 = vpop.permute.xlu1 %1185  ;;  %5107 = vmatmul.mubr.f32.gmra.mrb[18].mxu0 %v1417_v50  ;;  %v1181_v25 = vpop.permute.xlu0 %1180 }
 0x13d   : > { %v1419_v8 = vmul.f32 %v4615_v2, %v1186_v31  ;;  %v1418_v18 = vmul.f32 %v4614_v53, %v1181_v25  ;;  %1295 = vperm.xlu1 %5592, %v671_v7   ;;  %2035 = vperm.xlu0 %5591, %v1888_v52   ;;  %v676_v7 = vld [vmem:[%s5824_s22 + $0x180] sm:$0xff]  ;;  %v1893_v52 = vld [vmem:[%s6012_s18 + $0x170] sm:$0xff]  ;;  %v4624_v31 = vsel %vm916_vm15, 1.0, %v5602_v5 }
 0x13f   : > { %5109 = vmatprep.mubr.f32.mxu0 %v1418_v18  ;;  %v1894_v18 = vld [vmem:[%s6012_s18 + $0x178] sm:$0xff] }
 0x140   : > { %v1196_v51 = vpop.permute.xlu1 %1195  ;;  %5110 = vmatmul.mubr.f32.gmra.mrb[20].mxu0 %v1419_v8  ;;  %v1191_v44 = vpop.permute.xlu0 %1190  ;;  %v677_v8 = vld [vmem:[%s5824_s22 + $0x188] sm:$0xff] }
 0x141   : > { %v1421_v13 = vmul.f32 %v4617_v12, %v1196_v51  ;;  %v1420_v42 = vmul.f32 %v4616_v57, %v1191_v44  ;;  %1300 = vperm.xlu1 %5592, %v672_v41   ;;  %2038 = vperm.xlu0 %5591, %v1889_v39   ;;  %v4626_v39 = vsel %vm918_vm1, 1.0, %v5602_v5  ;;  %v678_v57 = vld [vmem:[%s5824_s22 + $0x190] sm:$0xff]  ;;  %v1895_v44 = vld [vmem:[%s6012_s18 + $0x180] sm:$0xff] }
 0x143   : > { %5112 = vmatprep.mubr.f32.mxu0 %v1420_v42  ;;  %v4628_v42 = vsel %vm920_vm3, 1.0, %v5602_v5 }
 0x144   : > { %v1206_v4 = vpop.permute.xlu1 %1205  ;;  %5113 = vmatmul.mubr.f32.gmra.mrb[22].mxu0 %v1421_v13  ;;  %v1201_v56 = vpop.permute.xlu0 %1200 }
 0x145   : > { %v1423_v20 = vmul.f32 %v4619_v19, %v1206_v4  ;;  %v1422_v62 = vmul.f32 %v4618_v10, %v1201_v56  ;;  %1305 = vperm.xlu1 %5592, %v673_v27   ;;  %2041 = vperm.xlu0 %5591, %v1890_v36   ;;  %v679_v19 = vld [vmem:[%s5824_s22 + $0x198] sm:$0xff]  ;;  %v1896_v4 = vld [vmem:[%s6012_s18 + $0x188] sm:$0xff]  ;;  %v4630_v56 = vsel %vm922_vm5, 1.0, %v5602_v5 }
 0x147   : > { %5115 = vmatprep.mubr.f32.mxu0 %v1422_v62 }
 0x148   : > { %v1216_v48 = vpop.permute.xlu1 %1215  ;;  %5116 = vmatmul.mubr.f32.gmra.mrb[24].mxu0 %v1423_v20  ;;  %v1211_v32 = vpop.permute.xlu0 %1210 }
 0x149   : > { %v1425_v33 = vmul.f32 %v4621_v30, %v1216_v48  ;;  %v1424_v38 = vmul.f32 %v4620_v28, %v1211_v32  ;;  %1310 = vperm.xlu1 %5592, %v674_v9   ;;  %2044 = vperm.xlu0 %5591, %v1891_v43   ;;  %v680_v9 = vld [vmem:[%s5824_s22 + $0x1a0] sm:$0xff]  ;;  %v1897_v43 = vld [vmem:[%s6012_s18 + $0x190] sm:$0xff]  ;;  %v4632_v48 = vsel %vm924_vm6, 1.0, %v5602_v5 }
 0x14b   : > { %5118 = vmatprep.mubr.f32.mxu0 %v1424_v38  ;;  %v1898_v38 = vld [vmem:[%s6012_s18 + $0x198] sm:$0xff] }
 0x14c   : > { %v1226_v35 = vpop.permute.xlu1 %1225  ;;  %5119 = vmatmul.mubr.f32.gmra.mrb[26].mxu0 %v1425_v33  ;;  %v1221_v50 = vpop.permute.xlu0 %1220  ;;  %v681_v33 = vld [vmem:[%s5824_s22 + $0x1a8] sm:$0xff] }
 0x14d   : > { %v1427_v46 = vmul.f32 %v4623_v45, %v1226_v35  ;;  %v1426_v47 = vmul.f32 %v4622_v40, %v1221_v50  ;;  %1315 = vperm.xlu1 %5592, %v675_v61   ;;  %2047 = vperm.xlu0 %5591, %v1892_v3   ;;  %v682_v45 = vld [vmem:[%s5824_s22 + $0x1b0] sm:$0xff]  ;;  %v1899_v35 = vld [vmem:[%s6012_s18 + $0x1a0] sm:$0xff] }
 0x14f   : > { %5121 = vmatprep.mubr.f32.mxu0 %v1426_v47  ;;  %v1900_v47 = vld [vmem:[%s6012_s18 + $0x1a8] sm:$0xff] }
 0x150   : > { %v1236_v2 = vpop.permute.xlu1 %1235  ;;  %5122 = vmatmul.mubr.f32.gmra.mrb[28].mxu0 %v1427_v46  ;;  %v1231_v53 = vpop.permute.xlu0 %1230  ;;  %v683_v46 = vld [vmem:[%s5824_s22 + $0x1b8] sm:$0xff] }
 0x151   : > { %v1429_v63 = vmul.f32 %v4625_v59, %v1236_v2  ;;  %v1428_v25 = vmul.f32 %v4624_v31, %v1231_v53  ;;  %1320 = vperm.xlu1 %5592, %v676_v7   ;;  %2050 = vperm.xlu0 %5591, %v1893_v52   ;;  %v684_v52 = vld [vmem:[%s5824_s22 + $0x1c0] sm:$0xff]  ;;  %v1901_v59 = vld [vmem:[%s6012_s18 + $0x1b0] sm:$0xff]  ;;  %v685_v31 = vld [vmem:[%s5824_s22 + $0x1c8] sm:$0xff] }
 0x152   : > { %v1902_v53 = vld [vmem:[%s6012_s18 + $0x1b8] sm:$0xff] }
 0x153   : > { %5124 = vmatprep.mubr.f32.mxu0 %v1428_v25  ;;  %v686_v25 = vld [vmem:[%s5824_s22 + $0x1d0] sm:$0xff] }
 0x154   : > { %v1246_v41 = vpop.permute.xlu1 %1245  ;;  %5125 = vmatmul.mubr.f32.gmra.mrb[30].mxu0 %v1429_v63  ;;  %v1241_v12 = vpop.permute.xlu0 %1240 }
 0x155   : > { %v1431_v15 = vmul.f32 %v4627_v14, %v1246_v41  ;;  %v1430_v51 = vmul.f32 %v4626_v39, %v1241_v12  ;;  %1325 = vperm.xlu1 %5592, %v677_v8   ;;  %2053 = vperm.xlu0 %5591, %v1894_v18   ;;  %v1903_v8 = vld [vmem:[%s6012_s18 + $0x1c0] sm:$0xff]  ;;  %v687_v41 = vld [vmem:[%s5824_s22 + $0x1d8] sm:$0xff]  ;;  %v1904_v39 = vld [vmem:[%s6012_s18 + $0x1c8] sm:$0xff] }
 0x156   : > { %v7727_v14 = vld [vmem:[#allocation3_spill] sm:$0xff] }
 0x157   : > { %5127 = vmatprep.mubr.f32.mxu0 %v1430_v51  ;;  %v688_v51 = vld [vmem:[%s5824_s22 + $0x1e0] sm:$0xff] }
 0x158   : > { %v1256_v13 = vpop.permute.xlu1 %1255  ;;  %5128 = vmatmul.mubr.f32.gmra.mrb[32].mxu0 %v1431_v15  ;;  %v1251_v27 = vpop.permute.xlu0 %1250  ;;  %v7728_v15 = vld [vmem:[#allocation4_spill] sm:$0xff] }
 0x159   : > { %v1433_v37 = vmul.f32 %v4629_v29, %v1256_v13  ;;  %v1432_v36 = vmul.f32 %v4628_v42, %v1251_v27  ;;  %1330 = vperm.xlu1 %5592, %v678_v57   ;;  %2056 = vperm.xlu0 %5591, %v1895_v44   ;;  %v1905_v57 = vld [vmem:[%s6012_s18 + $0x1d0] sm:$0xff]  ;;  %v7729_v13 = vld [vmem:[#allocation6_spill] sm:$0xff]  ;;  %v689_v42 = vld [vmem:[%s5824_s22 + $0x1e8] sm:$0xff] }
 0x15a   : > { %v1906_v27 = vld [vmem:[%s6012_s18 + $0x1d8] sm:$0xff] }
 0x15b   : > { %5130 = vmatprep.mubr.f32.mxu0 %v1432_v36 }
 0x15c   : > { %v1266_v10 = vpop.permute.xlu1 %1265  ;;  %5131 = vmatmul.mubr.f32.gmra.mrb[34].mxu0 %v1433_v37  ;;  %v1261_v20 = vpop.permute.xlu0 %1260 }
 0x15d   : > { %v1435_v58 = vmul.f32 %v4631_v54, %v1266_v10  ;;  %v1434_v62 = vmul.f32 %v4630_v56, %v1261_v20  ;;  %1335 = vperm.xlu1 %5592, %v679_v19   ;;  %2059 = vperm.xlu0 %5591, %v1896_v4   ;;  %v690_v19 = vld [vmem:[%s5824_s22 + $0x1f0] sm:$0xff]  ;;  %v1907_v4 = vld [vmem:[%s6012_s18 + $0x1e0] sm:$0xff]  ;;  %v691_v56 = vld [vmem:[%s5824_s22 + $0x1f8] sm:$0xff] }
 0x15e   : > { %v1908_v20 = vld [vmem:[%s6012_s18 + $0x1e8] sm:$0xff] }
 0x15f   : > { %5133 = vmatprep.mubr.f32.mxu0 %v1434_v62 }
 0x160   : > { %v1913_v30 = vpop.permute.xlu1 %1912  ;;  %5134 = vmatmul.mubr.f32.gmra.mrb[36].mxu0 %v1435_v58  ;;  %v1271_v28 = vpop.permute.xlu0 %1270 }
 0x161   : > { %v1436_v32 = vmul.f32 %v4632_v48, %v1271_v28  ;;  %1340 = vperm.xlu1 %5592, %v680_v9   ;;  %2062 = vperm.xlu0 %5591, %v1897_v43   ;;  %vm2103_vm7 = vcmp.eq.s32.totalorder %v1913_v30, %v6112_v23  ;;  %v1910_v9 = vld [vmem:[%s6012_s18 + $0x1f8] sm:$0xff]  ;;  %v1909_v43 = vld [vmem:[%s6012_s18 + $0x1f0] sm:$0xff]  ;;  %v3129_v28 = vld [vmem:[%s6411_s13 + $0x8] sm:$0xff] }
 0x162   : > { %5207 = vmatprep.mubr.msk.f32.mxu1 %vm2103_vm7, %v5603_v24 }
 0x163   : > { %5136 = vmatprep.mubr.f32.mxu0 %v1436_v32  ;;  %v3128_v32 = vld [vmem:[%s6411_s13] sm:$0xff] }
 0x164   : > { %v1919_v61 = vpop.permute.xlu1 %1918  ;;  %v1916_v3 = vpop.permute.xlu0 %1915 }
 0x165   : > { %vm2105_vm8 = vcmp.eq.s32.totalorder %v1919_v61, %v6112_v23  ;;  %vm2104_vm9 = vcmp.eq.s32.totalorder %v1916_v3, %v6112_v23  ;;  %1345 = vperm.xlu1 %5592, %v681_v33   ;;  %2065 = vperm.xlu0 %5591, %v1898_v38   ;;  %v3482_v61 = vld [vmem:[%s6423_s16 + $0x8] sm:$0xff]  ;;  %v3481_v3 = vld [vmem:[%s6423_s16] sm:$0xff] }
 0x166   : > { %5208 = vmatmul.mubr.msk.f32.vlgmr.msra.gmra.mrb[0].mxu1 %vm2104_vm9, %v5603_v24 }
 0x167   : > { %5210 = vmatprep.mubr.msk.f32.mxu1 %vm2105_vm8, %v5603_v24  ;;  %5525 = vmatpush3.bf16.msra.mxu1 %v5923_v22 }
 0x168   : > { %v1925_v40 = vpop.permute.xlu1 %1924  ;;  %v1922_v50 = vpop.permute.xlu0 %1921  ;;  %5527 = vmatprep.subr.bf16.mxu1 %v5939_v34 }
 0x169   : > { %vm2107_vm10 = vcmp.eq.s32.totalorder %v1925_v40, %v6112_v23  ;;  %vm2106_vm11 = vcmp.eq.s32.totalorder %v1922_v50, %v6112_v23  ;;  %1350 = vperm.xlu1 %5592, %v682_v45   ;;  %2068 = vperm.xlu0 %5591, %v1899_v35   ;;  %v5604_v45 = vmov 0.0|0.0   ;;  %v3131_v50 = vld [vmem:[%s6411_s13 + $0x18] sm:$0xff] }
 0x16a   : > { %5211 = vmatmul.mubr.msk.f32.gmra.mrb[2].mxu1 %vm2106_vm11, %v5603_v24  ;;  %5554 = vmatprep.subr.bf16.mxu0 %v5604_v45 }
 0x16b   : > { %5213 = vmatprep.mubr.msk.f32.mxu1 %vm2107_vm10, %v5603_v24  ;;  %5529 = vmatpush3.bf16.msra.mxu1 %v5939_v34 }
 0x16c   : > { %v1931_v22 = vpop.permute.xlu1 %1930  ;;  %v1928_v7 = vpop.permute.xlu0 %1927  ;;  %5531 = vmatprep.subr.bf16.mxu1 %v5955_v49 }
 0x16d   : > { %vm2109_vm12 = vcmp.eq.s32.totalorder %v1931_v22, %v6112_v23  ;;  %vm2108_vm13 = vcmp.eq.s32.totalorder %v1928_v7, %v6112_v23  ;;  %1355 = vperm.xlu1 %5592, %v683_v46   ;;  %2071 = vperm.xlu0 %5591, %v1900_v47   ;;  %v3130_v46 = vld [vmem:[%s6411_s13 + $0x10] sm:$0xff]  ;;  %v3484_v7 = vld [vmem:[%s6423_s16 + $0x18] sm:$0xff] }
 0x16e   : > { %5214 = vmatmul.mubr.msk.f32.gmra.mrb[4].mxu1 %vm2108_vm13, %v5603_v24 }
 0x16f   : > { %5216 = vmatprep.mubr.msk.f32.mxu1 %vm2109_vm12, %v5603_v24  ;;  %5533 = vmatpush3.bf16.msra.mxu1 %v5955_v49 }
 0x170   : > { %v1937_v34 = vpop.permute.xlu1 %1936  ;;  %v1934_v2 = vpop.permute.xlu0 %1933  ;;  %5535 = vmatprep.subr.bf16.mxu1 %v5971_v0 }
 0x171   : > { %vm2111_vm14 = vcmp.eq.s32.totalorder %v1937_v34, %v6112_v23  ;;  %vm2110_vm15 = vcmp.eq.s32.totalorder %v1934_v2, %v6112_v23  ;;  %1360 = vperm.xlu1 %5592, %v684_v52   ;;  %2074 = vperm.xlu0 %5591, %v1901_v59   ;;  %v3483_v52 = vld [vmem:[%s6423_s16 + $0x10] sm:$0xff]  ;;  %v3133_v2 = vld [vmem:[%s6411_s13 + $0x28] sm:$0xff] }
 0x172   : > { %5217 = vmatmul.mubr.msk.f32.gmra.mrb[6].mxu1 %vm2110_vm15, %v5603_v24 }
 0x173   : > { %5219 = vmatprep.mubr.msk.f32.mxu1 %vm2111_vm14, %v5603_v24  ;;  %5537 = vmatpush3.bf16.msra.mxu1 %v5971_v0 }
 0x174   : > { %v1943_v49 = vpop.permute.xlu1 %1942  ;;  %v1940_v63 = vpop.permute.xlu0 %1939  ;;  %5539 = vmatprep.subr.bf16.mxu1 %v5987_v17 }
 0x175   : > { %vm2113_vm0 = vcmp.eq.s32.totalorder %v1943_v49, %v6112_v23  ;;  %vm2112_vm1 = vcmp.eq.s32.totalorder %v1940_v63, %v6112_v23  ;;  %1365 = vperm.xlu1 %5592, %v685_v31   ;;  %2077 = vperm.xlu0 %5591, %v1902_v53   ;;  %v3132_v31 = vld [vmem:[%s6411_s13 + $0x20] sm:$0xff]  ;;  %v3486_v63 = vld [vmem:[%s6423_s16 + $0x28] sm:$0xff] }
 0x176   : > { %5220 = vmatmul.mubr.msk.f32.gmra.mrb[8].mxu1 %vm2112_vm1, %v5603_v24 }
 0x177   : > { %5222 = vmatprep.mubr.msk.f32.mxu1 %vm2113_vm0, %v5603_v24  ;;  %5541 = vmatpush3.bf16.msra.mxu1 %v5987_v17 }
 0x178   : > { %v1949_v0 = vpop.permute.xlu1 %1948  ;;  %v1946_v18 = vpop.permute.xlu0 %1945  ;;  %5543 = vmatprep.subr.bf16.mxu1 %v7727_v14 }
 0x179   : > { %vm2115_vm2 = vcmp.eq.s32.totalorder %v1949_v0, %v6112_v23  ;;  %vm2114_vm3 = vcmp.eq.s32.totalorder %v1946_v18, %v6112_v23  ;;  %1370 = vperm.xlu1 %5592, %v686_v25   ;;  %2080 = vperm.xlu0 %5591, %v1903_v8   ;;  %v3485_v25 = vld [vmem:[%s6423_s16 + $0x20] sm:$0xff]  ;;  %v7730_v18 = vld [vmem:[#allocation5_spill] sm:$0xff] }
 0x17a   : > { %5223 = vmatmul.mubr.msk.f32.gmra.mrb[10].mxu1 %vm2114_vm3, %v5603_v24 }
 0x17b   : > { %5225 = vmatprep.mubr.msk.f32.mxu1 %vm2115_vm2, %v5603_v24  ;;  %5545 = vmatpush3.bf16.msra.mxu1 %v7727_v14  ;;  %v3135_v14 = vld [vmem:[%s6411_s13 + $0x38] sm:$0xff] }
 0x17c   : > { %v1955_v17 = vpop.permute.xlu1 %1954  ;;  %v1952_v12 = vpop.permute.xlu0 %1951  ;;  %5547 = vmatprep.subr.bf16.mxu1 %v7728_v15 }
 0x17d   : > { %vm2117_vm4 = vcmp.eq.s32.totalorder %v1955_v17, %v6112_v23  ;;  %vm2116_vm5 = vcmp.eq.s32.totalorder %v1952_v12, %v6112_v23  ;;  %1375 = vperm.xlu1 %5592, %v687_v41   ;;  %2083 = vperm.xlu0 %5591, %v1904_v39   ;;  %v3134_v41 = vld [vmem:[%s6411_s13 + $0x30] sm:$0xff] }
 0x17e   : > { %5226 = vmatmul.mubr.msk.f32.gmra.mrb[12].mxu1 %vm2116_vm5, %v5603_v24 }
 0x17f   : > { %5228 = vmatprep.mubr.msk.f32.mxu1 %vm2117_vm4, %v5603_v24  ;;  %5549 = vmatpush3.bf16.msra.mxu1 %v7728_v15  ;;  %v7731_v15 = vld [vmem:[#allocation8_spill] sm:$0xff] }
 0x180   : > { %v1961_v44 = vpop.permute.xlu1 %1960  ;;  %v1958_v29 = vpop.permute.xlu0 %1957  ;;  %5551 = vmatprep.subr.bf16.mxu1 %v7729_v13 }
 0x181   : > { %vm2119_vm6 = vcmp.eq.s32.totalorder %v1961_v44, %v6112_v23  ;;  %vm2118_vm7 = vcmp.eq.s32.totalorder %v1958_v29, %v6112_v23  ;;  %1380 = vperm.xlu1 %5592, %v688_v51   ;;  %2086 = vperm.xlu0 %5591, %v1905_v57   ;;  %v3488_v57 = vld [vmem:[%s6423_s16 + $0x38] sm:$0xff]  ;;  %v3487_v44 = vld [vmem:[%s6423_s16 + $0x30] sm:$0xff] }
 0x182   : > { %5229 = vmatmul.mubr.msk.f32.gmra.mrb[14].mxu1 %vm2118_vm7, %v5603_v24 }
 0x183   : > { %5231 = vmatprep.mubr.msk.f32.mxu1 %vm2119_vm6, %v5603_v24  ;;  %5553 = vmatpush3.bf16.msra.mxu1 %v7729_v13 }
 0x184   : > { %v1967_v37 = vpop.permute.xlu1 %1966  ;;  %v1964_v36 = vpop.permute.xlu0 %1963 }
 0x185   : > { %vm2121_vm8 = vcmp.eq.s32.totalorder %v1967_v37, %v6112_v23  ;;  %vm2120_vm9 = vcmp.eq.s32.totalorder %v1964_v36, %v6112_v23  ;;  %1385 = vperm.xlu1 %5592, %v689_v42   ;;  %2089 = vperm.xlu0 %5591, %v1906_v27   ;;  %v7732_v27 = vld [vmem:[#allocation7_spill] sm:$0xff]  ;;  %v3835_v36 = vld [vmem:[%s6479_s23 + $0x8] sm:$0xff] }
 0x186   : > { %5232 = vmatmul.mubr.msk.f32.gmra.mrb[16].mxu1 %vm2120_vm9, %v5603_v24 }
 0x187   : > { %5234 = vmatprep.mubr.msk.f32.mxu1 %vm2121_vm8, %v5603_v24 }
 0x188   : > { %v1973_v54 = vpop.permute.xlu1 %1972  ;;  %v1970_v10 = vpop.permute.xlu0 %1969 }
 0x189   : > { %vm2123_vm10 = vcmp.eq.s32.totalorder %v1973_v54, %v6112_v23  ;;  %vm2122_vm11 = vcmp.eq.s32.totalorder %v1970_v10, %v6112_v23  ;;  %1390 = vperm.xlu1 %5592, %v690_v19   ;;  %2092 = vperm.xlu0 %5591, %v1907_v4   ;;  %v4297_v19 = vld [vmem:[%s523_s24] sm:$0xff] }
 0x18a   : > { %5235 = vmatmul.mubr.msk.f32.gmra.mrb[18].mxu1 %vm2122_vm11, %v5603_v24 }
 0x18b   : > { %5237 = vmatprep.mubr.msk.f32.mxu1 %vm2123_vm10, %v5603_v24  ;;  %vm925_vm10 = vcmp.eq.s32.totalorder %v7730_v18, %v6112_v23  ;;  %v7738_v18 = vld [vmem:[#allocation13_spill] sm:$0xff] }
 0x18c   : > { %v1979_v58 = vpop.permute.xlu1 %1978  ;;  %v1976_v62 = vpop.permute.xlu0 %1975  ;;  %v4633_v39 = vsel %vm925_vm10, 1.0, %v5602_v5 }
 0x18d   : > { %vm2125_vm12 = vcmp.eq.s32.totalorder %v1979_v58, %v6112_v23  ;;  %vm2124_vm13 = vcmp.eq.s32.totalorder %v1976_v62, %v6112_v23  ;;  %1395 = vperm.xlu1 %5592, %v691_v56   ;;  %2095 = vperm.xlu0 %5591, %v1908_v20   ;;  %v7733_v56 = vld [vmem:[#allocation10_spill] sm:$0xff]  ;;  %v3834_v58 = vld [vmem:[%s6479_s23] sm:$0xff]  ;;  %v3836_v62 = vld [vmem:[%s6479_s23 + $0x10] sm:$0xff] }
 0x18e   : > { %5238 = vmatmul.mubr.msk.f32.gmra.mrb[20].mxu1 %vm2124_vm13, %v5603_v24  ;;  %vm926_vm13 = vcmp.eq.s32.totalorder %v7731_v15, %v6112_v23 }
 0x18f   : > { %5240 = vmatprep.mubr.msk.f32.mxu1 %vm2125_vm12, %v5603_v24  ;;  %v4634_v13 = vsel %vm926_vm13, 1.0, %v5602_v5 }
 0x190   : > { %v1985_v30 = vpop.permute.xlu1 %1984  ;;  %v1982_v48 = vpop.permute.xlu0 %1981 }
 0x191   : > { %vm2127_vm14 = vcmp.eq.s32.totalorder %v1985_v30, %v6112_v23  ;;  %vm2126_vm15 = vcmp.eq.s32.totalorder %v1982_v48, %v6112_v23  ;;  %2101 = vperm.xlu1 %5592, %v1910_v9   ;;  %2098 = vperm.xlu0 %5591, %v1909_v43   ;;  %v7734_v48 = vld [vmem:[#allocation9_spill] sm:$0xff] }
 0x192   : > { %5241 = vmatmul.mubr.msk.f32.gmra.mrb[22].mxu1 %vm2126_vm15, %v5603_v24  ;;  %vm927_vm15 = vcmp.eq.s32.totalorder %v7732_v27, %v6112_v23 }
 0x193   : > { %5243 = vmatprep.mubr.msk.f32.mxu1 %vm2127_vm14, %v5603_v24  ;;  %v4635_v4 = vsel %vm927_vm15, 1.0, %v5602_v5 }
 0x194   : > { %v1991_v33 = vpop.permute.xlu1 %1990  ;;  %v1988_v38 = vpop.permute.xlu0 %1987 }
 0x195   : > { %vm2129_vm0 = vcmp.eq.s32.totalorder %v1991_v33, %v6112_v23  ;;  %vm2128_vm1 = vcmp.eq.s32.totalorder %v1988_v38, %v6112_v23  ;;  %3140 = vperm.xlu1 %5592, %v3129_v28   ;;  %3137 = vperm.xlu0 %5591, %v3128_v32   ;;  %v3838_v32 = vld [vmem:[%s6479_s23 + $0x20] sm:$0xff]  ;;  %v3837_v33 = vld [vmem:[%s6479_s23 + $0x18] sm:$0xff] }
 0x196   : > { %5244 = vmatmul.mubr.msk.f32.gmra.mrb[24].mxu1 %vm2128_vm1, %v5603_v24  ;;  %vm928_vm1 = vcmp.eq.s32.totalorder %v7733_v56, %v6112_v23  ;;  %v7742_v56 = vld [vmem:[#allocation17_spill] sm:$0xff] }
 0x197   : > { %5246 = vmatprep.mubr.msk.f32.mxu1 %vm2129_vm0, %v5603_v24  ;;  %v4636_v43 = vsel %vm928_vm1, 1.0, %v5602_v5 }
 0x198   : > { %v1997_v35 = vpop.permute.xlu1 %1996  ;;  %v1994_v40 = vpop.permute.xlu0 %1993 }
 0x199   : > { %vm2131_vm2 = vcmp.eq.s32.totalorder %v1997_v35, %v6112_v23  ;;  %vm2130_vm3 = vcmp.eq.s32.totalorder %v1994_v40, %v6112_v23  ;;  %3493 = vperm.xlu1 %5592, %v3482_v61   ;;  %3490 = vperm.xlu0 %5591, %v3481_v3   ;;  %v7735_v35 = vld [vmem:[#allocation12_spill] sm:$0xff] }
 0x19a   : > { %5247 = vmatmul.mubr.msk.f32.gmra.mrb[26].mxu1 %vm2130_vm3, %v5603_v24  ;;  %vm929_vm3 = vcmp.eq.s32.totalorder %v7734_v48, %v6112_v23 }
 0x19b   : > { %5249 = vmatprep.mubr.msk.f32.mxu1 %vm2131_vm2, %v5603_v24  ;;  %v4637_v38 = vsel %vm929_vm3, 1.0, %v5602_v5  ;;  %vm937_vm3 = vcmp.eq.s32.totalorder %v7742_v56, %v6112_v23 }
 0x19c   : > { %v2003_v47 = vpop.permute.xlu1 %2002  ;;  %v2000_v22 = vpop.permute.xlu0 %1999 }
 0x19d   : > { %vm2133_vm4 = vcmp.eq.s32.totalorder %v2003_v47, %v6112_v23  ;;  %vm2132_vm5 = vcmp.eq.s32.totalorder %v2000_v22, %v6112_v23  ;;  %3146 = vperm.xlu1 %5592, %v3131_v50   ;;  %3143 = vperm.xlu0 %5591, %v3130_v46   ;;  %v3840_v50 = vld [vmem:[%s6479_s23 + $0x30] sm:$0xff]  ;;  %v3839_v46 = vld [vmem:[%s6479_s23 + $0x28] sm:$0xff] }
 0x19e   : > { %5250 = vmatmul.mubr.msk.f32.gmra.mrb[28].mxu1 %vm2132_vm5, %v5603_v24  ;;  %vm930_vm5 = vcmp.eq.s32.totalorder %v7735_v35, %v6112_v23 }
 0x19f   : > { %5252 = vmatprep.mubr.msk.f32.mxu1 %vm2133_vm4, %v5603_v24  ;;  %v4638_v22 = vsel %vm930_vm5, 1.0, %v5602_v5 }
 0x1a0   : > { %v2009_v59 = vpop.permute.xlu1 %2008  ;;  %v2006_v34 = vpop.permute.xlu0 %2005 }
 0x1a1   : > { %vm2135_vm6 = vcmp.eq.s32.totalorder %v2009_v59, %v6112_v23  ;;  %vm2134_vm7 = vcmp.eq.s32.totalorder %v2006_v34, %v6112_v23  ;;  %3499 = vperm.xlu1 %5592, %v3484_v7   ;;  %3496 = vperm.xlu0 %5591, %v3483_v52   ;;  %v7736_v52 = vld [vmem:[#allocation11_spill] sm:$0xff]  ;;  %v3841_v34 = vld [vmem:[%s6479_s23 + $0x38] sm:$0xff] }
 0x1a2   : > { %5253 = vmatmul.mubr.msk.f32.gmra.mrb[30].mxu1 %vm2134_vm7, %v5603_v24  ;;  %vm931_vm7 = vcmp.eq.s32.totalorder %v7736_v52, %v6112_v23 }
 0x1a3   : > { %5255 = vmatprep.mubr.msk.f32.mxu1 %vm2135_vm6, %v5603_v24 }
 0x1a4   : > { %v2015_v53 = vpop.permute.xlu1 %2014  ;;  %v2012_v49 = vpop.permute.xlu0 %2011 }
 0x1a5   : > { %vm2137_vm8 = vcmp.eq.s32.totalorder %v2015_v53, %v6112_v23  ;;  %vm2136_vm9 = vcmp.eq.s32.totalorder %v2012_v49, %v6112_v23  ;;  %3152 = vperm.xlu1 %5592, %v3133_v2   ;;  %3149 = vperm.xlu0 %5591, %v3132_v31   ;;  %v4639_v2 = vsel %vm931_vm7, 1.0, %v5602_v5  ;;  %v7737_v49 = vld [vmem:[#allocation14_spill] sm:$0xff] }
 0x1a6   : > { %5256 = vmatmul.mubr.msk.f32.gmra.mrb[32].mxu1 %vm2136_vm9, %v5603_v24  ;;  %vm932_vm9 = vcmp.eq.s32.totalorder %v7737_v49, %v6112_v23 }
 0x1a7   : > { %5258 = vmatprep.mubr.msk.f32.mxu1 %vm2137_vm8, %v5603_v24 }
 0x1a8   : > { %v2021_v8 = vpop.permute.xlu1 %2020  ;;  %v2018_v0 = vpop.permute.xlu0 %2017 }
 0x1a9   : > { %vm2139_vm11 = vcmp.eq.s32.totalorder %v2021_v8, %v6112_v23  ;;  %vm2138_vm12 = vcmp.eq.s32.totalorder %v2018_v0, %v6112_v23  ;;  %3505 = vperm.xlu1 %5592, %v3486_v63   ;;  %3502 = vperm.xlu0 %5591, %v3485_v25   ;;  %v4640_v8 = vsel %vm932_vm9, 1.0, %v5602_v5 }
 0x1aa   : > { %5259 = vmatmul.mubr.msk.f32.gmra.mrb[34].mxu1 %vm2138_vm12, %v5603_v24 }
 0x1ab   : > { %5261 = vmatprep.mubr.msk.f32.mxu1 %vm2139_vm11, %v5603_v24  ;;  %vm933_vm11 = vcmp.eq.s32.totalorder %v7738_v18, %v6112_v23 }
 0x1ac   : > { %v1276_v17 = vpop.permute.xlu1 %1275  ;;  %v2024_v12 = vpop.permute.xlu0 %2023 }
 0x1ad   : > { %v1437_v51 = vmul.f32 %v4633_v39, %v1276_v17  ;;  %vm2140_vm14 = vcmp.eq.s32.totalorder %v2024_v12, %v6112_v23  ;;  %3158 = vperm.xlu1 %5592, %v3135_v14   ;;  %3155 = vperm.xlu0 %5591, %v3134_v41   ;;  %v4641_v41 = vsel %vm933_vm11, 1.0, %v5602_v5  ;;  %v7739_v12 = vld [vmem:[#allocation16_spill] sm:$0xff] }
 0x1ae   : > { %5262 = vmatmul.mubr.msk.f32.gmra.mrb[36].mxu1 %vm2140_vm14, %v5603_v24  ;;  %vm934_vm13 = vcmp.eq.s32.totalorder %v7739_v12, %v6112_v23 }
 0x1af   : > { %5137 = vmatmul.mubr.f32.gmra.mrb[38].mxu0 %v1437_v51 }
 0x1b0   : > { %v1281_v29 = vpop.permute.xlu1 %1280  ;;  %v2027_v42 = vpop.permute.xlu0 %2026 }
 0x1b1   : > { %v1438_v37 = vmul.f32 %v4634_v13, %v1281_v29  ;;  %vm2141_vm0 = vcmp.eq.s32.totalorder %v2027_v42, %v6112_v23  ;;  %3511 = vperm.xlu1 %5592, %v3488_v57   ;;  %3508 = vperm.xlu0 %5591, %v3487_v44   ;;  %v4642_v57 = vsel %vm934_vm13, 1.0, %v5602_v5  ;;  %v7740_v29 = vld [vmem:[#allocation15_spill] sm:$0xff] }
 0x1b2   : > { %5264 = vmatprep.mubr.msk.f32.mxu1 %vm2141_vm0, %v5603_v24  ;;  %vm935_vm15 = vcmp.eq.s32.totalorder %v7740_v29, %v6112_v23 }
 0x1b3   : > { %5139 = vmatprep.mubr.f32.mxu0 %v1438_v37  ;;  %v4643_v42 = vsel %vm935_vm15, 1.0, %v5602_v5 }
 0x1b4   : > { %v1286_v54 = vpop.permute.xlu1 %1285  ;;  %v2030_v10 = vpop.permute.xlu0 %2029 }
 0x1b5   : > { %v1439_v20 = vmul.f32 %v4635_v4, %v1286_v54  ;;  %vm2142_vm2 = vcmp.eq.s32.totalorder %v2030_v10, %v6112_v23  ;;  %3848 = vperm.xlu1 %5592, %v3835_v36   ;;  %4299 = vperm.xlu0 %5591, %v4297_v19   ;;  %v7741_v36 = vld [vmem:[#allocation18_spill] sm:$0xff] }
 0x1b6   : > { %5265 = vmatmul.mubr.msk.f32.gmra.mrb[38].mxu1 %vm2142_vm2, %v5603_v24  ;;  %vm936_vm1 = vcmp.eq.s32.totalorder %v7741_v36, %v6112_v23  ;;  %v7750_v36 = vld [vmem:[#allocation25_spill] sm:$0xff] }
 0x1b7   : > { %5140 = vmatmul.mubr.f32.gmra.mrb[40].mxu0 %v1439_v20  ;;  %v4644_v54 = vsel %vm936_vm1, 1.0, %v5602_v5 }
 0x1b8   : > { %v1291_v9 = vpop.permute.xlu1 %1290  ;;  %v2033_v30 = vpop.permute.xlu0 %2032 }
 0x1b9   : > { %v1440_v28 = vmul.f32 %v4636_v43, %v1291_v9  ;;  %vm2143_vm4 = vcmp.eq.s32.totalorder %v2033_v30, %v6112_v23  ;;  %3844 = vperm.xlu1 %5592, %v3834_v58   ;;  %3852 = vperm.xlu0 %5591, %v3836_v62   ;;  %v4645_v58 = vsel %vm937_vm3, 1.0, %v5602_v5  ;;  %v7743_v43 = vld [vmem:[#allocation20_spill] sm:$0xff]  ;;  %vm945_vm3 = vcmp.eq.s32.totalorder %v7750_v36, %v6112_v23 }
 0x1ba   : > { %5267 = vmatprep.mubr.msk.f32.mxu1 %vm2143_vm4, %v5603_v24  ;;  %vm938_vm5 = vcmp.eq.s32.totalorder %v7743_v43, %v6112_v23 }
 0x1bb   : > { %5142 = vmatprep.mubr.f32.mxu0 %v1440_v28  ;;  %v4646_v28 = vsel %vm938_vm5, 1.0, %v5602_v5 }
 0x1bc   : > { %v1296_v61 = vpop.permute.xlu1 %1295  ;;  %v2036_v3 = vpop.permute.xlu0 %2035 }
 0x1bd   : > { %v1441_v40 = vmul.f32 %v4637_v38, %v1296_v61  ;;  %vm2144_vm6 = vcmp.eq.s32.totalorder %v2036_v3, %v6112_v23  ;;  %3860 = vperm.xlu1 %5592, %v3838_v32   ;;  %3856 = vperm.xlu0 %5591, %v3837_v33   ;;  %v7744_v33 = vld [vmem:[#allocation19_spill] sm:$0xff] }
 0x1be   : > { %5268 = vmatmul.mubr.msk.f32.gmra.mrb[40].mxu1 %vm2144_vm6, %v5603_v24  ;;  %vm939_vm7 = vcmp.eq.s32.totalorder %v7744_v33, %v6112_v23 }
 0x1bf   : > { %5143 = vmatmul.mubr.f32.gmra.mrb[42].mxu0 %v1441_v40  ;;  %v4647_v61 = vsel %vm939_vm7, 1.0, %v5602_v5  ;;  %v7745_v40 = vld [vmem:[#allocation22_spill] sm:$0xff] }
 0x1c0   : > { %v1301_v47 = vpop.permute.xlu1 %1300  ;;  %v2039_v7 = vpop.permute.xlu0 %2038  ;;  %vm940_vm9 = vcmp.eq.s32.totalorder %v7745_v40, %v6112_v23 }
 0x1c1   : > { %v1442_v59 = vmul.f32 %v4638_v22, %v1301_v47  ;;  %vm2145_vm8 = vcmp.eq.s32.totalorder %v2039_v7, %v6112_v23  ;;  %3868 = vperm.xlu1 %5592, %v3840_v50   ;;  %3864 = vperm.xlu0 %5591, %v3839_v46   ;;  %v4648_v47 = vsel %vm940_vm9, 1.0, %v5602_v5  ;;  %v7746_v7 = vld [vmem:[#allocation21_spill] sm:$0xff] }
 0x1c2   : > { %5270 = vmatprep.mubr.msk.f32.mxu1 %vm2145_vm8, %v5603_v24  ;;  %vm941_vm11 = vcmp.eq.s32.totalorder %v7746_v7, %v6112_v23 }
 0x1c3   : > { %5145 = vmatprep.mubr.f32.mxu0 %v1442_v59 }
 0x1c4   : > { %v1306_v31 = vpop.permute.xlu1 %1305  ;;  %v2042_v53 = vpop.permute.xlu0 %2041 }
 0x1c5   : > { %v1443_v63 = vmul.f32 %v4639_v2, %v1306_v31  ;;  %vm2146_vm10 = vcmp.eq.s32.totalorder %v2042_v53, %v6112_v23  ;;  %3872 = vperm.xlu0 %5591, %v3841_v34   ;;  %v4649_v34 = vsel %vm941_vm11, 1.0, %v5602_v5  ;;  %v7747_v53 = vld [vmem:[#allocation24_spill] sm:$0xff] }
 0x1c6   : > { %5271 = vmatmul.mubr.msk.f32.gmra.mrb[42].mxu1 %vm2146_vm10, %v5603_v24  ;;  %vm942_vm13 = vcmp.eq.s32.totalorder %v7747_v53, %v6112_v23 }
 0x1c7   : > { %5146 = vmatmul.mubr.f32.gmra.mrb[44].mxu0 %v1443_v63 }
 0x1c8   : > { %v1311_v25 = vpop.permute.xlu1 %1310  ;;  %v2045_v0 = vpop.permute.xlu0 %2044 }
 0x1c9   : > { %v1444_v14 = vmul.f32 %v4640_v8, %v1311_v25  ;;  %vm2147_vm12 = vcmp.eq.s32.totalorder %v2045_v0, %v6112_v23  ;;  %v4650_v0 = vsel %vm942_vm13, 1.0, %v5602_v5 }
 0x1ca   : > { %5273 = vmatprep.mubr.msk.f32.mxu1 %vm2147_vm12, %v5603_v24 }
 0x1cb   : > { %5148 = vmatprep.mubr.f32.mxu0 %v1444_v14  ;;  %v7748_v14 = vld [vmem:[#allocation23_spill] sm:$0xff] }
 0x1cc   : > { %v1316_v39 = vpop.permute.xlu1 %1315  ;;  %v2048_v17 = vpop.permute.xlu0 %2047  ;;  %vm943_vm15 = vcmp.eq.s32.totalorder %v7748_v14, %v6112_v23 }
 0x1cd   : > { %v1445_v15 = vmul.f32 %v4641_v41, %v1316_v39  ;;  %vm2148_vm14 = vcmp.eq.s32.totalorder %v2048_v17, %v6112_v23  ;;  %v4651_v12 = vsel %vm943_vm15, 1.0, %v5602_v5 }
 0x1ce   : > { %5274 = vmatmul.mubr.msk.f32.gmra.mrb[44].mxu1 %vm2148_vm14, %v5603_v24 }
 0x1cf   : > { %5149 = vmatmul.mubr.f32.gmra.mrb[46].mxu0 %v1445_v15 }
 0x1d0   : > { %v1321_v51 = vpop.permute.xlu1 %1320  ;;  %v2051_v44 = vpop.permute.xlu0 %2050 }
 0x1d1   : > { %v1446_v13 = vmul.f32 %v4642_v57, %v1321_v51  ;;  %vm2149_vm0 = vcmp.eq.s32.totalorder %v2051_v44, %v6112_v23  ;;  %v7749_v57 = vld [vmem:[#allocation26_spill] sm:$0xff] }
 0x1d2   : > { %5276 = vmatprep.mubr.msk.f32.mxu1 %vm2149_vm0, %v5603_v24  ;;  %vm944_vm1 = vcmp.eq.s32.totalorder %v7749_v57, %v6112_v23 }
 0x1d3   : > { %5151 = vmatprep.mubr.f32.mxu0 %v1446_v13 }
 0x1d4   : > { %v1326_v27 = vpop.permute.xlu1 %1325  ;;  %v2054_v37 = vpop.permute.xlu0 %2053 }
 0x1d5   : > { %v1447_v19 = vmul.f32 %v4643_v42, %v1326_v27  ;;  %vm2150_vm2 = vcmp.eq.s32.totalorder %v2054_v37, %v6112_v23  ;;  %v4652_v27 = vsel %vm944_vm1, 1.0, %v5602_v5 }
 0x1d6   : > { %5277 = vmatmul.mubr.msk.f32.gmra.mrb[46].mxu1 %vm2150_vm2, %v5603_v24 }
 0x1d7   : > { %5152 = vmatmul.mubr.f32.gmra.mrb[48].mxu0 %v1447_v19 }
 0x1d8   : > { %v1331_v4 = vpop.permute.xlu1 %1330  ;;  %v2057_v10 = vpop.permute.xlu0 %2056 }
 0x1d9   : > { %v1448_v20 = vmul.f32 %v4644_v54, %v1331_v4  ;;  %vm2151_vm4 = vcmp.eq.s32.totalorder %v2057_v10, %v6112_v23  ;;  %v4653_v10 = vsel %vm945_vm3, 1.0, %v5602_v5 }
 0x1da   : > { %5279 = vmatprep.mubr.msk.f32.mxu1 %vm2151_vm4, %v5603_v24 }
 0x1db   : > { %5154 = vmatprep.mubr.f32.mxu0 %v1448_v20 }
 0x1dc   : > { %v1336_v62 = vpop.permute.xlu1 %1335  ;;  %v2060_v9 = vpop.permute.xlu0 %2059 }
 0x1dd   : > { %v1449_v30 = vmul.f32 %v4645_v58, %v1336_v62  ;;  %vm2152_vm6 = vcmp.eq.s32.totalorder %v2060_v9, %v6112_v23  ;;  %v7751_v58 = vld [vmem:[#allocation28_spill] sm:$0xff] }
 0x1de   : > { %5280 = vmatmul.mubr.msk.f32.gmra.mrb[48].mxu1 %vm2152_vm6, %v5603_v24  ;;  %vm946_vm5 = vcmp.eq.s32.totalorder %v7751_v58, %v6112_v23 }
 0x1df   : > { %5155 = vmatmul.mubr.f32.gmra.mrb[50].mxu0 %v1449_v30 }
 0x1e0   : > { %v1341_v48 = vpop.permute.xlu1 %1340  ;;  %v2063_v32 = vpop.permute.xlu0 %2062 }
 0x1e1   : > { %v1450_v38 = vmul.f32 %v4646_v28, %v1341_v48  ;;  %vm2153_vm8 = vcmp.eq.s32.totalorder %v2063_v32, %v6112_v23  ;;  %v4654_v48 = vsel %vm946_vm5, 1.0, %v5602_v5  ;;  %v7752_v32 = vld [vmem:[#allocation27_spill] sm:$0xff] }
 0x1e2   : > { %5282 = vmatprep.mubr.msk.f32.mxu1 %vm2153_vm8, %v5603_v24  ;;  %vm947_vm7 = vcmp.eq.s32.totalorder %v7752_v32, %v6112_v23 }
 0x1e3   : > { %5157 = vmatprep.mubr.f32.mxu0 %v1450_v38 }
 0x1e4   : > { %v1346_v3 = vpop.permute.xlu1 %1345  ;;  %v2066_v35 = vpop.permute.xlu0 %2065 }
 0x1e5   : > { %v1451_v50 = vmul.f32 %v4647_v61, %v1346_v3  ;;  %vm2154_vm10 = vcmp.eq.s32.totalorder %v2066_v35, %v6112_v23  ;;  %v4655_v3 = vsel %vm947_vm7, 1.0, %v5602_v5 }
 0x1e6   : > { %5283 = vmatmul.mubr.msk.f32.gmra.mrb[50].mxu1 %vm2154_vm10, %v5603_v24 }
 0x1e7   : > { %5158 = vmatmul.mubr.f32.gmra.mrb[52].mxu0 %v1451_v50  ;;  %v7753_v50 = vld [vmem:[#allocation30_spill] sm:$0xff] }
 0x1e8   : > { %v1351_v46 = vpop.permute.xlu1 %1350  ;;  %v2069_v22 = vpop.permute.xlu0 %2068  ;;  %vm948_vm9 = vcmp.eq.s32.totalorder %v7753_v50, %v6112_v23 }
 0x1e9   : > { %v1452_v52 = vmul.f32 %v4648_v47, %v1351_v46  ;;  %vm2155_vm12 = vcmp.eq.s32.totalorder %v2069_v22, %v6112_v23 }
 0x1ea   : > { %5285 = vmatprep.mubr.msk.f32.mxu1 %vm2155_vm12, %v5603_v24 }
 0x1eb   : > { %v6568_v59 = vpop.f32.mrb[0].mxu0  ;;  %5160 = vmatprep.mubr.f32.mxu0 %v1452_v52  ;;  %v4656_v52 = vsel %vm948_vm9, 1.0, %v5602_v5 }
 0x1ec   : > { %v1356_v2 = vpop.permute.xlu1 %1355  ;;  %v6571_v31 = vpop.f32.mrb[1].mxu0 }
 0x1ed   : > { %v1453_v49 = vmul.f32 %v4649_v34, %v1356_v2  ;;  %v2072_v63 = vpop.permute.xlu0 %2071  ;;  %v7754_v2 = vld [vmem:[#allocation29_spill] sm:$0xff] }
 0x1ee   : > { %vm2156_vm14 = vcmp.eq.s32.totalorder %v2072_v63, %v6112_v23  ;;  %vm949_vm11 = vcmp.eq.s32.totalorder %v7754_v2, %v6112_v23 }
 0x1ef   : > { %5286 = vmatmul.mubr.msk.f32.gmra.mrb[52].mxu1 %vm2156_vm14, %v5603_v24  ;;  %v6577_v25 = vpop.f32.mrb[2].mxu0  ;;  %5161 = vmatmul.mubr.f32.gmra.mrb[54].mxu0 %v1453_v49 }
 0x1f0   : > { %v1361_v8 = vpop.permute.xlu1 %1360  ;;  %v6580_v18 = vpop.f32.mrb[3].mxu0 }
 0x1f1   : > { %v1454_v41 = vmul.f32 %v4650_v0, %v1361_v8  ;;  %v2075_v39 = vpop.permute.xlu0 %2074  ;;  %v4657_v8 = vsel %vm949_vm11, 1.0, %v5602_v5 }
 0x1f2   : > { %vm2157_vm0 = vcmp.eq.s32.totalorder %v2075_v39, %v6112_v23 }
 0x1f3   : > { %5288 = vmatprep.mubr.msk.f32.mxu1 %vm2157_vm0, %v5603_v24  ;;  %v6586_v17 = vpop.f32.mrb[4].mxu0  ;;  %5163 = vmatprep.mubr.f32.mxu0 %v1454_v41 }
 0x1f4   : > { %v1366_v15 = vpop.permute.xlu1 %1365  ;;  %v6589_v51 = vpop.f32.mrb[5].mxu0 }
 0x1f5   : > { %v1455_v44 = vmul.f32 %v4651_v12, %v1366_v15  ;;  %v2078_v29 = vpop.permute.xlu0 %2077 }
 0x1f6   : > { %vm2158_vm2 = vcmp.eq.s32.totalorder %v2078_v29, %v6112_v23 }
 0x1f7   : > { %5289 = vmatmul.mubr.msk.f32.gmra.mrb[54].mxu1 %vm2158_vm2, %v5603_v24  ;;  %v6595_v13 = vpop.f32.mrb[6].mxu0  ;;  %5164 = vmatmul.mubr.f32.gmra.mrb[56].mxu0 %v1455_v44 }
 0x1f8   : > { %v1371_v42 = vpop.permute.xlu1 %1370  ;;  %v6598_v37 = vpop.f32.mrb[7].mxu0 }
 0x1f9   : > { %v1456_v19 = vmul.f32 %v4652_v27, %v1371_v42  ;;  %v2081_v4 = vpop.permute.xlu0 %2080 }
 0x1fa   : > { %vm2159_vm4 = vcmp.eq.s32.totalorder %v2081_v4, %v6112_v23 }
 0x1fb   : > { %5291 = vmatprep.mubr.msk.f32.mxu1 %vm2159_vm4, %v5603_v24  ;;  %v6604_v54 = vpop.f32.mrb[8].mxu0  ;;  %5166 = vmatprep.mubr.f32.mxu0 %v1456_v19 }
 0x1fc   : > { %v1376_v56 = vpop.permute.xlu1 %1375  ;;  %v6607_v20 = vpop.f32.mrb[9].mxu0 }
 0x1fd   : > { %v1457_v62 = vmul.f32 %v4653_v10, %v1376_v56  ;;  %v2084_v9 = vpop.permute.xlu0 %2083 }
 0x1fe   : > { %vm2160_vm6 = vcmp.eq.s32.totalorder %v2084_v9, %v6112_v23 }
 0x1ff   : > { %5292 = vmatmul.mubr.msk.f32.gmra.mrb[56].mxu1 %vm2160_vm6, %v5603_v24  ;;  %v6613_v43 = vpop.f32.mrb[10].mxu0  ;;  %5167 = vmatmul.mubr.f32.gmra.mrb[58].mxu0 %v1457_v62 }
 0x200   : > { %v1381_v30 = vpop.permute.xlu1 %1380  ;;  %v6616_v28 = vpop.f32.mrb[11].mxu0 }
 0x201   : > { %v1458_v33 = vmul.f32 %v4654_v48, %v1381_v30  ;;  %v2087_v38 = vpop.permute.xlu0 %2086 }
 0x202   : > { %vm2161_vm8 = vcmp.eq.s32.totalorder %v2087_v38, %v6112_v23 }
 0x203   : > { %5294 = vmatprep.mubr.msk.f32.mxu1 %vm2161_vm8, %v5603_v24  ;;  %v6622_v61 = vpop.f32.mrb[12].mxu0  ;;  %5169 = vmatprep.mubr.f32.mxu0 %v1458_v33 }
 0x204   : > { %v1386_v35 = vpop.permute.xlu1 %1385  ;;  %v6625_v40 = vpop.f32.mrb[13].mxu0 }
 0x205   : > { %v1459_v46 = vmul.f32 %v4655_v3, %v1386_v35  ;;  %v2090_v47 = vpop.permute.xlu0 %2089 }
 0x206   : > { %vm2162_vm10 = vcmp.eq.s32.totalorder %v2090_v47, %v6112_v23 }
 0x207   : > { %5295 = vmatmul.mubr.msk.f32.gmra.mrb[58].mxu1 %vm2162_vm10, %v5603_v24  ;;  %v6631_v22 = vpop.f32.mrb[14].mxu0  ;;  %5170 = vmatmul.mubr.f32.gmra.mrb[60].mxu0 %v1459_v46 }
 0x208   : > { %v1391_v7 = vpop.permute.xlu1 %1390  ;;  %v6634_v34 = vpop.f32.mrb[15].mxu0 }
 0x209   : > { %v1460_v53 = vmul.f32 %v4656_v52, %v1391_v7  ;;  %v2093_v49 = vpop.permute.xlu0 %2092 }
 0x20a   : > { %vm2163_vm12 = vcmp.eq.s32.totalorder %v2093_v49, %v6112_v23 }
 0x20b   : > { %5297 = vmatprep.mubr.msk.f32.mxu1 %vm2163_vm12, %v5603_v24  ;;  %v6640_v63 = vpop.f32.mrb[16].mxu0  ;;  %5172 = vmatprep.mubr.f32.mxu0 %v1460_v53 }
 0x20c   : > { %v1396_v0 = vpop.permute.xlu1 %1395  ;;  %v6643_v14 = vpop.f32.mrb[17].mxu0 }
 0x20d   : > { %v1461_v41 = vmul.f32 %v4657_v8, %v1396_v0  ;;  %v2096_v39 = vpop.permute.xlu0 %2095 }
 0x20e   : > { %vm2164_vm13 = vcmp.eq.s32.totalorder %v2096_v39, %v6112_v23 }
 0x20f   : > { %5298 = vmatmul.mubr.msk.f32.gmra.mrb[60].mxu1 %vm2164_vm13, %v5603_v24  ;;  %v6647_v12 = vpop.f32.mrb[18].mxu0  ;;  %5173 = vmatmul.mubr.f32.gmra.mrb[62].mxu0 %v1461_v41 }
 0x210   : > { %v2102_v15 = vpop.permute.xlu1 %2101  ;;  %v6649_v57 = vpop.f32.mrb[19].mxu0 }
 0x211   : > { %vm2166_vm14 = vcmp.eq.s32.totalorder %v2102_v15, %v6112_v23  ;;  %v2099_v44 = vpop.permute.xlu0 %2098 }
 0x212   : > { %vm2165_vm15 = vcmp.eq.s32.totalorder %v2099_v44, %v6112_v23 }
 0x213   : > { %5300 = vmatprep.mubr.msk.f32.mxu1 %vm2165_vm15, %v5603_v24  ;;  %v6654_v29 = vpop.f32.mrb[20].mxu0  ;;  %vm5605_vm15 = vmmov 0  }
 0x214   : > { %5301 = vmatmul.mubr.msk.f32.gmra.mrb[62].mxu1 %vm2166_vm14, %v5603_v24  ;;  %v3141_v42 = vpop.permute.xlu1 %3140  ;;  %v6657_v27 = vpop.f32.mrb[21].mxu0 }
 0x215   : > { %vm3161_vm0 = vcmp.eq.s32.totalorder %v3141_v42, %v6112_v23  ;;  %v3138_v36 = vpop.permute.xlu0 %3137 }
 0x216   : > { %vm3160_vm1 = vcmp.eq.s32.totalorder %v3138_v36, %v6112_v23 }
 0x217   : > { %5335 = vmatprep.mubr.msk.f32.mxu0 %vm3160_vm1, %v5603_v24  ;;  %v6662_v19 = vpop.f32.mrb[22].mxu0 }
 0x218   : > { %5336 = vmatmul.mubr.msk.f32.vlgmr.msra.gmra.mrb[64].mxu0 %vm3161_vm0, %v5603_v24  ;;  %v3494_v4 = vpop.permute.xlu1 %3493  ;;  %v6665_v10 = vpop.f32.mrb[23].mxu0 }
 0x219   : > { %5556 = vmatpush3.bf16.msra.mxu0 %v5746_v55  ;;  %vm3514_vm2 = vcmp.eq.s32.totalorder %v3494_v4, %v6112_v23  ;;  %v3491_v56 = vpop.permute.xlu0 %3490 }
 0x21a   : > { %vm3513_vm3 = vcmp.eq.s32.totalorder %v3491_v56, %v6112_v23  ;;  %5557 = vmatprep.subr.bf16.mxu0 %v5604_v45 }
 0x21b   : > { %5379 = vmatprep.mubr.msk.f32.mxu1 %vm3513_vm3, %v5603_v24  ;;  %v6672_v58 = vpop.f32.mrb[24].mxu0  ;;  %vm4126_vm3 = vcmask 1042434  }
 0x21c   : > { %5380 = vmatmul.mubr.msk.f32.vlgmr.msra.gmra.mrb[64].mxu1 %vm3514_vm2, %v5603_v24  ;;  %v3147_v62 = vpop.permute.xlu1 %3146  ;;  %v6675_v9 = vpop.f32.mrb[25].mxu0  ;;  %vm4123_vm2 = vcmask 1041409  }
 0x21d   : > { %5559 = vmatpush3.bf16.msra.mxu0 %v5758_v60  ;;  %vm3163_vm4 = vcmp.eq.s32.totalorder %v3147_v62, %v6112_v23  ;;  %v3144_v55 = vpop.permute.xlu0 %3143 }
 0x21e   : > { %vm3162_vm5 = vcmp.eq.s32.totalorder %v3144_v55, %v6112_v23  ;;  %5560 = vmatprep.subr.bf16.mxu0 %v5604_v45 }
 0x21f   : > { %5338 = vmatprep.mubr.msk.f32.mxu0 %vm3162_vm5, %v5603_v24  ;;  %v6682_v30 = vpop.f32.mrb[26].mxu0  ;;  %vm4132_vm5 = vcmask 1044484  }
 0x220   : > { %5339 = vmatmul.mubr.msk.f32.gmra.mrb[66].mxu0 %vm3163_vm4, %v5603_v24  ;;  %v3500_v48 = vpop.permute.xlu1 %3499  ;;  %v6685_v32 = vpop.f32.mrb[27].mxu0  ;;  %vm4129_vm4 = vcmask 1043459  }
 0x221   : > { %5562 = vmatpush3.bf16.msra.mxu0 %v5770_v1  ;;  %vm3516_vm6 = vcmp.eq.s32.totalorder %v3500_v48, %v6112_v23  ;;  %v3497_v60 = vpop.permute.xlu0 %3496 }
 0x222   : > { %vm3515_vm7 = vcmp.eq.s32.totalorder %v3497_v60, %v6112_v23  ;;  %5563 = vmatprep.subr.bf16.mxu0 %v5604_v45 }
 0x223   : > { %5382 = vmatprep.mubr.msk.f32.mxu1 %vm3515_vm7, %v5603_v24  ;;  %v6692_v33 = vpop.f32.mrb[28].mxu0  ;;  %vm4138_vm7 = vcmask 1046534  }
 0x224   : > { %5383 = vmatmul.mubr.msk.f32.gmra.mrb[66].mxu1 %vm3516_vm6, %v5603_v24  ;;  %v3153_v38 = vpop.permute.xlu1 %3152  ;;  %v6695_v3 = vpop.f32.mrb[29].mxu0  ;;  %vm4135_vm6 = vcmask 1045509  }
 0x225   : > { %5565 = vmatpush3.bf16.msra.mxu0 %v5782_v6  ;;  %vm3165_vm8 = vcmp.eq.s32.totalorder %v3153_v38, %v6112_v23  ;;  %v3150_v1 = vpop.permute.xlu0 %3149 }
 0x226   : > { %vm3164_vm9 = vcmp.eq.s32.totalorder %v3150_v1, %v6112_v23  ;;  %5566 = vmatprep.subr.bf16.mxu0 %v5604_v45 }
 0x227   : > { %5341 = vmatprep.mubr.msk.f32.mxu0 %vm3164_vm9, %v5603_v24  ;;  %v6702_v35 = vpop.f32.mrb[30].mxu0 }
 0x228   : > { %5342 = vmatmul.mubr.msk.f32.gmra.mrb[68].mxu0 %vm3165_vm8, %v5603_v24  ;;  %v3506_v50 = vpop.permute.xlu1 %3505  ;;  %v6705_v46 = vpop.f32.mrb[31].mxu0  ;;  %vm4141_vm8 = vcmask 1047559  }
 0x229   : > { %5568 = vmatpush3.bf16.msra.mxu0 %v5794_v11  ;;  %vm3518_vm10 = vcmp.eq.s32.totalorder %v3506_v50, %v6112_v23  ;;  %v3503_v6 = vpop.permute.xlu0 %3502 }
 0x22a   : > { %vm3517_vm11 = vcmp.eq.s32.totalorder %v3503_v6, %v6112_v23  ;;  %5569 = vmatprep.subr.bf16.mxu0 %v5604_v45 }
 0x22b   : > { %5385 = vmatprep.mubr.msk.f32.mxu1 %vm3517_vm11, %v5603_v24  ;;  %v6712_v47 = vpop.f32.mrb[32].mxu0 }
 0x22c   : > { %5386 = vmatmul.mubr.msk.f32.gmra.mrb[68].mxu1 %vm3518_vm10, %v5603_v24  ;;  %v3159_v7 = vpop.permute.xlu1 %3158  ;;  %v6715_v52 = vpop.f32.mrb[33].mxu0 }
 0x22d   : > { %5571 = vmatpush3.bf16.msra.mxu0 %v5806_v16  ;;  %vm3167_vm12 = vcmp.eq.s32.totalorder %v3159_v7, %v6112_v23  ;;  %v3156_v11 = vpop.permute.xlu0 %3155 }
 0x22e   : > { %vm3166_vm13 = vcmp.eq.s32.totalorder %v3156_v11, %v6112_v23  ;;  %5572 = vmatprep.subr.bf16.mxu0 %v5604_v45 }
 0x22f   : > { %5344 = vmatprep.mubr.msk.f32.mxu0 %vm3166_vm13, %v5603_v24  ;;  %v6722_v2 = vpop.f32.mrb[34].mxu0 }
 0x230   : > { %5345 = vmatmul.mubr.msk.f32.gmra.mrb[70].mxu0 %vm3167_vm12, %v5603_v24  ;;  %v3512_v53 = vpop.permute.xlu1 %3511  ;;  %v6725_v49 = vpop.f32.mrb[35].mxu0 }
 0x231   : > { %5574 = vmatpush3.bf16.msra.mxu0 %v5818_v21  ;;  %vm3520_vm14 = vcmp.eq.s32.totalorder %v3512_v53, %v6112_v23  ;;  %v3509_v16 = vpop.permute.xlu0 %3508  ;;  %5423 = vmatprep.mubr.msk.f32.mxu0 %vm5605_vm15, %v5602_v5 }
 0x232   : > { %vm3519_vm0 = vcmp.eq.s32.totalorder %v3509_v16, %v6112_v23  ;;  %5575 = vmatprep.subr.bf16.mxu0 %v5604_v45 }
 0x233   : > { %5388 = vmatprep.mubr.msk.f32.mxu1 %vm3519_vm0, %v5603_v24  ;;  %v6733_v8 = vpop.f32.mrb[36].mxu0 }
 0x234   : > { %5389 = vmatmul.mubr.msk.f32.gmra.mrb[70].mxu1 %vm3520_vm14, %v5603_v24  ;;  %v6736_v0 = vpop.f32.mrb[37].mxu0 }
 0x235   : > { %5577 = vmatpush3.bf16.msra.mxu0 %v5836_v26  ;;  %v4300_v21 = vpop.permute.xlu0 %4299 }
 0x236   : > { %vm4301_vm1 = vcmp.eq.s32.totalorder %v4300_v21, %v6112_v23 }
 0x238   : > { %5424 = vmatmul.mubr.msk.f32.vlgmr.msra.gmra.mrb[72].mxu0 %vm4301_vm1, %v5603_v24 }
 0x239   : > { %v5209_v5 = vpop.f32.mrb[0].mxu1 }
 0x23a   : > { %v2361_v41 = vpop.f32.mrb[1].mxu1  ;;  %v6742_v39 = vmul.f32 %v5209_v5, %v6568_v59 }
 0x23b   : > { %v6745_v45 = vmul.f32 %v2361_v41, %v6571_v31 }
 0x23d   : > { %v5212_v15 = vpop.f32.mrb[2].mxu1 }
 0x23e   : > { %v2371_v44 = vpop.f32.mrb[3].mxu1  ;;  %v6748_v42 = vmul.f32 %v5212_v15, %v6577_v25 }
 0x23f   : > { %v6751_v26 = vmul.f32 %v2371_v44, %v6580_v18 }
 0x241   : > { %v5215_v36 = vpop.f32.mrb[4].mxu1 }
 0x242   : > { %v2381_v23 = vpop.f32.mrb[5].mxu1  ;;  %v6754_v56 = vmul.f32 %v5215_v36, %v6586_v17 }
 0x243   : > { %v6757_v59 = vmul.f32 %v2381_v23, %v6589_v51 }
 0x245   : > { %v5218_v4 = vpop.f32.mrb[6].mxu1 }
 0x246   : > { %v2391_v24 = vpop.f32.mrb[7].mxu1  ;;  %v6760_v55 = vmul.f32 %v5218_v4, %v6595_v13 }
 0x247   : > { %v6763_v48 = vmul.f32 %v2391_v24, %v6598_v37 }
 0x249   : > { %v5221_v31 = vpop.f32.mrb[8].mxu1 }
 0x24a   : > { %v2401_v62 = vpop.f32.mrb[9].mxu1  ;;  %v6766_v18 = vmul.f32 %v5221_v31, %v6604_v54 }
 0x24b   : > { %v6769_v60 = vmul.f32 %v2401_v62, %v6607_v20 }
 0x24d   : > { %v5224_v25 = vpop.f32.mrb[10].mxu1 }
 0x24e   : > { %v2411_v17 = vpop.f32.mrb[11].mxu1  ;;  %v6772_v38 = vmul.f32 %v5224_v25, %v6613_v43 }
 0x24f   : > { %v6775_v51 = vmul.f32 %v2411_v17, %v6616_v28 }
 0x251   : > { %v5227_v1 = vpop.f32.mrb[12].mxu1 }
 0x252   : > { %v2421_v13 = vpop.f32.mrb[13].mxu1  ;;  %v6778_v37 = vmul.f32 %v5227_v1, %v6622_v61  ;;  %v2750_v1 = vrot.slane %v6742_v39, 4 }
 0x253   : > { %v6781_v54 = vmul.f32 %v2421_v13, %v6625_v40  ;;  %v2744_v13 = vrot.slane %v6745_v45, 4 }
 0x255   : > { %v5230_v50 = vpop.f32.mrb[14].mxu1 }
 0x256   : > { %v2431_v6 = vpop.f32.mrb[15].mxu1  ;;  %v6784_v20 = vmul.f32 %v5230_v50, %v6631_v22  ;;  %v6846_v50 = vstv %s4402_s26 }
 0x257   : > { %v6787_v43 = vmul.f32 %v2431_v6, %v6634_v34  ;;  %7757 = vst [vmem:[#allocation6_spill] sm:$0xff] %v6846_v50 }
 0x259   : > { %v5233_v7 = vpop.f32.mrb[16].mxu1 }
 0x25a   : > { %v2441_v11 = vpop.f32.mrb[17].mxu1  ;;  %v6790_v28 = vmul.f32 %v5233_v7, %v6640_v63  ;;  %v6850_v7 = vpop.permute.xlu0 %3852 }
 0x25b   : > { %v6793_v53 = vmul.f32 %v2441_v11, %v6643_v14  ;;  %7758 = vst [vmem:[#allocation5_spill] sm:$0xff] %v6850_v7 }
 0x25d   : > { %v5236_v16 = vpop.f32.mrb[18].mxu1 }
 0x25e   : > { %v2451_v61 = vpop.f32.mrb[19].mxu1  ;;  %v6796_v21 = vmul.f32 %v5236_v16, %v6647_v12 }
 0x25f   : > { %v6799_v40 = vmul.f32 %v2451_v61, %v6649_v57 }
 0x261   : > { %v5239_v22 = vpop.f32.mrb[20].mxu1 }
 0x262   : > { %v2461_v5 = vpop.f32.mrb[21].mxu1  ;;  %v6802_v41 = vmul.f32 %v5239_v22, %v6654_v29 }
 0x263   : > { %v6805_v34 = vmul.f32 %v2461_v5, %v6657_v27 }
 0x265   : > { %v5242_v63 = vpop.f32.mrb[22].mxu1 }
 0x266   : > { %v2471_v15 = vpop.f32.mrb[23].mxu1  ;;  %v6808_v14 = vmul.f32 %v5242_v63, %v6662_v19  ;;  %v2756_v63 = vrot.slane %v6751_v26, 4 }
 0x267   : > { %v6811_v12 = vmul.f32 %v2471_v15, %v6665_v10  ;;  %v6827_v10 = vpop.permute.xlu1 %3848 }
 0x268   : > { %7755 = vst [vmem:[#allocation3_spill] sm:$0xff] %v6827_v10  ;;  %v2757_v22 = vadd.f32 %v2756_v63, %v6751_v26  ;;  %v2768_v26 = vrot.slane %v6757_v59, 4 }
 0x269   : > { %v5245_v44 = vpop.f32.mrb[24].mxu1 }
 0x26a   : > { %v6814_v57 = vmul.f32 %v5245_v44, %v6672_v58  ;;  %v2481_v36 = vpop.f32.mrb[25].mxu1 }
 0x26b   : > { %v6817_v23 = vmul.f32 %v2481_v36, %v6675_v9  ;;  %v6839_v17 = vpop.permute.xlu1 %3844 }
 0x26c   : > { %7756 = vst [vmem:[#allocation4_spill] sm:$0xff] %v6839_v17 }
 0x26d   : > { %v5248_v29 = vpop.f32.mrb[26].mxu1 }
 0x26e   : > { %v2491_v27 = vpop.f32.mrb[27].mxu1  ;;  %v6822_v4 = vmul.f32 %v5248_v29, %v6682_v30  ;;  %v2751_v29 = vadd.f32 %v2750_v1, %v6742_v39 }
 0x26f   : > { %v6825_v19 = vmul.f32 %v2491_v27, %v6685_v32  ;;  %v2745_v27 = vadd.f32 %v2744_v13, %v6745_v45  ;;  %v2762_v13 = vrot.slane %v6748_v42, 4 }
 0x271   : > { %v5251_v24 = vpop.f32.mrb[28].mxu1 }
 0x272   : > { %v2501_v58 = vpop.f32.mrb[29].mxu1  ;;  %v6830_v31 = vmul.f32 %v5251_v24, %v6692_v33  ;;  %v6869_v24 = vpop.permute.xlu1 %3860 }
 0x273   : > { %v6833_v9 = vmul.f32 %v2501_v58, %v6695_v3  ;;  %7759 = vst [vmem:[#allocation8_spill] sm:$0xff] %v6869_v24  ;;  %v2780_v3 = vrot.slane %v6763_v48, 4 }
 0x275   : > { %v5254_v62 = vpop.f32.mrb[30].mxu1 }
 0x276   : > { %v6837_v25 = vmul.f32 %v5254_v62, %v6702_v35  ;;  %v2511_v30 = vpop.f32.mrb[31].mxu1  ;;  %v2752_v62 = vrot.slane %v2751_v29, 2  ;;  %v6897_v5 = vpop.permute.xlu1 %3868 }
 0x277   : > { %v6842_v32 = vmul.f32 %v2511_v30, %v6705_v46  ;;  %7761 = vst [vmem:[#allocation10_spill] sm:$0xff] %v6897_v5  ;;  %v2758_v46 = vrot.slane %v2757_v22, 2  ;;  %v2798_v5 = vrot.slane %v6766_v18, 4 }
 0x279   : > { %v5257_v33 = vpop.f32.mrb[32].mxu1  ;;  %v2759_v10 = vadd.f32 %v2758_v46, %v2757_v22 }
 0x27a   : > { %v6853_v35 = vmul.f32 %v5257_v33, %v6712_v47  ;;  %v2521_v11 = vpop.f32.mrb[33].mxu1  ;;  %v2746_v47 = vrot.slane %v2745_v27, 2  ;;  %v2753_v33 = vadd.f32 %v2752_v62, %v2751_v29  ;;  %v2786_v29 = vrot.slane %v6760_v55, 4 }
 0x27b   : > { %v6863_v44 = vmul.f32 %v2521_v11, %v6715_v52  ;;  %v6887_v52 = vpop.permute.xlu0 %3856 }
 0x27c   : > { %7760 = vst [vmem:[#allocation7_spill] sm:$0xff] %v6887_v52  ;;  %v2747_v16 = vadd.f32 %v2746_v47, %v2745_v27  ;;  %v2792_v47 = vrot.slane %v6769_v60, 4 }
 0x27d   : > { %v5260_v58 = vpop.f32.mrb[34].mxu1 }
 0x27e   : > { %v2531_v11 = vpop.f32.mrb[35].mxu1  ;;  %v6878_v39 = vmul.f32 %v5260_v58, %v6722_v2 }
 0x27f   : > { %v6881_v45 = vmul.f32 %v2531_v11, %v6725_v49  ;;  %v6915_v11 = vpop.permute.xlu0 %3864 }
 0x280   : > { %7762 = vst [vmem:[#allocation9_spill] sm:$0xff] %v6915_v11 }
 0x281   : > { %v5263_v58 = vpop.f32.mrb[36].mxu1 }
 0x282   : > { %v5138_v30 = vpop.f32.mrb[38].mxu0  ;;  %v2541_v15 = vpop.f32.mrb[37].mxu1  ;;  %v6900_v36 = vmul.f32 %v5263_v58, %v6733_v8  ;;  %v2748_v58 = vrot.slane %v2747_v16, 1 }
 0x283   : > { %v6903_v2 = vmul.f32 %v2541_v15, %v6736_v0  ;;  %v1718_v49 = vpop.f32.mrb[39].mxu0  ;;  %v2763_v15 = vadd.f32 %v2762_v13, %v6748_v42  ;;  %v2774_v42 = vrot.slane %v6754_v56, 4  ;;  %v2754_v13 = vrot.slane %v2753_v33, 1  ;;  %v6945_v1 = vpop.permute.xlu0 %3872 }
 0x284   : > { %v2769_v0 = vadd.f32 %v2768_v26, %v6757_v59  ;;  %7766 = vst [vmem:[#allocation13_spill] sm:$0xff] %v6945_v1  ;;  %v2799_v59 = vadd.f32 %v2798_v5, %v6766_v18  ;;  %v2822_v26 = vrot.slane %v6778_v37, 4 }
 0x285   : > { %v2764_v61 = vrot.slane %v2763_v15, 2  ;;  %v2775_v50 = vadd.f32 %v2774_v42, %v6754_v56  ;;  %v2787_v42 = vadd.f32 %v2786_v29, %v6760_v55  ;;  %v2816_v55 = vrot.slane %v6781_v54, 4 }
 0x286   : > { %v2800_v11 = vrot.slane %v2799_v59, 2 }
 0x287   : > { %v2765_v52 = vadd.f32 %v2764_v61, %v2763_v15  ;;  %v2793_v61 = vadd.f32 %v2792_v47, %v6769_v60  ;;  %v2770_v15 = vrot.slane %v2769_v0, 2  ;;  %v2788_v22 = vrot.slane %v2787_v42, 2 }
 0x289   : > { %v5266_v63 = vpop.f32.mrb[38].mxu1  ;;  %v2766_v17 = vrot.slane %v2765_v52, 1 }
 0x28a   : > { %v6929_v6 = vmul.f32 %v5266_v63, %v5138_v30  ;;  %v5141_v27 = vpop.f32.mrb[40].mxu0  ;;  %v2551_v62 = vpop.f32.mrb[39].mxu1  ;;  %v6939_v30 = vadd.f32 %v2754_v13, %v2753_v33  ;;  %v6941_v63 = vadd.f32 %v2748_v58, %v2747_v16  ;;  %v2810_v33 = vrot.slane %v6772_v38, 4 }
 0x28b   : > { %v1728_v8 = vpop.f32.mrb[41].mxu0  ;;  %v6937_v24 = vmul.f32 %v2551_v62, %v1718_v49  ;;  %v2781_v49 = vadd.f32 %v2780_v3, %v6763_v48  ;;  %v2804_v16 = vrot.slane %v6775_v51, 4  ;;  %v2776_v58 = vrot.slane %v2775_v50, 2 }
 0x28c   : > { %7764 = vst [vmem:[#allocation11_spill] sm:$0xff] %v6939_v30  ;;  %7765 = vst [vmem:[#allocation14_spill] sm:$0xff] %v6941_v63  ;;  %v2811_v60 = vadd.f32 %v2810_v33, %v6772_v38  ;;  %v2794_v30 = vrot.slane %v2793_v61, 2  ;;  %v2760_v48 = vrot.slane %v2759_v10, 1  ;;  %v2771_v63 = vadd.f32 %v2770_v15, %v2769_v0 }
 0x28d   : > { %7763 = vst [vmem:[#allocation12_spill] sm:$0xff] %v6937_v24  ;;  %v2782_v18 = vrot.slane %v2781_v49, 2  ;;  %v2805_v5 = vadd.f32 %v2804_v16, %v6775_v51  ;;  %v2777_v7 = vadd.f32 %v2776_v58, %v2775_v50  ;;  %v2823_v3 = vadd.f32 %v2822_v26, %v6778_v37 }
 0x28e   : > { %v2789_v38 = vadd.f32 %v2788_v22, %v2787_v42  ;;  %v2834_v51 = vrot.slane %v6784_v20, 4  ;;  %v2812_v33 = vrot.slane %v2811_v60, 2  ;;  %v6973_v16 = vadd.f32 %v2766_v17, %v2765_v52 }
 0x28f   : > { %v2806_v50 = vrot.slane %v2805_v5, 2  ;;  %v2778_v58 = vrot.slane %v2777_v7, 1  ;;  %v2801_v0 = vadd.f32 %v2800_v11, %v2799_v59  ;;  %v2795_v15 = vadd.f32 %v2794_v30, %v2793_v61 }
 0x290   : > { %7769 = vst [vmem:[#allocation18_spill] sm:$0xff] %v6973_v16  ;;  %v2772_v37 = vrot.slane %v2771_v63, 1  ;;  %v2824_v26 = vrot.slane %v2823_v3, 2  ;;  %v2835_v42 = vadd.f32 %v2834_v51, %v6784_v20  ;;  %v2846_v22 = vrot.slane %v6790_v28, 4 }
 0x291   : > { %v5269_v46 = vpop.f32.mrb[40].mxu1  ;;  %v2813_v52 = vadd.f32 %v2812_v33, %v2811_v60  ;;  %v2807_v1 = vadd.f32 %v2806_v50, %v2805_v5  ;;  %v6982_v59 = vadd.f32 %v2760_v48, %v2759_v10  ;;  %v2802_v61 = vrot.slane %v2801_v0, 1 }
 0x292   : > { %v6961_v29 = vmul.f32 %v5269_v46, %v5141_v27  ;;  %v5144_v62 = vpop.f32.mrb[42].mxu0  ;;  %v2561_v56 = vpop.f32.mrb[41].mxu1  ;;  %v2817_v27 = vadd.f32 %v2816_v55, %v6781_v54  ;;  %v2828_v55 = vrot.slane %v6787_v43, 4  ;;  %v2796_v16 = vrot.slane %v2795_v15, 1 }
 0x293   : > { %v6965_v47 = vmul.f32 %v2561_v56, %v1728_v8  ;;  %v1738_v13 = vpop.f32.mrb[43].mxu0  ;;  %v2783_v56 = vadd.f32 %v2782_v18, %v2781_v49  ;;  %7771 = vst [vmem:[#allocation20_spill] sm:$0xff] %v6982_v59  ;;  %v6985_v24 = vadd.f32 %v2778_v58, %v2777_v7  ;;  %v2825_v20 = vadd.f32 %v2824_v26, %v2823_v3 }
 0x294   : > { %7767 = vst [vmem:[#allocation16_spill] sm:$0xff] %v6961_v29  ;;  %v2818_v54 = vrot.slane %v2817_v27, 2  ;;  %v2790_v29 = vrot.slane %v2789_v38, 1  ;;  %v2836_v60 = vrot.slane %v2835_v42, 2  ;;  %v2814_v10 = vrot.slane %v2813_v52, 1 }
 0x295   : > { %7768 = vst [vmem:[#allocation15_spill] sm:$0xff] %v6965_v47  ;;  %v2784_v17 = vrot.slane %v2783_v56, 1  ;;  %v2840_v47 = vrot.slane %v6793_v53, 4  ;;  %7772 = vst [vmem:[#allocation19_spill] sm:$0xff] %v6985_v24  ;;  %v2808_v48 = vrot.slane %v2807_v1, 1  ;;  %v2858_v33 = vrot.slane %v6796_v21, 4 }
 0x296   : > { %v2819_v51 = vadd.f32 %v2818_v54, %v2817_v27  ;;  %v6996_v50 = vadd.f32 %v2802_v61, %v2801_v0  ;;  %v6998_v7 = vadd.f32 %v2796_v16, %v2795_v15 }
 0x297   : > { %v6993_v5 = vadd.f32 %v2784_v17, %v2783_v56  ;;  %v2841_v3 = vadd.f32 %v2840_v47, %v6793_v53  ;;  %v2837_v56 = vadd.f32 %v2836_v60, %v2835_v42  ;;  %v2859_v16 = vadd.f32 %v2858_v33, %v6796_v21 }
 0x298   : > { %v2882_v53 = vrot.slane %v6808_v14, 4  ;;  %v2876_v47 = vrot.slane %v6811_v12, 4  ;;  %v2894_v42 = vrot.slane %v6814_v57, 4  ;;  %v2888_v17 = vrot.slane %v6817_v23, 4 }
 0x299   : > { %v5272_v46 = vpop.f32.mrb[42].mxu1  ;;  %7775 = vst [vmem:[#allocation24_spill] sm:$0xff] %v6993_v5  ;;  %v7016_v61 = vadd.f32 %v2808_v48, %v2807_v1 }
 0x29a   : > { %v6978_v8 = vmul.f32 %v5272_v46, %v5144_v62  ;;  %v5147_v49 = vpop.f32.mrb[44].mxu0  ;;  %v2571_v18 = vpop.f32.mrb[43].mxu1  ;;  %v2829_v62 = vadd.f32 %v2828_v55, %v6787_v43  ;;  %v6988_v46 = vadd.f32 %v2772_v37, %v2771_v63  ;;  %v2852_v43 = vrot.slane %v6799_v40, 4 }
 0x29b   : > { %v6980_v11 = vmul.f32 %v2571_v18, %v1738_v13  ;;  %v1748_v30 = vpop.f32.mrb[45].mxu0  ;;  %v2847_v13 = vadd.f32 %v2846_v22, %v6790_v28  ;;  %v2826_v63 = vrot.slane %v2825_v20, 1  ;;  %v2864_v37 = vrot.slane %v6805_v34, 4 }
 0x29c   : > { %7770 = vst [vmem:[#allocation17_spill] sm:$0xff] %v6978_v8  ;;  %7773 = vst [vmem:[#allocation22_spill] sm:$0xff] %v6988_v46  ;;  %v6990_v8 = vadd.f32 %v2790_v29, %v2789_v38  ;;  %v2820_v29 = vrot.slane %v2819_v51, 1  ;;  %v2830_v27 = vrot.slane %v2829_v62, 2  ;;  %v2870_v38 = vrot.slane %v6802_v41, 4 }
 0x29d   : > { %v2848_v58 = vrot.slane %v2847_v13, 2  ;;  %v2842_v22 = vrot.slane %v2841_v3, 2  ;;  %v2853_v18 = vadd.f32 %v2852_v43, %v6799_v40  ;;  %v7019_v33 = vadd.f32 %v2826_v63, %v2825_v20 }
 0x29e   : > { %7774 = vst [vmem:[#allocation21_spill] sm:$0xff] %v6990_v8  ;;  %v2831_v60 = vadd.f32 %v2830_v27, %v2829_v62  ;;  %v2871_v21 = vadd.f32 %v2870_v38, %v6802_v41  ;;  %v2838_v8 = vrot.slane %v2837_v56, 1  ;;  %v2860_v40 = vrot.slane %v2859_v16, 2 }
 0x29f   : > { %7776 = vst [vmem:[#allocation23_spill] sm:$0xff] %v7019_v33  ;;  %v2883_v43 = vadd.f32 %v2882_v53, %v6808_v14  ;;  %v2877_v5 = vadd.f32 %v2876_v47, %v6811_v12  ;;  %v2895_v1 = vadd.f32 %v2894_v42, %v6814_v57  ;;  %v2889_v62 = vadd.f32 %v2888_v17, %v6817_v23 }
 0x2a0   : > { %v2832_v41 = vrot.slane %v2831_v60, 1  ;;  %v2872_v20 = vrot.slane %v2871_v21, 2  ;;  %v2861_v27 = vadd.f32 %v2860_v40, %v2859_v16  ;;  %v7036_v42 = vadd.f32 %v2838_v8, %v2837_v56 }
 0x2a1   : > { %v5275_v28 = vpop.f32.mrb[44].mxu1  ;;  %v2884_v38 = vrot.slane %v2883_v43, 2  ;;  %v2878_v57 = vrot.slane %v2877_v5, 2  ;;  %v2896_v53 = vrot.slane %v2895_v1, 2  ;;  %v2890_v47 = vrot.slane %v2889_v62, 2 }
 0x2a2   : > { %v7004_v26 = vmul.f32 %v5275_v28, %v5147_v49  ;;  %v5150_v0 = vpop.f32.mrb[46].mxu0  ;;  %v2581_v54 = vpop.f32.mrb[45].mxu1  ;;  %v7014_v49 = vadd.f32 %v2814_v10, %v2813_v52  ;;  %v7021_v28 = vadd.f32 %v2820_v29, %v2819_v51  ;;  %v2843_v52 = vadd.f32 %v2842_v22, %v2841_v3 }
 0x2a3   : > { %v7009_v15 = vmul.f32 %v2581_v54, %v1748_v30  ;;  %v1758_v55 = vpop.f32.mrb[47].mxu0  ;;  %v2849_v30 = vadd.f32 %v2848_v58, %v2847_v13  ;;  %v2865_v54 = vadd.f32 %v2864_v37, %v6805_v34  ;;  %v2854_v10 = vrot.slane %v2853_v18, 2 }
 0x2a4   : > { %v2906_v51 = vrot.slane %v6822_v4, 4  ;;  %v2900_v13 = vrot.slane %v6825_v19, 4  ;;  %v2918_v29 = vrot.slane %v6830_v31, 4  ;;  %v2912_v22 = vrot.slane %v6833_v9, 4 }
 0x2a5   : > { %v2850_v34 = vrot.slane %v2849_v30, 1  ;;  %v2866_v63 = vrot.slane %v2865_v54, 2  ;;  %v2855_v37 = vadd.f32 %v2854_v10, %v2853_v18  ;;  %v2873_v17 = vadd.f32 %v2872_v20, %v2871_v21 }
 0x2a6   : > { %v2907_v24 = vadd.f32 %v2906_v51, %v6822_v4  ;;  %v2844_v16 = vrot.slane %v2843_v52, 1  ;;  %v2862_v18 = vrot.slane %v2861_v27, 1  ;;  %v2885_v10 = vadd.f32 %v2884_v38, %v2883_v43 }
 0x2a7   : > { %v2867_v40 = vadd.f32 %v2866_v63, %v2865_v54  ;;  %v2879_v46 = vadd.f32 %v2878_v57, %v2877_v5  ;;  %v2856_v59 = vrot.slane %v2855_v37, 1  ;;  %v2897_v33 = vadd.f32 %v2896_v53, %v2895_v1 }
 0x2a8   : > { %v2891_v8 = vadd.f32 %v2890_v47, %v2889_v62  ;;  %v2913_v56 = vadd.f32 %v2912_v22, %v6833_v9  ;;  %v2874_v21 = vrot.slane %v2873_v17, 1  ;;  %v2908_v4 = vrot.slane %v2907_v24, 2 }
 0x2a9   : > { %v5278_v48 = vpop.f32.mrb[46].mxu1  ;;  %v2886_v5 = vrot.slane %v2885_v10, 1  ;;  %v2942_v1 = vrot.slane %v6853_v35, 4  ;;  %v2898_v63 = vrot.slane %v2897_v33, 1  ;;  %v7055_v57 = vadd.f32 %v2862_v18, %v2861_v27 }
 0x2aa   : > { %v7031_v14 = vmul.f32 %v5278_v48, %v5150_v0  ;;  %v5153_v12 = vpop.f32.mrb[48].mxu0  ;;  %v2591_v3 = vpop.f32.mrb[47].mxu1  ;;  %v2901_v0 = vadd.f32 %v2900_v13, %v6825_v19  ;;  %v7040_v48 = vadd.f32 %v2832_v41, %v2831_v60  ;;  %v2930_v19 = vrot.slane %v6837_v25, 4 }
 0x2ab   : > { %v7033_v58 = vmul.f32 %v2591_v3, %v1758_v55  ;;  %v1768_v23 = vpop.f32.mrb[49].mxu0  ;;  %v2919_v55 = vadd.f32 %v2918_v29, %v6830_v31  ;;  %v7043_v3 = vadd.f32 %v2850_v34, %v2849_v30  ;;  %v2868_v41 = vrot.slane %v2867_v40, 1  ;;  %7779 = vst [vmem:[#allocation28_spill] sm:$0xff] %v7055_v57 }
 0x2ac   : > { %v2902_v20 = vrot.slane %v2901_v0, 2  ;;  %v2924_v31 = vrot.slane %v6842_v32, 4  ;;  %v2880_v13 = vrot.slane %v2879_v46, 1  ;;  %v7053_v34 = vadd.f32 %v2844_v16, %v2843_v52 }
 0x2ad   : > { %7777 = vst [vmem:[#allocation26_spill] sm:$0xff] %v7043_v3  ;;  %v2920_v54 = vrot.slane %v2919_v55, 2  ;;  %v2892_v29 = vrot.slane %v2891_v8, 1  ;;  %v2914_v38 = vrot.slane %v2913_v56, 2  ;;  %v2909_v53 = vadd.f32 %v2908_v4, %v2907_v24 }
 0x2ae   : > { %7778 = vst [vmem:[#allocation25_spill] sm:$0xff] %v7053_v34  ;;  %v2903_v47 = vadd.f32 %v2902_v20, %v2901_v0  ;;  %v7058_v22 = vadd.f32 %v2856_v59, %v2855_v37  ;;  %v7065_v52 = vadd.f32 %v2886_v5, %v2885_v10  ;;  %v7067_v16 = vadd.f32 %v2880_v13, %v2879_v46  ;;  %v7785_v5 = vld [vmem:[#allocation12_spill] sm:$0xff] }
 0x2af   : > { %v2921_v3 = vadd.f32 %v2920_v54, %v2919_v55  ;;  %v2943_v27 = vadd.f32 %v2942_v1, %v6853_v35  ;;  %v7070_v18 = vadd.f32 %v2898_v63, %v2897_v33  ;;  %v7072_v24 = vadd.f32 %v2892_v29, %v2891_v8  ;;  %v7786_v63 = vld [vmem:[#allocation16_spill] sm:$0xff] }
 0x2b0   : > { %7780 = vst [vmem:[#allocation27_spill] sm:$0xff] %v7058_v22  ;;  %7783 = vst [vmem:[#allocation31_spill] sm:$0xff] %v7065_v52  ;;  %v2936_v59 = vrot.slane %v6863_v44, 4  ;;  %v2910_v37 = vrot.slane %v2909_v53, 1  ;;  %v2948_v46 = vrot.slane %v6881_v45, 4  ;;  %v2966_v8 = vrot.slane %v6900_v36, 4 }
 0x2b1   : > { %v5281_v60 = vpop.f32.mrb[48].mxu1  ;;  %7784 = vst [vmem:[#allocation32_spill] sm:$0xff] %v7067_v16  ;;  %v2922_v55 = vrot.slane %v2921_v3, 1  ;;  %v2944_v4 = vrot.slane %v2943_v27, 2  ;;  %v2972_v13 = vrot.slane %v7785_v5, 4  ;;  %v2990_v29 = vrot.slane %v7786_v63, 4 }
 0x2b2   : > { %v7048_v30 = vmul.f32 %v5281_v60, %v5153_v12  ;;  %v5156_v51 = vpop.f32.mrb[50].mxu0  ;;  %v2601_v43 = vpop.f32.mrb[49].mxu1  ;;  %v2931_v12 = vadd.f32 %v2930_v19, %v6837_v25  ;;  %v7060_v60 = vadd.f32 %v2874_v21, %v2873_v17  ;;  %v2915_v25 = vadd.f32 %v2914_v38, %v2913_v56  ;;  %v7787_v38 = vld [vmem:[#allocation15_spill] sm:$0xff] }
 0x2b3   : > { %v7051_v62 = vmul.f32 %v2601_v43, %v1768_v23  ;;  %v1778_v9 = vpop.f32.mrb[51].mxu0  ;;  %v2925_v23 = vadd.f32 %v2924_v31, %v6842_v32  ;;  %v7063_v43 = vadd.f32 %v2868_v41, %v2867_v40  ;;  %v2904_v17 = vrot.slane %v2903_v47, 1 }
 0x2b4   : > { %7781 = vst [vmem:[#allocation30_spill] sm:$0xff] %v7060_v60  ;;  %v2932_v0 = vrot.slane %v2931_v12, 2  ;;  %v2954_v32 = vrot.slane %v6878_v39, 4  ;;  %v2960_v56 = vrot.slane %v6903_v2, 4  ;;  %v2916_v41 = vrot.slane %v2915_v25, 1 }
 0x2b5   : > { %7782 = vst [vmem:[#allocation29_spill] sm:$0xff] %v7063_v43  ;;  %v2926_v10 = vrot.slane %v2925_v23, 2  ;;  %v2937_v54 = vadd.f32 %v2936_v59, %v6863_v44  ;;  %v2978_v31 = vrot.slane %v6929_v6, 4  ;;  %v7089_v52 = vadd.f32 %v2910_v37, %v2909_v53 }
 0x2b6   : > { %v2933_v1 = vadd.f32 %v2932_v0, %v2931_v12  ;;  %v7091_v16 = vadd.f32 %v2904_v17, %v2903_v47  ;;  %v7094_v60 = vadd.f32 %v2922_v55, %v2921_v3  ;;  %v2945_v44 = vadd.f32 %v2944_v4, %v2943_v27  ;;  %v7790_v27 = vld [vmem:[#allocation17_spill] sm:$0xff] }
 0x2b7   : > { %v2967_v59 = vadd.f32 %v2966_v8, %v6900_v36  ;;  %v2961_v12 = vadd.f32 %v2960_v56, %v6903_v2  ;;  %v7098_v0 = vadd.f32 %v2916_v41, %v2915_v25  ;;  %v2973_v53 = vadd.f32 %v2972_v13, %v7785_v5 }
 0x2b8   : > { %7788 = vst [vmem:[#allocation12_spill] sm:$0xff] %v7094_v60  ;;  %v2934_v37 = vrot.slane %v2933_v1, 1  ;;  %v3002_v55 = vrot.slane %v7790_v27, 4  ;;  %v2996_v36 = vrot.slane %v6980_v11, 4 }
 0x2b9   : > { %v5284_v40 = vpop.f32.mrb[50].mxu1  ;;  %7789 = vst [vmem:[#allocation16_spill] sm:$0xff] %v7098_v0  ;;  %v2962_v4 = vrot.slane %v2961_v12, 2  ;;  %v2974_v5 = vrot.slane %v2973_v53, 2 }
 0x2ba   : > { %v7077_v21 = vmul.f32 %v5284_v40, %v5156_v51  ;;  %v5159_v35 = vpop.f32.mrb[52].mxu0  ;;  %v2611_v33 = vpop.f32.mrb[51].mxu1  ;;  %v2955_v51 = vadd.f32 %v2954_v32, %v6878_v39  ;;  %v2984_v40 = vrot.slane %v7787_v38, 4  ;;  %v2938_v39 = vrot.slane %v2937_v54, 2 }
 0x2bb   : > { %v7081_v20 = vmul.f32 %v2611_v33, %v1778_v9  ;;  %v1788_v19 = vpop.f32.mrb[53].mxu0  ;;  %v2927_v9 = vadd.f32 %v2926_v10, %v2925_v23  ;;  %v2949_v33 = vadd.f32 %v2948_v46, %v6881_v45  ;;  %v2979_v32 = vadd.f32 %v2978_v31, %v6929_v6 }
 0x2bc   : > { %v2956_v47 = vrot.slane %v2955_v51, 2  ;;  %v2991_v23 = vadd.f32 %v2990_v29, %v7786_v63  ;;  %v2985_v45 = vadd.f32 %v2984_v40, %v7787_v38  ;;  %v2946_v10 = vrot.slane %v2945_v44, 1 }
 0x2bd   : > { %v2928_v3 = vrot.slane %v2927_v9, 1  ;;  %v2950_v17 = vrot.slane %v2949_v33, 2  ;;  %v2968_v46 = vrot.slane %v2967_v59, 2  ;;  %v2939_v41 = vadd.f32 %v2938_v39, %v2937_v54 }
 0x2be   : > { %v2980_v31 = vrot.slane %v2979_v32, 2  ;;  %v2957_v63 = vadd.f32 %v2956_v47, %v2955_v51  ;;  %v2992_v29 = vrot.slane %v2991_v23, 2  ;;  %v2986_v38 = vrot.slane %v2985_v45, 2 }
 0x2bf   : > { %v3014_v40 = vrot.slane %v7004_v26, 4  ;;  %v2951_v43 = vadd.f32 %v2950_v17, %v2949_v33  ;;  %v3003_v57 = vadd.f32 %v3002_v55, %v7790_v27  ;;  %v2997_v22 = vadd.f32 %v2996_v36, %v6980_v11 }
 0x2c0   : > { %v7116_v34 = vadd.f32 %v2928_v3, %v2927_v9  ;;  %v2969_v54 = vadd.f32 %v2968_v46, %v2967_v59  ;;  %v2963_v39 = vadd.f32 %v2962_v4, %v2961_v12  ;;  %v2940_v51 = vrot.slane %v2939_v41, 1 }
 0x2c1   : > { %v2981_v47 = vadd.f32 %v2980_v31, %v2979_v32  ;;  %v2958_v60 = vrot.slane %v2957_v63, 1  ;;  %v2993_v0 = vadd.f32 %v2992_v29, %v2991_v23  ;;  %v2987_v33 = vadd.f32 %v2986_v38, %v2985_v45 }
 0x2c2   : > { %v5287_v2 = vpop.f32.mrb[52].mxu1  ;;  %v5162_v25 = vpop.f32.mrb[54].mxu0  ;;  %v3015_v17 = vadd.f32 %v3014_v40, %v7004_v26  ;;  %v2952_v27 = vrot.slane %v2951_v43, 1  ;;  %v3004_v11 = vrot.slane %v3003_v57, 2  ;;  %v2998_v55 = vrot.slane %v2997_v22, 2 }
 0x2c3   : > { %v7106_v6 = vmul.f32 %v5287_v2, %v5159_v35  ;;  %v2621_v8 = vpop.f32.mrb[53].mxu1  ;;  %v1798_v56 = vpop.f32.mrb[55].mxu0  ;;  %v3008_v35 = vrot.slane %v7009_v15, 4  ;;  %v7114_v2 = vadd.f32 %v2934_v37, %v2933_v1  ;;  %v2970_v3 = vrot.slane %v2969_v54, 1 }
 0x2c4   : > { %v7108_v13 = vmul.f32 %v2621_v8, %v1788_v19  ;;  %v7118_v19 = vadd.f32 %v2946_v10, %v2945_v44  ;;  %v2975_v8 = vadd.f32 %v2974_v5, %v2973_v53  ;;  %v2964_v59 = vrot.slane %v2963_v39, 1 }
 0x2c5   : > { %v3009_v1 = vadd.f32 %v3008_v35, %v7009_v15  ;;  %v3026_v44 = vrot.slane %v7031_v14, 4  ;;  %v2982_v53 = vrot.slane %v2981_v47, 1  ;;  %v3020_v23 = vrot.slane %v7033_v58, 4 }
 0x2c6   : > { %7791 = vst [vmem:[#allocation15_spill] sm:$0xff] %v7118_v19  ;;  %v2976_v10 = vrot.slane %v2975_v8, 1  ;;  %v7124_v26 = vadd.f32 %v2940_v51, %v2939_v41  ;;  %v2994_v46 = vrot.slane %v2993_v0, 1  ;;  %v2988_v4 = vrot.slane %v2987_v33, 1 }
 0x2c7   : > { %v3016_v31 = vrot.slane %v3015_v17, 2  ;;  %v7126_v15 = vadd.f32 %v2958_v60, %v2957_v63  ;;  %v3005_v5 = vadd.f32 %v3004_v11, %v3003_v57  ;;  %v2999_v29 = vadd.f32 %v2998_v55, %v2997_v22 }
 0x2c8   : > { %7792 = vst [vmem:[#allocation17_spill] sm:$0xff] %v7124_v26  ;;  %v3010_v38 = vrot.slane %v3009_v1, 2  ;;  %v7128_v40 = vadd.f32 %v2952_v27, %v2951_v43  ;;  %v3027_v35 = vadd.f32 %v3026_v44, %v7031_v14  ;;  %v7134_v19 = vadd.f32 %v2964_v59, %v2963_v39 }
 0x2c9   : > { %7793 = vst [vmem:[#allocation33_spill] sm:$0xff] %v7126_v15  ;;  %v7138_v41 = vadd.f32 %v2976_v10, %v2975_v8  ;;  %v3021_v60 = vadd.f32 %v3020_v23, %v7033_v58  ;;  %v7141_v63 = vadd.f32 %v2994_v46, %v2993_v0  ;;  %v7143_v57 = vadd.f32 %v2988_v4, %v2987_v33 }
 0x2ca   : > { %v5290_v37 = vpop.f32.mrb[54].mxu1  ;;  %v5165_v9 = vpop.f32.mrb[56].mxu0  ;;  %7794 = vst [vmem:[#allocation34_spill] sm:$0xff] %v7128_v40  ;;  %7796 = vst [vmem:[#allocation36_spill] sm:$0xff] %v7134_v19  ;;  %v3017_v22 = vadd.f32 %v3016_v31, %v3015_v17  ;;  %v3032_v43 = vrot.slane %v7051_v62, 4  ;;  %v3000_v51 = vrot.slane %v2999_v29, 1  ;;  %v3011_v14 = vadd.f32 %v3010_v38, %v3009_v1 }
 0x2cb   : > { %v2735_v12 = vmul.f32 %v5290_v37, %v5162_v25  ;;  %v2631_v36 = vpop.f32.mrb[55].mxu1  ;;  %v1808_v32 = vpop.f32.mrb[57].mxu0  ;;  %v7130_v25 = vadd.f32 %v2970_v3, %v2969_v54  ;;  %v3038_v37 = vrot.slane %v7048_v30, 4  ;;  %7798 = vst [vmem:[#allocation38_spill] sm:$0xff] %v7138_v41  ;;  %v3006_v54 = vrot.slane %v3005_v5, 1 }
 0x2cc   : > { %v2734_v45 = vmul.f32 %v2631_v36, %v1798_v56  ;;  %v7136_v56 = vadd.f32 %v2982_v53, %v2981_v47  ;;  %v3050_v27 = vrot.slane %v7077_v21, 4  ;;  %v3028_v47 = vrot.slane %v3027_v35, 2 }
 0x2cd   : > { %7795 = vst [vmem:[#allocation35_spill] sm:$0xff] %v7130_v25  ;;  %v3039_v8 = vadd.f32 %v3038_v37, %v7048_v30  ;;  %v3044_v55 = vrot.slane %v7081_v20, 4  ;;  %v3022_v33 = vrot.slane %v3021_v60, 2  ;;  %v3062_v17 = vrot.slane %v7106_v6, 4 }
 0x2ce   : > { %7797 = vst [vmem:[#allocation37_spill] sm:$0xff] %v7136_v56  ;;  %v3056_v59 = vrot.slane %v7108_v13, 4  ;;  %v3018_v36 = vrot.slane %v3017_v22, 1  ;;  %v3033_v1 = vadd.f32 %v3032_v43, %v7051_v62  ;;  %v3074_v53 = vrot.slane %v2735_v12, 4 }
 0x2cf   : > { %v3068_v10 = vrot.slane %v2734_v45, 4  ;;  %v3012_v23 = vrot.slane %v3011_v14, 1  ;;  %v3051_v46 = vadd.f32 %v3050_v27, %v7077_v21  ;;  %v7153_v31 = vadd.f32 %v3006_v54, %v3005_v5 }
 0x2d0   : > { %v3040_v38 = vrot.slane %v3039_v8, 2  ;;  %v3045_v37 = vadd.f32 %v3044_v55, %v7081_v20  ;;  %v3023_v56 = vadd.f32 %v3022_v33, %v3021_v60  ;;  %v3057_v62 = vadd.f32 %v3056_v59, %v7108_v13 }
 0x2d1   : > { %v7160_v43 = vadd.f32 %v3018_v36, %v3017_v22  ;;  %v3075_v41 = vadd.f32 %v3074_v53, %v2735_v12  ;;  %v3069_v21 = vadd.f32 %v3068_v10, %v2734_v45  ;;  %v7162_v27 = vadd.f32 %v3012_v23, %v3011_v14 }
 0x2d2   : > { %v5293_v39 = vpop.f32.mrb[56].mxu1  ;;  %v5168_v11 = vpop.f32.mrb[58].mxu0  ;;  %v3052_v5 = vrot.slane %v3051_v46, 2  ;;  %v3024_v33 = vrot.slane %v3023_v56, 1  ;;  %v3058_v22 = vrot.slane %v3057_v62, 2 }
 0x2d3   : > { %v2737_v58 = vmul.f32 %v5293_v39, %v5165_v9  ;;  %v2641_v0 = vpop.f32.mrb[57].mxu1  ;;  %v1818_v3 = vpop.f32.mrb[59].mxu0  ;;  %v3029_v9 = vadd.f32 %v3028_v47, %v3027_v35  ;;  %v7156_v39 = vadd.f32 %v3000_v51, %v2999_v29  ;;  %v3041_v29 = vadd.f32 %v3040_v38, %v3039_v8 }
 0x2d4   : > { %v2736_v44 = vmul.f32 %v2641_v0, %v1808_v32  ;;  %v3063_v32 = vadd.f32 %v3062_v17, %v7106_v6  ;;  %v3034_v0 = vrot.slane %v3033_v1, 2  ;;  %v3046_v51 = vrot.slane %v3045_v37, 2 }
 0x2d5   : > { %v3086_v30 = vrot.slane %v2737_v58, 4  ;;  %v3030_v20 = vrot.slane %v3029_v9, 1  ;;  %v3076_v12 = vrot.slane %v3075_v41, 2  ;;  %v3070_v45 = vrot.slane %v3069_v21, 2 }
 0x2d6   : > { %v3080_v4 = vrot.slane %v2736_v44, 4  ;;  %v3064_v13 = vrot.slane %v3063_v32, 2  ;;  %v3035_v59 = vadd.f32 %v3034_v0, %v3033_v1  ;;  %v3053_v36 = vadd.f32 %v3052_v5, %v3051_v46 }
 0x2d7   : > { %v3087_v54 = vadd.f32 %v3086_v30, %v2737_v58  ;;  %v7164_v10 = vadd.f32 %v3030_v20, %v3029_v9  ;;  %v3042_v23 = vrot.slane %v3041_v29, 1  ;;  %v3047_v8 = vadd.f32 %v3046_v51, %v3045_v37 }
 0x2d8   : > { %v3081_v35 = vadd.f32 %v3080_v4, %v2736_v44  ;;  %v3065_v4 = vadd.f32 %v3064_v13, %v3063_v32  ;;  %v3059_v38 = vadd.f32 %v3058_v22, %v3057_v62  ;;  %v3036_v19 = vrot.slane %v3035_v59, 1 }
 0x2d9   : > { %v3088_v53 = vrot.slane %v3087_v54, 2  ;;  %v3071_v1 = vadd.f32 %v3070_v45, %v3069_v21  ;;  %v7168_v9 = vadd.f32 %v3042_v23, %v3041_v29  ;;  %v3048_v20 = vrot.slane %v3047_v8, 1 }
 0x2da   : > { %v5296_v47 = vpop.f32.mrb[58].mxu1  ;;  %v5171_v25 = vpop.f32.mrb[60].mxu0  ;;  %v3082_v58 = vrot.slane %v3081_v35, 2  ;;  %v3066_v32 = vrot.slane %v3065_v4, 1  ;;  %v3060_v62 = vrot.slane %v3059_v38, 1 }
 0x2db   : > { %v2739_v60 = vmul.f32 %v5296_v47, %v5168_v11  ;;  %v2651_v55 = vpop.f32.mrb[59].mxu1  ;;  %v1828_v6 = vpop.f32.mrb[61].mxu0  ;;  %v7166_v11 = vadd.f32 %v3024_v33, %v3023_v56  ;;  %v3089_v15 = vadd.f32 %v3088_v53, %v3087_v54  ;;  %7799 = vst [vmem:[#allocation39_spill] sm:$0xff] %v7168_v9  ;;  %v3072_v22 = vrot.slane %v3071_v1, 1 }
 0x2dc   : > { %v2738_v17 = vmul.f32 %v2651_v55, %v1818_v3  ;;  %v3077_v3 = vadd.f32 %v3076_v12, %v3075_v41  ;;  %v3054_v55 = vrot.slane %v3053_v36, 1  ;;  %v3083_v46 = vadd.f32 %v3082_v58, %v3081_v35 }
 0x2dd   : > { %v3098_v14 = vrot.slane %v2739_v60, 4  ;;  %v7170_v41 = vadd.f32 %v3036_v19, %v3035_v59  ;;  %v7174_v45 = vadd.f32 %v3048_v20, %v3047_v8  ;;  %v7176_v58 = vadd.f32 %v3066_v32, %v3065_v4 }
 0x2de   : > { %v3092_v44 = vrot.slane %v2738_v17, 4  ;;  %v3078_v21 = vrot.slane %v3077_v3, 1  ;;  %v7172_v35 = vadd.f32 %v3054_v55, %v3053_v36  ;;  %v3084_v12 = vrot.slane %v3083_v46, 1 }
 0x2df   : > { %v3099_v30 = vadd.f32 %v3098_v14, %v2739_v60  ;;  %7800 = vst [vmem:[#allocation40_spill] sm:$0xff] %v7170_v41  ;;  %7802 = vst [vmem:[#allocation42_spill] sm:$0xff] %v7174_v45  ;;  %v7182_v36 = vadd.f32 %v3072_v22, %v3071_v1 }
 0x2e0   : > { %v3093_v47 = vadd.f32 %v3092_v44, %v2738_v17  ;;  %7801 = vst [vmem:[#allocation41_spill] sm:$0xff] %v7172_v35  ;;  %v3090_v17 = vrot.slane %v3089_v15, 1  ;;  %7803 = vst [vmem:[#allocation43_spill] sm:$0xff] %v7176_v58  ;;  %v7178_v44 = vadd.f32 %v3060_v62, %v3059_v38  ;;  %v7180_v23 = vadd.f32 %v3078_v21, %v3077_v3  ;;  %v7818_v58 = vld [vmem:[#allocation21_spill] sm:$0xff] }
 0x2e1   : > { %v3100_v0 = vrot.slane %v3099_v30, 2  ;;  %7806 = vst [vmem:[#allocation46_spill] sm:$0xff] %v7182_v36  ;;  %v7186_v8 = vadd.f32 %v3084_v12, %v3083_v46 }
 0x2e2   : > { %v3094_v5 = vrot.slane %v3093_v47, 2  ;;  %v5299_v40 = vpop.f32.mrb[60].mxu1  ;;  %v5174_v26 = vpop.f32.mrb[62].mxu0  ;;  %7804 = vst [vmem:[#allocation44_spill] sm:$0xff] %v7178_v44  ;;  %7805 = vst [vmem:[#allocation45_spill] sm:$0xff] %v7180_v23  ;;  %v7817_v23 = vld [vmem:[#allocation24_spill] sm:$0xff] }
 0x2e3   : > { %v3101_v37 = vadd.f32 %v3100_v0, %v3099_v30  ;;  %v2741_v51 = vmul.f32 %v5299_v40, %v5171_v25  ;;  %v2661_v56 = vpop.f32.mrb[61].mxu1  ;;  %v1838_v60 = vpop.f32.mrb[63].mxu0  ;;  %v7184_v0 = vadd.f32 %v3090_v17, %v3089_v15 }
 0x2e4   : > { %v3095_v33 = vadd.f32 %v3094_v5, %v3093_v47  ;;  %v2740_v13 = vmul.f32 %v2661_v56, %v1828_v6 }
 0x2e5   : > { %v3110_v54 = vrot.slane %v2741_v51, 4  ;;  %v3102_v14 = vrot.slane %v3101_v37, 1 }
 0x2e6   : > { %v3104_v29 = vrot.slane %v2740_v13, 4  ;;  %v3096_v40 = vrot.slane %v3095_v33, 1 }
 0x2e7   : > { %v3111_v25 = vadd.f32 %v3110_v54, %v2741_v51  ;;  %v5302_v53 = vpop.f32.mrb[62].mxu1  ;;  %v7188_v20 = vadd.f32 %v3102_v14, %v3101_v37 }
 0x2e8   : > { %v3105_v19 = vadd.f32 %v3104_v29, %v2740_v13  ;;  %v2743_v6 = vmul.f32 %v5302_v53, %v5174_v26  ;;  %v2671_v59 = vpop.f32.mrb[63].mxu1  ;;  %v7190_v4 = vadd.f32 %v3096_v40, %v3095_v33 }
 0x2e9   : > { %v3112_v30 = vrot.slane %v3111_v25, 2  ;;  %v2742_v47 = vmul.f32 %v2671_v59, %v1838_v60 }
 0x2ea   : > { %v3106_v55 = vrot.slane %v3105_v19, 2  ;;  %v3122_v5 = vrot.slane %v2743_v6, 4 }
 0x2eb   : > { %v3113_v38 = vadd.f32 %v3112_v30, %v3111_v25  ;;  %v3116_v51 = vrot.slane %v2742_v47, 4  ;;  %v5337_v26 = vpop.f32.mrb[64].mxu0 }
 0x2ec   : > { %v3107_v56 = vadd.f32 %v3106_v55, %v3105_v19  ;;  %v3123_v3 = vadd.f32 %v3122_v5, %v2743_v6  ;;  %v3304_v32 = vrot.slane %v5337_v26, 1  ;;  %v3305_v1 = vrot.slane %v5337_v26, 2  ;;  %v3250_v62 = vpop.f32.mrb[65].mxu0  ;;  %v7808_v55 = vld [vmem:[#allocation23_spill] sm:$0xff] }
 0x2ed   : > { %v3114_v13 = vrot.slane %v3113_v38, 1  ;;  %v3117_v60 = vadd.f32 %v3116_v51, %v2742_v47  ;;  %v3306_v15 = vrot.slane %v5337_v26, 3  ;;  %v3307_v21 = vrot.slane %v5337_v26, 4 }
 0x2ee   : > { %v3108_v46 = vrot.slane %v3107_v56, 1  ;;  %v3124_v22 = vrot.slane %v3123_v3, 2  ;;  %v3308_v54 = vrot.slane %v5337_v26, 5  ;;  %v3309_v17 = vrot.slane %v5337_v26, 6 }
 0x2ef   : > { %v7192_v37 = vadd.f32 %v3114_v13, %v3113_v38  ;;  %v3118_v33 = vrot.slane %v3117_v60, 2  ;;  %v3310_v12 = vrot.slane %v5337_v26, 7  ;;  %v3425_v29 = vadd.f32 %v5337_v26, %v6998_v7  ;;  %v5381_v14 = vpop.f32.mrb[64].mxu1 }
 0x2f0   : > { %v7195_v40 = vadd.f32 %v3108_v46, %v3107_v56  ;;  %v3125_v25 = vadd.f32 %v3124_v22, %v3123_v3  ;;  %v3426_v53 = vadd.f32 %v3304_v32, %v6996_v50  ;;  %v3427_v19 = vadd.f32 %v3305_v1, %v7016_v61  ;;  %v7199_v6 = vpop.f32.mrb[65].mxu1  ;;  %v7813_v22 = vld [vmem:[#allocation20_spill] sm:$0xff] }
 0x2f1   : > { %7807 = vst [vmem:[#allocation47_spill] sm:$0xff] %v7192_v37  ;;  %v3119_v59 = vadd.f32 %v3118_v33, %v3117_v60  ;;  %v3428_v30 = vadd.f32 %v3306_v15, %v7014_v49  ;;  %v3429_v47 = vadd.f32 %v3307_v21, %v7021_v28  ;;  %v3430_v5 = vadd.f32 %v3308_v54, %v7808_v55  ;;  %v7816_v55 = vld [vmem:[#allocation19_spill] sm:$0xff] }
 0x2f2   : > { %v3126_v38 = vrot.slane %v3125_v25, 1  ;;  %v3431_v7 = vadd.f32 %v3309_v17, %v7040_v48  ;;  %v3432_v51 = vadd.f32 %v3310_v12, %v7036_v42  ;;  %v3297_v26 = vrot.slane %v3250_v62, 1  ;;  %v7811_v48 = vld [vmem:[#allocation14_spill] sm:$0xff]  ;;  %v7812_v42 = vld [vmem:[#allocation11_spill] sm:$0xff] }
 0x2f3   : > { %v3120_v56 = vrot.slane %v3119_v59, 1  ;;  %v3298_v3 = vrot.slane %v3250_v62, 2  ;;  %v3299_v50 = vrot.slane %v3250_v62, 3  ;;  %v3300_v32 = vrot.slane %v3250_v62, 4  ;;  %v7206_v61 = vpop.f32.mrb[66].mxu0  ;;  %v7814_v17 = vld [vmem:[#allocation18_spill] sm:$0xff] }
 0x2f4   : > { %v7208_v1 = vadd.f32 %v3126_v38, %v3125_v25  ;;  %v3301_v13 = vrot.slane %v3250_v62, 5  ;;  %v3302_v49 = vrot.slane %v3250_v62, 6  ;;  %v3303_v60 = vrot.slane %v3250_v62, 7  ;;  %v7210_v28 = vpop.f32.mrb[67].mxu0  ;;  %v7815_v12 = vld [vmem:[#allocation22_spill] sm:$0xff] }
 0x2f5   : > { %v7212_v15 = vadd.f32 %v3120_v56, %v3119_v59  ;;  %v3417_v21 = vadd.f32 %v3250_v62, %v7811_v48  ;;  %v3418_v46 = vadd.f32 %v3297_v26, %v7812_v42  ;;  %v3419_v54 = vadd.f32 %v3298_v3, %v7813_v22 }
 0x2f6   : > { %7809 = vst [vmem:[#allocation23_spill] sm:$0xff] %v7208_v1  ;;  %v3420_v33 = vadd.f32 %v3299_v50, %v7814_v17  ;;  %v3421_v25 = vadd.f32 %v3300_v32, %v7815_v12  ;;  %v3422_v38 = vadd.f32 %v3301_v13, %v7816_v55  ;;  %v3423_v36 = vadd.f32 %v3302_v49, %v7817_v23  ;;  %v7819_v12 = vld [vmem:[#allocation3_spill] sm:$0xff] }
 0x2f7   : > { %7810 = vst [vmem:[#allocation48_spill] sm:$0xff] %v7212_v15  ;;  %v3424_v44 = vadd.f32 %v3303_v60, %v7818_v58  ;;  %v3657_v59 = vrot.slane %v5381_v14, 1  ;;  %v3658_v56 = vrot.slane %v5381_v14, 2  ;;  %v3659_v35 = vrot.slane %v5381_v14, 3  ;;  %v7222_v62 = vpop.f32.mrb[66].mxu1 }
 0x2f8   : > { %v3660_v26 = vrot.slane %v5381_v14, 4  ;;  %v3661_v3 = vrot.slane %v5381_v14, 5  ;;  %v3662_v48 = vrot.slane %v5381_v14, 6  ;;  %v3663_v42 = vrot.slane %v5381_v14, 7  ;;  %v7224_v50 = vpop.f32.mrb[67].mxu1 }
 0x2f9   : > { %v3778_v32 = vmul.f32 %v5381_v14, %v3425_v29  ;;  %v3779_v13 = vmul.f32 %v3657_v59, %v3426_v53  ;;  %v3780_v22 = vmul.f32 %v3658_v56, %v3427_v19  ;;  %v3781_v23 = vmul.f32 %v3659_v35, %v3428_v30 }
 0x2fa   : > { %v3782_v49 = vmul.f32 %v3660_v26, %v3429_v47  ;;  %v3783_v58 = vmul.f32 %v3661_v3, %v3430_v5  ;;  %v3784_v60 = vmul.f32 %v3662_v48, %v3431_v7  ;;  %v3785_v17 = vmul.f32 %v3663_v42, %v3432_v51 }
 0x2fb   : > { %v4002_v55 = vmul.f32 %v7819_v12, %v3778_v32  ;;  %v7820_v45 = vrot.slane %v7819_v12, 1  ;;  %v7821_v41 = vrot.slane %v7819_v12, 2  ;;  %v7822_v15 = vrot.slane %v7819_v12, 3  ;;  %v7233_v29 = vpop.f32.mrb[68].mxu0 }
 0x2fc   : > { %v7823_v35 = vrot.slane %v7819_v12, 4  ;;  %v7824_v53 = vrot.slane %v7819_v12, 5  ;;  %v7825_v30 = vrot.slane %v7819_v12, 6  ;;  %v7826_v5 = vrot.slane %v7819_v12, 7  ;;  %v7245_v7 = vpop.f32.mrb[69].mxu0 }
 0x2fd   : > { %v4003_v9 = vmul.f32 %v7820_v45, %v3779_v13  ;;  %v4004_v1 = vmul.f32 %v7821_v41, %v3780_v22  ;;  %v4005_v37 = vmul.f32 %v7822_v15, %v3781_v23  ;;  %v3650_v59 = vrot.slane %v7199_v6, 1 }
 0x2fe   : > { %v4006_v14 = vmul.f32 %v7823_v35, %v3782_v49  ;;  %v4007_v19 = vmul.f32 %v7824_v53, %v3783_v58  ;;  %v4008_v47 = vmul.f32 %v7825_v30, %v3784_v60  ;;  %v7243_v45 = vmul.f32 %v7826_v5, %v3785_v17 }
 0x2ff   : > { %v4143_v41 = vrot.slane %v4003_v9, 7  ;;  %v4145_v51 = vrot.slane %v4004_v1, 6  ;;  %v4147_v15 = vrot.slane %v4005_v37, 5  ;;  %v3651_v32 = vrot.slane %v7199_v6, 2  ;;  %v7253_v23 = vpop.f32.mrb[68].mxu1 }
 0x300   : > { %7827 = vst [vmem:[#allocation14_spill] sm:$0xff] %v7243_v45  ;;  %v4149_v56 = vrot.slane %v4006_v14, 4  ;;  %v4151_v26 = vrot.slane %v4007_v19, 3  ;;  %v4153_v3 = vrot.slane %v4008_v47, 2  ;;  %v3652_v13 = vrot.slane %v7199_v6, 3  ;;  %v7259_v58 = vpop.f32.mrb[69].mxu1 }
 0x301   : > { %v4144_v42 = vsel %vm4123_vm2, %v4143_v41, %v4002_v55  ;;  %v3653_v22 = vrot.slane %v7199_v6, 4  ;;  %v3654_v37 = vrot.slane %v7199_v6, 5  ;;  %v3655_v1 = vrot.slane %v7199_v6, 6  ;;  %v7828_v41 = vld [vmem:[#allocation4_spill] sm:$0xff] }
 0x302   : > { %v4146_v9 = vsel %vm4126_vm3, %v4145_v51, %v4144_v42  ;;  %v3656_v49 = vrot.slane %v7199_v6, 7  ;;  %v3770_v17 = vmul.f32 %v7199_v6, %v3417_v21  ;;  %v3771_v12 = vmul.f32 %v3650_v59, %v3418_v46 }
 0x303   : > { %v4148_v60 = vsel %vm4129_vm4, %v4147_v15, %v4146_v9  ;;  %v3772_v55 = vmul.f32 %v3651_v32, %v3419_v54  ;;  %v3773_v14 = vmul.f32 %v3652_v13, %v3420_v33  ;;  %v3774_v53 = vmul.f32 %v3653_v22, %v3421_v25  ;;  %v7266_v42 = vpop.f32.mrb[70].mxu0 }
 0x304   : > { %v4150_v35 = vsel %vm4132_vm5, %v4149_v56, %v4148_v60  ;;  %v3775_v19 = vmul.f32 %v3654_v37, %v3422_v38  ;;  %v3776_v47 = vmul.f32 %v3655_v1, %v3423_v36  ;;  %v3777_v5 = vmul.f32 %v3656_v49, %v3424_v44  ;;  %v7277_v38 = vpop.f32.mrb[71].mxu0 }
 0x305   : > { %v4152_v30 = vsel %vm4135_vm6, %v4151_v26, %v4150_v35  ;;  %v3994_v51 = vmul.f32 %v7828_v41, %v3770_v17  ;;  %v7830_v6 = vrot.slane %v7828_v41, 1  ;;  %v7831_v46 = vrot.slane %v7828_v41, 2 }
 0x306   : > { %v7269_v48 = vsel %vm4138_vm7, %v4153_v3, %v4152_v30  ;;  %v7832_v33 = vrot.slane %v7828_v41, 3  ;;  %v7833_v44 = vrot.slane %v7828_v41, 4  ;;  %v7834_v15 = vrot.slane %v7828_v41, 5 }
 0x307   : > { %7829 = vst [vmem:[#allocation11_spill] sm:$0xff] %v7269_v48  ;;  %v3995_v21 = vmul.f32 %v7830_v6, %v3771_v12  ;;  %v3996_v54 = vmul.f32 %v7831_v46, %v3772_v55  ;;  %v7835_v56 = vrot.slane %v7828_v41, 6  ;;  %v7836_v3 = vrot.slane %v7828_v41, 7  ;;  %v7291_v12 = vpop.f32.mrb[70].mxu1 }
 0x308   : > { %v3997_v25 = vmul.f32 %v7832_v33, %v3773_v14  ;;  %v3998_v36 = vmul.f32 %v7833_v44, %v3774_v53  ;;  %v3999_v59 = vmul.f32 %v7834_v15, %v3775_v19  ;;  %v3318_v37 = vrot.slane %v7206_v61, 1  ;;  %v7297_v19 = vpop.f32.mrb[71].mxu1 }
 0x309   : > { %v4000_v26 = vmul.f32 %v7835_v56, %v3776_v47  ;;  %v7287_v32 = vmul.f32 %v7836_v3, %v3777_v5  ;;  %v4122_v13 = vrot.slane %v3995_v21, 7  ;;  %v4125_v22 = vrot.slane %v3996_v54, 6 }
 0x30a   : > { %v4128_v9 = vrot.slane %v3997_v25, 5  ;;  %v4131_v1 = vrot.slane %v3998_v36, 4  ;;  %v4134_v49 = vrot.slane %v3999_v59, 3  ;;  %v3319_v35 = vrot.slane %v7206_v61, 2  ;;  %v7837_v25 = vld [vmem:[#allocation16_spill] sm:$0xff] }
 0x30b   : > { %v4137_v60 = vrot.slane %v4000_v26, 2  ;;  %v4124_v55 = vsel %vm4123_vm2, %v4122_v13, %v3994_v51  ;;  %v3320_v14 = vrot.slane %v7206_v61, 3  ;;  %v3321_v53 = vrot.slane %v7206_v61, 4  ;;  %v7838_v36 = vld [vmem:[#allocation12_spill] sm:$0xff]  ;;  %v7312_v59 = vpop.f32.mrb[72].mxu0 }
 0x30c   : > { %v4127_v30 = vsel %vm4126_vm3, %v4125_v22, %v4124_v55  ;;  %v3322_v47 = vrot.slane %v7206_v61, 5  ;;  %v3323_v5 = vrot.slane %v7206_v61, 6  ;;  %v3324_v41 = vrot.slane %v7206_v61, 7  ;;  %7839 = vst [vmem:[#allocation20_spill] sm:$0xff] %v7312_v59  ;;  %v7842_v55 = vld [vmem:[#allocation27_spill] sm:$0xff] }
 0x30d   : > { %v4130_v6 = vsel %vm4129_vm4, %v4128_v9, %v4127_v30  ;;  %v3441_v51 = vadd.f32 %v7206_v61, %v7072_v24  ;;  %v3442_v21 = vadd.f32 %v3318_v37, %v7070_v18  ;;  %v3443_v46 = vadd.f32 %v3319_v35, %v7091_v16  ;;  %v5425_v61 = vpop.f32.mrb[73].mxu0  ;;  %v7840_v37 = vld [vmem:[#allocation25_spill] sm:$0xff]  ;;  %v7843_v35 = vld [vmem:[#allocation28_spill] sm:$0xff] }
 0x30e   : > { %v4133_v54 = vsel %vm4132_vm5, %v4131_v1, %v4130_v6  ;;  %v3444_v33 = vadd.f32 %v3320_v14, %v7089_v52  ;;  %v3445_v44 = vadd.f32 %v3321_v53, %v7837_v25  ;;  %v3446_v15 = vadd.f32 %v3322_v47, %v7838_v36  ;;  %v7841_v1 = vld [vmem:[#allocation26_spill] sm:$0xff]  ;;  %v7844_v53 = vld [vmem:[#allocation29_spill] sm:$0xff] }
 0x30f   : > { %v4136_v56 = vsel %vm4135_vm6, %v4134_v49, %v4133_v54  ;;  %v3447_v26 = vadd.f32 %v3323_v5, %v7116_v34  ;;  %v3448_v24 = vadd.f32 %v3324_v41, %v7114_v2  ;;  %v3311_v18 = vrot.slane %v7210_v28, 1  ;;  %v7845_v47 = vld [vmem:[#allocation30_spill] sm:$0xff]  ;;  %v7846_v41 = vld [vmem:[#allocation32_spill] sm:$0xff]  ;;  %v7847_v54 = vld [vmem:[#allocation31_spill] sm:$0xff] }
 0x310   : > { %v7319_v16 = vsel %vm4138_vm7, %v4137_v60, %v4136_v56  ;;  %v3312_v52 = vrot.slane %v7210_v28, 2  ;;  %v3313_v3 = vrot.slane %v7210_v28, 3  ;;  %v3314_v13 = vrot.slane %v7210_v28, 4 }
 0x311   : > { %v3315_v22 = vrot.slane %v7210_v28, 5  ;;  %v3316_v9 = vrot.slane %v7210_v28, 6  ;;  %v3317_v34 = vrot.slane %v7210_v28, 7  ;;  %v3433_v2 = vadd.f32 %v7210_v28, %v7840_v37 }
 0x312   : > { %v3434_v49 = vadd.f32 %v3311_v18, %v7841_v1  ;;  %v3435_v60 = vadd.f32 %v3312_v52, %v7842_v55  ;;  %v3436_v14 = vadd.f32 %v3313_v3, %v7843_v35  ;;  %v3437_v30 = vadd.f32 %v3314_v13, %v7844_v53  ;;  %v7848_v53 = vld [vmem:[#allocation7_spill] sm:$0xff] }
 0x313   : > { %v3438_v5 = vadd.f32 %v3315_v22, %v7845_v47  ;;  %v3439_v6 = vadd.f32 %v3316_v9, %v7846_v41  ;;  %v3440_v25 = vadd.f32 %v3317_v34, %v7847_v54  ;;  %v3671_v36 = vrot.slane %v7222_v62, 1 }
 0x314   : > { %v3672_v56 = vrot.slane %v7222_v62, 2  ;;  %v3673_v28 = vrot.slane %v7222_v62, 3  ;;  %v3674_v18 = vrot.slane %v7222_v62, 4  ;;  %v3675_v61 = vrot.slane %v7222_v62, 5 }
 0x315   : > { %v3676_v52 = vrot.slane %v7222_v62, 6  ;;  %v3677_v3 = vrot.slane %v7222_v62, 7  ;;  %v3794_v13 = vmul.f32 %v7222_v62, %v3441_v51  ;;  %v3795_v22 = vmul.f32 %v3671_v36, %v3442_v21 }
 0x316   : > { %v3796_v9 = vmul.f32 %v3672_v56, %v3443_v46  ;;  %v3797_v37 = vmul.f32 %v3673_v28, %v3444_v33  ;;  %v3798_v34 = vmul.f32 %v3674_v18, %v3445_v44  ;;  %v3799_v1 = vmul.f32 %v3675_v61, %v3446_v15 }
 0x317   : > { %v3800_v55 = vmul.f32 %v3676_v52, %v3447_v26  ;;  %v3801_v35 = vmul.f32 %v3677_v3, %v3448_v24  ;;  %v4018_v47 = vmul.f32 %v7848_v53, %v3794_v13  ;;  %v7849_v41 = vrot.slane %v7848_v53, 1 }
 0x318   : > { %v7850_v17 = vrot.slane %v7848_v53, 2  ;;  %v7851_v45 = vrot.slane %v7848_v53, 3  ;;  %v7852_v62 = vrot.slane %v7848_v53, 4  ;;  %v7853_v21 = vrot.slane %v7848_v53, 5 }
 0x319   : > { %v4019_v54 = vmul.f32 %v7849_v41, %v3795_v22  ;;  %v7854_v33 = vrot.slane %v7848_v53, 6  ;;  %v7855_v15 = vrot.slane %v7848_v53, 7  ;;  %v3664_v36 = vrot.slane %v7224_v50, 1 }
 0x31a   : > { %v4020_v59 = vmul.f32 %v7850_v17, %v3796_v9  ;;  %v4021_v48 = vmul.f32 %v7851_v45, %v3797_v37  ;;  %v4022_v51 = vmul.f32 %v7852_v62, %v3798_v34  ;;  %v4023_v46 = vmul.f32 %v7853_v21, %v3799_v1 }
 0x31b   : > { %v4024_v44 = vmul.f32 %v7854_v33, %v3800_v55  ;;  %v7359_v26 = vmul.f32 %v7855_v15, %v3801_v35  ;;  %v4171_v24 = vrot.slane %v4019_v54, 7  ;;  %v3665_v3 = vrot.slane %v7224_v50, 2  ;;  %v7856_v33 = vld [vmem:[#allocation5_spill] sm:$0xff] }
 0x31c   : > { %v4173_v17 = vrot.slane %v4020_v59, 6  ;;  %v4175_v56 = vrot.slane %v4021_v48, 5  ;;  %v4177_v28 = vrot.slane %v4022_v51, 4  ;;  %v4179_v45 = vrot.slane %v4023_v46, 3 }
 0x31d   : > { %v4172_v18 = vsel %vm4123_vm2, %v4171_v24, %v4018_v47  ;;  %v4181_v61 = vrot.slane %v4024_v44, 2  ;;  %v4183_v52 = vrot.slane %v7359_v26, 1  ;;  %v3666_v22 = vrot.slane %v7224_v50, 3 }
 0x31e   : > { %v4174_v13 = vsel %vm4126_vm3, %v4173_v17, %v4172_v18  ;;  %v3667_v9 = vrot.slane %v7224_v50, 4  ;;  %v3668_v37 = vrot.slane %v7224_v50, 5  ;;  %v3669_v48 = vrot.slane %v7224_v50, 6 }
 0x31f   : > { %v4176_v59 = vsel %vm4129_vm4, %v4175_v56, %v4174_v13  ;;  %v3670_v34 = vrot.slane %v7224_v50, 7  ;;  %v3786_v1 = vmul.f32 %v7224_v50, %v3433_v2  ;;  %v3787_v35 = vmul.f32 %v3664_v36, %v3434_v49 }
 0x320   : > { %v4178_v55 = vsel %vm4132_vm5, %v4177_v28, %v4176_v59  ;;  %v3788_v53 = vmul.f32 %v3665_v3, %v3435_v60  ;;  %v3789_v47 = vmul.f32 %v3666_v22, %v3436_v14  ;;  %v3790_v54 = vmul.f32 %v3667_v9, %v3437_v30 }
 0x321   : > { %v4180_v41 = vsel %vm4135_vm6, %v4179_v45, %v4178_v55  ;;  %v3791_v62 = vmul.f32 %v3668_v37, %v3438_v5  ;;  %v3792_v51 = vmul.f32 %v3669_v48, %v3439_v6  ;;  %v3793_v46 = vmul.f32 %v3670_v34, %v3440_v25 }
 0x322   : > { %v7376_v21 = vsel %vm4138_vm7, %v4181_v61, %v4180_v41  ;;  %v4010_v44 = vmul.f32 %v7856_v33, %v3786_v1  ;;  %v7857_v15 = vrot.slane %v7856_v33, 1  ;;  %v7858_v50 = vrot.slane %v7856_v33, 2 }
 0x323   : > { %v7859_v49 = vrot.slane %v7856_v33, 3  ;;  %v7860_v14 = vrot.slane %v7856_v33, 4  ;;  %v7861_v5 = vrot.slane %v7856_v33, 5  ;;  %v7862_v36 = vrot.slane %v7856_v33, 6 }
 0x324   : > { %v4011_v24 = vmul.f32 %v7857_v15, %v3787_v35  ;;  %v4012_v2 = vmul.f32 %v7858_v50, %v3788_v53  ;;  %v7863_v17 = vrot.slane %v7856_v33, 7  ;;  %v3332_v45 = vrot.slane %v7233_v29, 1 }
 0x325   : > { %v4013_v60 = vmul.f32 %v7859_v49, %v3789_v47  ;;  %v4014_v30 = vmul.f32 %v7860_v14, %v3790_v54  ;;  %v4015_v6 = vmul.f32 %v7861_v5, %v3791_v62  ;;  %v4016_v25 = vmul.f32 %v7862_v36, %v3792_v51  ;;  %v7867_v5 = vld [vmem:[#allocation33_spill] sm:$0xff]  ;;  %v7868_v36 = vld [vmem:[#allocation36_spill] sm:$0xff] }
 0x326   : > { %v7393_v56 = vmul.f32 %v7863_v17, %v3793_v46  ;;  %v4157_v28 = vrot.slane %v4011_v24, 7  ;;  %v4159_v18 = vrot.slane %v4012_v2, 6  ;;  %v3333_v59 = vrot.slane %v7233_v29, 2  ;;  %v7869_v17 = vld [vmem:[#allocation35_spill] sm:$0xff] }
 0x327   : > { %v4161_v61 = vrot.slane %v4013_v60, 5  ;;  %v4163_v3 = vrot.slane %v4014_v30, 4  ;;  %v4165_v13 = vrot.slane %v4015_v6, 3  ;;  %v4167_v9 = vrot.slane %v4016_v25, 2  ;;  %v7865_v60 = vld [vmem:[#allocation15_spill] sm:$0xff] }
 0x328   : > { %v4158_v22 = vsel %vm4123_vm2, %v4157_v28, %v4010_v44  ;;  %v4169_v37 = vrot.slane %v7393_v56, 1  ;;  %v3334_v34 = vrot.slane %v7233_v29, 3  ;;  %v3335_v1 = vrot.slane %v7233_v29, 4 }
 0x329   : > { %v4160_v48 = vsel %vm4126_vm3, %v4159_v18, %v4158_v22  ;;  %v3336_v55 = vrot.slane %v7233_v29, 5  ;;  %v3337_v53 = vrot.slane %v7233_v29, 6  ;;  %v3338_v47 = vrot.slane %v7233_v29, 7 }
 0x32a   : > { %v4162_v35 = vsel %vm4129_vm4, %v4161_v61, %v4160_v48  ;;  %v3457_v41 = vadd.f32 %v7233_v29, %v7143_v57  ;;  %v3458_v62 = vadd.f32 %v3332_v45, %v7141_v63  ;;  %v3459_v51 = vadd.f32 %v3333_v59, %v7156_v39  ;;  %v7870_v45 = vld [vmem:[#allocation38_spill] sm:$0xff]  ;;  %v7871_v61 = vld [vmem:[#allocation37_spill] sm:$0xff] }
 0x32b   : > { %v4164_v54 = vsel %vm4132_vm5, %v4163_v3, %v4162_v35  ;;  %v3460_v46 = vadd.f32 %v3334_v34, %v7153_v31  ;;  %v3461_v44 = vadd.f32 %v3335_v1, %v7162_v27  ;;  %v3462_v15 = vadd.f32 %v3336_v55, %v7160_v43 }
 0x32c   : > { %v4166_v33 = vsel %vm4135_vm6, %v4165_v13, %v4164_v54  ;;  %v3463_v24 = vadd.f32 %v3337_v53, %v7166_v11  ;;  %v3464_v57 = vadd.f32 %v3338_v47, %v7164_v10  ;;  %v3325_v29 = vrot.slane %v7245_v7, 1  ;;  %v7864_v11 = vld [vmem:[#allocation17_spill] sm:$0xff]  ;;  %v7866_v10 = vld [vmem:[#allocation34_spill] sm:$0xff] }
 0x32d   : > { %v7417_v50 = vsel %vm4138_vm7, %v4167_v9, %v4166_v33  ;;  %v3326_v63 = vrot.slane %v7245_v7, 2  ;;  %v3327_v39 = vrot.slane %v7245_v7, 3  ;;  %v3328_v31 = vrot.slane %v7245_v7, 4 }
 0x32e   : > { %v3329_v2 = vrot.slane %v7245_v7, 5  ;;  %v3330_v27 = vrot.slane %v7245_v7, 6  ;;  %v3331_v43 = vrot.slane %v7245_v7, 7  ;;  %v3449_v49 = vadd.f32 %v7245_v7, %v7864_v11 }
 0x32f   : > { %v3450_v14 = vadd.f32 %v3325_v29, %v7865_v60  ;;  %v3451_v30 = vadd.f32 %v3326_v63, %v7866_v10  ;;  %v3452_v6 = vadd.f32 %v3327_v39, %v7867_v5  ;;  %v3453_v25 = vadd.f32 %v3328_v31, %v7868_v36  ;;  %v7872_v63 = vld [vmem:[#allocation9_spill] sm:$0xff] }
 0x330   : > { %v3454_v28 = vadd.f32 %v3329_v2, %v7869_v17  ;;  %v3455_v18 = vadd.f32 %v3330_v27, %v7870_v45  ;;  %v3456_v3 = vadd.f32 %v3331_v43, %v7871_v61  ;;  %v3685_v13 = vrot.slane %v7253_v23, 1 }
 0x331   : > { %v3686_v22 = vrot.slane %v7253_v23, 2  ;;  %v3687_v7 = vrot.slane %v7253_v23, 3  ;;  %v3688_v9 = vrot.slane %v7253_v23, 4  ;;  %v3689_v59 = vrot.slane %v7253_v23, 5 }
 0x332   : > { %v3690_v48 = vrot.slane %v7253_v23, 6  ;;  %v3691_v34 = vrot.slane %v7253_v23, 7  ;;  %v3810_v1 = vmul.f32 %v7253_v23, %v3457_v41  ;;  %v3811_v55 = vmul.f32 %v3685_v13, %v3458_v62 }
 0x333   : > { %v3812_v35 = vmul.f32 %v3686_v22, %v3459_v51  ;;  %v3813_v53 = vmul.f32 %v3687_v7, %v3460_v46  ;;  %v3814_v47 = vmul.f32 %v3688_v9, %v3461_v44  ;;  %v3815_v54 = vmul.f32 %v3689_v59, %v3462_v15 }
 0x334   : > { %v3816_v33 = vmul.f32 %v3690_v48, %v3463_v24  ;;  %v3817_v29 = vmul.f32 %v3691_v34, %v3464_v57  ;;  %v4034_v39 = vmul.f32 %v7872_v63, %v3810_v1  ;;  %v7873_v31 = vrot.slane %v7872_v63, 1 }
 0x335   : > { %v7874_v27 = vrot.slane %v7872_v63, 2  ;;  %v7875_v11 = vrot.slane %v7872_v63, 3  ;;  %v7876_v23 = vrot.slane %v7872_v63, 4  ;;  %v7877_v62 = vrot.slane %v7872_v63, 5 }
 0x336   : > { %v4035_v2 = vmul.f32 %v7873_v31, %v3811_v55  ;;  %v7878_v46 = vrot.slane %v7872_v63, 6  ;;  %v7879_v15 = vrot.slane %v7872_v63, 7  ;;  %v3678_v36 = vrot.slane %v7259_v58, 1 }
 0x337   : > { %v4036_v43 = vmul.f32 %v7874_v27, %v3812_v35  ;;  %v4037_v60 = vmul.f32 %v7875_v11, %v3813_v53  ;;  %v4038_v41 = vmul.f32 %v7876_v23, %v3814_v47  ;;  %v4039_v51 = vmul.f32 %v7877_v62, %v3815_v54 }
 0x338   : > { %v4040_v44 = vmul.f32 %v7878_v46, %v3816_v33  ;;  %v7459_v24 = vmul.f32 %v7879_v15, %v3817_v29  ;;  %v4199_v57 = vrot.slane %v4035_v2, 7  ;;  %v3679_v7 = vrot.slane %v7259_v58, 2 }
 0x339   : > { %v4201_v10 = vrot.slane %v4036_v43, 6  ;;  %v4203_v5 = vrot.slane %v4037_v60, 5  ;;  %v4205_v17 = vrot.slane %v4038_v41, 4  ;;  %v4207_v45 = vrot.slane %v4039_v51, 3  ;;  %v7880_v43 = vld [vmem:[#allocation8_spill] sm:$0xff] }
 0x33a   : > { %v4209_v61 = vrot.slane %v4040_v44, 2  ;;  %v4211_v13 = vrot.slane %v7459_v24, 1  ;;  %v4200_v22 = vsel %vm4123_vm2, %v4199_v57, %v4034_v39  ;;  %v3680_v9 = vrot.slane %v7259_v58, 3 }
 0x33b   : > { %v3681_v59 = vrot.slane %v7259_v58, 4  ;;  %v4202_v48 = vsel %vm4126_vm3, %v4201_v10, %v4200_v22  ;;  %v3682_v34 = vrot.slane %v7259_v58, 5  ;;  %v3683_v1 = vrot.slane %v7259_v58, 6 }
 0x33c   : > { %v3684_v55 = vrot.slane %v7259_v58, 7  ;;  %v4204_v35 = vsel %vm4129_vm4, %v4203_v5, %v4202_v48  ;;  %v3802_v53 = vmul.f32 %v7259_v58, %v3449_v49  ;;  %v3803_v47 = vmul.f32 %v3678_v36, %v3450_v14 }
 0x33d   : > { %v3804_v54 = vmul.f32 %v3679_v7, %v3451_v30  ;;  %v4206_v33 = vsel %vm4132_vm5, %v4205_v17, %v4204_v35  ;;  %v3805_v29 = vmul.f32 %v3680_v9, %v3452_v6  ;;  %v3806_v63 = vmul.f32 %v3681_v59, %v3453_v25 }
 0x33e   : > { %v3807_v39 = vmul.f32 %v3682_v34, %v3454_v28  ;;  %v4208_v31 = vsel %vm4135_vm6, %v4207_v45, %v4206_v33  ;;  %v3808_v2 = vmul.f32 %v3683_v1, %v3455_v18  ;;  %v3809_v27 = vmul.f32 %v3684_v55, %v3456_v3 }
 0x33f   : > { %v4026_v11 = vmul.f32 %v7880_v43, %v3802_v53  ;;  %v7477_v60 = vsel %vm4138_vm7, %v4209_v61, %v4208_v31  ;;  %v7881_v23 = vrot.slane %v7880_v43, 1  ;;  %v7882_v58 = vrot.slane %v7880_v43, 2 }
 0x340   : > { %v7883_v14 = vrot.slane %v7880_v43, 3  ;;  %v7884_v6 = vrot.slane %v7880_v43, 4  ;;  %v7885_v28 = vrot.slane %v7880_v43, 5  ;;  %v7886_v3 = vrot.slane %v7880_v43, 6 }
 0x341   : > { %v4027_v41 = vmul.f32 %v7881_v23, %v3803_v47  ;;  %v4028_v49 = vmul.f32 %v7882_v58, %v3804_v54  ;;  %v7887_v51 = vrot.slane %v7880_v43, 7  ;;  %v3346_v10 = vrot.slane %v7266_v42, 1  ;;  %v7890_v43 = vld [vmem:[#allocation23_spill] sm:$0xff] }
 0x342   : > { %v4029_v30 = vmul.f32 %v7883_v14, %v3805_v29  ;;  %v4030_v25 = vmul.f32 %v7884_v6, %v3806_v63  ;;  %v4031_v18 = vmul.f32 %v7885_v28, %v3807_v39  ;;  %v4032_v62 = vmul.f32 %v7886_v3, %v3808_v2  ;;  %v7888_v63 = vld [vmem:[#allocation47_spill] sm:$0xff]  ;;  %v7889_v2 = vld [vmem:[#allocation48_spill] sm:$0xff] }
 0x343   : > { %v7493_v46 = vmul.f32 %v7887_v51, %v3809_v27  ;;  %v4185_v44 = vrot.slane %v4027_v41, 7  ;;  %v4187_v15 = vrot.slane %v4028_v49, 6  ;;  %v3347_v22 = vrot.slane %v7266_v42, 2 }
 0x344   : > { %v4189_v57 = vrot.slane %v4029_v30, 5  ;;  %v4191_v5 = vrot.slane %v4030_v25, 4  ;;  %v4193_v36 = vrot.slane %v4031_v18, 3  ;;  %v4195_v17 = vrot.slane %v4032_v62, 2 }
 0x345   : > { %v4197_v45 = vrot.slane %v7493_v46, 1  ;;  %v4186_v61 = vsel %vm4123_vm2, %v4185_v44, %v4026_v11  ;;  %v3348_v7 = vrot.slane %v7266_v42, 3  ;;  %v3349_v9 = vrot.slane %v7266_v42, 4 }
 0x346   : > { %v4188_v59 = vsel %vm4126_vm3, %v4187_v15, %v4186_v61  ;;  %v3350_v48 = vrot.slane %v7266_v42, 5  ;;  %v3351_v34 = vrot.slane %v7266_v42, 6  ;;  %v3352_v1 = vrot.slane %v7266_v42, 7 }
 0x347   : > { %v4190_v55 = vsel %vm4129_vm4, %v4189_v57, %v4188_v59  ;;  %v3473_v35 = vadd.f32 %v7266_v42, %v7186_v8  ;;  %v3474_v53 = vadd.f32 %v3346_v10, %v7184_v0  ;;  %v3475_v47 = vadd.f32 %v3347_v22, %v7190_v4 }
 0x348   : > { %v4192_v54 = vsel %vm4132_vm5, %v4191_v5, %v4190_v55  ;;  %v3476_v33 = vadd.f32 %v3348_v7, %v7188_v20  ;;  %v3477_v29 = vadd.f32 %v3349_v9, %v7195_v40  ;;  %v3478_v39 = vadd.f32 %v3350_v48, %v7888_v63  ;;  %v7891_v5 = vld [vmem:[#allocation13_spill] sm:$0xff] }
 0x349   : > { %v4194_v31 = vsel %vm4135_vm6, %v4193_v36, %v4192_v54  ;;  %v3479_v27 = vadd.f32 %v3351_v34, %v7889_v2  ;;  %v3480_v11 = vadd.f32 %v3352_v1, %v7890_v43  ;;  %v3339_v8 = vrot.slane %v7277_v38, 1 }
 0x34a   : > { %v7519_v0 = vsel %vm4138_vm7, %v4195_v17, %v4194_v31  ;;  %v3340_v4 = vrot.slane %v7277_v38, 2  ;;  %v3341_v42 = vrot.slane %v7277_v38, 3  ;;  %v3342_v20 = vrot.slane %v7277_v38, 4 }
 0x34b   : > { %v3343_v40 = vrot.slane %v7277_v38, 5  ;;  %v3344_v23 = vrot.slane %v7277_v38, 6  ;;  %v3345_v41 = vrot.slane %v7277_v38, 7  ;;  %v3699_v58 = vrot.slane %v7291_v12, 1 }
 0x34c   : > { %v3700_v49 = vrot.slane %v7291_v12, 2  ;;  %v3701_v14 = vrot.slane %v7291_v12, 3  ;;  %v3702_v30 = vrot.slane %v7291_v12, 4  ;;  %v3703_v6 = vrot.slane %v7291_v12, 5 }
 0x34d   : > { %v3704_v25 = vrot.slane %v7291_v12, 6  ;;  %v3705_v28 = vrot.slane %v7291_v12, 7  ;;  %v3826_v18 = vmul.f32 %v7291_v12, %v3473_v35  ;;  %v3827_v3 = vmul.f32 %v3699_v58, %v3474_v53  ;;  %v7900_v58 = vld [vmem:[#allocation39_spill] sm:$0xff] }
 0x34e   : > { %v3828_v62 = vmul.f32 %v3700_v49, %v3475_v47  ;;  %v3829_v51 = vmul.f32 %v3701_v14, %v3476_v33  ;;  %v3830_v44 = vmul.f32 %v3702_v30, %v3477_v29  ;;  %v3831_v15 = vmul.f32 %v3703_v6, %v3478_v39  ;;  %v7899_v33 = vld [vmem:[#allocation40_spill] sm:$0xff]  ;;  %v7901_v30 = vld [vmem:[#allocation42_spill] sm:$0xff] }
 0x34f   : > { %v3832_v57 = vmul.f32 %v3704_v25, %v3479_v27  ;;  %v3833_v10 = vmul.f32 %v3705_v28, %v3480_v11  ;;  %v4050_v36 = vmul.f32 %v7891_v5, %v3826_v18  ;;  %v7892_v17 = vrot.slane %v7891_v5, 1  ;;  %v7902_v25 = vld [vmem:[#allocation41_spill] sm:$0xff]  ;;  %v7903_v18 = vld [vmem:[#allocation44_spill] sm:$0xff] }
 0x350   : > { %v7893_v22 = vrot.slane %v7891_v5, 2  ;;  %v7894_v9 = vrot.slane %v7891_v5, 3  ;;  %v7895_v12 = vrot.slane %v7891_v5, 4  ;;  %v7896_v34 = vrot.slane %v7891_v5, 5 }
 0x351   : > { %v4051_v61 = vmul.f32 %v7892_v17, %v3827_v3  ;;  %v7897_v55 = vrot.slane %v7891_v5, 6  ;;  %v7898_v53 = vrot.slane %v7891_v5, 7  ;;  %v3465_v29 = vadd.f32 %v7277_v38, %v7899_v33 }
 0x352   : > { %v4052_v7 = vmul.f32 %v7893_v22, %v3828_v62  ;;  %v4053_v59 = vmul.f32 %v7894_v9, %v3829_v51  ;;  %v4054_v48 = vmul.f32 %v7895_v12, %v3830_v44  ;;  %v4055_v1 = vmul.f32 %v7896_v34, %v3831_v15  ;;  %v7904_v62 = vld [vmem:[#allocation43_spill] sm:$0xff]  ;;  %v7905_v44 = vld [vmem:[#allocation46_spill] sm:$0xff] }
 0x353   : > { %v4056_v35 = vmul.f32 %v7897_v55, %v3832_v57  ;;  %v7550_v47 = vmul.f32 %v7898_v53, %v3833_v10  ;;  %v4227_v54 = vrot.slane %v4051_v61, 7  ;;  %v3466_v49 = vadd.f32 %v3339_v8, %v7900_v58  ;;  %v7906_v57 = vld [vmem:[#allocation45_spill] sm:$0xff] }
 0x354   : > { %v4229_v63 = vrot.slane %v4052_v7, 6  ;;  %v4231_v39 = vrot.slane %v4053_v59, 5  ;;  %v4233_v31 = vrot.slane %v4054_v48, 4  ;;  %v4235_v2 = vrot.slane %v4055_v1, 3  ;;  %v7907_v1 = vld [vmem:[#allocation10_spill] sm:$0xff] }
 0x355   : > { %v4228_v27 = vsel %vm4123_vm2, %v4227_v54, %v4050_v36  ;;  %v4237_v43 = vrot.slane %v4056_v35, 2  ;;  %v4239_v11 = vrot.slane %v7550_v47, 1  ;;  %v3467_v6 = vadd.f32 %v3340_v4, %v7901_v30 }
 0x356   : > { %v4230_v14 = vsel %vm4126_vm3, %v4229_v63, %v4228_v27  ;;  %v3468_v28 = vadd.f32 %v3341_v42, %v7902_v25  ;;  %v3469_v38 = vadd.f32 %v3342_v20, %v7903_v18  ;;  %v3470_v51 = vadd.f32 %v3343_v40, %v7904_v62 }
 0x357   : > { %v4232_v3 = vsel %vm4129_vm4, %v4231_v39, %v4230_v14  ;;  %v3471_v15 = vadd.f32 %v3344_v23, %v7905_v44  ;;  %v3472_v10 = vadd.f32 %v3345_v41, %v7906_v57  ;;  %v3692_v8 = vrot.slane %v7297_v19, 1  ;;  %v7917_v44 = vld [vmem:[#allocation14_spill] sm:$0xff] }
 0x358   : > { %v4234_v5 = vsel %vm4132_vm5, %v4233_v31, %v4232_v3  ;;  %v3693_v36 = vrot.slane %v7297_v19, 2  ;;  %v3694_v4 = vrot.slane %v7297_v19, 3  ;;  %v3695_v20 = vrot.slane %v7297_v19, 4 }
 0x359   : > { %v4236_v42 = vsel %vm4135_vm6, %v4235_v2, %v4234_v5  ;;  %v3696_v17 = vrot.slane %v7297_v19, 5  ;;  %v3697_v40 = vrot.slane %v7297_v19, 6  ;;  %v3698_v41 = vrot.slane %v7297_v19, 7 }
 0x35a   : > { %v4238_v23 = vsel %vm4138_vm7, %v4237_v43, %v4236_v42  ;;  %v3818_v61 = vmul.f32 %v7297_v19, %v3465_v29  ;;  %v3819_v22 = vmul.f32 %v3692_v8, %v3466_v49  ;;  %v3820_v7 = vmul.f32 %v3693_v36, %v3467_v6 }
 0x35b   : > { %v3821_v9 = vmul.f32 %v3694_v4, %v3468_v28  ;;  %v3822_v59 = vmul.f32 %v3695_v20, %v3469_v38  ;;  %v3823_v12 = vmul.f32 %v3696_v17, %v3470_v51  ;;  %v3824_v48 = vmul.f32 %v3697_v40, %v3471_v15  ;;  %v7916_v51 = vld [vmem:[#allocation11_spill] sm:$0xff] }
 0x35c   : > { %v3825_v34 = vmul.f32 %v3698_v41, %v3472_v10  ;;  %v4042_v55 = vmul.f32 %v7907_v1, %v3818_v61  ;;  %v7908_v35 = vrot.slane %v7907_v1, 1  ;;  %v7909_v47 = vrot.slane %v7907_v1, 2 }
 0x35d   : > { %v7910_v33 = vrot.slane %v7907_v1, 3  ;;  %v7911_v19 = vrot.slane %v7907_v1, 4  ;;  %v7912_v39 = vrot.slane %v7907_v1, 5  ;;  %v7913_v2 = vrot.slane %v7907_v1, 6 }
 0x35e   : > { %v4043_v53 = vmul.f32 %v7908_v35, %v3819_v22  ;;  %v4044_v54 = vmul.f32 %v7909_v47, %v3820_v7  ;;  %v7914_v43 = vrot.slane %v7907_v1, 7  ;;  %v7915_v14 = vrot.slane %v7287_v32, 1 }
 0x35f   : > { %v4045_v63 = vmul.f32 %v7910_v33, %v3821_v9  ;;  %v4046_v29 = vmul.f32 %v7911_v19, %v3822_v59  ;;  %v4047_v31 = vmul.f32 %v7912_v39, %v3823_v12  ;;  %v4048_v27 = vmul.f32 %v7913_v2, %v3824_v48 }
 0x360   : > { %v4049_v58 = vmul.f32 %v7914_v43, %v3825_v34  ;;  %v4213_v49 = vrot.slane %v4043_v53, 7  ;;  %v4142_v30 = vsel %vm4141_vm8, %v7915_v14, %v7319_v16  ;;  %v4215_v6 = vrot.slane %v4044_v54, 6 }
 0x361   : > { %v4217_v25 = vrot.slane %v4045_v63, 5  ;;  %v4219_v28 = vrot.slane %v4046_v29, 4  ;;  %v4221_v18 = vrot.slane %v4047_v31, 3  ;;  %v4223_v3 = vrot.slane %v4048_v27, 2 }
 0x362   : > { %v4214_v38 = vsel %vm4123_vm2, %v4213_v49, %v4042_v55  ;;  %v4225_v62 = vrot.slane %v4049_v58, 1  ;;  %v7918_v15 = vrot.slane %v7917_v44, 1  ;;  %v4170_v32 = vsel %vm4141_vm8, %v4169_v37, %v7417_v50 }
 0x363   : > { %v4216_v10 = vsel %vm4126_vm3, %v4215_v6, %v4214_v38  ;;  %v4184_v16 = vsel %vm4141_vm8, %v4183_v52, %v7376_v21  ;;  %v4198_v5 = vsel %vm4141_vm8, %v4197_v45, %v7519_v0  ;;  %v4212_v36 = vsel %vm4141_vm8, %v4211_v13, %v7477_v60 }
 0x364   : > { %v4156_v57 = vsel %vm4141_vm8, %v7918_v15, %v7916_v51  ;;  %v4218_v8 = vsel %vm4129_vm4, %v4217_v25, %v4216_v10  ;;  %v4240_v56 = vsel %vm4141_vm8, %v4239_v11, %v4238_v23  ;;  %v4249_v37 = vrot.slane %v4142_v30, 4 }
 0x365   : > { %v4220_v50 = vsel %vm4132_vm5, %v4219_v28, %v4218_v8  ;;  %v4255_v26 = vrot.slane %v4156_v57, 4  ;;  %v4261_v4 = vrot.slane %v4170_v32, 4  ;;  %v4267_v52 = vrot.slane %v4184_v16, 4  ;;  %v7919_v28 = vld [vmem:[#allocation20_spill] sm:$0xff] }
 0x366   : > { %v4222_v21 = vsel %vm4135_vm6, %v4221_v18, %v4220_v50  ;;  %v4250_v46 = vadd.f32 %v4249_v37, %v4142_v30  ;;  %v4273_v42 = vrot.slane %v4198_v5, 4  ;;  %v4279_v45 = vrot.slane %v4212_v36, 4 }
 0x367   : > { %v4224_v0 = vsel %vm4138_vm7, %v4223_v3, %v4222_v21  ;;  %v4256_v20 = vadd.f32 %v4255_v26, %v4156_v57  ;;  %v4262_v17 = vadd.f32 %v4261_v4, %v4170_v32  ;;  %v4268_v24 = vadd.f32 %v4267_v52, %v4184_v16  ;;  %v7920_v4 = vld [vmem:[#allocation6_spill] sm:$0xff] }
 0x368   : > { %v4226_v13 = vsel %vm4141_vm8, %v4225_v62, %v4224_v0  ;;  %v4251_v60 = vrot.slane %v4250_v46, 2  ;;  %v4274_v11 = vadd.f32 %v4273_v42, %v4198_v5  ;;  %v4280_v40 = vadd.f32 %v4279_v45, %v4212_v36 }
 0x369   : > { %v4285_v23 = vrot.slane %v4226_v13, 4  ;;  %v4257_v41 = vrot.slane %v4256_v20, 2  ;;  %v4263_v61 = vrot.slane %v4262_v17, 2  ;;  %v4269_v22 = vrot.slane %v4268_v24, 2 }
 0x36a   : > { %v4252_v7 = vadd.f32 %v4251_v60, %v4250_v46  ;;  %v4275_v9 = vrot.slane %v4274_v11, 2  ;;  %v4281_v59 = vrot.slane %v4280_v40, 2  ;;  %v4291_v12 = vrot.slane %v4240_v56, 4 }
 0x36b   : > { %v4286_v48 = vadd.f32 %v4285_v23, %v4226_v13  ;;  %v4258_v34 = vadd.f32 %v4257_v41, %v4256_v20  ;;  %v4264_v1 = vadd.f32 %v4263_v61, %v4262_v17  ;;  %v4270_v55 = vadd.f32 %v4269_v22, %v4268_v24 }
 0x36c   : > { %v4253_v35 = vrot.slane %v4252_v7, 1  ;;  %v4276_v53 = vadd.f32 %v4275_v9, %v4274_v11  ;;  %v4282_v47 = vadd.f32 %v4281_v59, %v4280_v40  ;;  %v4292_v54 = vadd.f32 %v4291_v12, %v4240_v56  ;;  %v4375_v11 = vld [vmem:[%s527_s29] sm:$0xff] }
 0x36d   : > { %v4287_v33 = vrot.slane %v4286_v48, 2  ;;  %v4259_v63 = vrot.slane %v4258_v34, 1  ;;  %v4265_v19 = vrot.slane %v4264_v1, 1  ;;  %v4271_v29 = vrot.slane %v4270_v55, 1 }
 0x36e   : > { %v4254_v39 = vadd.f32 %v4253_v35, %v4252_v7  ;;  %v4277_v31 = vrot.slane %v4276_v53, 1  ;;  %v4283_v2 = vrot.slane %v4282_v47, 1  ;;  %v4293_v27 = vrot.slane %v4292_v54, 2 }
 0x36f   : > { %v4260_v43 = vadd.f32 %v4259_v63, %v4258_v34  ;;  %v4266_v58 = vadd.f32 %v4265_v19, %v4264_v1  ;;  %v4272_v49 = vadd.f32 %v4271_v29, %v4270_v55  ;;  %v4288_v14 = vadd.f32 %v4287_v33, %v4286_v48 }
 0x370   : > { %v4278_v30 = vadd.f32 %v4277_v31, %v4276_v53  ;;  %v4284_v6 = vadd.f32 %v4283_v2, %v4282_v47  ;;  %v4294_v25 = vadd.f32 %v4293_v27, %v4292_v54  ;;  %v4379_v18 = vrot.slane %v7919_v28, 1 }
 0x371   : > { %v4289_v38 = vrot.slane %v4288_v14, 1  ;;  %v4380_v3 = vrot.slane %v7919_v28, 2  ;;  %v4381_v62 = vrot.slane %v7919_v28, 3  ;;  %v4382_v51 = vrot.slane %v7919_v28, 4 }
 0x372   : > { %v4295_v44 = vrot.slane %v4294_v25, 1  ;;  %v4383_v15 = vrot.slane %v7919_v28, 5  ;;  %v4384_v57 = vrot.slane %v7919_v28, 6  ;;  %v4385_v10 = vrot.slane %v7919_v28, 7 }
 0x373   : > { %v4290_v32 = vadd.f32 %v4289_v38, %v4288_v14  ;;  %v4394_v16 = vadd.f32 %v7919_v28, %v4254_v39  ;;  %v4395_v5 = vadd.f32 %v4379_v18, %v4260_v43  ;;  %v4396_v8 = vadd.f32 %v4380_v3, %v4266_v58 }
 0x374   : > { %v4296_v36 = vadd.f32 %v4295_v44, %v4294_v25  ;;  %v4397_v56 = vadd.f32 %v4381_v62, %v4272_v49  ;;  %v4398_v37 = vadd.f32 %v4382_v51, %v4278_v30  ;;  %v4399_v50 = vadd.f32 %v4383_v15, %v4284_v6 }
 0x375   : > { %v4400_v26 = vadd.f32 %v4384_v57, %v4290_v32  ;;  %v4405_v52 = vmul.f32 %v7920_v4, %v4395_v5  ;;  %v4406_v21 = vmul.f32 %v7920_v4, %v4396_v8  ;;  %v4404_v42 = vmul.f32 %v7920_v4, %v4394_v16 }
 0x376   : > { %v4401_v46 = vadd.f32 %v4385_v10, %v4296_v36  ;;  %v4407_v45 = vmul.f32 %v7920_v4, %v4397_v56  ;;  %v4408_v0 = vmul.f32 %v7920_v4, %v4398_v37  ;;  %v4409_v20 = vmul.f32 %v7920_v4, %v4399_v50 }
 0x377   : > { %v4410_v17 = vmul.f32 %v7920_v4, %v4400_v26  ;;  %v4420_v24 = vrot.slane %v4405_v52, 7  ;;  %v4422_v13 = vrot.slane %v4406_v21, 6  ;;  %v4376_v40 = vstv %s6819_s0 }
 0x378   : > { %v4426_v60 = vrot.slane %v4408_v0, 4  ;;  %v4411_v23 = vmul.f32 %v7920_v4, %v4401_v46  ;;  %v4424_v61 = vrot.slane %v4407_v45, 5  ;;  %v4428_v59 = vrot.slane %v4409_v20, 3 }
 0x379   : > { %v4421_v41 = vsel %vm4123_vm2, %v4420_v24, %v4404_v42  ;;  %v4430_v7 = vrot.slane %v4410_v17, 2  ;;  %v4377_v12 = vmul.f32 %v4376_v40, %v4375_v11 }
 0x37a   : > { %v4423_v22 = vsel %vm4126_vm3, %v4422_v13, %v4421_v41  ;;  %v4432_v1 = vrot.slane %v4411_v23, 1 }
 0x37b   : > { %v4425_v9 = vsel %vm4129_vm4, %v4424_v61, %v4423_v22 }
 0x37c   : > { %v4427_v48 = vsel %vm4132_vm5, %v4426_v60, %v4425_v9 }
 0x37d   : > { %v4429_v34 = vsel %vm4135_vm6, %v4428_v59, %v4427_v48 }
 0x37e   : > { %v4431_v55 = vsel %vm4138_vm7, %v4430_v7, %v4429_v34 }
 0x37f   : > { %v4433_v35 = vsel %vm4141_vm8, %v4432_v1, %v4431_v55 }
 0x380   : > { %v4435_v53 = vadd.f32 %v4433_v35, %v4377_v12 }
 0x382   : > { %4436 = vst [vmem:[%s531_s12] sm:$0xff] %v4435_v53 }
 0x383 PF: > { %s22_s19 = sadd.s32 1, %s5599_s19  }
 0x384   : > { %p19_p6 = scmp.ge.s32.totalorder %s22_s19, 4  }
 0x386   :  { %21 = sbr.rel (!%p19_p6) target bundleno = 2 (0x2), region = 115 }

// kernel: forward.6
= control target key start
LH: loop header
LB: loop body
LE: loop exit
PB: predicated region body
PF: predicated region fallthrough
CT: control target
= control target key end

     0   :  { %s7873_s0 = inlined_call_operand.<no memory space> [shape: f32[1], index: 0, kind: input, shape index: {}]   ;;  %s7874_s1 = inlined_call_operand.vmem [shape: f32[128,128], index: 1, kind: input, shape index: {}]   ;;  %s7875_s2 = inlined_call_operand.vmem [shape: f32[128,128], index: 2, kind: input, shape index: {}]   ;;  %s7876_s3 = inlined_call_operand.vmem [shape: s32[1024,1], index: 3, kind: input, shape index: {}]   ;;  %s7877_s4 = inlined_call_operand.vmem [shape: s32[1024,1], index: 4, kind: input, shape index: {}]   ;;  %s7878_s5 = inlined_call_operand.vmem [shape: f32[1024,1], index: 5, kind: input, shape index: {}]   ;;  %s7879_s6 = inlined_call_operand.vmem [shape: s32[128,1], index: 6, kind: input, shape index: {}]   ;;  %s7880_s7 = inlined_call_operand.vmem [shape: s32[128,1], index: 7, kind: input, shape index: {}]   ;;  %s7881_s8 = inlined_call_operand.vmem [shape: f32[128,1], index: 8, kind: input, shape index: {}]   ;;  %s7882_s9 = inlined_call_operand.vmem [shape: s32[16,1], index: 9, kind: input, shape index: {}]   ;;  %s7883_s10 = inlined_call_operand.vmem [shape: f32[16,128], index: 10, kind: input, shape index: {}]   ;;  %s7884_s11 = inlined_call_operand.hbm [shape: f32[16,128], index: 11, kind: output, shape index: {}]  }
   0x1   :  { %16 = sst [smem:[#allocation2]] %s7873_s0 }
   0x2   :  { %17 = vsyncpa [#allocation4], 0 }
   0x3   :  { %19 = vsyncpa [#allocation4 + $0x1], 0  ;;  %s5778_s19 = smov 0   ;;  %s5780_s20 = smov 0  }
   0x4   :  { %s5782_s21 = smov 0   ;;  %s5784_s22 = smov 0  }
   0x5 LB: > { %s5799_s0 = sadd.s32 4294967295, %s5707_s22   ;;  %s4594_s23 = sadd.s32 4294967294, %s5707_s22   ;;  %s5707_s22 = sphi %s5784_s22, %s8134_s22   ;;  %s5703_s21 = sphi %s5782_s21, %s8133_s21   ;;  %s5699_s20 = sphi %s5780_s20, %s8132_s20   ;;  %s5695_s19 = sphi %s5778_s19, %s8131_s19  }
   0x6   : > { %s5803_s24 = sadd.s32 1, %s5707_s22   ;;  %s303_s25 = sadd.s32 1, %s5703_s21 }
   0x7   : > { %s300_s26 = ssub.s32 %s5707_s22, %s5803_s24  ;;  %p313_p0 = scmp.ne.s32.totalorder %s5703_s21, %s5699_s20 }
   0x8   : > { %p301_p1 = scmp.eq.s32.totalorder %s300_s26, 0  ;;  %p314_p2 = scmp.eq.s32.totalorder %s5799_s0, 1 }
   0x9   : > { %p319_p3 = scmp.ne.s32.totalorder %s5699_s20, %s5695_s19  ;;  %p320_p4 = scmp.eq.s32.totalorder %s4594_s23, 1 }
   0xa   : > { %s5814_s27 = scalar_select %p301_p1, %s5703_s21, %s303_s25  }
   0xb   : > { %p5816_p5 = por %p314_p2, %p313_p0  ;;  %p5820_p6 = por %p320_p4, %p319_p3 }
   0xc   : > { %p4597_p7 = scmp.ge.s32.totalorder %s5707_s22, 1  ;;  %p415_p8 = scmp.lt.s32.totalorder %s5707_s22, 3 }
   0xe   : > { %p416_p9 = pnand %p4597_p7, %p415_p8 }
  0x10   : > { %419 = sbr.rel (%p416_p9) target bundleno = 923 (0x39b), region = 64 }
  0x17   : > { %s4599_s30 = sshll.u32 %s5799_s0, 6  ;;  %v5709_v0 = vmov 0   ;;  %v532_v51 = vld [vmem:[%s7874_s1] sm:$0xff]  ;;  %v533_v52 = vld [vmem:[%s7874_s1 + $0x8] sm:$0xff]  ;;  %v534_v56 = vld [vmem:[%s7874_s1 + $0x10] sm:$0xff]  ;;  %p524_p12 = scmp.lt.s32.totalorder %s5799_s0, 1 }
  0x18   : > { %5644 = vset.pattern.permute.xlu1 %v5709_v0  ;;  %5643 = vset.pattern.permute.xlu0 %v5709_v0  ;;  %p489_p10 = scmp.lt.s32.totalorder %s4599_s30, 127  ;;  %v5893_v55 = vpack.c.bf16 %v533_v52, %v532_v51  ;;  %v535_v57 = vld [vmem:[%s7874_s1 + $0x18] sm:$0xff]  ;;  %v536_v61 = vld [vmem:[%s7874_s1 + $0x20] sm:$0xff]  ;;  %v537_v62 = vld [vmem:[%s7874_s1 + $0x28] sm:$0xff] }
  0x19   : > { %v5905_v60 = vpack.c.bf16 %v535_v57, %v534_v56  ;;  %s6605_s18 = scalar_select %p524_p12, %s5799_s0, 1 }
  0x1a   : > { %s8136_s30 = smov (!%p489_p10, %s4599_s30), 127  ;;  %5448 = vmatprep.subr.bf16.mxu0 %v5893_v55 }
  0x1b   : > { %s5827_s12 = sshll.u32 %s8136_s30, 3  ;;  %5450 = vmatpush3.bf16.msra.mxu0 %v5893_v55  ;;  %s4611_s25 = sshll.u32 %s6605_s18, 3 }
  0x1c   : > { %s5833_s15 = scalar_lea.vmem %s7876_s3, %s5827_s12  ;;  %5452 = vmatprep.subr.bf16.mxu0 %v5905_v60  ;;  %s5971_s23 = scalar_lea.vmem %s7878_s5, %s5827_s12 }
  0x1d   : > { %v566_v1 = vld [vmem:[%s5833_s15 + $0x10] sm:$0xff]  ;;  %v564_v2 = vld [vmem:[%s5833_s15] sm:$0xff]  ;;  %v567_v3 = vld [vmem:[%s5833_s15 + $0x18] sm:$0xff]  ;;  %s6159_s30 = scalar_lea.vmem %s7877_s4, %s5827_s12  ;;  %s4840_s18 = sshll.u32 %s5799_s0, 7 }
  0x1e   : > { %701 = vperm.xlu1 %5644, %v566_v1   ;;  %695 = vperm.xlu0 %5643, %v564_v2   ;;  %v565_v4 = vld [vmem:[%s5833_s15 + $0x8] sm:$0xff]  ;;  %v568_v6 = vld [vmem:[%s5833_s15 + $0x20] sm:$0xff]  ;;  %v571_v7 = vld [vmem:[%s5833_s15 + $0x38] sm:$0xff]  ;;  %v5917_v1 = vpack.c.bf16 %v537_v62, %v536_v61 }
  0x1f   : > { %v569_v5 = vld [vmem:[%s5833_s15 + $0x28] sm:$0xff]  ;;  %v570_v8 = vld [vmem:[%s5833_s15 + $0x30] sm:$0xff]  ;;  %v572_v10 = vld [vmem:[%s5833_s15 + $0x40] sm:$0xff]  ;;  %5454 = vmatpush3.bf16.msra.mxu0 %v5905_v60 }
  0x20   : > { %v573_v9 = vld [vmem:[%s5833_s15 + $0x48] sm:$0xff]  ;;  %v575_v11 = vld [vmem:[%s5833_s15 + $0x58] sm:$0xff]  ;;  %v574_v12 = vld [vmem:[%s5833_s15 + $0x50] sm:$0xff]  ;;  %5456 = vmatprep.subr.bf16.mxu0 %v5917_v1 }
  0x21   : > { %v577_v13 = vld [vmem:[%s5833_s15 + $0x68] sm:$0xff]  ;;  %v576_v14 = vld [vmem:[%s5833_s15 + $0x60] sm:$0xff]  ;;  %v579_v15 = vld [vmem:[%s5833_s15 + $0x78] sm:$0xff] }
  0x22   : > { %704 = vperm.xlu1 %5644, %v567_v3   ;;  %698 = vperm.xlu0 %5643, %v565_v4   ;;  %v578_v16 = vld [vmem:[%s5833_s15 + $0x70] sm:$0xff]  ;;  %v581_v17 = vld [vmem:[%s5833_s15 + $0x88] sm:$0xff]  ;;  %v580_v18 = vld [vmem:[%s5833_s15 + $0x80] sm:$0xff] }
  0x23   : > { %v583_v19 = vld [vmem:[%s5833_s15 + $0x98] sm:$0xff]  ;;  %v582_v20 = vld [vmem:[%s5833_s15 + $0x90] sm:$0xff]  ;;  %v585_v21 = vld [vmem:[%s5833_s15 + $0xa8] sm:$0xff]  ;;  %5458 = vmatpush3.bf16.msra.mxu0 %v5917_v1 }
  0x24   : > { %v584_v22 = vld [vmem:[%s5833_s15 + $0xa0] sm:$0xff]  ;;  %v587_v23 = vld [vmem:[%s5833_s15 + $0xb8] sm:$0xff]  ;;  %v586_v24 = vld [vmem:[%s5833_s15 + $0xb0] sm:$0xff] }
  0x25   : > { %v589_v25 = vld [vmem:[%s5833_s15 + $0xc8] sm:$0xff]  ;;  %v588_v26 = vld [vmem:[%s5833_s15 + $0xc0] sm:$0xff]  ;;  %v591_v27 = vld [vmem:[%s5833_s15 + $0xd8] sm:$0xff] }
  0x26   : > { %710 = vperm.xlu1 %5644, %v569_v5   ;;  %707 = vperm.xlu0 %5643, %v568_v6   ;;  %v590_v28 = vld [vmem:[%s5833_s15 + $0xd0] sm:$0xff]  ;;  %v593_v29 = vld [vmem:[%s5833_s15 + $0xe8] sm:$0xff]  ;;  %v592_v30 = vld [vmem:[%s5833_s15 + $0xe0] sm:$0xff] }
  0x27   : > { %v595_v31 = vld [vmem:[%s5833_s15 + $0xf8] sm:$0xff]  ;;  %v594_v32 = vld [vmem:[%s5833_s15 + $0xf0] sm:$0xff]  ;;  %v597_v33 = vld [vmem:[%s5833_s15 + $0x108] sm:$0xff] }
  0x28   : > { %v596_v34 = vld [vmem:[%s5833_s15 + $0x100] sm:$0xff]  ;;  %v599_v35 = vld [vmem:[%s5833_s15 + $0x118] sm:$0xff]  ;;  %v598_v36 = vld [vmem:[%s5833_s15 + $0x110] sm:$0xff] }
  0x29   : > { %v601_v37 = vld [vmem:[%s5833_s15 + $0x128] sm:$0xff]  ;;  %v600_v38 = vld [vmem:[%s5833_s15 + $0x120] sm:$0xff]  ;;  %v603_v39 = vld [vmem:[%s5833_s15 + $0x138] sm:$0xff] }
  0x2a   : > { %716 = vperm.xlu1 %5644, %v571_v7   ;;  %713 = vperm.xlu0 %5643, %v570_v8   ;;  %v602_v40 = vld [vmem:[%s5833_s15 + $0x130] sm:$0xff]  ;;  %v605_v41 = vld [vmem:[%s5833_s15 + $0x148] sm:$0xff]  ;;  %v604_v42 = vld [vmem:[%s5833_s15 + $0x140] sm:$0xff] }
  0x2b   : > { %v607_v43 = vld [vmem:[%s5833_s15 + $0x158] sm:$0xff]  ;;  %v606_v44 = vld [vmem:[%s5833_s15 + $0x150] sm:$0xff]  ;;  %v609_v45 = vld [vmem:[%s5833_s15 + $0x168] sm:$0xff] }
  0x2c   : > { %v608_v46 = vld [vmem:[%s5833_s15 + $0x160] sm:$0xff]  ;;  %v611_v47 = vld [vmem:[%s5833_s15 + $0x178] sm:$0xff]  ;;  %v610_v48 = vld [vmem:[%s5833_s15 + $0x170] sm:$0xff] }
  0x2d   : > { %v613_v49 = vld [vmem:[%s5833_s15 + $0x188] sm:$0xff]  ;;  %v612_v50 = vld [vmem:[%s5833_s15 + $0x180] sm:$0xff]  ;;  %v615_v53 = vld [vmem:[%s5833_s15 + $0x198] sm:$0xff] }
  0x2e   : > { %722 = vperm.xlu1 %5644, %v573_v9   ;;  %719 = vperm.xlu0 %5643, %v572_v10   ;;  %v614_v54 = vld [vmem:[%s5833_s15 + $0x190] sm:$0xff]  ;;  %v617_v58 = vld [vmem:[%s5833_s15 + $0x1a8] sm:$0xff]  ;;  %v616_v59 = vld [vmem:[%s5833_s15 + $0x1a0] sm:$0xff] }
  0x2f   : > { %v619_v63 = vld [vmem:[%s5833_s15 + $0x1b8] sm:$0xff]  ;;  %v618_v0 = vld [vmem:[%s5833_s15 + $0x1b0] sm:$0xff]  ;;  %v621_v4 = vld [vmem:[%s5833_s15 + $0x1c8] sm:$0xff] }
  0x30   : > { %v538_v2 = vld [vmem:[%s7874_s1 + $0x30] sm:$0xff]  ;;  %v539_v3 = vld [vmem:[%s7874_s1 + $0x38] sm:$0xff]  ;;  %v620_v5 = vld [vmem:[%s5833_s15 + $0x1c0] sm:$0xff] }
  0x31   : > { %v5929_v6 = vpack.c.bf16 %v539_v3, %v538_v2  ;;  %v540_v7 = vld [vmem:[%s7874_s1 + $0x40] sm:$0xff]  ;;  %v541_v8 = vld [vmem:[%s7874_s1 + $0x48] sm:$0xff]  ;;  %v623_v9 = vld [vmem:[%s5833_s15 + $0x1d8] sm:$0xff] }
  0x32   : > { %728 = vperm.xlu1 %5644, %v575_v11   ;;  %725 = vperm.xlu0 %5643, %v574_v12   ;;  %v622_v10 = vld [vmem:[%s5833_s15 + $0x1d0] sm:$0xff]  ;;  %v5941_v11 = vpack.c.bf16 %v541_v8, %v540_v7 }
  0x33   : > { %5460 = vmatprep.subr.bf16.mxu0 %v5929_v6  ;;  %v542_v12 = vld [vmem:[%s7874_s1 + $0x50] sm:$0xff] }
  0x34   : > { %5462 = vmatpush3.bf16.msra.mxu0 %v5929_v6 }
  0x35   : > { %5464 = vmatprep.subr.bf16.mxu0 %v5941_v11 }
  0x36   : > { %734 = vperm.xlu1 %5644, %v577_v13   ;;  %731 = vperm.xlu0 %5643, %v576_v14   ;;  %v543_v13 = vld [vmem:[%s7874_s1 + $0x58] sm:$0xff]  ;;  %v625_v14 = vld [vmem:[%s5833_s15 + $0x1e8] sm:$0xff] }
  0x38   : > { %5466 = vmatpush3.bf16.msra.mxu0 %v5941_v11 }
  0x3a   : > { %740 = vperm.xlu1 %5644, %v579_v15   ;;  %737 = vperm.xlu0 %5643, %v578_v16   ;;  %v624_v15 = vld [vmem:[%s5833_s15 + $0x1e0] sm:$0xff]  ;;  %v5953_v16 = vpack.c.bf16 %v543_v13, %v542_v12 }
  0x3c   : > { %5468 = vmatprep.subr.bf16.mxu0 %v5953_v16 }
  0x3d   : > { %5470 = vmatpush3.bf16.msra.mxu0 %v5953_v16 }
  0x3e   : > { %746 = vperm.xlu1 %5644, %v581_v17   ;;  %743 = vperm.xlu0 %5643, %v580_v18   ;;  %v544_v17 = vld [vmem:[%s7874_s1 + $0x60] sm:$0xff]  ;;  %v545_v18 = vld [vmem:[%s7874_s1 + $0x68] sm:$0xff] }
  0x42   : > { %752 = vperm.xlu1 %5644, %v583_v19   ;;  %749 = vperm.xlu0 %5643, %v582_v20   ;;  %v627_v19 = vld [vmem:[%s5833_s15 + $0x1f8] sm:$0xff]  ;;  %v626_v20 = vld [vmem:[%s5833_s15 + $0x1f0] sm:$0xff]  ;;  %s4605_s15 = sshll.u32 %s5799_s0, 3 }
  0x43   : > { %p507_p11 = scmp.lt.s32.totalorder %s4605_s15, 15 }
  0x45   : > { %s8138_s15 = smov (!%p507_p11, %s4605_s15), 15 }
  0x46   : > { %758 = vperm.xlu1 %5644, %v585_v21   ;;  %755 = vperm.xlu0 %5643, %v584_v22   ;;  %v5965_v21 = vpack.c.bf16 %v545_v18, %v544_v17  ;;  %v546_v22 = vld [vmem:[%s7874_s1 + $0x70] sm:$0xff]  ;;  %v548_v17 = vld [vmem:[%s7875_s2] sm:$0xff]  ;;  %v549_v18 = vld [vmem:[%s7875_s2 + $0x8] sm:$0xff]  ;;  %s6546_s13 = sshll.u32 %s8138_s15, 3  ;;  %s5714_s15 = smov [#allocation3]  }
  0x47   : > { %s6558_s16 = scalar_lea.vmem %s7879_s6, %s6546_s13  ;;  %s6570_s12 = scalar_lea.vmem %s7880_s7, %s6546_s13 }
  0x48   : > { %5472 = vmatprep.subr.bf16.mxu0 %v5965_v21 }
  0x49   : > { %5474 = vmatpush3.bf16.msra.mxu0 %v5965_v21 }
  0x4a   : > { %764 = vperm.xlu1 %5644, %v587_v23   ;;  %761 = vperm.xlu0 %5643, %v586_v24   ;;  %v547_v23 = vld [vmem:[%s7874_s1 + $0x78] sm:$0xff]  ;;  %v629_v24 = vld [vmem:[%s5971_s23 + $0x8] sm:$0xff] }
  0x4e   : > { %770 = vperm.xlu1 %5644, %v589_v25   ;;  %767 = vperm.xlu0 %5643, %v588_v26   ;;  %v628_v25 = vld [vmem:[%s5971_s23] sm:$0xff]  ;;  %v5983_v26 = vpack.c.bf16 %v547_v23, %v546_v22  ;;  %v6070_v22 = vpack.c.bf16 %v549_v18, %v548_v17  ;;  %v655_v23 = vld [vmem:[%s5971_s23 + $0xd8] sm:$0xff] }
  0x4f   : > { %v663_v18 = vld [vmem:[%s5971_s23 + $0x118] sm:$0xff] }
  0x50   : > { %5476 = vmatprep.subr.bf16.mxu0 %v5983_v26  ;;  %5480 = vmatprep.subr.bf16.mxu1 %v6070_v22 }
  0x51   : > { %5478 = vmatpush3.bf16.msra.mxu0 %v5983_v26  ;;  %5482 = vmatpush3.bf16.msra.mxu1 %v6070_v22 }
  0x52   : > { %776 = vperm.xlu1 %5644, %v591_v27   ;;  %773 = vperm.xlu0 %5643, %v590_v28  }
  0x53   : > { %5512 = vmatprep.subr.bf16.mxu0 %v5893_v55 }
  0x56   : > { %782 = vperm.xlu1 %5644, %v593_v29   ;;  %779 = vperm.xlu0 %5643, %v592_v30   ;;  %v631_v29 = vld [vmem:[%s5971_s23 + $0x18] sm:$0xff]  ;;  %v630_v30 = vld [vmem:[%s5971_s23 + $0x10] sm:$0xff] }
  0x5a   : > { %788 = vperm.xlu1 %5644, %v595_v31   ;;  %785 = vperm.xlu0 %5643, %v594_v32  }
  0x5e   : > { %794 = vperm.xlu1 %5644, %v597_v33   ;;  %791 = vperm.xlu0 %5643, %v596_v34   ;;  %v633_v33 = vld [vmem:[%s5971_s23 + $0x28] sm:$0xff]  ;;  %v632_v34 = vld [vmem:[%s5971_s23 + $0x20] sm:$0xff] }
  0x62   : > { %800 = vperm.xlu1 %5644, %v599_v35   ;;  %797 = vperm.xlu0 %5643, %v598_v36  }
  0x66   : > { %806 = vperm.xlu1 %5644, %v601_v37   ;;  %803 = vperm.xlu0 %5643, %v600_v38   ;;  %v635_v37 = vld [vmem:[%s5971_s23 + $0x38] sm:$0xff]  ;;  %v634_v38 = vld [vmem:[%s5971_s23 + $0x30] sm:$0xff] }
  0x6a   : > { %812 = vperm.xlu1 %5644, %v603_v39   ;;  %809 = vperm.xlu0 %5643, %v602_v40  }
  0x6e   : > { %818 = vperm.xlu1 %5644, %v605_v41   ;;  %815 = vperm.xlu0 %5643, %v604_v42   ;;  %v637_v41 = vld [vmem:[%s5971_s23 + $0x48] sm:$0xff]  ;;  %v636_v42 = vld [vmem:[%s5971_s23 + $0x40] sm:$0xff] }
  0x72   : > { %824 = vperm.xlu1 %5644, %v607_v43   ;;  %821 = vperm.xlu0 %5643, %v606_v44  }
  0x76   : > { %830 = vperm.xlu1 %5644, %v609_v45   ;;  %827 = vperm.xlu0 %5643, %v608_v46   ;;  %v639_v45 = vld [vmem:[%s5971_s23 + $0x58] sm:$0xff]  ;;  %v638_v46 = vld [vmem:[%s5971_s23 + $0x50] sm:$0xff] }
  0x7a   : > { %836 = vperm.xlu1 %5644, %v611_v47   ;;  %833 = vperm.xlu0 %5643, %v610_v48  }
  0x7e   : > { %842 = vperm.xlu1 %5644, %v613_v49   ;;  %839 = vperm.xlu0 %5643, %v612_v50   ;;  %v641_v49 = vld [vmem:[%s5971_s23 + $0x68] sm:$0xff]  ;;  %v640_v50 = vld [vmem:[%s5971_s23 + $0x60] sm:$0xff] }
  0x82   : > { %848 = vperm.xlu1 %5644, %v615_v53   ;;  %845 = vperm.xlu0 %5643, %v614_v54   ;;  %v643_v53 = vld [vmem:[%s5971_s23 + $0x78] sm:$0xff]  ;;  %v642_v54 = vld [vmem:[%s5971_s23 + $0x70] sm:$0xff] }
  0x86   : > { %854 = vperm.xlu1 %5644, %v617_v58   ;;  %851 = vperm.xlu0 %5643, %v616_v59   ;;  %v645_v58 = vld [vmem:[%s5971_s23 + $0x88] sm:$0xff]  ;;  %v644_v59 = vld [vmem:[%s5971_s23 + $0x80] sm:$0xff] }
  0x8a   : > { %860 = vperm.xlu1 %5644, %v619_v63   ;;  %857 = vperm.xlu0 %5643, %v618_v0   ;;  %v647_v63 = vld [vmem:[%s5971_s23 + $0x98] sm:$0xff]  ;;  %v646_v0 = vld [vmem:[%s5971_s23 + $0x90] sm:$0xff] }
  0x8e   : > { %866 = vperm.xlu1 %5644, %v621_v4   ;;  %863 = vperm.xlu0 %5643, %v620_v5   ;;  %v649_v4 = vld [vmem:[%s5971_s23 + $0xa8] sm:$0xff]  ;;  %v648_v5 = vld [vmem:[%s5971_s23 + $0xa0] sm:$0xff] }
  0x92   : > { %872 = vperm.xlu1 %5644, %v623_v9   ;;  %869 = vperm.xlu0 %5643, %v622_v10   ;;  %v651_v9 = vld [vmem:[%s5971_s23 + $0xb8] sm:$0xff]  ;;  %v650_v10 = vld [vmem:[%s5971_s23 + $0xb0] sm:$0xff] }
  0x96   : > { %878 = vperm.xlu1 %5644, %v625_v14   ;;  %875 = vperm.xlu0 %5643, %v624_v15   ;;  %v653_v14 = vld [vmem:[%s5971_s23 + $0xc8] sm:$0xff]  ;;  %v652_v15 = vld [vmem:[%s5971_s23 + $0xc0] sm:$0xff] }
  0x9a   : > { %884 = vperm.xlu1 %5644, %v627_v19   ;;  %881 = vperm.xlu0 %5643, %v626_v20  }
  0x9d   : > { %v5985_v27 = vpop.permute.xlu1 %701  ;;  %v5987_v28 = vpop.permute.xlu0 %695 }
  0x9e   : > { %1085 = vperm.xlu1 %5644, %v629_v24   ;;  %1080 = vperm.xlu0 %5643, %v628_v25   ;;  %v654_v24 = vld [vmem:[%s5971_s23 + $0xd0] sm:$0xff] }
  0x9f   : > { %v550_v25 = vld [vmem:[%s7875_s2 + $0x10] sm:$0xff] }
  0xa1   : > { %v5994_v31 = vpop.permute.xlu1 %704  ;;  %v5996_v32 = vpop.permute.xlu0 %698 }
  0xa2   : > { %1095 = vperm.xlu1 %5644, %v631_v29   ;;  %1090 = vperm.xlu0 %5643, %v630_v30   ;;  %v551_v29 = vld [vmem:[%s7875_s2 + $0x18] sm:$0xff] }
  0xa5   : > { %v6000_v35 = vpop.permute.xlu1 %710  ;;  %v6002_v36 = vpop.permute.xlu0 %707 }
  0xa6   : > { %1105 = vperm.xlu1 %5644, %v633_v33   ;;  %1100 = vperm.xlu0 %5643, %v632_v34   ;;  %v6086_v34 = vpack.c.bf16 %v551_v29, %v550_v25  ;;  %v559_v25 = vld [vmem:[%s7875_s2 + $0x58] sm:$0xff] }
  0xa8   : > { %5484 = vmatprep.subr.bf16.mxu1 %v6086_v34 }
  0xa9   : > { %v6006_v39 = vpop.permute.xlu1 %716  ;;  %v6008_v40 = vpop.permute.xlu0 %713  ;;  %5486 = vmatpush3.bf16.msra.mxu1 %v6086_v34 }
  0xaa   : > { %1115 = vperm.xlu1 %5644, %v635_v37   ;;  %1110 = vperm.xlu0 %5643, %v634_v38   ;;  %v657_v37 = vld [vmem:[%s5971_s23 + $0xe8] sm:$0xff]  ;;  %v656_v38 = vld [vmem:[%s5971_s23 + $0xe0] sm:$0xff] }
  0xad   : > { %v6012_v43 = vpop.permute.xlu1 %722  ;;  %v6014_v44 = vpop.permute.xlu0 %719 }
  0xae   : > { %1125 = vperm.xlu1 %5644, %v637_v41   ;;  %1120 = vperm.xlu0 %5643, %v636_v42   ;;  %v552_v41 = vld [vmem:[%s7875_s2 + $0x20] sm:$0xff]  ;;  %v553_v42 = vld [vmem:[%s7875_s2 + $0x28] sm:$0xff] }
  0xb1   : > { %v6018_v47 = vpop.permute.xlu1 %728  ;;  %v6020_v48 = vpop.permute.xlu0 %725 }
  0xb2   : > { %1135 = vperm.xlu1 %5644, %v639_v45   ;;  %1130 = vperm.xlu0 %5643, %v638_v46  }
  0xb5   : > { %v6024_v51 = vpop.permute.xlu1 %734  ;;  %v6026_v52 = vpop.permute.xlu0 %731 }
  0xb6   : > { %1145 = vperm.xlu1 %5644, %v641_v49   ;;  %1140 = vperm.xlu0 %5643, %v640_v50   ;;  %v6102_v49 = vpack.c.bf16 %v553_v42, %v552_v41  ;;  %v659_v50 = vld [vmem:[%s5971_s23 + $0xf8] sm:$0xff]  ;;  %v665_v41 = vld [vmem:[%s5971_s23 + $0x128] sm:$0xff]  ;;  %v664_v42 = vld [vmem:[%s5971_s23 + $0x120] sm:$0xff] }
  0xb8   : > { %5488 = vmatprep.subr.bf16.mxu1 %v6102_v49 }
  0xb9   : > { %v6030_v56 = vpop.permute.xlu1 %740  ;;  %v6032_v57 = vpop.permute.xlu0 %737  ;;  %5490 = vmatpush3.bf16.msra.mxu1 %v6102_v49 }
  0xba   : > { %1155 = vperm.xlu1 %5644, %v643_v53   ;;  %1150 = vperm.xlu0 %5643, %v642_v54   ;;  %v658_v53 = vld [vmem:[%s5971_s23 + $0xf0] sm:$0xff] }
  0xbb   : > { %v554_v54 = vld [vmem:[%s7875_s2 + $0x30] sm:$0xff] }
  0xbd   : > { %v6036_v61 = vpop.permute.xlu1 %746  ;;  %v6038_v62 = vpop.permute.xlu0 %743 }
  0xbe   : > { %1165 = vperm.xlu1 %5644, %v645_v58   ;;  %1160 = vperm.xlu0 %5643, %v644_v59   ;;  %v555_v58 = vld [vmem:[%s7875_s2 + $0x38] sm:$0xff] }
  0xc1   : > { %v6042_v2 = vpop.permute.xlu1 %752  ;;  %v6044_v3 = vpop.permute.xlu0 %749 }
  0xc2   : > { %1175 = vperm.xlu1 %5644, %v647_v63   ;;  %1170 = vperm.xlu0 %5643, %v646_v0   ;;  %v6118_v0 = vpack.c.bf16 %v555_v58, %v554_v54 }
  0xc4   : > { %5492 = vmatprep.subr.bf16.mxu1 %v6118_v0 }
  0xc5   : > { %v6048_v7 = vpop.permute.xlu1 %758  ;;  %v6050_v8 = vpop.permute.xlu0 %755  ;;  %5494 = vmatpush3.bf16.msra.mxu1 %v6118_v0 }
  0xc6   : > { %1185 = vperm.xlu1 %5644, %v649_v4   ;;  %1180 = vperm.xlu0 %5643, %v648_v5   ;;  %v661_v4 = vld [vmem:[%s5971_s23 + $0x108] sm:$0xff]  ;;  %v660_v5 = vld [vmem:[%s5971_s23 + $0x100] sm:$0xff] }
  0xc9   : > { %v6054_v12 = vpop.permute.xlu1 %764  ;;  %v6056_v13 = vpop.permute.xlu0 %761 }
  0xca   : > { %1195 = vperm.xlu1 %5644, %v651_v9   ;;  %1190 = vperm.xlu0 %5643, %v650_v10   ;;  %v556_v9 = vld [vmem:[%s7875_s2 + $0x40] sm:$0xff]  ;;  %v557_v10 = vld [vmem:[%s7875_s2 + $0x48] sm:$0xff] }
  0xcb   : > { %v6134_v17 = vpack.c.bf16 %v557_v10, %v556_v9  ;;  %v666_v9 = vld [vmem:[%s5971_s23 + $0x130] sm:$0xff] }
  0xcc   : > { %v562_v10 = vld [vmem:[%s7875_s2 + $0x70] sm:$0xff] }
  0xcd   : > { %v6066_v19 = vpop.permute.xlu1 %770  ;;  %v6068_v20 = vpop.permute.xlu0 %767  ;;  %5496 = vmatprep.subr.bf16.mxu1 %v6134_v17 }
  0xce   : > { %1205 = vperm.xlu1 %5644, %v653_v14   ;;  %1200 = vperm.xlu0 %5643, %v652_v15  }
  0xcf   : > { %5498 = vmatpush3.bf16.msra.mxu1 %v6134_v17 }
  0xd1   : > { %v6082_v30 = vpop.permute.xlu1 %776  ;;  %v6084_v33 = vpop.permute.xlu0 %773 }
  0xd2   : > { %1215 = vperm.xlu1 %5644, %v655_v23   ;;  %1210 = vperm.xlu0 %5643, %v654_v24   ;;  %v662_v23 = vld [vmem:[%s5971_s23 + $0x110] sm:$0xff] }
  0xd3   : > { %v558_v24 = vld [vmem:[%s7875_s2 + $0x50] sm:$0xff] }
  0xd5   : > { %v6098_v45 = vpop.permute.xlu1 %782  ;;  %v6100_v46 = vpop.permute.xlu0 %779 }
  0xd6   : > { %1225 = vperm.xlu1 %5644, %v657_v37   ;;  %1220 = vperm.xlu0 %5643, %v656_v38   ;;  %v6150_v38 = vpack.c.bf16 %v559_v25, %v558_v24 }
  0xd8   : > { %7913 = vst [vmem:[#allocation6_spill] sm:$0xff] %v6150_v38  ;;  %5500 = vmatprep.subr.bf16.mxu1 %v6150_v38 }
  0xd9   : > { %v6114_v59 = vpop.permute.xlu1 %788  ;;  %v6116_v63 = vpop.permute.xlu0 %785  ;;  %5502 = vmatpush3.bf16.msra.mxu1 %v6150_v38  ;;  %v1870_v38 = vld [vmem:[%s6159_s30 + $0xb8] sm:$0xff] }
  0xda   : > { %1235 = vperm.xlu1 %5644, %v659_v50   ;;  %1230 = vperm.xlu0 %5643, %v658_v53   ;;  %v560_v50 = vld [vmem:[%s7875_s2 + $0x60] sm:$0xff]  ;;  %v561_v53 = vld [vmem:[%s7875_s2 + $0x68] sm:$0xff] }
  0xdd   : > { %v6130_v14 = vpop.permute.xlu1 %794  ;;  %v6132_v15 = vpop.permute.xlu0 %791 }
  0xde   : > { %1245 = vperm.xlu1 %5644, %v661_v4   ;;  %1240 = vperm.xlu0 %5643, %v660_v5   ;;  %v6172_v4 = vpack.c.bf16 %v561_v53, %v560_v50  ;;  %v1847_v5 = vld [vmem:[%s6159_s30] sm:$0xff] }
  0xe0   : > { %7914 = vst [vmem:[#allocation7_spill] sm:$0xff] %v6172_v4  ;;  %5504 = vmatprep.subr.bf16.mxu1 %v6172_v4 }
  0xe1   : > { %v6146_v29 = vpop.permute.xlu1 %800  ;;  %v6148_v37 = vpop.permute.xlu0 %797  ;;  %5506 = vmatpush3.bf16.msra.mxu1 %v6172_v4 }
  0xe2   : > { %1255 = vperm.xlu1 %5644, %v663_v18   ;;  %1250 = vperm.xlu0 %5643, %v662_v23   ;;  %v563_v18 = vld [vmem:[%s7875_s2 + $0x78] sm:$0xff] }
  0xe3   : > { %v6188_v25 = vpack.c.bf16 %v563_v18, %v562_v10 }
  0xe5   : > { %v6168_v54 = vpop.permute.xlu1 %806  ;;  %v6170_v58 = vpop.permute.xlu0 %803  ;;  %7916 = vst [vmem:[#allocation9_spill] sm:$0xff] %v6188_v25  ;;  %5508 = vmatprep.subr.bf16.mxu1 %v6188_v25 }
  0xe6   : > { %1265 = vperm.xlu1 %5644, %v665_v41   ;;  %1260 = vperm.xlu0 %5643, %v664_v42   ;;  %v1849_v41 = vld [vmem:[%s6159_s30 + $0x10] sm:$0xff]  ;;  %v1848_v42 = vld [vmem:[%s6159_s30 + $0x8] sm:$0xff] }
  0xe7   : > { %5510 = vmatpush3.bf16.msra.mxu1 %v6188_v25 }
  0xe8   : > { %5544 = vmatprep.subr.bf16.mxu1 %v6070_v22 }
  0xe9   : > { %v6184_v23 = vpop.permute.xlu1 %812  ;;  %v6186_v24 = vpop.permute.xlu0 %809 }
  0xea   : > { %7915 = vst [vmem:[#allocation8_spill] sm:$0xff] %v6184_v23  ;;  %1912 = vperm.xlu1 %5644, %v1847_v5   ;;  %1270 = vperm.xlu0 %5643, %v666_v9   ;;  %v1851_v5 = vld [vmem:[%s6159_s30 + $0x20] sm:$0xff]  ;;  %v1850_v9 = vld [vmem:[%s6159_s30 + $0x18] sm:$0xff]  ;;  %v1853_v23 = vld [vmem:[%s6159_s30 + $0x30] sm:$0xff] }
  0xed   : > { %v6194_v50 = vpop.permute.xlu1 %818  ;;  %v6196_v53 = vpop.permute.xlu0 %815 }
  0xee   : > { %7917 = vst [vmem:[#allocation10_spill] sm:$0xff] %v6194_v50  ;;  %7918 = vst [vmem:[#allocation11_spill] sm:$0xff] %v6196_v53  ;;  %1918 = vperm.xlu1 %5644, %v1849_v41   ;;  %1915 = vperm.xlu0 %5643, %v1848_v42   ;;  %v1852_v50 = vld [vmem:[%s6159_s30 + $0x28] sm:$0xff]  ;;  %v1855_v41 = vld [vmem:[%s6159_s30 + $0x40] sm:$0xff] }
  0xef   : > { %v1854_v42 = vld [vmem:[%s6159_s30 + $0x38] sm:$0xff] }
  0xf1   : > { %v6201_v10 = vpop.permute.xlu1 %824  ;;  %v6203_v18 = vpop.permute.xlu0 %821 }
  0xf2   : > { %7919 = vst [vmem:[#allocation12_spill] sm:$0xff] %v6201_v10  ;;  %7920 = vst [vmem:[#allocation13_spill] sm:$0xff] %v6203_v18  ;;  %1924 = vperm.xlu1 %5644, %v1851_v5   ;;  %1921 = vperm.xlu0 %5643, %v1850_v9   ;;  %v1857_v5 = vld [vmem:[%s6159_s30 + $0x50] sm:$0xff]  ;;  %v1856_v9 = vld [vmem:[%s6159_s30 + $0x48] sm:$0xff] }
  0xf5   : > { %v6207_v25 = vpop.permute.xlu1 %830  ;;  %v6209_v53 = vpop.permute.xlu0 %827 }
  0xf6   : > { %7921 = vst [vmem:[#allocation14_spill] sm:$0xff] %v6207_v25  ;;  %7922 = vst [vmem:[#allocation15_spill] sm:$0xff] %v6209_v53  ;;  %1930 = vperm.xlu1 %5644, %v1853_v23   ;;  %1927 = vperm.xlu0 %5643, %v1852_v50   ;;  %v1859_v23 = vld [vmem:[%s6159_s30 + $0x60] sm:$0xff]  ;;  %v1858_v50 = vld [vmem:[%s6159_s30 + $0x58] sm:$0xff] }
  0xf9   : > { %v6213_v4 = vpop.permute.xlu1 %836  ;;  %v6215_v10 = vpop.permute.xlu0 %833 }
  0xfa   : > { %7923 = vst [vmem:[#allocation16_spill] sm:$0xff] %v6213_v4  ;;  %7924 = vst [vmem:[#allocation17_spill] sm:$0xff] %v6215_v10  ;;  %1936 = vperm.xlu1 %5644, %v1855_v41   ;;  %1933 = vperm.xlu0 %5643, %v1854_v42   ;;  %v1861_v41 = vld [vmem:[%s6159_s30 + $0x70] sm:$0xff]  ;;  %v1860_v42 = vld [vmem:[%s6159_s30 + $0x68] sm:$0xff] }
  0xfd   : > { %v6219_v18 = vpop.permute.xlu1 %842  ;;  %v6221_v25 = vpop.permute.xlu0 %839 }
  0xfe   : > { %7925 = vst [vmem:[#allocation18_spill] sm:$0xff] %v6219_v18  ;;  %7926 = vst [vmem:[#allocation19_spill] sm:$0xff] %v6221_v25  ;;  %1942 = vperm.xlu1 %5644, %v1857_v5   ;;  %1939 = vperm.xlu0 %5643, %v1856_v9   ;;  %v1863_v5 = vld [vmem:[%s6159_s30 + $0x80] sm:$0xff]  ;;  %v1862_v9 = vld [vmem:[%s6159_s30 + $0x78] sm:$0xff] }
 0x101   : > { %v6225_v53 = vpop.permute.xlu1 %848  ;;  %v6227_v4 = vpop.permute.xlu0 %845 }
 0x102   : > { %7927 = vst [vmem:[#allocation20_spill] sm:$0xff] %v6225_v53  ;;  %7928 = vst [vmem:[#allocation21_spill] sm:$0xff] %v6227_v4  ;;  %1948 = vperm.xlu1 %5644, %v1859_v23   ;;  %1945 = vperm.xlu0 %5643, %v1858_v50   ;;  %v1865_v23 = vld [vmem:[%s6159_s30 + $0x90] sm:$0xff]  ;;  %v1864_v50 = vld [vmem:[%s6159_s30 + $0x88] sm:$0xff] }
 0x105   : > { %v6231_v10 = vpop.permute.xlu1 %854  ;;  %v6233_v18 = vpop.permute.xlu0 %851 }
 0x106   : > { %7929 = vst [vmem:[#allocation22_spill] sm:$0xff] %v6231_v10  ;;  %7930 = vst [vmem:[#allocation23_spill] sm:$0xff] %v6233_v18  ;;  %1954 = vperm.xlu1 %5644, %v1861_v41   ;;  %1951 = vperm.xlu0 %5643, %v1860_v42   ;;  %v1867_v41 = vld [vmem:[%s6159_s30 + $0xa0] sm:$0xff]  ;;  %v1866_v42 = vld [vmem:[%s6159_s30 + $0x98] sm:$0xff] }
 0x109   : > { %v6237_v25 = vpop.permute.xlu1 %860  ;;  %v6239_v53 = vpop.permute.xlu0 %857 }
 0x10a   : > { %7931 = vst [vmem:[#allocation24_spill] sm:$0xff] %v6237_v25  ;;  %7932 = vst [vmem:[#allocation25_spill] sm:$0xff] %v6239_v53  ;;  %1960 = vperm.xlu1 %5644, %v1863_v5   ;;  %1957 = vperm.xlu0 %5643, %v1862_v9   ;;  %v692_v53 = vlaneseq  ;;  %v1869_v5 = vld [vmem:[%s6159_s30 + $0xb0] sm:$0xff]  ;;  %v1868_v9 = vld [vmem:[%s6159_s30 + $0xa8] sm:$0xff] }
 0x10d   : > { %v6243_v4 = vpop.permute.xlu1 %866  ;;  %v6245_v10 = vpop.permute.xlu0 %863 }
 0x10e   : > { %7933 = vst [vmem:[#allocation26_spill] sm:$0xff] %v6243_v4  ;;  %7934 = vst [vmem:[#allocation27_spill] sm:$0xff] %v6245_v10  ;;  %1966 = vperm.xlu1 %5644, %v1865_v23   ;;  %1963 = vperm.xlu0 %5643, %v1864_v50   ;;  %v6259_v23 = vand.u32 127, %v692_v53  ;;  %v1871_v50 = vld [vmem:[%s6159_s30 + $0xc0] sm:$0xff]  ;;  %v1873_v53 = vld [vmem:[%s6159_s30 + $0xd0] sm:$0xff] }
 0x110   : > { %vm886_vm0 = vcmp.eq.s32.totalorder %v5987_v28, %v6259_v23  ;;  %vm887_vm1 = vcmp.eq.s32.totalorder %v5996_v32, %v6259_v23  ;;  %vm888_vm2 = vcmp.eq.s32.totalorder %v5985_v27, %v6259_v23  ;;  %vm889_vm3 = vcmp.eq.s32.totalorder %v5994_v31, %v6259_v23 }
 0x111   : > { %v6249_v18 = vpop.permute.xlu1 %872  ;;  %v6251_v25 = vpop.permute.xlu0 %869  ;;  %vm891_vm4 = vcmp.eq.s32.totalorder %v6000_v35, %v6259_v23  ;;  %vm890_vm5 = vcmp.eq.s32.totalorder %v6002_v36, %v6259_v23  ;;  %vm893_vm6 = vcmp.eq.s32.totalorder %v6006_v39, %v6259_v23  ;;  %vm892_vm7 = vcmp.eq.s32.totalorder %v6008_v40, %v6259_v23 }
 0x112   : > { %7935 = vst [vmem:[#allocation28_spill] sm:$0xff] %v6249_v18  ;;  %7936 = vst [vmem:[#allocation29_spill] sm:$0xff] %v6251_v25  ;;  %1972 = vperm.xlu1 %5644, %v1867_v41   ;;  %1969 = vperm.xlu0 %5643, %v1866_v42   ;;  %v1872_v41 = vld [vmem:[%s6159_s30 + $0xc8] sm:$0xff]  ;;  %vm895_vm8 = vcmp.eq.s32.totalorder %v6012_v43, %v6259_v23  ;;  %vm894_vm9 = vcmp.eq.s32.totalorder %v6014_v44, %v6259_v23 }
 0x113   : > { %vm897_vm10 = vcmp.eq.s32.totalorder %v6018_v47, %v6259_v23  ;;  %vm896_vm11 = vcmp.eq.s32.totalorder %v6020_v48, %v6259_v23  ;;  %vm899_vm12 = vcmp.eq.s32.totalorder %v6024_v51, %v6259_v23  ;;  %vm898_vm13 = vcmp.eq.s32.totalorder %v6026_v52, %v6259_v23 }
 0x114   : > { %vm901_vm14 = vcmp.eq.s32.totalorder %v6030_v56, %v6259_v23  ;;  %vm900_vm15 = vcmp.eq.s32.totalorder %v6032_v57, %v6259_v23 }
 0x115   : > { %v6255_v4 = vpop.permute.xlu1 %878  ;;  %v6257_v10 = vpop.permute.xlu0 %875 }
 0x116   : > { %7937 = vst [vmem:[#allocation30_spill] sm:$0xff] %v6255_v4  ;;  %7938 = vst [vmem:[#allocation31_spill] sm:$0xff] %v6257_v10  ;;  %1978 = vperm.xlu1 %5644, %v1869_v5   ;;  %1975 = vperm.xlu0 %5643, %v1868_v9   ;;  %v5710_v5 = vmov 0.0  }
 0x117   : > { %v4614_v9 = vsel %vm887_vm1, 1.0, %v5710_v5  ;;  %v4616_v4 = vsel %vm889_vm3, 1.0, %v5710_v5  ;;  %v4615_v31 = vsel %vm888_vm2, 1.0, %v5710_v5  ;;  %v4618_v27 = vsel %vm891_vm4, 1.0, %v5710_v5 }
 0x118   : > { %v4620_v35 = vsel %vm893_vm6, 1.0, %v5710_v5  ;;  %v4622_v39 = vsel %vm895_vm8, 1.0, %v5710_v5  ;;  %v4624_v43 = vsel %vm897_vm10, 1.0, %v5710_v5  ;;  %v4626_v47 = vsel %vm899_vm12, 1.0, %v5710_v5 }
 0x119   : > { %v6263_v18 = vpop.permute.xlu1 %884  ;;  %v6265_v25 = vpop.permute.xlu0 %881  ;;  %v4628_v51 = vsel %vm901_vm14, 1.0, %v5710_v5  ;;  %vm902_vm1 = vcmp.eq.s32.totalorder %v6038_v62, %v6259_v23  ;;  %vm905_vm2 = vcmp.eq.s32.totalorder %v6042_v2, %v6259_v23  ;;  %vm904_vm3 = vcmp.eq.s32.totalorder %v6044_v3, %v6259_v23 }
 0x11a   : > { %7939 = vst [vmem:[#allocation32_spill] sm:$0xff] %v6263_v18  ;;  %7940 = vst [vmem:[#allocation33_spill] sm:$0xff] %v6265_v25  ;;  %1984 = vperm.xlu1 %5644, %v1871_v50   ;;  %1981 = vperm.xlu0 %5643, %v1870_v38   ;;  %v4613_v25 = vsel %vm886_vm0, 1.0, %v5710_v5  ;;  %v1875_v38 = vld [vmem:[%s6159_s30 + $0xe0] sm:$0xff]  ;;  %v1874_v50 = vld [vmem:[%s6159_s30 + $0xd8] sm:$0xff]  ;;  %vm903_vm0 = vcmp.eq.s32.totalorder %v6036_v61, %v6259_v23  ;;  %vm907_vm4 = vcmp.eq.s32.totalorder %v6048_v7, %v6259_v23 }
 0x11b   : > { %v4630_v56 = vsel %vm903_vm0, 1.0, %v5710_v5  ;;  %v4632_v61 = vsel %vm905_vm2, 1.0, %v5710_v5  ;;  %v671_v7 = vld [vmem:[%s5971_s23 + $0x158] sm:$0xff]  ;;  %vm909_vm6 = vcmp.eq.s32.totalorder %v6054_v12, %v6259_v23  ;;  %v4634_v2 = vsel %vm907_vm4, 1.0, %v5710_v5 }
 0x11c   : > { %vm911_vm8 = vcmp.eq.s32.totalorder %v6066_v19, %v6259_v23  ;;  %v4636_v12 = vsel %vm909_vm6, 1.0, %v5710_v5  ;;  %vm913_vm10 = vcmp.eq.s32.totalorder %v6082_v30, %v6259_v23  ;;  %vm915_vm12 = vcmp.eq.s32.totalorder %v6098_v45, %v6259_v23 }
 0x11d   : > { %v1086_v42 = vpop.permute.xlu1 %1085  ;;  %v1081_v18 = vpop.permute.xlu0 %1080  ;;  %v4638_v19 = vsel %vm911_vm8, 1.0, %v5710_v5  ;;  %v4640_v30 = vsel %vm913_vm10, 1.0, %v5710_v5  ;;  %vm917_vm14 = vcmp.eq.s32.totalorder %v6114_v59, %v6259_v23  ;;  %v4642_v45 = vsel %vm915_vm12, 1.0, %v5710_v5 }
 0x11e   : > { %v1399_v28 = vmul.f32 %v4614_v9, %v1086_v42  ;;  %1990 = vperm.xlu1 %5644, %v1873_v53   ;;  %1987 = vperm.xlu0 %5643, %v1872_v41   ;;  %v1398_v32 = vmul.f32 %v4613_v25, %v1081_v18  ;;  %v1877_v41 = vld [vmem:[%s6159_s30 + $0xf0] sm:$0xff]  ;;  %v1876_v42 = vld [vmem:[%s6159_s30 + $0xe8] sm:$0xff]  ;;  %vm919_vm0 = vcmp.eq.s32.totalorder %v6130_v14, %v6259_v23  ;;  %v4644_v59 = vsel %vm917_vm14, 1.0, %v5710_v5 }
 0x11f   : > { %vm921_vm2 = vcmp.eq.s32.totalorder %v6146_v29, %v6259_v23  ;;  %v4646_v14 = vsel %vm919_vm0, 1.0, %v5710_v5  ;;  %vm923_vm4 = vcmp.eq.s32.totalorder %v6168_v54, %v6259_v23  ;;  %vm924_vm6 = vcmp.eq.s32.totalorder %v6186_v24, %v6259_v23 }
 0x120   : > { %5100 = vmatprep.mubr.f32.mxu0 %v1398_v32  ;;  %v1879_v32 = vld [vmem:[%s6159_s30 + $0x100] sm:$0xff]  ;;  %v4648_v29 = vsel %vm921_vm2, 1.0, %v5710_v5  ;;  %v4650_v54 = vsel %vm923_vm4, 1.0, %v5710_v5  ;;  %v5711_v24 = vmov 1.0  }
 0x121   : > { %v1096_v10 = vpop.permute.xlu1 %1095  ;;  %5101 = vmatmul.mubr.f32.vlgmr.msra.gmra.mrb[0].mxu0 %v1399_v28  ;;  %v1091_v53 = vpop.permute.xlu0 %1090 }
 0x122   : > { %v1401_v25 = vmul.f32 %v4616_v4, %v1096_v10  ;;  %v1400_v18 = vmul.f32 %v4615_v31, %v1091_v53  ;;  %1996 = vperm.xlu1 %5644, %v1875_v38   ;;  %1993 = vperm.xlu0 %5643, %v1874_v50   ;;  %v4617_v4 = vsel %vm890_vm5, 1.0, %v5710_v5  ;;  %v1878_v38 = vld [vmem:[%s6159_s30 + $0xf8] sm:$0xff]  ;;  %v4619_v50 = vsel %vm892_vm7, 1.0, %v5710_v5 }
 0x123   : > { %5514 = vmatpush3.bf16.msra.mxu0 %v5893_v55  ;;  %vm906_vm5 = vcmp.eq.s32.totalorder %v6050_v8, %v6259_v23  ;;  %vm908_vm7 = vcmp.eq.s32.totalorder %v6056_v13, %v6259_v23 }
 0x124   : > { %5103 = vmatprep.mubr.f32.mxu0 %v1400_v18  ;;  %5516 = vmatprep.subr.bf16.mxu0 %v5905_v60  ;;  %v1881_v18 = vld [vmem:[%s6159_s30 + $0x110] sm:$0xff] }
 0x125   : > { %v1106_v36 = vpop.permute.xlu1 %1105  ;;  %5104 = vmatmul.mubr.f32.gmra.mrb[2].mxu0 %v1401_v25  ;;  %v1101_v10 = vpop.permute.xlu0 %1100 }
 0x126   : > { %v1403_v9 = vmul.f32 %v4618_v27, %v1106_v36  ;;  %v1402_v28 = vmul.f32 %v4617_v4, %v1101_v10  ;;  %2002 = vperm.xlu1 %5644, %v1877_v41   ;;  %1999 = vperm.xlu0 %5643, %v1876_v42   ;;  %v1880_v41 = vld [vmem:[%s6159_s30 + $0x108] sm:$0xff]  ;;  %v4621_v42 = vsel %vm894_vm9, 1.0, %v5710_v5  ;;  %v1883_v10 = vld [vmem:[%s6159_s30 + $0x120] sm:$0xff]  ;;  %vm910_vm9 = vcmp.eq.s32.totalorder %v6068_v20, %v6259_v23 }
 0x127   : > { %5518 = vmatpush3.bf16.msra.mxu0 %v5905_v60 }
 0x128   : > { %5106 = vmatprep.mubr.f32.mxu0 %v1402_v28  ;;  %5520 = vmatprep.subr.bf16.mxu0 %v5917_v1  ;;  %v4623_v28 = vsel %vm896_vm11, 1.0, %v5710_v5  ;;  %vm912_vm11 = vcmp.eq.s32.totalorder %v6084_v33, %v6259_v23 }
 0x129   : > { %v1116_v40 = vpop.permute.xlu1 %1115  ;;  %5107 = vmatmul.mubr.f32.gmra.mrb[4].mxu0 %v1403_v9  ;;  %v1111_v31 = vpop.permute.xlu0 %1110  ;;  %v1882_v9 = vld [vmem:[%s6159_s30 + $0x118] sm:$0xff] }
 0x12a   : > { %v1405_v53 = vmul.f32 %v4620_v35, %v1116_v40  ;;  %v1404_v25 = vmul.f32 %v4619_v50, %v1111_v31  ;;  %2008 = vperm.xlu1 %5644, %v1879_v32   ;;  %2005 = vperm.xlu0 %5643, %v1878_v38   ;;  %v667_v40 = vld [vmem:[%s5971_s23 + $0x138] sm:$0xff]  ;;  %v1884_v50 = vld [vmem:[%s6159_s30 + $0x128] sm:$0xff]  ;;  %v4625_v31 = vsel %vm898_vm13, 1.0, %v5710_v5  ;;  %vm914_vm13 = vcmp.eq.s32.totalorder %v6100_v46, %v6259_v23 }
 0x12b   : > { %5522 = vmatpush3.bf16.msra.mxu0 %v5917_v1 }
 0x12c   : > { %5109 = vmatprep.mubr.f32.mxu0 %v1404_v25  ;;  %5524 = vmatprep.subr.bf16.mxu0 %v5929_v6 }
 0x12d   : > { %v1126_v44 = vpop.permute.xlu1 %1125  ;;  %5110 = vmatmul.mubr.f32.gmra.mrb[6].mxu0 %v1405_v53  ;;  %v1121_v27 = vpop.permute.xlu0 %1120 }
 0x12e   : > { %v1407_v36 = vmul.f32 %v4622_v39, %v1126_v44  ;;  %v1406_v4 = vmul.f32 %v4621_v42, %v1121_v27  ;;  %2014 = vperm.xlu1 %5644, %v1881_v18   ;;  %2011 = vperm.xlu0 %5643, %v1880_v41   ;;  %v668_v41 = vld [vmem:[%s5971_s23 + $0x140] sm:$0xff]  ;;  %v1885_v39 = vld [vmem:[%s6159_s30 + $0x130] sm:$0xff]  ;;  %v4627_v44 = vsel %vm900_vm15, 1.0, %v5710_v5  ;;  %vm916_vm15 = vcmp.eq.s32.totalorder %v6116_v63, %v6259_v23 }
 0x12f   : > { %5526 = vmatpush3.bf16.msra.mxu0 %v5929_v6 }
 0x130   : > { %5112 = vmatprep.mubr.f32.mxu0 %v1406_v4  ;;  %5528 = vmatprep.subr.bf16.mxu0 %v5941_v11  ;;  %v669_v4 = vld [vmem:[%s5971_s23 + $0x148] sm:$0xff] }
 0x131   : > { %v1136_v48 = vpop.permute.xlu1 %1135  ;;  %5113 = vmatmul.mubr.f32.gmra.mrb[8].mxu0 %v1407_v36  ;;  %v1131_v32 = vpop.permute.xlu0 %1130 }
 0x132   : > { %v1409_v38 = vmul.f32 %v4624_v43, %v1136_v48  ;;  %v1408_v35 = vmul.f32 %v4623_v28, %v1131_v32  ;;  %2020 = vperm.xlu1 %5644, %v1883_v10   ;;  %2017 = vperm.xlu0 %5643, %v1882_v9   ;;  %v1886_v10 = vld [vmem:[%s6159_s30 + $0x138] sm:$0xff]  ;;  %v4629_v9 = vsel %vm902_vm1, 1.0, %v5710_v5  ;;  %v670_v32 = vld [vmem:[%s5971_s23 + $0x150] sm:$0xff]  ;;  %vm918_vm1 = vcmp.eq.s32.totalorder %v6132_v15, %v6259_v23 }
 0x133   : > { %5530 = vmatpush3.bf16.msra.mxu0 %v5941_v11 }
 0x134   : > { %5115 = vmatprep.mubr.f32.mxu0 %v1408_v35  ;;  %5532 = vmatprep.subr.bf16.mxu0 %v5953_v16  ;;  %v4631_v35 = vsel %vm904_vm3, 1.0, %v5710_v5  ;;  %vm920_vm3 = vcmp.eq.s32.totalorder %v6148_v37, %v6259_v23 }
 0x135   : > { %v1146_v52 = vpop.permute.xlu1 %1145  ;;  %5116 = vmatmul.mubr.f32.gmra.mrb[10].mxu0 %v1409_v38  ;;  %v1141_v53 = vpop.permute.xlu0 %1140  ;;  %v1887_v38 = vld [vmem:[%s6159_s30 + $0x140] sm:$0xff] }
 0x136   : > { %v1411_v25 = vmul.f32 %v4626_v47, %v1146_v52  ;;  %v1410_v18 = vmul.f32 %v4625_v31, %v1141_v53  ;;  %1275 = vperm.xlu1 %5644, %v667_v40   ;;  %2023 = vperm.xlu0 %5643, %v1884_v50   ;;  %v1888_v52 = vld [vmem:[%s6159_s30 + $0x148] sm:$0xff]  ;;  %v4633_v53 = vsel %vm906_vm5, 1.0, %v5710_v5  ;;  %vm922_vm5 = vcmp.eq.s32.totalorder %v6170_v58, %v6259_v23 }
 0x137   : > { %5534 = vmatpush3.bf16.msra.mxu0 %v5953_v16 }
 0x138   : > { %5118 = vmatprep.mubr.f32.mxu0 %v1410_v18  ;;  %5536 = vmatprep.subr.bf16.mxu0 %v5965_v21 }
 0x139   : > { %v1156_v57 = vpop.permute.xlu1 %1155  ;;  %5119 = vmatmul.mubr.f32.gmra.mrb[12].mxu0 %v1411_v25  ;;  %v1151_v42 = vpop.permute.xlu0 %1150 }
 0x13a   : > { %v1413_v27 = vmul.f32 %v4628_v51, %v1156_v57  ;;  %v1412_v36 = vmul.f32 %v4627_v44, %v1151_v42  ;;  %1280 = vperm.xlu1 %5644, %v668_v41   ;;  %2026 = vperm.xlu0 %5643, %v1885_v39   ;;  %v672_v41 = vld [vmem:[%s5971_s23 + $0x160] sm:$0xff]  ;;  %v1889_v39 = vld [vmem:[%s6159_s30 + $0x150] sm:$0xff]  ;;  %v4635_v57 = vsel %vm908_vm7, 1.0, %v5710_v5 }
 0x13b   : > { %5538 = vmatpush3.bf16.msra.mxu0 %v5965_v21 }
 0x13c   : > { %5121 = vmatprep.mubr.f32.mxu0 %v1412_v36  ;;  %5540 = vmatprep.subr.bf16.mxu0 %v5983_v26  ;;  %v1890_v36 = vld [vmem:[%s6159_s30 + $0x158] sm:$0xff] }
 0x13d   : > { %v1166_v62 = vpop.permute.xlu1 %1165  ;;  %5122 = vmatmul.mubr.f32.gmra.mrb[14].mxu0 %v1413_v27  ;;  %v1161_v43 = vpop.permute.xlu0 %1160  ;;  %v673_v27 = vld [vmem:[%s5971_s23 + $0x168] sm:$0xff] }
 0x13e   : > { %v1415_v48 = vmul.f32 %v4630_v56, %v1166_v62  ;;  %v1414_v28 = vmul.f32 %v4629_v9, %v1161_v43  ;;  %1285 = vperm.xlu1 %5644, %v669_v4   ;;  %2029 = vperm.xlu0 %5643, %v1886_v10   ;;  %v4637_v10 = vsel %vm910_vm9, 1.0, %v5710_v5  ;;  %v674_v9 = vld [vmem:[%s5971_s23 + $0x170] sm:$0xff]  ;;  %v1891_v43 = vld [vmem:[%s6159_s30 + $0x160] sm:$0xff] }
 0x13f   : > { %5542 = vmatpush3.bf16.msra.mxu0 %v5983_v26 }
 0x140   : > { %5124 = vmatprep.mubr.f32.mxu0 %v1414_v28  ;;  %v4639_v28 = vsel %vm912_vm11, 1.0, %v5710_v5 }
 0x141   : > { %v1176_v3 = vpop.permute.xlu1 %1175  ;;  %5125 = vmatmul.mubr.f32.gmra.mrb[16].mxu0 %v1415_v48  ;;  %v1171_v40 = vpop.permute.xlu0 %1170 }
 0x142   : > { %v1417_v50 = vmul.f32 %v4632_v61, %v1176_v3  ;;  %v1416_v47 = vmul.f32 %v4631_v35, %v1171_v40  ;;  %1290 = vperm.xlu1 %5644, %v670_v32   ;;  %2032 = vperm.xlu0 %5643, %v1887_v38   ;;  %v675_v61 = vld [vmem:[%s5971_s23 + $0x178] sm:$0xff]  ;;  %v1892_v3 = vld [vmem:[%s6159_s30 + $0x168] sm:$0xff]  ;;  %v4641_v40 = vsel %vm914_vm13, 1.0, %v5710_v5 }
 0x144   : > { %5127 = vmatprep.mubr.f32.mxu0 %v1416_v47 }
 0x145   : > { %v1186_v31 = vpop.permute.xlu1 %1185  ;;  %5128 = vmatmul.mubr.f32.gmra.mrb[18].mxu0 %v1417_v50  ;;  %v1181_v25 = vpop.permute.xlu0 %1180 }
 0x146   : > { %v1419_v8 = vmul.f32 %v4634_v2, %v1186_v31  ;;  %v1418_v18 = vmul.f32 %v4633_v53, %v1181_v25  ;;  %1295 = vperm.xlu1 %5644, %v671_v7   ;;  %2035 = vperm.xlu0 %5643, %v1888_v52   ;;  %v676_v7 = vld [vmem:[%s5971_s23 + $0x180] sm:$0xff]  ;;  %v1893_v52 = vld [vmem:[%s6159_s30 + $0x170] sm:$0xff]  ;;  %v4643_v31 = vsel %vm916_vm15, 1.0, %v5710_v5 }
 0x148   : > { %5130 = vmatprep.mubr.f32.mxu0 %v1418_v18  ;;  %v1894_v18 = vld [vmem:[%s6159_s30 + $0x178] sm:$0xff] }
 0x149   : > { %v1196_v51 = vpop.permute.xlu1 %1195  ;;  %5131 = vmatmul.mubr.f32.gmra.mrb[20].mxu0 %v1419_v8  ;;  %v1191_v44 = vpop.permute.xlu0 %1190  ;;  %v677_v8 = vld [vmem:[%s5971_s23 + $0x188] sm:$0xff] }
 0x14a   : > { %v1421_v13 = vmul.f32 %v4636_v12, %v1196_v51  ;;  %v1420_v42 = vmul.f32 %v4635_v57, %v1191_v44  ;;  %1300 = vperm.xlu1 %5644, %v672_v41   ;;  %2038 = vperm.xlu0 %5643, %v1889_v39   ;;  %v4645_v39 = vsel %vm918_vm1, 1.0, %v5710_v5  ;;  %v678_v57 = vld [vmem:[%s5971_s23 + $0x190] sm:$0xff]  ;;  %v1895_v44 = vld [vmem:[%s6159_s30 + $0x180] sm:$0xff] }
 0x14c   : > { %5133 = vmatprep.mubr.f32.mxu0 %v1420_v42  ;;  %v4647_v42 = vsel %vm920_vm3, 1.0, %v5710_v5 }
 0x14d   : > { %v1206_v4 = vpop.permute.xlu1 %1205  ;;  %5134 = vmatmul.mubr.f32.gmra.mrb[22].mxu0 %v1421_v13  ;;  %v1201_v56 = vpop.permute.xlu0 %1200 }
 0x14e   : > { %v1423_v20 = vmul.f32 %v4638_v19, %v1206_v4  ;;  %v1422_v62 = vmul.f32 %v4637_v10, %v1201_v56  ;;  %1305 = vperm.xlu1 %5644, %v673_v27   ;;  %2041 = vperm.xlu0 %5643, %v1890_v36   ;;  %v679_v19 = vld [vmem:[%s5971_s23 + $0x198] sm:$0xff]  ;;  %v1896_v4 = vld [vmem:[%s6159_s30 + $0x188] sm:$0xff]  ;;  %v4649_v56 = vsel %vm922_vm5, 1.0, %v5710_v5 }
 0x150   : > { %5136 = vmatprep.mubr.f32.mxu0 %v1422_v62 }
 0x151   : > { %v1216_v48 = vpop.permute.xlu1 %1215  ;;  %5137 = vmatmul.mubr.f32.gmra.mrb[24].mxu0 %v1423_v20  ;;  %v1211_v32 = vpop.permute.xlu0 %1210 }
 0x152   : > { %v1425_v33 = vmul.f32 %v4640_v30, %v1216_v48  ;;  %v1424_v38 = vmul.f32 %v4639_v28, %v1211_v32  ;;  %1310 = vperm.xlu1 %5644, %v674_v9   ;;  %2044 = vperm.xlu0 %5643, %v1891_v43   ;;  %v680_v9 = vld [vmem:[%s5971_s23 + $0x1a0] sm:$0xff]  ;;  %v1897_v43 = vld [vmem:[%s6159_s30 + $0x190] sm:$0xff]  ;;  %v4651_v48 = vsel %vm924_vm6, 1.0, %v5710_v5 }
 0x154   : > { %5139 = vmatprep.mubr.f32.mxu0 %v1424_v38  ;;  %v1898_v38 = vld [vmem:[%s6159_s30 + $0x198] sm:$0xff] }
 0x155   : > { %v1226_v35 = vpop.permute.xlu1 %1225  ;;  %5140 = vmatmul.mubr.f32.gmra.mrb[26].mxu0 %v1425_v33  ;;  %v1221_v50 = vpop.permute.xlu0 %1220  ;;  %v681_v33 = vld [vmem:[%s5971_s23 + $0x1a8] sm:$0xff] }
 0x156   : > { %v1427_v46 = vmul.f32 %v4642_v45, %v1226_v35  ;;  %v1426_v47 = vmul.f32 %v4641_v40, %v1221_v50  ;;  %1315 = vperm.xlu1 %5644, %v675_v61   ;;  %2047 = vperm.xlu0 %5643, %v1892_v3   ;;  %v682_v45 = vld [vmem:[%s5971_s23 + $0x1b0] sm:$0xff]  ;;  %v1899_v35 = vld [vmem:[%s6159_s30 + $0x1a0] sm:$0xff] }
 0x158   : > { %5142 = vmatprep.mubr.f32.mxu0 %v1426_v47  ;;  %v1900_v47 = vld [vmem:[%s6159_s30 + $0x1a8] sm:$0xff] }
 0x159   : > { %v1236_v2 = vpop.permute.xlu1 %1235  ;;  %5143 = vmatmul.mubr.f32.gmra.mrb[28].mxu0 %v1427_v46  ;;  %v1231_v53 = vpop.permute.xlu0 %1230  ;;  %v683_v46 = vld [vmem:[%s5971_s23 + $0x1b8] sm:$0xff] }
 0x15a   : > { %v1429_v63 = vmul.f32 %v4644_v59, %v1236_v2  ;;  %v1428_v25 = vmul.f32 %v4643_v31, %v1231_v53  ;;  %1320 = vperm.xlu1 %5644, %v676_v7   ;;  %2050 = vperm.xlu0 %5643, %v1893_v52   ;;  %v684_v52 = vld [vmem:[%s5971_s23 + $0x1c0] sm:$0xff]  ;;  %v1901_v59 = vld [vmem:[%s6159_s30 + $0x1b0] sm:$0xff]  ;;  %v685_v31 = vld [vmem:[%s5971_s23 + $0x1c8] sm:$0xff] }
 0x15b   : > { %v1902_v53 = vld [vmem:[%s6159_s30 + $0x1b8] sm:$0xff] }
 0x15c   : > { %5145 = vmatprep.mubr.f32.mxu0 %v1428_v25  ;;  %v686_v25 = vld [vmem:[%s5971_s23 + $0x1d0] sm:$0xff] }
 0x15d   : > { %v1246_v41 = vpop.permute.xlu1 %1245  ;;  %5146 = vmatmul.mubr.f32.gmra.mrb[30].mxu0 %v1429_v63  ;;  %v1241_v12 = vpop.permute.xlu0 %1240 }
 0x15e   : > { %v1431_v15 = vmul.f32 %v4646_v14, %v1246_v41  ;;  %v1430_v51 = vmul.f32 %v4645_v39, %v1241_v12  ;;  %1325 = vperm.xlu1 %5644, %v677_v8   ;;  %2053 = vperm.xlu0 %5643, %v1894_v18   ;;  %v1903_v8 = vld [vmem:[%s6159_s30 + $0x1c0] sm:$0xff]  ;;  %v7941_v14 = vld [vmem:[#allocation6_spill] sm:$0xff]  ;;  %v687_v41 = vld [vmem:[%s5971_s23 + $0x1d8] sm:$0xff] }
 0x15f   : > { %v1904_v39 = vld [vmem:[%s6159_s30 + $0x1c8] sm:$0xff] }
 0x160   : > { %5148 = vmatprep.mubr.f32.mxu0 %v1430_v51  ;;  %v688_v51 = vld [vmem:[%s5971_s23 + $0x1e0] sm:$0xff] }
 0x161   : > { %v1256_v13 = vpop.permute.xlu1 %1255  ;;  %5149 = vmatmul.mubr.f32.gmra.mrb[32].mxu0 %v1431_v15  ;;  %v1251_v27 = vpop.permute.xlu0 %1250  ;;  %v7942_v15 = vld [vmem:[#allocation7_spill] sm:$0xff] }
 0x162   : > { %v1433_v37 = vmul.f32 %v4648_v29, %v1256_v13  ;;  %v1432_v36 = vmul.f32 %v4647_v42, %v1251_v27  ;;  %1330 = vperm.xlu1 %5644, %v678_v57   ;;  %2056 = vperm.xlu0 %5643, %v1895_v44   ;;  %v1905_v57 = vld [vmem:[%s6159_s30 + $0x1d0] sm:$0xff]  ;;  %v7943_v13 = vld [vmem:[#allocation9_spill] sm:$0xff]  ;;  %v1906_v27 = vld [vmem:[%s6159_s30 + $0x1d8] sm:$0xff] }
 0x163   : > { %v689_v42 = vld [vmem:[%s5971_s23 + $0x1e8] sm:$0xff] }
 0x164   : > { %5151 = vmatprep.mubr.f32.mxu0 %v1432_v36 }
 0x165   : > { %v1266_v10 = vpop.permute.xlu1 %1265  ;;  %5152 = vmatmul.mubr.f32.gmra.mrb[34].mxu0 %v1433_v37  ;;  %v1261_v20 = vpop.permute.xlu0 %1260 }
 0x166   : > { %v1435_v58 = vmul.f32 %v4650_v54, %v1266_v10  ;;  %v1434_v62 = vmul.f32 %v4649_v56, %v1261_v20  ;;  %1335 = vperm.xlu1 %5644, %v679_v19   ;;  %2059 = vperm.xlu0 %5643, %v1896_v4   ;;  %v690_v19 = vld [vmem:[%s5971_s23 + $0x1f0] sm:$0xff]  ;;  %v1907_v4 = vld [vmem:[%s6159_s30 + $0x1e0] sm:$0xff]  ;;  %v691_v56 = vld [vmem:[%s5971_s23 + $0x1f8] sm:$0xff]  ;;  %s6627_s23 = scalar_lea.vmem %s7881_s8, %s6546_s13  ;;  %s6968_s13 = sld [smem:[#allocation2]] }
 0x167   : > { %v1908_v20 = vld [vmem:[%s6159_s30 + $0x1e8] sm:$0xff] }
 0x168   : > { %5154 = vmatprep.mubr.f32.mxu0 %v1434_v62 }
 0x169   : > { %v1913_v30 = vpop.permute.xlu1 %1912  ;;  %5155 = vmatmul.mubr.f32.gmra.mrb[36].mxu0 %v1435_v58  ;;  %v1271_v28 = vpop.permute.xlu0 %1270 }
 0x16a   : > { %v1436_v32 = vmul.f32 %v4651_v48, %v1271_v28  ;;  %1340 = vperm.xlu1 %5644, %v680_v9   ;;  %2062 = vperm.xlu0 %5643, %v1897_v43   ;;  %vm2103_vm7 = vcmp.eq.s32.totalorder %v1913_v30, %v6259_v23  ;;  %v1910_v9 = vld [vmem:[%s6159_s30 + $0x1f8] sm:$0xff]  ;;  %v1909_v43 = vld [vmem:[%s6159_s30 + $0x1f0] sm:$0xff]  ;;  %v3129_v28 = vld [vmem:[%s6558_s16 + $0x8] sm:$0xff]  ;;  %s527_s30 = scalar_lea.vmem %s7882_s9, %s4611_s25 }
 0x16b   : > { %5228 = vmatprep.mubr.msk.f32.mxu1 %vm2103_vm7, %v5711_v24 }
 0x16c   : > { %5157 = vmatprep.mubr.f32.mxu0 %v1436_v32  ;;  %v3128_v32 = vld [vmem:[%s6558_s16] sm:$0xff]  ;;  %s4402_s17 = ssub.f32 1.0, %s6968_s13 }
 0x16d   : > { %v1919_v61 = vpop.permute.xlu1 %1918  ;;  %v1916_v3 = vpop.permute.xlu0 %1915 }
 0x16e   : > { %vm2105_vm8 = vcmp.eq.s32.totalorder %v1919_v61, %v6259_v23  ;;  %vm2104_vm9 = vcmp.eq.s32.totalorder %v1916_v3, %v6259_v23  ;;  %1345 = vperm.xlu1 %5644, %v681_v33   ;;  %2065 = vperm.xlu0 %5643, %v1898_v38   ;;  %v3482_v61 = vld [vmem:[%s6570_s12 + $0x8] sm:$0xff]  ;;  %v3481_v3 = vld [vmem:[%s6570_s12] sm:$0xff] }
 0x16f   : > { %5229 = vmatmul.mubr.msk.f32.vlgmr.msra.gmra.mrb[0].mxu1 %vm2104_vm9, %v5711_v24 }
 0x170   : > { %5231 = vmatprep.mubr.msk.f32.mxu1 %vm2105_vm8, %v5711_v24  ;;  %5546 = vmatpush3.bf16.msra.mxu1 %v6070_v22 }
 0x171   : > { %v1925_v40 = vpop.permute.xlu1 %1924  ;;  %v1922_v50 = vpop.permute.xlu0 %1921  ;;  %5548 = vmatprep.subr.bf16.mxu1 %v6086_v34 }
 0x172   : > { %vm2107_vm10 = vcmp.eq.s32.totalorder %v1925_v40, %v6259_v23  ;;  %vm2106_vm11 = vcmp.eq.s32.totalorder %v1922_v50, %v6259_v23  ;;  %1350 = vperm.xlu1 %5644, %v682_v45   ;;  %2068 = vperm.xlu0 %5643, %v1899_v35   ;;  %v5712_v45 = vmov 0.0|0.0   ;;  %v3131_v50 = vld [vmem:[%s6558_s16 + $0x18] sm:$0xff] }
 0x173   : > { %5232 = vmatmul.mubr.msk.f32.gmra.mrb[2].mxu1 %vm2106_vm11, %v5711_v24  ;;  %5575 = vmatprep.subr.bf16.mxu0 %v5712_v45 }
 0x174   : > { %5234 = vmatprep.mubr.msk.f32.mxu1 %vm2107_vm10, %v5711_v24  ;;  %5550 = vmatpush3.bf16.msra.mxu1 %v6086_v34 }
 0x175   : > { %v1931_v22 = vpop.permute.xlu1 %1930  ;;  %v1928_v7 = vpop.permute.xlu0 %1927  ;;  %5552 = vmatprep.subr.bf16.mxu1 %v6102_v49 }
 0x176   : > { %vm2109_vm12 = vcmp.eq.s32.totalorder %v1931_v22, %v6259_v23  ;;  %vm2108_vm13 = vcmp.eq.s32.totalorder %v1928_v7, %v6259_v23  ;;  %1355 = vperm.xlu1 %5644, %v683_v46   ;;  %2071 = vperm.xlu0 %5643, %v1900_v47   ;;  %v3130_v46 = vld [vmem:[%s6558_s16 + $0x10] sm:$0xff]  ;;  %v3484_v7 = vld [vmem:[%s6570_s12 + $0x18] sm:$0xff] }
 0x177   : > { %5235 = vmatmul.mubr.msk.f32.gmra.mrb[4].mxu1 %vm2108_vm13, %v5711_v24 }
 0x178   : > { %5237 = vmatprep.mubr.msk.f32.mxu1 %vm2109_vm12, %v5711_v24  ;;  %5554 = vmatpush3.bf16.msra.mxu1 %v6102_v49 }
 0x179   : > { %v1937_v34 = vpop.permute.xlu1 %1936  ;;  %v1934_v2 = vpop.permute.xlu0 %1933  ;;  %5556 = vmatprep.subr.bf16.mxu1 %v6118_v0 }
 0x17a   : > { %vm2111_vm14 = vcmp.eq.s32.totalorder %v1937_v34, %v6259_v23  ;;  %vm2110_vm15 = vcmp.eq.s32.totalorder %v1934_v2, %v6259_v23  ;;  %1360 = vperm.xlu1 %5644, %v684_v52   ;;  %2074 = vperm.xlu0 %5643, %v1901_v59   ;;  %v3483_v52 = vld [vmem:[%s6570_s12 + $0x10] sm:$0xff]  ;;  %v3133_v2 = vld [vmem:[%s6558_s16 + $0x28] sm:$0xff] }
 0x17b   : > { %5238 = vmatmul.mubr.msk.f32.gmra.mrb[6].mxu1 %vm2110_vm15, %v5711_v24 }
 0x17c   : > { %5240 = vmatprep.mubr.msk.f32.mxu1 %vm2111_vm14, %v5711_v24  ;;  %5558 = vmatpush3.bf16.msra.mxu1 %v6118_v0 }
 0x17d   : > { %v1943_v49 = vpop.permute.xlu1 %1942  ;;  %v1940_v63 = vpop.permute.xlu0 %1939  ;;  %5560 = vmatprep.subr.bf16.mxu1 %v6134_v17 }
 0x17e   : > { %vm2113_vm0 = vcmp.eq.s32.totalorder %v1943_v49, %v6259_v23  ;;  %vm2112_vm1 = vcmp.eq.s32.totalorder %v1940_v63, %v6259_v23  ;;  %1365 = vperm.xlu1 %5644, %v685_v31   ;;  %2077 = vperm.xlu0 %5643, %v1902_v53   ;;  %v3132_v31 = vld [vmem:[%s6558_s16 + $0x20] sm:$0xff]  ;;  %v3486_v63 = vld [vmem:[%s6570_s12 + $0x28] sm:$0xff] }
 0x17f   : > { %5241 = vmatmul.mubr.msk.f32.gmra.mrb[8].mxu1 %vm2112_vm1, %v5711_v24 }
 0x180   : > { %5243 = vmatprep.mubr.msk.f32.mxu1 %vm2113_vm0, %v5711_v24  ;;  %5562 = vmatpush3.bf16.msra.mxu1 %v6134_v17 }
 0x181   : > { %v1949_v0 = vpop.permute.xlu1 %1948  ;;  %v1946_v18 = vpop.permute.xlu0 %1945  ;;  %5564 = vmatprep.subr.bf16.mxu1 %v7941_v14 }
 0x182   : > { %vm2115_vm2 = vcmp.eq.s32.totalorder %v1949_v0, %v6259_v23  ;;  %vm2114_vm3 = vcmp.eq.s32.totalorder %v1946_v18, %v6259_v23  ;;  %1370 = vperm.xlu1 %5644, %v686_v25   ;;  %2080 = vperm.xlu0 %5643, %v1903_v8   ;;  %v3485_v25 = vld [vmem:[%s6570_s12 + $0x20] sm:$0xff] }
 0x183   : > { %5244 = vmatmul.mubr.msk.f32.gmra.mrb[10].mxu1 %vm2114_vm3, %v5711_v24  ;;  %v7944_v18 = vld [vmem:[#allocation8_spill] sm:$0xff] }
 0x184   : > { %5246 = vmatprep.mubr.msk.f32.mxu1 %vm2115_vm2, %v5711_v24  ;;  %5566 = vmatpush3.bf16.msra.mxu1 %v7941_v14  ;;  %v3135_v14 = vld [vmem:[%s6558_s16 + $0x38] sm:$0xff] }
 0x185   : > { %v1955_v17 = vpop.permute.xlu1 %1954  ;;  %v1952_v12 = vpop.permute.xlu0 %1951  ;;  %5568 = vmatprep.subr.bf16.mxu1 %v7942_v15 }
 0x186   : > { %vm2117_vm4 = vcmp.eq.s32.totalorder %v1955_v17, %v6259_v23  ;;  %vm2116_vm5 = vcmp.eq.s32.totalorder %v1952_v12, %v6259_v23  ;;  %1375 = vperm.xlu1 %5644, %v687_v41   ;;  %2083 = vperm.xlu0 %5643, %v1904_v39   ;;  %v3134_v41 = vld [vmem:[%s6558_s16 + $0x30] sm:$0xff] }
 0x187   : > { %5247 = vmatmul.mubr.msk.f32.gmra.mrb[12].mxu1 %vm2116_vm5, %v5711_v24 }
 0x188   : > { %5249 = vmatprep.mubr.msk.f32.mxu1 %vm2117_vm4, %v5711_v24  ;;  %5570 = vmatpush3.bf16.msra.mxu1 %v7942_v15  ;;  %v7945_v15 = vld [vmem:[#allocation11_spill] sm:$0xff] }
 0x189   : > { %v1961_v44 = vpop.permute.xlu1 %1960  ;;  %v1958_v29 = vpop.permute.xlu0 %1957  ;;  %5572 = vmatprep.subr.bf16.mxu1 %v7943_v13 }
 0x18a   : > { %vm2119_vm6 = vcmp.eq.s32.totalorder %v1961_v44, %v6259_v23  ;;  %vm2118_vm7 = vcmp.eq.s32.totalorder %v1958_v29, %v6259_v23  ;;  %1380 = vperm.xlu1 %5644, %v688_v51   ;;  %2086 = vperm.xlu0 %5643, %v1905_v57   ;;  %v3488_v57 = vld [vmem:[%s6570_s12 + $0x38] sm:$0xff]  ;;  %v3487_v44 = vld [vmem:[%s6570_s12 + $0x30] sm:$0xff]  ;;  %s485_s12 = sand.u32 1, %s5699_s20  }
 0x18b   : > { %5250 = vmatmul.mubr.msk.f32.gmra.mrb[14].mxu1 %vm2118_vm7, %v5711_v24  ;;  %s4598_s14 = sshll.u32 %s485_s12, 3  ;;  %s4438_s0 = scalar_lea.sflag [#allocation4], %s485_s12 }
 0x18c   : > { %5252 = vmatprep.mubr.msk.f32.mxu1 %vm2119_vm6, %v5711_v24  ;;  %5574 = vmatpush3.bf16.msra.mxu1 %v7943_v13 }
 0x18d   : > { %v1967_v37 = vpop.permute.xlu1 %1966  ;;  %v1964_v36 = vpop.permute.xlu0 %1963 }
 0x18e   : > { %vm2121_vm8 = vcmp.eq.s32.totalorder %v1967_v37, %v6259_v23  ;;  %vm2120_vm9 = vcmp.eq.s32.totalorder %v1964_v36, %v6259_v23  ;;  %1385 = vperm.xlu1 %5644, %v689_v42   ;;  %2089 = vperm.xlu0 %5643, %v1906_v27   ;;  %v7946_v27 = vld [vmem:[#allocation10_spill] sm:$0xff]  ;;  %v3835_v36 = vld [vmem:[%s6627_s23 + $0x8] sm:$0xff] }
 0x18f   : > { %5253 = vmatmul.mubr.msk.f32.gmra.mrb[16].mxu1 %vm2120_vm9, %v5711_v24 }
 0x190   : > { %5255 = vmatprep.mubr.msk.f32.mxu1 %vm2121_vm8, %v5711_v24 }
 0x191   : > { %v1973_v54 = vpop.permute.xlu1 %1972  ;;  %v1970_v10 = vpop.permute.xlu0 %1969 }
 0x192   : > { %vm2123_vm10 = vcmp.eq.s32.totalorder %v1973_v54, %v6259_v23  ;;  %vm2122_vm11 = vcmp.eq.s32.totalorder %v1970_v10, %v6259_v23  ;;  %1390 = vperm.xlu1 %5644, %v690_v19   ;;  %2092 = vperm.xlu0 %5643, %v1907_v4   ;;  %v4297_v19 = vld [vmem:[%s527_s30] sm:$0xff] }
 0x193   : > { %5256 = vmatmul.mubr.msk.f32.gmra.mrb[18].mxu1 %vm2122_vm11, %v5711_v24 }
 0x194   : > { %5258 = vmatprep.mubr.msk.f32.mxu1 %vm2123_vm10, %v5711_v24  ;;  %vm925_vm10 = vcmp.eq.s32.totalorder %v7944_v18, %v6259_v23  ;;  %v7952_v18 = vld [vmem:[#allocation16_spill] sm:$0xff] }
 0x195   : > { %v1979_v58 = vpop.permute.xlu1 %1978  ;;  %v1976_v62 = vpop.permute.xlu0 %1975  ;;  %v4652_v39 = vsel %vm925_vm10, 1.0, %v5710_v5 }
 0x196   : > { %vm2125_vm12 = vcmp.eq.s32.totalorder %v1979_v58, %v6259_v23  ;;  %vm2124_vm13 = vcmp.eq.s32.totalorder %v1976_v62, %v6259_v23  ;;  %1395 = vperm.xlu1 %5644, %v691_v56   ;;  %2095 = vperm.xlu0 %5643, %v1908_v20   ;;  %v7947_v56 = vld [vmem:[#allocation13_spill] sm:$0xff]  ;;  %v3834_v58 = vld [vmem:[%s6627_s23] sm:$0xff]  ;;  %v3836_v62 = vld [vmem:[%s6627_s23 + $0x10] sm:$0xff] }
 0x197   : > { %5259 = vmatmul.mubr.msk.f32.gmra.mrb[20].mxu1 %vm2124_vm13, %v5711_v24  ;;  %vm926_vm13 = vcmp.eq.s32.totalorder %v7945_v15, %v6259_v23 }
 0x198   : > { %5261 = vmatprep.mubr.msk.f32.mxu1 %vm2125_vm12, %v5711_v24  ;;  %v4653_v13 = vsel %vm926_vm13, 1.0, %v5710_v5 }
 0x199   : > { %v1985_v30 = vpop.permute.xlu1 %1984  ;;  %v1982_v48 = vpop.permute.xlu0 %1981 }
 0x19a   : > { %vm2127_vm14 = vcmp.eq.s32.totalorder %v1985_v30, %v6259_v23  ;;  %vm2126_vm15 = vcmp.eq.s32.totalorder %v1982_v48, %v6259_v23  ;;  %2101 = vperm.xlu1 %5644, %v1910_v9   ;;  %2098 = vperm.xlu0 %5643, %v1909_v43   ;;  %v7948_v48 = vld [vmem:[#allocation12_spill] sm:$0xff] }
 0x19b   : > { %5262 = vmatmul.mubr.msk.f32.gmra.mrb[22].mxu1 %vm2126_vm15, %v5711_v24  ;;  %vm927_vm15 = vcmp.eq.s32.totalorder %v7946_v27, %v6259_v23 }
 0x19c   : > { %5264 = vmatprep.mubr.msk.f32.mxu1 %vm2127_vm14, %v5711_v24  ;;  %v4654_v4 = vsel %vm927_vm15, 1.0, %v5710_v5 }
 0x19d   : > { %v1991_v33 = vpop.permute.xlu1 %1990  ;;  %v1988_v38 = vpop.permute.xlu0 %1987 }
 0x19e   : > { %vm2129_vm0 = vcmp.eq.s32.totalorder %v1991_v33, %v6259_v23  ;;  %vm2128_vm1 = vcmp.eq.s32.totalorder %v1988_v38, %v6259_v23  ;;  %3140 = vperm.xlu1 %5644, %v3129_v28   ;;  %3137 = vperm.xlu0 %5643, %v3128_v32   ;;  %v3838_v32 = vld [vmem:[%s6627_s23 + $0x20] sm:$0xff]  ;;  %v3837_v33 = vld [vmem:[%s6627_s23 + $0x18] sm:$0xff] }
 0x19f   : > { %5265 = vmatmul.mubr.msk.f32.gmra.mrb[24].mxu1 %vm2128_vm1, %v5711_v24  ;;  %vm928_vm1 = vcmp.eq.s32.totalorder %v7947_v56, %v6259_v23  ;;  %v7956_v56 = vld [vmem:[#allocation20_spill] sm:$0xff] }
 0x1a0   : > { %5267 = vmatprep.mubr.msk.f32.mxu1 %vm2129_vm0, %v5711_v24  ;;  %v4655_v43 = vsel %vm928_vm1, 1.0, %v5710_v5 }
 0x1a1   : > { %v1997_v35 = vpop.permute.xlu1 %1996  ;;  %v1994_v40 = vpop.permute.xlu0 %1993 }
 0x1a2   : > { %vm2131_vm2 = vcmp.eq.s32.totalorder %v1997_v35, %v6259_v23  ;;  %vm2130_vm3 = vcmp.eq.s32.totalorder %v1994_v40, %v6259_v23  ;;  %3493 = vperm.xlu1 %5644, %v3482_v61   ;;  %3490 = vperm.xlu0 %5643, %v3481_v3   ;;  %v7949_v35 = vld [vmem:[#allocation15_spill] sm:$0xff] }
 0x1a3   : > { %5268 = vmatmul.mubr.msk.f32.gmra.mrb[26].mxu1 %vm2130_vm3, %v5711_v24  ;;  %vm929_vm3 = vcmp.eq.s32.totalorder %v7948_v48, %v6259_v23 }
 0x1a4   : > { %5270 = vmatprep.mubr.msk.f32.mxu1 %vm2131_vm2, %v5711_v24  ;;  %v4656_v38 = vsel %vm929_vm3, 1.0, %v5710_v5  ;;  %vm937_vm3 = vcmp.eq.s32.totalorder %v7956_v56, %v6259_v23 }
 0x1a5   : > { %v2003_v47 = vpop.permute.xlu1 %2002  ;;  %v2000_v22 = vpop.permute.xlu0 %1999 }
 0x1a6   : > { %vm2133_vm4 = vcmp.eq.s32.totalorder %v2003_v47, %v6259_v23  ;;  %vm2132_vm5 = vcmp.eq.s32.totalorder %v2000_v22, %v6259_v23  ;;  %3146 = vperm.xlu1 %5644, %v3131_v50   ;;  %3143 = vperm.xlu0 %5643, %v3130_v46   ;;  %v3840_v50 = vld [vmem:[%s6627_s23 + $0x30] sm:$0xff]  ;;  %v3839_v46 = vld [vmem:[%s6627_s23 + $0x28] sm:$0xff] }
 0x1a7   : > { %5271 = vmatmul.mubr.msk.f32.gmra.mrb[28].mxu1 %vm2132_vm5, %v5711_v24  ;;  %vm930_vm5 = vcmp.eq.s32.totalorder %v7949_v35, %v6259_v23 }
 0x1a8   : > { %5273 = vmatprep.mubr.msk.f32.mxu1 %vm2133_vm4, %v5711_v24  ;;  %v4657_v22 = vsel %vm930_vm5, 1.0, %v5710_v5 }
 0x1a9   : > { %v2009_v59 = vpop.permute.xlu1 %2008  ;;  %v2006_v34 = vpop.permute.xlu0 %2005 }
 0x1aa   : > { %vm2135_vm6 = vcmp.eq.s32.totalorder %v2009_v59, %v6259_v23  ;;  %vm2134_vm7 = vcmp.eq.s32.totalorder %v2006_v34, %v6259_v23  ;;  %3499 = vperm.xlu1 %5644, %v3484_v7   ;;  %3496 = vperm.xlu0 %5643, %v3483_v52   ;;  %v7950_v52 = vld [vmem:[#allocation14_spill] sm:$0xff]  ;;  %v3841_v34 = vld [vmem:[%s6627_s23 + $0x38] sm:$0xff]  ;;  %s531_s23 = scalar_lea.vmem %s7883_s10, %s4611_s25  ;;  %s487_s25 = scalar_lea.vmem [#allocation3], %s4598_s14 }
 0x1ab   : > { %5274 = vmatmul.mubr.msk.f32.gmra.mrb[30].mxu1 %vm2134_vm7, %v5711_v24  ;;  %vm931_vm7 = vcmp.eq.s32.totalorder %v7950_v52, %v6259_v23  ;;  %s4451_s16 = sshll.u32 %s487_s25, 4  ;;  %s7831_s16 = int_to_ptr.vmem [resolvable:$true] %s4451_s16 }
 0x1ac   : > { %5276 = vmatprep.mubr.msk.f32.mxu1 %vm2135_vm6, %v5711_v24  ;;  %s5645_s26 = scalar_lea.vmem %s7831_s16, 128 }
 0x1ad   : > { %v2015_v53 = vpop.permute.xlu1 %2014  ;;  %v2012_v49 = vpop.permute.xlu0 %2011  ;;  %p5646_p13 = scmp.ne.s32.totalorder %s7831_s16, %s5645_s26 }
 0x1ae   : > { %vm2137_vm8 = vcmp.eq.s32.totalorder %v2015_v53, %v6259_v23  ;;  %vm2136_vm9 = vcmp.eq.s32.totalorder %v2012_v49, %v6259_v23  ;;  %3152 = vperm.xlu1 %5644, %v3133_v2   ;;  %3149 = vperm.xlu0 %5643, %v3132_v31   ;;  %v4658_v2 = vsel %vm931_vm7, 1.0, %v5710_v5  ;;  %v7951_v49 = vld [vmem:[#allocation17_spill] sm:$0xff] }
 0x1af   : > { %5277 = vmatmul.mubr.msk.f32.gmra.mrb[32].mxu1 %vm2136_vm9, %v5711_v24  ;;  %vm932_vm9 = vcmp.eq.s32.totalorder %v7951_v49, %v6259_v23  ;;  %p5647_p0 = pnand %p5646_p13, %p5816_p5 }
 0x1b0   : > { %5279 = vmatprep.mubr.msk.f32.mxu1 %vm2137_vm8, %v5711_v24 }
 0x1b1   : > { %v2021_v8 = vpop.permute.xlu1 %2020  ;;  %v2018_v0 = vpop.permute.xlu0 %2017  ;;  %p5648_p1 = pneg %p5647_p0 }
 0x1b2   : > { %vm2139_vm11 = vcmp.eq.s32.totalorder %v2021_v8, %v6259_v23  ;;  %vm2138_vm12 = vcmp.eq.s32.totalorder %v2018_v0, %v6259_v23  ;;  %3505 = vperm.xlu1 %5644, %v3486_v63   ;;  %3502 = vperm.xlu0 %5643, %v3485_v25   ;;  %v4659_v8 = vsel %vm932_vm9, 1.0, %v5710_v5 }
 0x1b3   : > { %5280 = vmatmul.mubr.msk.f32.gmra.mrb[34].mxu1 %vm2138_vm12, %v5711_v24 }
 0x1b4   : > { %5282 = vmatprep.mubr.msk.f32.mxu1 %vm2139_vm11, %v5711_v24  ;;  %vm933_vm11 = vcmp.eq.s32.totalorder %v7952_v18, %v6259_v23 }
 0x1b5   : > { %v1276_v17 = vpop.permute.xlu1 %1275  ;;  %v2024_v12 = vpop.permute.xlu0 %2023 }
 0x1b6   : > { %v1437_v51 = vmul.f32 %v4652_v39, %v1276_v17  ;;  %vm2140_vm14 = vcmp.eq.s32.totalorder %v2024_v12, %v6259_v23  ;;  %3158 = vperm.xlu1 %5644, %v3135_v14   ;;  %3155 = vperm.xlu0 %5643, %v3134_v41   ;;  %v4660_v41 = vsel %vm933_vm11, 1.0, %v5710_v5  ;;  %v7953_v12 = vld [vmem:[#allocation19_spill] sm:$0xff] }
 0x1b7   : > { %5283 = vmatmul.mubr.msk.f32.gmra.mrb[36].mxu1 %vm2140_vm14, %v5711_v24  ;;  %vm934_vm13 = vcmp.eq.s32.totalorder %v7953_v12, %v6259_v23 }
 0x1b8   : > { %5158 = vmatmul.mubr.f32.gmra.mrb[38].mxu0 %v1437_v51 }
 0x1b9   : > { %v1281_v29 = vpop.permute.xlu1 %1280  ;;  %v2027_v42 = vpop.permute.xlu0 %2026 }
 0x1ba   : > { %v1438_v37 = vmul.f32 %v4653_v13, %v1281_v29  ;;  %vm2141_vm0 = vcmp.eq.s32.totalorder %v2027_v42, %v6259_v23  ;;  %3511 = vperm.xlu1 %5644, %v3488_v57   ;;  %3508 = vperm.xlu0 %5643, %v3487_v44   ;;  %v4661_v57 = vsel %vm934_vm13, 1.0, %v5710_v5  ;;  %v7954_v29 = vld [vmem:[#allocation18_spill] sm:$0xff] }
 0x1bb   : > { %5285 = vmatprep.mubr.msk.f32.mxu1 %vm2141_vm0, %v5711_v24  ;;  %vm935_vm15 = vcmp.eq.s32.totalorder %v7954_v29, %v6259_v23 }
 0x1bc   : > { %5160 = vmatprep.mubr.f32.mxu0 %v1438_v37  ;;  %v4662_v42 = vsel %vm935_vm15, 1.0, %v5710_v5 }
 0x1bd   : > { %v1286_v54 = vpop.permute.xlu1 %1285  ;;  %v2030_v10 = vpop.permute.xlu0 %2029 }
 0x1be   : > { %v1439_v20 = vmul.f32 %v4654_v4, %v1286_v54  ;;  %vm2142_vm2 = vcmp.eq.s32.totalorder %v2030_v10, %v6259_v23  ;;  %3848 = vperm.xlu1 %5644, %v3835_v36   ;;  %4299 = vperm.xlu0 %5643, %v4297_v19   ;;  %v7955_v36 = vld [vmem:[#allocation21_spill] sm:$0xff] }
 0x1bf   : > { %5286 = vmatmul.mubr.msk.f32.gmra.mrb[38].mxu1 %vm2142_vm2, %v5711_v24  ;;  %vm936_vm1 = vcmp.eq.s32.totalorder %v7955_v36, %v6259_v23  ;;  %v7964_v36 = vld [vmem:[#allocation28_spill] sm:$0xff] }
 0x1c0   : > { %5161 = vmatmul.mubr.f32.gmra.mrb[40].mxu0 %v1439_v20  ;;  %v4663_v54 = vsel %vm936_vm1, 1.0, %v5710_v5 }
 0x1c1   : > { %v1291_v9 = vpop.permute.xlu1 %1290  ;;  %v2033_v30 = vpop.permute.xlu0 %2032 }
 0x1c2   : > { %v1440_v28 = vmul.f32 %v4655_v43, %v1291_v9  ;;  %vm2143_vm4 = vcmp.eq.s32.totalorder %v2033_v30, %v6259_v23  ;;  %3844 = vperm.xlu1 %5644, %v3834_v58   ;;  %3852 = vperm.xlu0 %5643, %v3836_v62   ;;  %v4664_v58 = vsel %vm937_vm3, 1.0, %v5710_v5  ;;  %v7957_v43 = vld [vmem:[#allocation23_spill] sm:$0xff]  ;;  %vm945_vm3 = vcmp.eq.s32.totalorder %v7964_v36, %v6259_v23 }
 0x1c3   : > { %5288 = vmatprep.mubr.msk.f32.mxu1 %vm2143_vm4, %v5711_v24  ;;  %vm938_vm5 = vcmp.eq.s32.totalorder %v7957_v43, %v6259_v23 }
 0x1c4   : > { %5163 = vmatprep.mubr.f32.mxu0 %v1440_v28  ;;  %v4665_v28 = vsel %vm938_vm5, 1.0, %v5710_v5 }
 0x1c5   : > { %v1296_v61 = vpop.permute.xlu1 %1295  ;;  %v2036_v3 = vpop.permute.xlu0 %2035 }
 0x1c6   : > { %v1441_v40 = vmul.f32 %v4656_v38, %v1296_v61  ;;  %vm2144_vm6 = vcmp.eq.s32.totalorder %v2036_v3, %v6259_v23  ;;  %3860 = vperm.xlu1 %5644, %v3838_v32   ;;  %3856 = vperm.xlu0 %5643, %v3837_v33   ;;  %v7958_v33 = vld [vmem:[#allocation22_spill] sm:$0xff] }
 0x1c7   : > { %5289 = vmatmul.mubr.msk.f32.gmra.mrb[40].mxu1 %vm2144_vm6, %v5711_v24  ;;  %vm939_vm7 = vcmp.eq.s32.totalorder %v7958_v33, %v6259_v23 }
 0x1c8   : > { %5164 = vmatmul.mubr.f32.gmra.mrb[42].mxu0 %v1441_v40  ;;  %v4666_v61 = vsel %vm939_vm7, 1.0, %v5710_v5  ;;  %v7959_v40 = vld [vmem:[#allocation25_spill] sm:$0xff] }
 0x1c9   : > { %v1301_v47 = vpop.permute.xlu1 %1300  ;;  %v2039_v7 = vpop.permute.xlu0 %2038  ;;  %vm940_vm9 = vcmp.eq.s32.totalorder %v7959_v40, %v6259_v23 }
 0x1ca   : > { %v1442_v59 = vmul.f32 %v4657_v22, %v1301_v47  ;;  %vm2145_vm8 = vcmp.eq.s32.totalorder %v2039_v7, %v6259_v23  ;;  %3868 = vperm.xlu1 %5644, %v3840_v50   ;;  %3864 = vperm.xlu0 %5643, %v3839_v46   ;;  %v4667_v47 = vsel %vm940_vm9, 1.0, %v5710_v5  ;;  %v7960_v7 = vld [vmem:[#allocation24_spill] sm:$0xff] }
 0x1cb   : > { %5291 = vmatprep.mubr.msk.f32.mxu1 %vm2145_vm8, %v5711_v24  ;;  %vm941_vm11 = vcmp.eq.s32.totalorder %v7960_v7, %v6259_v23 }
 0x1cc   : > { %5166 = vmatprep.mubr.f32.mxu0 %v1442_v59 }
 0x1cd   : > { %v1306_v31 = vpop.permute.xlu1 %1305  ;;  %v2042_v53 = vpop.permute.xlu0 %2041 }
 0x1ce   : > { %v1443_v63 = vmul.f32 %v4658_v2, %v1306_v31  ;;  %vm2146_vm10 = vcmp.eq.s32.totalorder %v2042_v53, %v6259_v23  ;;  %3872 = vperm.xlu0 %5643, %v3841_v34   ;;  %v4668_v34 = vsel %vm941_vm11, 1.0, %v5710_v5  ;;  %v7961_v53 = vld [vmem:[#allocation27_spill] sm:$0xff] }
 0x1cf   : > { %5292 = vmatmul.mubr.msk.f32.gmra.mrb[42].mxu1 %vm2146_vm10, %v5711_v24  ;;  %vm942_vm13 = vcmp.eq.s32.totalorder %v7961_v53, %v6259_v23 }
 0x1d0   : > { %5167 = vmatmul.mubr.f32.gmra.mrb[44].mxu0 %v1443_v63 }
 0x1d1   : > { %v1311_v25 = vpop.permute.xlu1 %1310  ;;  %v2045_v0 = vpop.permute.xlu0 %2044 }
 0x1d2   : > { %v1444_v14 = vmul.f32 %v4659_v8, %v1311_v25  ;;  %vm2147_vm12 = vcmp.eq.s32.totalorder %v2045_v0, %v6259_v23  ;;  %v4669_v0 = vsel %vm942_vm13, 1.0, %v5710_v5 }
 0x1d3   : > { %5294 = vmatprep.mubr.msk.f32.mxu1 %vm2147_vm12, %v5711_v24 }
 0x1d4   : > { %5169 = vmatprep.mubr.f32.mxu0 %v1444_v14  ;;  %v7962_v14 = vld [vmem:[#allocation26_spill] sm:$0xff] }
 0x1d5   : > { %v1316_v39 = vpop.permute.xlu1 %1315  ;;  %v2048_v17 = vpop.permute.xlu0 %2047  ;;  %vm943_vm15 = vcmp.eq.s32.totalorder %v7962_v14, %v6259_v23 }
 0x1d6   : > { %v1445_v15 = vmul.f32 %v4660_v41, %v1316_v39  ;;  %vm2148_vm14 = vcmp.eq.s32.totalorder %v2048_v17, %v6259_v23  ;;  %v4670_v12 = vsel %vm943_vm15, 1.0, %v5710_v5 }
 0x1d7   : > { %5295 = vmatmul.mubr.msk.f32.gmra.mrb[44].mxu1 %vm2148_vm14, %v5711_v24 }
 0x1d8   : > { %5170 = vmatmul.mubr.f32.gmra.mrb[46].mxu0 %v1445_v15 }
 0x1d9   : > { %v1321_v51 = vpop.permute.xlu1 %1320  ;;  %v2051_v44 = vpop.permute.xlu0 %2050 }
 0x1da   : > { %v1446_v13 = vmul.f32 %v4661_v57, %v1321_v51  ;;  %vm2149_vm0 = vcmp.eq.s32.totalorder %v2051_v44, %v6259_v23  ;;  %v7963_v57 = vld [vmem:[#allocation29_spill] sm:$0xff] }
 0x1db   : > { %5297 = vmatprep.mubr.msk.f32.mxu1 %vm2149_vm0, %v5711_v24  ;;  %vm944_vm1 = vcmp.eq.s32.totalorder %v7963_v57, %v6259_v23 }
 0x1dc   : > { %5172 = vmatprep.mubr.f32.mxu0 %v1446_v13 }
 0x1dd   : > { %v1326_v27 = vpop.permute.xlu1 %1325  ;;  %v2054_v37 = vpop.permute.xlu0 %2053 }
 0x1de   : > { %v1447_v19 = vmul.f32 %v4662_v42, %v1326_v27  ;;  %vm2150_vm2 = vcmp.eq.s32.totalorder %v2054_v37, %v6259_v23  ;;  %v4671_v27 = vsel %vm944_vm1, 1.0, %v5710_v5 }
 0x1df   : > { %5298 = vmatmul.mubr.msk.f32.gmra.mrb[46].mxu1 %vm2150_vm2, %v5711_v24 }
 0x1e0   : > { %5173 = vmatmul.mubr.f32.gmra.mrb[48].mxu0 %v1447_v19 }
 0x1e1   : > { %v1331_v4 = vpop.permute.xlu1 %1330  ;;  %v2057_v10 = vpop.permute.xlu0 %2056 }
 0x1e2   : > { %v1448_v20 = vmul.f32 %v4663_v54, %v1331_v4  ;;  %vm2151_vm4 = vcmp.eq.s32.totalorder %v2057_v10, %v6259_v23  ;;  %v4672_v10 = vsel %vm945_vm3, 1.0, %v5710_v5 }
 0x1e3   : > { %5300 = vmatprep.mubr.msk.f32.mxu1 %vm2151_vm4, %v5711_v24 }
 0x1e4   : > { %5175 = vmatprep.mubr.f32.mxu0 %v1448_v20 }
 0x1e5   : > { %v1336_v62 = vpop.permute.xlu1 %1335  ;;  %v2060_v9 = vpop.permute.xlu0 %2059 }
 0x1e6   : > { %v1449_v30 = vmul.f32 %v4664_v58, %v1336_v62  ;;  %vm2152_vm6 = vcmp.eq.s32.totalorder %v2060_v9, %v6259_v23  ;;  %v7965_v58 = vld [vmem:[#allocation31_spill] sm:$0xff] }
 0x1e7   : > { %5301 = vmatmul.mubr.msk.f32.gmra.mrb[48].mxu1 %vm2152_vm6, %v5711_v24  ;;  %vm946_vm5 = vcmp.eq.s32.totalorder %v7965_v58, %v6259_v23 }
 0x1e8   : > { %5176 = vmatmul.mubr.f32.gmra.mrb[50].mxu0 %v1449_v30 }
 0x1e9   : > { %v1341_v48 = vpop.permute.xlu1 %1340  ;;  %v2063_v32 = vpop.permute.xlu0 %2062 }
 0x1ea   : > { %v1450_v38 = vmul.f32 %v4665_v28, %v1341_v48  ;;  %vm2153_vm8 = vcmp.eq.s32.totalorder %v2063_v32, %v6259_v23  ;;  %v4673_v48 = vsel %vm946_vm5, 1.0, %v5710_v5  ;;  %v7966_v32 = vld [vmem:[#allocation30_spill] sm:$0xff] }
 0x1eb   : > { %5303 = vmatprep.mubr.msk.f32.mxu1 %vm2153_vm8, %v5711_v24  ;;  %vm947_vm7 = vcmp.eq.s32.totalorder %v7966_v32, %v6259_v23 }
 0x1ec   : > { %5178 = vmatprep.mubr.f32.mxu0 %v1450_v38 }
 0x1ed   : > { %v1346_v3 = vpop.permute.xlu1 %1345  ;;  %v2066_v35 = vpop.permute.xlu0 %2065 }
 0x1ee   : > { %v1451_v50 = vmul.f32 %v4666_v61, %v1346_v3  ;;  %vm2154_vm10 = vcmp.eq.s32.totalorder %v2066_v35, %v6259_v23  ;;  %v4674_v3 = vsel %vm947_vm7, 1.0, %v5710_v5 }
 0x1ef   : > { %5304 = vmatmul.mubr.msk.f32.gmra.mrb[50].mxu1 %vm2154_vm10, %v5711_v24 }
 0x1f0   : > { %5179 = vmatmul.mubr.f32.gmra.mrb[52].mxu0 %v1451_v50  ;;  %v7967_v50 = vld [vmem:[#allocation33_spill] sm:$0xff] }
 0x1f1   : > { %v1351_v46 = vpop.permute.xlu1 %1350  ;;  %v2069_v22 = vpop.permute.xlu0 %2068  ;;  %vm948_vm9 = vcmp.eq.s32.totalorder %v7967_v50, %v6259_v23 }
 0x1f2   : > { %v1452_v52 = vmul.f32 %v4667_v47, %v1351_v46  ;;  %vm2155_vm12 = vcmp.eq.s32.totalorder %v2069_v22, %v6259_v23 }
 0x1f3   : > { %5306 = vmatprep.mubr.msk.f32.mxu1 %vm2155_vm12, %v5711_v24 }
 0x1f4   : > { %v6717_v59 = vpop.f32.mrb[0].mxu0  ;;  %5181 = vmatprep.mubr.f32.mxu0 %v1452_v52  ;;  %v4675_v52 = vsel %vm948_vm9, 1.0, %v5710_v5 }
 0x1f5   : > { %v1356_v2 = vpop.permute.xlu1 %1355  ;;  %v6720_v31 = vpop.f32.mrb[1].mxu0 }
 0x1f6   : > { %v1453_v49 = vmul.f32 %v4668_v34, %v1356_v2  ;;  %v2072_v63 = vpop.permute.xlu0 %2071  ;;  %v7968_v2 = vld [vmem:[#allocation32_spill] sm:$0xff] }
 0x1f7   : > { %vm2156_vm14 = vcmp.eq.s32.totalorder %v2072_v63, %v6259_v23  ;;  %vm949_vm11 = vcmp.eq.s32.totalorder %v7968_v2, %v6259_v23 }
 0x1f8   : > { %5307 = vmatmul.mubr.msk.f32.gmra.mrb[52].mxu1 %vm2156_vm14, %v5711_v24  ;;  %v6726_v25 = vpop.f32.mrb[2].mxu0  ;;  %5182 = vmatmul.mubr.f32.gmra.mrb[54].mxu0 %v1453_v49 }
 0x1f9   : > { %v1361_v8 = vpop.permute.xlu1 %1360  ;;  %v6729_v18 = vpop.f32.mrb[3].mxu0 }
 0x1fa   : > { %v1454_v41 = vmul.f32 %v4669_v0, %v1361_v8  ;;  %v2075_v39 = vpop.permute.xlu0 %2074  ;;  %v4676_v8 = vsel %vm949_vm11, 1.0, %v5710_v5 }
 0x1fb   : > { %vm2157_vm0 = vcmp.eq.s32.totalorder %v2075_v39, %v6259_v23 }
 0x1fc   : > { %5309 = vmatprep.mubr.msk.f32.mxu1 %vm2157_vm0, %v5711_v24  ;;  %v6735_v17 = vpop.f32.mrb[4].mxu0  ;;  %5184 = vmatprep.mubr.f32.mxu0 %v1454_v41 }
 0x1fd   : > { %v1366_v15 = vpop.permute.xlu1 %1365  ;;  %v6738_v51 = vpop.f32.mrb[5].mxu0 }
 0x1fe   : > { %v1455_v44 = vmul.f32 %v4670_v12, %v1366_v15  ;;  %v2078_v29 = vpop.permute.xlu0 %2077 }
 0x1ff   : > { %vm2158_vm2 = vcmp.eq.s32.totalorder %v2078_v29, %v6259_v23 }
 0x200   : > { %5310 = vmatmul.mubr.msk.f32.gmra.mrb[54].mxu1 %vm2158_vm2, %v5711_v24  ;;  %v6744_v13 = vpop.f32.mrb[6].mxu0  ;;  %5185 = vmatmul.mubr.f32.gmra.mrb[56].mxu0 %v1455_v44 }
 0x201   : > { %v1371_v42 = vpop.permute.xlu1 %1370  ;;  %v6747_v37 = vpop.f32.mrb[7].mxu0 }
 0x202   : > { %v1456_v19 = vmul.f32 %v4671_v27, %v1371_v42  ;;  %v2081_v4 = vpop.permute.xlu0 %2080 }
 0x203   : > { %vm2159_vm4 = vcmp.eq.s32.totalorder %v2081_v4, %v6259_v23 }
 0x204   : > { %5312 = vmatprep.mubr.msk.f32.mxu1 %vm2159_vm4, %v5711_v24  ;;  %v6753_v54 = vpop.f32.mrb[8].mxu0  ;;  %5187 = vmatprep.mubr.f32.mxu0 %v1456_v19 }
 0x205   : > { %v1376_v56 = vpop.permute.xlu1 %1375  ;;  %v6756_v20 = vpop.f32.mrb[9].mxu0 }
 0x206   : > { %v1457_v62 = vmul.f32 %v4672_v10, %v1376_v56  ;;  %v2084_v9 = vpop.permute.xlu0 %2083 }
 0x207   : > { %vm2160_vm6 = vcmp.eq.s32.totalorder %v2084_v9, %v6259_v23 }
 0x208   : > { %5313 = vmatmul.mubr.msk.f32.gmra.mrb[56].mxu1 %vm2160_vm6, %v5711_v24  ;;  %v6762_v43 = vpop.f32.mrb[10].mxu0  ;;  %5188 = vmatmul.mubr.f32.gmra.mrb[58].mxu0 %v1457_v62 }
 0x209   : > { %v1381_v30 = vpop.permute.xlu1 %1380  ;;  %v6765_v28 = vpop.f32.mrb[11].mxu0 }
 0x20a   : > { %v1458_v33 = vmul.f32 %v4673_v48, %v1381_v30  ;;  %v2087_v38 = vpop.permute.xlu0 %2086 }
 0x20b   : > { %vm2161_vm8 = vcmp.eq.s32.totalorder %v2087_v38, %v6259_v23 }
 0x20c   : > { %5315 = vmatprep.mubr.msk.f32.mxu1 %vm2161_vm8, %v5711_v24  ;;  %v6771_v61 = vpop.f32.mrb[12].mxu0  ;;  %5190 = vmatprep.mubr.f32.mxu0 %v1458_v33 }
 0x20d   : > { %v1386_v35 = vpop.permute.xlu1 %1385  ;;  %v6774_v40 = vpop.f32.mrb[13].mxu0 }
 0x20e   : > { %v1459_v46 = vmul.f32 %v4674_v3, %v1386_v35  ;;  %v2090_v47 = vpop.permute.xlu0 %2089 }
 0x20f   : > { %vm2162_vm10 = vcmp.eq.s32.totalorder %v2090_v47, %v6259_v23 }
 0x210   : > { %5316 = vmatmul.mubr.msk.f32.gmra.mrb[58].mxu1 %vm2162_vm10, %v5711_v24  ;;  %v6780_v22 = vpop.f32.mrb[14].mxu0  ;;  %5191 = vmatmul.mubr.f32.gmra.mrb[60].mxu0 %v1459_v46 }
 0x211   : > { %v1391_v7 = vpop.permute.xlu1 %1390  ;;  %v6783_v34 = vpop.f32.mrb[15].mxu0 }
 0x212   : > { %v1460_v53 = vmul.f32 %v4675_v52, %v1391_v7  ;;  %v2093_v49 = vpop.permute.xlu0 %2092 }
 0x213   : > { %vm2163_vm12 = vcmp.eq.s32.totalorder %v2093_v49, %v6259_v23 }
 0x214   : > { %5318 = vmatprep.mubr.msk.f32.mxu1 %vm2163_vm12, %v5711_v24  ;;  %v6789_v63 = vpop.f32.mrb[16].mxu0  ;;  %5193 = vmatprep.mubr.f32.mxu0 %v1460_v53 }
 0x215   : > { %v1396_v0 = vpop.permute.xlu1 %1395  ;;  %v6792_v14 = vpop.f32.mrb[17].mxu0 }
 0x216   : > { %v1461_v41 = vmul.f32 %v4676_v8, %v1396_v0  ;;  %v2096_v39 = vpop.permute.xlu0 %2095 }
 0x217   : > { %vm2164_vm13 = vcmp.eq.s32.totalorder %v2096_v39, %v6259_v23 }
 0x218   : > { %5319 = vmatmul.mubr.msk.f32.gmra.mrb[60].mxu1 %vm2164_vm13, %v5711_v24  ;;  %v6796_v12 = vpop.f32.mrb[18].mxu0  ;;  %5194 = vmatmul.mubr.f32.gmra.mrb[62].mxu0 %v1461_v41 }
 0x219   : > { %v2102_v15 = vpop.permute.xlu1 %2101  ;;  %v6798_v57 = vpop.f32.mrb[19].mxu0 }
 0x21a   : > { %vm2166_vm14 = vcmp.eq.s32.totalorder %v2102_v15, %v6259_v23  ;;  %v2099_v44 = vpop.permute.xlu0 %2098 }
 0x21b   : > { %vm2165_vm15 = vcmp.eq.s32.totalorder %v2099_v44, %v6259_v23 }
 0x21c   : > { %5321 = vmatprep.mubr.msk.f32.mxu1 %vm2165_vm15, %v5711_v24  ;;  %v6803_v29 = vpop.f32.mrb[20].mxu0  ;;  %vm5713_vm15 = vmmov 0  }
 0x21d   : > { %5322 = vmatmul.mubr.msk.f32.gmra.mrb[62].mxu1 %vm2166_vm14, %v5711_v24  ;;  %v3141_v42 = vpop.permute.xlu1 %3140  ;;  %v6806_v27 = vpop.f32.mrb[21].mxu0 }
 0x21e   : > { %vm3161_vm0 = vcmp.eq.s32.totalorder %v3141_v42, %v6259_v23  ;;  %v3138_v36 = vpop.permute.xlu0 %3137 }
 0x21f   : > { %vm3160_vm1 = vcmp.eq.s32.totalorder %v3138_v36, %v6259_v23 }
 0x220   : > { %5356 = vmatprep.mubr.msk.f32.mxu0 %vm3160_vm1, %v5711_v24  ;;  %v6811_v19 = vpop.f32.mrb[22].mxu0 }
 0x221   : > { %5357 = vmatmul.mubr.msk.f32.vlgmr.msra.gmra.mrb[64].mxu0 %vm3161_vm0, %v5711_v24  ;;  %v3494_v4 = vpop.permute.xlu1 %3493  ;;  %v6814_v10 = vpop.f32.mrb[23].mxu0 }
 0x222   : > { %5577 = vmatpush3.bf16.msra.mxu0 %v5893_v55  ;;  %vm3514_vm2 = vcmp.eq.s32.totalorder %v3494_v4, %v6259_v23  ;;  %v3491_v56 = vpop.permute.xlu0 %3490 }
 0x223   : > { %vm3513_vm3 = vcmp.eq.s32.totalorder %v3491_v56, %v6259_v23  ;;  %5578 = vmatprep.subr.bf16.mxu0 %v5712_v45 }
 0x224   : > { %5400 = vmatprep.mubr.msk.f32.mxu1 %vm3513_vm3, %v5711_v24  ;;  %v6821_v58 = vpop.f32.mrb[24].mxu0  ;;  %vm4126_vm3 = vcmask 1042434  }
 0x225   : > { %5401 = vmatmul.mubr.msk.f32.vlgmr.msra.gmra.mrb[64].mxu1 %vm3514_vm2, %v5711_v24  ;;  %v3147_v62 = vpop.permute.xlu1 %3146  ;;  %v6824_v9 = vpop.f32.mrb[25].mxu0  ;;  %vm4123_vm2 = vcmask 1041409  }
 0x226   : > { %5580 = vmatpush3.bf16.msra.mxu0 %v5905_v60  ;;  %vm3163_vm4 = vcmp.eq.s32.totalorder %v3147_v62, %v6259_v23  ;;  %v3144_v55 = vpop.permute.xlu0 %3143 }
 0x227   : > { %vm3162_vm5 = vcmp.eq.s32.totalorder %v3144_v55, %v6259_v23  ;;  %5581 = vmatprep.subr.bf16.mxu0 %v5712_v45 }
 0x228   : > { %5359 = vmatprep.mubr.msk.f32.mxu0 %vm3162_vm5, %v5711_v24  ;;  %v6831_v30 = vpop.f32.mrb[26].mxu0  ;;  %vm4132_vm5 = vcmask 1044484  }
 0x229   : > { %5360 = vmatmul.mubr.msk.f32.gmra.mrb[66].mxu0 %vm3163_vm4, %v5711_v24  ;;  %v3500_v48 = vpop.permute.xlu1 %3499  ;;  %v6834_v32 = vpop.f32.mrb[27].mxu0  ;;  %vm4129_vm4 = vcmask 1043459  }
 0x22a   : > { %5583 = vmatpush3.bf16.msra.mxu0 %v5917_v1  ;;  %vm3516_vm6 = vcmp.eq.s32.totalorder %v3500_v48, %v6259_v23  ;;  %v3497_v60 = vpop.permute.xlu0 %3496 }
 0x22b   : > { %vm3515_vm7 = vcmp.eq.s32.totalorder %v3497_v60, %v6259_v23  ;;  %5584 = vmatprep.subr.bf16.mxu0 %v5712_v45 }
 0x22c   : > { %5403 = vmatprep.mubr.msk.f32.mxu1 %vm3515_vm7, %v5711_v24  ;;  %v6841_v33 = vpop.f32.mrb[28].mxu0  ;;  %vm4138_vm7 = vcmask 1046534  }
 0x22d   : > { %5404 = vmatmul.mubr.msk.f32.gmra.mrb[66].mxu1 %vm3516_vm6, %v5711_v24  ;;  %v3153_v38 = vpop.permute.xlu1 %3152  ;;  %v6844_v3 = vpop.f32.mrb[29].mxu0  ;;  %vm4135_vm6 = vcmask 1045509  }
 0x22e   : > { %5586 = vmatpush3.bf16.msra.mxu0 %v5929_v6  ;;  %vm3165_vm8 = vcmp.eq.s32.totalorder %v3153_v38, %v6259_v23  ;;  %v3150_v1 = vpop.permute.xlu0 %3149 }
 0x22f   : > { %vm3164_vm9 = vcmp.eq.s32.totalorder %v3150_v1, %v6259_v23  ;;  %5587 = vmatprep.subr.bf16.mxu0 %v5712_v45 }
 0x230   : > { %5362 = vmatprep.mubr.msk.f32.mxu0 %vm3164_vm9, %v5711_v24  ;;  %v6851_v35 = vpop.f32.mrb[30].mxu0 }
 0x231   : > { %5363 = vmatmul.mubr.msk.f32.gmra.mrb[68].mxu0 %vm3165_vm8, %v5711_v24  ;;  %v3506_v50 = vpop.permute.xlu1 %3505  ;;  %v6854_v46 = vpop.f32.mrb[31].mxu0  ;;  %vm4141_vm8 = vcmask 1047559  }
 0x232   : > { %5589 = vmatpush3.bf16.msra.mxu0 %v5941_v11  ;;  %vm3518_vm10 = vcmp.eq.s32.totalorder %v3506_v50, %v6259_v23  ;;  %v3503_v6 = vpop.permute.xlu0 %3502 }
 0x233   : > { %vm3517_vm11 = vcmp.eq.s32.totalorder %v3503_v6, %v6259_v23  ;;  %5590 = vmatprep.subr.bf16.mxu0 %v5712_v45 }
 0x234   : > { %5406 = vmatprep.mubr.msk.f32.mxu1 %vm3517_vm11, %v5711_v24  ;;  %v6861_v47 = vpop.f32.mrb[32].mxu0 }
 0x235   : > { %5407 = vmatmul.mubr.msk.f32.gmra.mrb[68].mxu1 %vm3518_vm10, %v5711_v24  ;;  %v3159_v7 = vpop.permute.xlu1 %3158  ;;  %v6864_v52 = vpop.f32.mrb[33].mxu0 }
 0x236   : > { %5592 = vmatpush3.bf16.msra.mxu0 %v5953_v16  ;;  %vm3167_vm12 = vcmp.eq.s32.totalorder %v3159_v7, %v6259_v23  ;;  %v3156_v11 = vpop.permute.xlu0 %3155 }
 0x237   : > { %vm3166_vm13 = vcmp.eq.s32.totalorder %v3156_v11, %v6259_v23  ;;  %5593 = vmatprep.subr.bf16.mxu0 %v5712_v45 }
 0x238   : > { %5365 = vmatprep.mubr.msk.f32.mxu0 %vm3166_vm13, %v5711_v24  ;;  %v6871_v2 = vpop.f32.mrb[34].mxu0 }
 0x239   : > { %5366 = vmatmul.mubr.msk.f32.gmra.mrb[70].mxu0 %vm3167_vm12, %v5711_v24  ;;  %v3512_v53 = vpop.permute.xlu1 %3511  ;;  %v6874_v49 = vpop.f32.mrb[35].mxu0 }
 0x23a   : > { %5595 = vmatpush3.bf16.msra.mxu0 %v5965_v21  ;;  %vm3520_vm14 = vcmp.eq.s32.totalorder %v3512_v53, %v6259_v23  ;;  %v3509_v16 = vpop.permute.xlu0 %3508  ;;  %5444 = vmatprep.mubr.msk.f32.mxu0 %vm5713_vm15, %v5710_v5 }
 0x23b   : > { %vm3519_vm0 = vcmp.eq.s32.totalorder %v3509_v16, %v6259_v23  ;;  %5596 = vmatprep.subr.bf16.mxu0 %v5712_v45 }
 0x23c   : > { %5409 = vmatprep.mubr.msk.f32.mxu1 %vm3519_vm0, %v5711_v24  ;;  %v6882_v8 = vpop.f32.mrb[36].mxu0 }
 0x23d   : > { %5410 = vmatmul.mubr.msk.f32.gmra.mrb[70].mxu1 %vm3520_vm14, %v5711_v24  ;;  %v6885_v0 = vpop.f32.mrb[37].mxu0 }
 0x23e   : > { %5598 = vmatpush3.bf16.msra.mxu0 %v5983_v26  ;;  %v4300_v21 = vpop.permute.xlu0 %4299 }
 0x23f   : > { %vm4301_vm1 = vcmp.eq.s32.totalorder %v4300_v21, %v6259_v23 }
 0x241   : > { %5445 = vmatmul.mubr.msk.f32.vlgmr.msra.gmra.mrb[72].mxu0 %vm4301_vm1, %v5711_v24 }
 0x242   : > { %v5230_v5 = vpop.f32.mrb[0].mxu1 }
 0x243   : > { %v2361_v41 = vpop.f32.mrb[1].mxu1  ;;  %v6891_v39 = vmul.f32 %v5230_v5, %v6717_v59 }
 0x244   : > { %v6894_v45 = vmul.f32 %v2361_v41, %v6720_v31 }
 0x246   : > { %v5233_v15 = vpop.f32.mrb[2].mxu1 }
 0x247   : > { %v2371_v44 = vpop.f32.mrb[3].mxu1  ;;  %v6897_v42 = vmul.f32 %v5233_v15, %v6726_v25 }
 0x248   : > { %v6900_v26 = vmul.f32 %v2371_v44, %v6729_v18 }
 0x24a   : > { %v5236_v36 = vpop.f32.mrb[4].mxu1 }
 0x24b   : > { %v2381_v23 = vpop.f32.mrb[5].mxu1  ;;  %v6903_v56 = vmul.f32 %v5236_v36, %v6735_v17 }
 0x24c   : > { %v6906_v59 = vmul.f32 %v2381_v23, %v6738_v51 }
 0x24e   : > { %v5239_v4 = vpop.f32.mrb[6].mxu1 }
 0x24f   : > { %v2391_v24 = vpop.f32.mrb[7].mxu1  ;;  %v6909_v55 = vmul.f32 %v5239_v4, %v6744_v13 }
 0x250   : > { %v6912_v48 = vmul.f32 %v2391_v24, %v6747_v37  ;;  %v6976_v24 = vpop.permute.xlu1 %3848 }
 0x251   : > { %7969 = vst [vmem:[#allocation6_spill] sm:$0xff] %v6976_v24 }
 0x252   : > { %v5242_v31 = vpop.f32.mrb[8].mxu1 }
 0x253   : > { %v2401_v62 = vpop.f32.mrb[9].mxu1  ;;  %v6915_v18 = vmul.f32 %v5242_v31, %v6753_v54 }
 0x254   : > { %v6918_v60 = vmul.f32 %v2401_v62, %v6756_v20 }
 0x256   : > { %v5245_v25 = vpop.f32.mrb[10].mxu1 }
 0x257   : > { %v2411_v17 = vpop.f32.mrb[11].mxu1  ;;  %v6921_v38 = vmul.f32 %v5245_v25, %v6762_v43 }
 0x258   : > { %v6924_v51 = vmul.f32 %v2411_v17, %v6765_v28  ;;  %v6988_v17 = vpop.permute.xlu1 %3844 }
 0x259   : > { %7970 = vst [vmem:[#allocation7_spill] sm:$0xff] %v6988_v17 }
 0x25a   : > { %v5248_v1 = vpop.f32.mrb[12].mxu1 }
 0x25b   : > { %v2421_v13 = vpop.f32.mrb[13].mxu1  ;;  %v6927_v37 = vmul.f32 %v5248_v1, %v6771_v61 }
 0x25c   : > { %v6930_v54 = vmul.f32 %v2421_v13, %v6774_v40  ;;  %v6993_v13 = vstv %s4402_s17  ;;  %s7829_s17 = scalar_lea.hbm %s7884_s11, %s4840_s18 }
 0x25d   : > { %7971 = vst [vmem:[#allocation9_spill] sm:$0xff] %v6993_v13  ;;  %v2792_v13 = vrot.slane %v6918_v60, 4 }
 0x25e   : > { %v5251_v50 = vpop.f32.mrb[14].mxu1 }
 0x25f   : > { %v2431_v6 = vpop.f32.mrb[15].mxu1  ;;  %v6933_v20 = vmul.f32 %v5251_v50, %v6780_v22  ;;  %v6995_v50 = vpop.permute.xlu0 %3852 }
 0x260   : > { %v6936_v43 = vmul.f32 %v2431_v6, %v6783_v34  ;;  %7972 = vst [vmem:[#allocation8_spill] sm:$0xff] %v6995_v50 }
 0x262   : > { %v5254_v7 = vpop.f32.mrb[16].mxu1 }
 0x263   : > { %v2441_v11 = vpop.f32.mrb[17].mxu1  ;;  %v6939_v28 = vmul.f32 %v5254_v7, %v6789_v63  ;;  %v2798_v7 = vrot.slane %v6915_v18, 4 }
 0x264   : > { %v6942_v53 = vmul.f32 %v2441_v11, %v6792_v14  ;;  %v2780_v11 = vrot.slane %v6912_v48, 4 }
 0x266   : > { %v5257_v16 = vpop.f32.mrb[18].mxu1 }
 0x267   : > { %v2451_v61 = vpop.f32.mrb[19].mxu1  ;;  %v6945_v21 = vmul.f32 %v5257_v16, %v6796_v12  ;;  %v2786_v16 = vrot.slane %v6909_v55, 4 }
 0x268   : > { %v6948_v40 = vmul.f32 %v2451_v61, %v6798_v57 }
 0x269   : > { %v2787_v24 = vadd.f32 %v2786_v16, %v6909_v55  ;;  %v2822_v55 = vrot.slane %v6927_v37, 4 }
 0x26a   : > { %v5260_v22 = vpop.f32.mrb[20].mxu1 }
 0x26b   : > { %v2461_v5 = vpop.f32.mrb[21].mxu1  ;;  %v6951_v41 = vmul.f32 %v5260_v22, %v6803_v29 }
 0x26c   : > { %v6954_v34 = vmul.f32 %v2461_v5, %v6806_v27 }
 0x26e   : > { %v5263_v63 = vpop.f32.mrb[22].mxu1 }
 0x26f   : > { %v2471_v15 = vpop.f32.mrb[23].mxu1  ;;  %v6957_v14 = vmul.f32 %v5263_v63, %v6811_v19 }
 0x270   : > { %v6960_v12 = vmul.f32 %v2471_v15, %v6814_v10 }
 0x272   : > { %v5266_v44 = vpop.f32.mrb[24].mxu1 }
 0x273   : > { %v6963_v57 = vmul.f32 %v5266_v44, %v6821_v58  ;;  %v2481_v36 = vpop.f32.mrb[25].mxu1 }
 0x274   : > { %v6966_v23 = vmul.f32 %v2481_v36, %v6824_v9 }
 0x276   : > { %v5269_v29 = vpop.f32.mrb[26].mxu1 }
 0x277   : > { %v2491_v27 = vpop.f32.mrb[27].mxu1  ;;  %v6971_v4 = vmul.f32 %v5269_v29, %v6831_v30 }
 0x278   : > { %v6974_v19 = vmul.f32 %v2491_v27, %v6834_v32 }
 0x27a   : > { %v5272_v10 = vpop.f32.mrb[28].mxu1 }
 0x27b   : > { %v2501_v58 = vpop.f32.mrb[29].mxu1  ;;  %v6979_v31 = vmul.f32 %v5272_v10, %v6841_v33  ;;  %v2750_v33 = vrot.slane %v6891_v39, 4 }
 0x27c   : > { %v6982_v9 = vmul.f32 %v2501_v58, %v6844_v3  ;;  %v2744_v3 = vrot.slane %v6894_v45, 4 }
 0x27d   : > { %v2751_v58 = vadd.f32 %v2750_v33, %v6891_v39  ;;  %v7034_v33 = vpop.permute.xlu0 %3856 }
 0x27e   : > { %v5275_v62 = vpop.f32.mrb[30].mxu1  ;;  %7974 = vst [vmem:[#allocation10_spill] sm:$0xff] %v7034_v33 }
 0x27f   : > { %v6986_v25 = vmul.f32 %v5275_v62, %v6851_v35  ;;  %v2511_v30 = vpop.f32.mrb[31].mxu1  ;;  %v2745_v62 = vadd.f32 %v2744_v3, %v6894_v45  ;;  %v2762_v45 = vrot.slane %v6897_v42, 4 }
 0x280   : > { %v6991_v32 = vmul.f32 %v2511_v30, %v6854_v46  ;;  %v7020_v30 = vpop.permute.xlu1 %3860 }
 0x281   : > { %7973 = vst [vmem:[#allocation11_spill] sm:$0xff] %v7020_v30  ;;  %v7062_v46 = vpop.permute.xlu0 %3864  ;;  %v2763_v27 = vadd.f32 %v2762_v45, %v6897_v42  ;;  %v2774_v42 = vrot.slane %v6903_v56, 4 }
 0x282   : > { %v5278_v1 = vpop.f32.mrb[32].mxu1  ;;  %7976 = vst [vmem:[#allocation12_spill] sm:$0xff] %v7062_v46 }
 0x283   : > { %v7000_v6 = vmul.f32 %v5278_v1, %v6861_v47  ;;  %v2521_v35 = vpop.f32.mrb[33].mxu1  ;;  %v2746_v1 = vrot.slane %v2745_v62, 2  ;;  %v2756_v47 = vrot.slane %v6900_v26, 4  ;;  %v2775_v30 = vadd.f32 %v2774_v42, %v6903_v56 }
 0x284   : > { %v7010_v63 = vmul.f32 %v2521_v35, %v6864_v52  ;;  %v7054_v22 = vpop.permute.xlu1 %3868 }
 0x285   : > { %7975 = vst [vmem:[#allocation13_spill] sm:$0xff] %v7054_v22  ;;  %v2757_v10 = vadd.f32 %v2756_v47, %v6900_v26  ;;  %v2768_v26 = vrot.slane %v6906_v59, 4  ;;  %v7095_v17 = vpop.permute.xlu0 %3872 }
 0x286   : > { %v5281_v29 = vpop.f32.mrb[34].mxu1  ;;  %7979 = vst [vmem:[#allocation17_spill] sm:$0xff] %v7095_v17 }
 0x287   : > { %v2531_v52 = vpop.f32.mrb[35].mxu1  ;;  %v7025_v44 = vmul.f32 %v5281_v29, %v6871_v2  ;;  %v2758_v35 = vrot.slane %v2757_v10, 2  ;;  %v2769_v50 = vadd.f32 %v2768_v26, %v6906_v59  ;;  %v2781_v59 = vadd.f32 %v2780_v11, %v6912_v48 }
 0x288   : > { %v7028_v36 = vmul.f32 %v2531_v52, %v6874_v49  ;;  %v2752_v52 = vrot.slane %v2751_v58, 2 }
 0x289   : > { %v2759_v56 = vadd.f32 %v2758_v35, %v2757_v10  ;;  %v2770_v42 = vrot.slane %v2769_v50, 2  ;;  %v2782_v26 = vrot.slane %v2781_v59, 2 }
 0x28a   : > { %v5284_v49 = vpop.f32.mrb[36].mxu1 }
 0x28b   : > { %v5159_v39 = vpop.f32.mrb[38].mxu0  ;;  %v2541_v15 = vpop.f32.mrb[37].mxu1  ;;  %v7045_v3 = vmul.f32 %v5284_v49, %v6882_v8  ;;  %v2747_v49 = vadd.f32 %v2746_v1, %v2745_v62 }
 0x28c   : > { %v7048_v2 = vmul.f32 %v2541_v15, %v6885_v0  ;;  %v1718_v29 = vpop.f32.mrb[39].mxu0  ;;  %v2753_v15 = vadd.f32 %v2752_v52, %v2751_v58  ;;  %v2764_v58 = vrot.slane %v2763_v27, 2 }
 0x28d   : > { %v2748_v61 = vrot.slane %v2747_v49, 1 }
 0x28e   : > { %v2754_v45 = vrot.slane %v2753_v15, 1 }
 0x28f   : > { %v7092_v1 = vadd.f32 %v2748_v61, %v2747_v49  ;;  %v2793_v61 = vadd.f32 %v2792_v13, %v6918_v60  ;;  %v2776_v49 = vrot.slane %v2775_v30, 2 }
 0x290   : > { %v7090_v62 = vadd.f32 %v2754_v45, %v2753_v15  ;;  %v2799_v15 = vadd.f32 %v2798_v7, %v6915_v18  ;;  %v2816_v45 = vrot.slane %v6930_v54, 4 }
 0x291   : > { %7978 = vst [vmem:[#allocation14_spill] sm:$0xff] %v7092_v1  ;;  %v2794_v33 = vrot.slane %v2793_v61, 2  ;;  %v2760_v1 = vrot.slane %v2759_v56, 1 }
 0x292   : > { %v5287_v47 = vpop.f32.mrb[38].mxu1  ;;  %7977 = vst [vmem:[#allocation15_spill] sm:$0xff] %v7090_v62  ;;  %v2777_v62 = vadd.f32 %v2776_v49, %v2775_v30  ;;  %v2834_v30 = vrot.slane %v6933_v20, 4 }
 0x293   : > { %v7077_v8 = vmul.f32 %v5287_v47, %v5159_v39  ;;  %v5162_v0 = vpop.f32.mrb[40].mxu0  ;;  %v2551_v5 = vpop.f32.mrb[39].mxu1  ;;  %v2810_v39 = vrot.slane %v6921_v38, 4  ;;  %v2804_v47 = vrot.slane %v6924_v51, 4  ;;  %v7131_v17 = vadd.f32 %v2760_v1, %v2759_v56 }
 0x294   : > { %v1728_v52 = vpop.f32.mrb[41].mxu0  ;;  %v7084_v22 = vmul.f32 %v2551_v5, %v1718_v29  ;;  %v2765_v5 = vadd.f32 %v2764_v58, %v2763_v27  ;;  %v2788_v58 = vrot.slane %v2787_v24, 2  ;;  %v2800_v27 = vrot.slane %v2799_v15, 2 }
 0x295   : > { %v2811_v60 = vadd.f32 %v2810_v39, %v6921_v38  ;;  %v2805_v13 = vadd.f32 %v2804_v47, %v6924_v51  ;;  %v2817_v38 = vadd.f32 %v2816_v45, %v6930_v54  ;;  %v2828_v54 = vrot.slane %v6936_v43, 4  ;;  %7984 = vst [vmem:[#allocation20_spill] sm:$0xff] %v7131_v17 }
 0x296   : > { %v2766_v46 = vrot.slane %v2765_v5, 1  ;;  %v2801_v35 = vadd.f32 %v2800_v27, %v2799_v15  ;;  %v2835_v27 = vadd.f32 %v2834_v30, %v6933_v20  ;;  %v2858_v20 = vrot.slane %v6945_v21, 4 }
 0x297   : > { %v2812_v39 = vrot.slane %v2811_v60, 2  ;;  %v2806_v47 = vrot.slane %v2805_v13, 2  ;;  %v2912_v17 = vrot.slane %v6982_v9, 4 }
 0x299   : > { %v2813_v18 = vadd.f32 %v2812_v39, %v2811_v60 }
 0x29a   : > { %v5290_v16 = vpop.f32.mrb[40].mxu1 }
 0x29b   : > { %v7108_v29 = vmul.f32 %v5290_v16, %v5162_v0  ;;  %v5165_v10 = vpop.f32.mrb[42].mxu0  ;;  %v2561_v48 = vpop.f32.mrb[41].mxu1  ;;  %v2771_v0 = vadd.f32 %v2770_v42, %v2769_v50  ;;  %v2823_v16 = vadd.f32 %v2822_v55, %v6927_v37  ;;  %v7122_v50 = vadd.f32 %v2766_v46, %v2765_v5 }
 0x29c   : > { %v7113_v7 = vmul.f32 %v2561_v48, %v1728_v52  ;;  %v1738_v11 = vpop.f32.mrb[43].mxu0  ;;  %v2783_v48 = vadd.f32 %v2782_v26, %v2781_v59  ;;  %v2778_v37 = vrot.slane %v2777_v62, 1  ;;  %v2807_v59 = vadd.f32 %v2806_v47, %v2805_v13 }
 0x29d   : > { %7980 = vst [vmem:[#allocation16_spill] sm:$0xff] %v7108_v29  ;;  %v2789_v29 = vadd.f32 %v2788_v58, %v2787_v24  ;;  %7982 = vst [vmem:[#allocation18_spill] sm:$0xff] %v7122_v50  ;;  %v2772_v49 = vrot.slane %v2771_v0, 1  ;;  %v2824_v42 = vrot.slane %v2823_v16, 2  ;;  %v2818_v58 = vrot.slane %v2817_v38, 2 }
 0x29e   : > { %7981 = vst [vmem:[#allocation19_spill] sm:$0xff] %v7113_v7  ;;  %v2795_v7 = vadd.f32 %v2794_v33, %v2793_v61  ;;  %v2846_v33 = vrot.slane %v6939_v28, 4  ;;  %v2784_v5 = vrot.slane %v2783_v48, 1  ;;  %v2802_v61 = vrot.slane %v2801_v35, 1 }
 0x29f   : > { %v2790_v24 = vrot.slane %v2789_v29, 1  ;;  %v7133_v50 = vadd.f32 %v2778_v37, %v2777_v62  ;;  %v2819_v13 = vadd.f32 %v2818_v58, %v2817_v38  ;;  %v2808_v39 = vrot.slane %v2807_v59, 1 }
 0x2a0   : > { %v2796_v26 = vrot.slane %v2795_v7, 1  ;;  %v2847_v47 = vadd.f32 %v2846_v33, %v6939_v28  ;;  %v7143_v1 = vadd.f32 %v2784_v5, %v2783_v48  ;;  %v7145_v62 = vadd.f32 %v2802_v61, %v2801_v35 }
 0x2a1   : > { %7985 = vst [vmem:[#allocation23_spill] sm:$0xff] %v7133_v50  ;;  %v7138_v60 = vadd.f32 %v2790_v24, %v2789_v29  ;;  %v2852_v38 = vrot.slane %v6948_v40, 4  ;;  %v2820_v37 = vrot.slane %v2819_v13, 1  ;;  %v2864_v28 = vrot.slane %v6954_v34, 4 }
 0x2a2   : > { %v5293_v55 = vpop.f32.mrb[42].mxu1  ;;  %7988 = vst [vmem:[#allocation24_spill] sm:$0xff] %v7143_v1  ;;  %v7147_v56 = vadd.f32 %v2796_v26, %v2795_v7  ;;  %v2848_v24 = vrot.slane %v2847_v47, 2  ;;  %v2859_v7 = vadd.f32 %v2858_v20, %v6945_v21  ;;  %v2882_v58 = vrot.slane %v6957_v14, 4 }
 0x2a3   : > { %v7125_v45 = vmul.f32 %v5293_v55, %v5165_v10  ;;  %v5168_v52 = vpop.f32.mrb[44].mxu0  ;;  %v2571_v51 = vpop.f32.mrb[43].mxu1  ;;  %v2825_v10 = vadd.f32 %v2824_v42, %v2823_v16  ;;  %v2840_v55 = vrot.slane %v6942_v53, 4  ;;  %7987 = vst [vmem:[#allocation25_spill] sm:$0xff] %v7138_v60  ;;  %v2836_v16 = vrot.slane %v2835_v27, 2 }
 0x2a4   : > { %v7128_v15 = vmul.f32 %v2571_v51, %v1738_v11  ;;  %v1748_v46 = vpop.f32.mrb[45].mxu0  ;;  %v2829_v11 = vadd.f32 %v2828_v54, %v6936_v43  ;;  %v2814_v51 = vrot.slane %v2813_v18, 1  ;;  %v2870_v43 = vrot.slane %v6951_v41, 4 }
 0x2a5   : > { %7983 = vst [vmem:[#allocation21_spill] sm:$0xff] %v7125_v45  ;;  %v7136_v45 = vadd.f32 %v2772_v49, %v2771_v0  ;;  %v2826_v0 = vrot.slane %v2825_v10, 1  ;;  %v2841_v29 = vadd.f32 %v2840_v55, %v6942_v53  ;;  %v2837_v33 = vadd.f32 %v2836_v16, %v2835_v27 }
 0x2a6   : > { %v2830_v49 = vrot.slane %v2829_v11, 2  ;;  %v2876_v5 = vrot.slane %v6960_v12, 4  ;;  %v2894_v61 = vrot.slane %v6963_v57, 4  ;;  %v2888_v26 = vrot.slane %v6966_v23, 4 }
 0x2a7   : > { %7986 = vst [vmem:[#allocation22_spill] sm:$0xff] %v7136_v45  ;;  %v7162_v55 = vadd.f32 %v2814_v51, %v2813_v18  ;;  %v2871_v60 = vadd.f32 %v2870_v43, %v6951_v41  ;;  %v7166_v21 = vadd.f32 %v2808_v39, %v2807_v59  ;;  %v7168_v20 = vadd.f32 %v2826_v0, %v2825_v10 }
 0x2a8   : > { %v2865_v27 = vadd.f32 %v2864_v28, %v6954_v34  ;;  %v7171_v16 = vadd.f32 %v2820_v37, %v2819_v13  ;;  %v2860_v1 = vrot.slane %v2859_v7, 2  ;;  %v2883_v50 = vadd.f32 %v2882_v58, %v6957_v14 }
 0x2a9   : > { %7989 = vst [vmem:[#allocation27_spill] sm:$0xff] %v7168_v20  ;;  %v2838_v18 = vrot.slane %v2837_v33, 1  ;;  %v2877_v51 = vadd.f32 %v2876_v5, %v6960_v12  ;;  %v2889_v41 = vadd.f32 %v2888_v26, %v6966_v23  ;;  %v2872_v10 = vrot.slane %v2871_v60, 2 }
 0x2aa   : > { %v5296_v30 = vpop.f32.mrb[44].mxu1  ;;  %7990 = vst [vmem:[#allocation26_spill] sm:$0xff] %v7171_v16  ;;  %v2866_v13 = vrot.slane %v2865_v27, 2  ;;  %v2861_v12 = vadd.f32 %v2860_v1, %v2859_v7  ;;  %v2918_v58 = vrot.slane %v6979_v31, 4 }
 0x2ab   : > { %v7153_v42 = vmul.f32 %v5296_v30, %v5168_v52  ;;  %v5171_v48 = vpop.f32.mrb[46].mxu0  ;;  %v2581_v35 = vpop.f32.mrb[45].mxu1  ;;  %v2842_v52 = vrot.slane %v2841_v29, 2  ;;  %v2853_v30 = vadd.f32 %v2852_v38, %v6948_v40  ;;  %v2895_v40 = vadd.f32 %v2894_v61, %v6963_v57 }
 0x2ac   : > { %v7157_v54 = vmul.f32 %v2581_v35, %v1748_v46  ;;  %v1758_v53 = vpop.f32.mrb[47].mxu0  ;;  %v2831_v46 = vadd.f32 %v2830_v49, %v2829_v11  ;;  %v2849_v35 = vadd.f32 %v2848_v24, %v2847_v47  ;;  %v2906_v11 = vrot.slane %v6971_v4, 4 }
 0x2ad   : > { %v2843_v59 = vadd.f32 %v2842_v52, %v2841_v29  ;;  %v2854_v39 = vrot.slane %v2853_v30, 2  ;;  %v2900_v47 = vrot.slane %v6974_v19, 4  ;;  %v2884_v49 = vrot.slane %v2883_v50, 2 }
 0x2ae   : > { %v2832_v34 = vrot.slane %v2831_v46, 1  ;;  %v2850_v37 = vrot.slane %v2849_v35, 1  ;;  %v2878_v29 = vrot.slane %v2877_v51, 2  ;;  %v2896_v28 = vrot.slane %v2895_v40, 2 }
 0x2af   : > { %v2890_v24 = vrot.slane %v2889_v41, 2  ;;  %v7184_v5 = vadd.f32 %v2838_v18, %v2837_v33  ;;  %v2855_v61 = vadd.f32 %v2854_v39, %v2853_v30  ;;  %v2873_v26 = vadd.f32 %v2872_v10, %v2871_v60 }
 0x2b0   : > { %v7187_v52 = vadd.f32 %v2832_v34, %v2831_v46  ;;  %v2867_v45 = vadd.f32 %v2866_v13, %v2865_v27  ;;  %v2901_v1 = vadd.f32 %v2900_v47, %v6974_v19  ;;  %v7190_v7 = vadd.f32 %v2850_v37, %v2849_v35 }
 0x2b1   : > { %v2879_v20 = vadd.f32 %v2878_v29, %v2877_v51  ;;  %v2897_v16 = vadd.f32 %v2896_v28, %v2895_v40  ;;  %v2891_v33 = vadd.f32 %v2890_v24, %v2889_v41  ;;  %v2919_v30 = vadd.f32 %v2918_v58, %v6979_v31 }
 0x2b2   : > { %v5299_v0 = vpop.f32.mrb[46].mxu1  ;;  %7991 = vst [vmem:[#allocation29_spill] sm:$0xff] %v7190_v7  ;;  %v2856_v60 = vrot.slane %v2855_v61, 1  ;;  %v2874_v18 = vrot.slane %v2873_v26, 1  ;;  %v2930_v46 = vrot.slane %v6986_v25, 4  ;;  %v2868_v27 = vrot.slane %v2867_v45, 1 }
 0x2b3   : > { %v7179_v38 = vmul.f32 %v5299_v0, %v5171_v48  ;;  %v5174_v14 = vpop.f32.mrb[48].mxu0  ;;  %v2591_v43 = vpop.f32.mrb[47].mxu1  ;;  %v2907_v48 = vadd.f32 %v2906_v11, %v6971_v4  ;;  %v2844_v0 = vrot.slane %v2843_v59, 1  ;;  %v2902_v10 = vrot.slane %v2901_v1, 2 }
 0x2b4   : > { %v7181_v57 = vmul.f32 %v2591_v43, %v1758_v53  ;;  %v1768_v23 = vpop.f32.mrb[49].mxu0  ;;  %v2862_v53 = vrot.slane %v2861_v12, 1  ;;  %v2885_v43 = vadd.f32 %v2884_v49, %v2883_v50  ;;  %v2924_v19 = vrot.slane %v6991_v32, 4 }
 0x2b5   : > { %v2908_v4 = vrot.slane %v2907_v48, 2  ;;  %v2913_v51 = vadd.f32 %v2912_v17, %v6982_v9  ;;  %v2942_v40 = vrot.slane %v7000_v6, 4  ;;  %v2880_v13 = vrot.slane %v2879_v20, 1 }
 0x2b6   : > { %v2886_v34 = vrot.slane %v2885_v43, 1  ;;  %v2898_v47 = vrot.slane %v2897_v16, 1  ;;  %v2892_v37 = vrot.slane %v2891_v33, 1  ;;  %v2920_v49 = vrot.slane %v2919_v30, 2 }
 0x2b7   : > { %v7202_v29 = vadd.f32 %v2844_v0, %v2843_v59  ;;  %v7204_v28 = vadd.f32 %v2862_v53, %v2861_v12  ;;  %v2931_v24 = vadd.f32 %v2930_v46, %v6986_v25  ;;  %v7207_v58 = vadd.f32 %v2856_v60, %v2855_v61 }
 0x2b8   : > { %v2903_v9 = vadd.f32 %v2902_v10, %v2901_v1  ;;  %v2925_v17 = vadd.f32 %v2924_v19, %v6991_v32  ;;  %v2914_v7 = vrot.slane %v2913_v51, 2  ;;  %v2943_v59 = vadd.f32 %v2942_v40, %v7000_v6 }
 0x2b9   : > { %7992 = vst [vmem:[#allocation28_spill] sm:$0xff] %v7202_v29  ;;  %7993 = vst [vmem:[#allocation31_spill] sm:$0xff] %v7204_v28  ;;  %v7217_v0 = vadd.f32 %v2880_v13, %v2879_v20  ;;  %v7219_v12 = vadd.f32 %v2898_v47, %v2897_v16  ;;  %v2921_v25 = vadd.f32 %v2920_v49, %v2919_v30  ;;  %v2936_v1 = vrot.slane %v7010_v63, 4  ;;  %v7999_v47 = vld [vmem:[#allocation16_spill] sm:$0xff]  ;;  %v8000_v49 = vld [vmem:[#allocation19_spill] sm:$0xff] }
 0x2ba   : > { %v5302_v39 = vpop.f32.mrb[48].mxu1  ;;  %7994 = vst [vmem:[#allocation30_spill] sm:$0xff] %v7207_v58  ;;  %v2954_v32 = vrot.slane %v7025_v44, 4  ;;  %v2904_v53 = vrot.slane %v2903_v9, 1  ;;  %v2948_v60 = vrot.slane %v7028_v36, 4  ;;  %v2915_v16 = vadd.f32 %v2914_v7, %v2913_v51 }
 0x2bb   : > { %v7196_v35 = vmul.f32 %v5302_v39, %v5174_v14  ;;  %v5177_v50 = vpop.f32.mrb[50].mxu0  ;;  %v2601_v11 = vpop.f32.mrb[49].mxu1  ;;  %v2909_v14 = vadd.f32 %v2908_v4, %v2907_v48  ;;  %v7209_v39 = vadd.f32 %v2874_v18, %v2873_v26  ;;  %7998 = vst [vmem:[#allocation35_spill] sm:$0xff] %v7217_v0  ;;  %v7221_v48 = vadd.f32 %v2892_v37, %v2891_v33 }
 0x2bc   : > { %v7200_v31 = vmul.f32 %v2601_v11, %v1768_v23  ;;  %v1778_v41 = vpop.f32.mrb[51].mxu0  ;;  %v7212_v23 = vadd.f32 %v2868_v27, %v2867_v45  ;;  %v7214_v11 = vadd.f32 %v2886_v34, %v2885_v43  ;;  %v2932_v26 = vrot.slane %v2931_v24, 2 }
 0x2bd   : > { %7995 = vst [vmem:[#allocation33_spill] sm:$0xff] %v7209_v39  ;;  %v2910_v61 = vrot.slane %v2909_v14, 1  ;;  %v2926_v43 = vrot.slane %v2925_v17, 2  ;;  %v2944_v4 = vrot.slane %v2943_v59, 2  ;;  %v2966_v33 = vrot.slane %v7045_v3, 4 }
 0x2be   : > { %7996 = vst [vmem:[#allocation32_spill] sm:$0xff] %v7212_v23  ;;  %7997 = vst [vmem:[#allocation34_spill] sm:$0xff] %v7214_v11  ;;  %v2922_v27 = vrot.slane %v2921_v25, 1  ;;  %v2960_v10 = vrot.slane %v7048_v2, 4  ;;  %v2978_v19 = vrot.slane %v7077_v8, 4  ;;  %v2972_v34 = vrot.slane %v7084_v22, 4 }
 0x2bf   : > { %v2933_v40 = vadd.f32 %v2932_v26, %v2931_v24  ;;  %v2955_v13 = vadd.f32 %v2954_v32, %v7025_v44  ;;  %v2990_v7 = vrot.slane %v7999_v47, 4  ;;  %v7237_v51 = vadd.f32 %v2910_v61, %v2909_v14 }
 0x2c0   : > { %v2927_v37 = vadd.f32 %v2926_v43, %v2925_v17  ;;  %v2916_v11 = vrot.slane %v2915_v16, 1  ;;  %v2945_v0 = vadd.f32 %v2944_v4, %v2943_v59  ;;  %v2967_v39 = vadd.f32 %v2966_v33, %v7045_v3  ;;  %v8002_v59 = vld [vmem:[#allocation21_spill] sm:$0xff] }
 0x2c1   : > { %v7244_v24 = vadd.f32 %v2922_v27, %v2921_v25  ;;  %v2979_v44 = vadd.f32 %v2978_v19, %v7077_v8  ;;  %v2973_v14 = vadd.f32 %v2972_v34, %v7084_v22  ;;  %v2934_v61 = vrot.slane %v2933_v40, 1 }
 0x2c2   : > { %v5305_v45 = vpop.f32.mrb[50].mxu1  ;;  %v2956_v26 = vrot.slane %v2955_v13, 2  ;;  %v2946_v43 = vrot.slane %v2945_v0, 1  ;;  %v7257_v34 = vadd.f32 %v2916_v11, %v2915_v16  ;;  %v3014_v58 = vrot.slane %v7153_v42, 4 }
 0x2c3   : > { %v7226_v18 = vmul.f32 %v5305_v45, %v5177_v50  ;;  %v5180_v6 = vpop.f32.mrb[52].mxu0  ;;  %v2611_v20 = vpop.f32.mrb[51].mxu1  ;;  %v2937_v50 = vadd.f32 %v2936_v1, %v7010_v63  ;;  %v2984_v45 = vrot.slane %v8000_v49, 4  ;;  %8001 = vst [vmem:[#allocation16_spill] sm:$0xff] %v7244_v24  ;;  %v2961_v63 = vadd.f32 %v2960_v10, %v7048_v2 }
 0x2c4   : > { %v7229_v30 = vmul.f32 %v2611_v20, %v1778_v41  ;;  %v1788_v46 = vpop.f32.mrb[53].mxu0  ;;  %v2949_v41 = vadd.f32 %v2948_v60, %v7028_v36  ;;  %v7241_v20 = vadd.f32 %v2904_v53, %v2903_v9  ;;  %v2991_v36 = vadd.f32 %v2990_v7, %v7999_v47 }
 0x2c5   : > { %v2938_v17 = vrot.slane %v2937_v50, 2  ;;  %v2928_v1 = vrot.slane %v2927_v37, 1  ;;  %v2985_v32 = vadd.f32 %v2984_v45, %v8000_v49  ;;  %v3002_v53 = vrot.slane %v8002_v59, 4 }
 0x2c6   : > { %v2950_v9 = vrot.slane %v2949_v41, 2  ;;  %v2968_v60 = vrot.slane %v2967_v39, 2  ;;  %v2996_v2 = vrot.slane %v7128_v15, 4  ;;  %v2962_v33 = vrot.slane %v2961_v63, 2 }
 0x2c7   : > { %v2980_v27 = vrot.slane %v2979_v44, 2  ;;  %v2974_v10 = vrot.slane %v2973_v14, 2  ;;  %v2939_v47 = vadd.f32 %v2938_v17, %v2937_v50  ;;  %v2957_v7 = vadd.f32 %v2956_v26, %v2955_v13 }
 0x2c8   : > { %v2992_v49 = vrot.slane %v2991_v36, 2  ;;  %v2951_v45 = vadd.f32 %v2950_v9, %v2949_v41  ;;  %v2986_v23 = vrot.slane %v2985_v32, 2  ;;  %v3003_v28 = vadd.f32 %v3002_v53, %v8002_v59 }
 0x2c9   : > { %v2969_v29 = vadd.f32 %v2968_v60, %v2967_v39  ;;  %v2997_v24 = vadd.f32 %v2996_v2, %v7128_v15  ;;  %v2963_v11 = vadd.f32 %v2962_v33, %v2961_v63  ;;  %v2981_v16 = vadd.f32 %v2980_v27, %v2979_v44 }
 0x2ca   : > { %v2975_v50 = vadd.f32 %v2974_v10, %v2973_v14  ;;  %v2940_v13 = vrot.slane %v2939_v47, 1  ;;  %v2958_v17 = vrot.slane %v2957_v7, 1  ;;  %v2993_v41 = vadd.f32 %v2992_v49, %v2991_v36 }
 0x2cb   : > { %v5308_v3 = vpop.f32.mrb[52].mxu1  ;;  %v5183_v25 = vpop.f32.mrb[54].mxu0  ;;  %v3008_v26 = vrot.slane %v7157_v54, 4  ;;  %v2952_v9 = vrot.slane %v2951_v45, 1  ;;  %v2987_v59 = vadd.f32 %v2986_v23, %v2985_v32  ;;  %v3004_v53 = vrot.slane %v3003_v28, 2 }
 0x2cc   : > { %v7253_v8 = vmul.f32 %v5308_v3, %v5180_v6  ;;  %v2621_v22 = vpop.f32.mrb[53].mxu1  ;;  %v1798_v4 = vpop.f32.mrb[55].mxu0  ;;  %v7261_v6 = vadd.f32 %v2934_v61, %v2933_v40  ;;  %v7263_v3 = vadd.f32 %v2928_v1, %v2927_v37  ;;  %v3015_v40 = vadd.f32 %v3014_v58, %v7153_v42 }
 0x2cd   : > { %v7255_v19 = vmul.f32 %v2621_v22, %v1788_v46  ;;  %v7266_v46 = vadd.f32 %v2946_v43, %v2945_v0  ;;  %v2970_v39 = vrot.slane %v2969_v29, 1  ;;  %v2998_v1 = vrot.slane %v2997_v24, 2 }
 0x2ce   : > { %v3026_v15 = vrot.slane %v7179_v38, 4  ;;  %v2964_v14 = vrot.slane %v2963_v11, 1  ;;  %v2982_v43 = vrot.slane %v2981_v16, 1  ;;  %v2976_v60 = vrot.slane %v2975_v50, 1 }
 0x2cf   : > { %8003 = vst [vmem:[#allocation19_spill] sm:$0xff] %v7266_v46  ;;  %v7271_v2 = vadd.f32 %v2940_v13, %v2939_v47  ;;  %v2994_v22 = vrot.slane %v2993_v41, 1  ;;  %v3009_v23 = vadd.f32 %v3008_v26, %v7157_v54  ;;  %v3020_v42 = vrot.slane %v7181_v57, 4 }
 0x2d0   : > { %v7275_v58 = vadd.f32 %v2958_v17, %v2957_v7  ;;  %v2988_v32 = vrot.slane %v2987_v59, 1  ;;  %v3005_v33 = vadd.f32 %v3004_v53, %v3003_v28  ;;  %v3016_v27 = vrot.slane %v3015_v40, 2 }
 0x2d1   : > { %8004 = vst [vmem:[#allocation21_spill] sm:$0xff] %v7271_v2  ;;  %v7277_v10 = vadd.f32 %v2952_v9, %v2951_v45  ;;  %v2999_v49 = vadd.f32 %v2998_v1, %v2997_v24  ;;  %v7284_v47 = vadd.f32 %v2982_v43, %v2981_v16  ;;  %v7286_v13 = vadd.f32 %v2976_v60, %v2975_v50 }
 0x2d2   : > { %8005 = vst [vmem:[#allocation36_spill] sm:$0xff] %v7275_v58  ;;  %v3038_v54 = vrot.slane %v7196_v35, 4  ;;  %v7289_v7 = vadd.f32 %v2994_v22, %v2993_v41  ;;  %v3010_v17 = vrot.slane %v3009_v23, 2  ;;  %v3021_v28 = vadd.f32 %v3020_v42, %v7181_v57 }
 0x2d3   : > { %v5311_v37 = vpop.f32.mrb[54].mxu1  ;;  %v5186_v61 = vpop.f32.mrb[56].mxu0  ;;  %8006 = vst [vmem:[#allocation37_spill] sm:$0xff] %v7277_v10  ;;  %8009 = vst [vmem:[#allocation40_spill] sm:$0xff] %v7284_v47  ;;  %v3032_v45 = vrot.slane %v7200_v31, 4  ;;  %v3006_v24 = vrot.slane %v3005_v33, 1  ;;  %v3017_v26 = vadd.f32 %v3016_v27, %v3015_v40 }
 0x2d4   : > { %v2735_v0 = vmul.f32 %v5311_v37, %v5183_v25  ;;  %v2631_v63 = vpop.f32.mrb[55].mxu1  ;;  %v1808_v44 = vpop.f32.mrb[57].mxu0  ;;  %v7279_v25 = vadd.f32 %v2970_v39, %v2969_v29  ;;  %v3027_v37 = vadd.f32 %v3026_v15, %v7179_v38  ;;  %8010 = vst [vmem:[#allocation41_spill] sm:$0xff] %v7286_v13  ;;  %v7293_v29 = vadd.f32 %v2988_v32, %v2987_v59 }
 0x2d5   : > { %v2734_v36 = vmul.f32 %v2631_v63, %v1798_v4  ;;  %v7282_v4 = vadd.f32 %v2964_v14, %v2963_v11  ;;  %v3050_v38 = vrot.slane %v7226_v18, 4  ;;  %v3000_v9 = vrot.slane %v2999_v49, 1 }
 0x2d6   : > { %8007 = vst [vmem:[#allocation38_spill] sm:$0xff] %v7279_v25  ;;  %v3028_v50 = vrot.slane %v3027_v37, 2  ;;  %v3044_v53 = vrot.slane %v7229_v30, 4  ;;  %v3039_v15 = vadd.f32 %v3038_v54, %v7196_v35  ;;  %v3062_v57 = vrot.slane %v7253_v8, 4 }
 0x2d7   : > { %8008 = vst [vmem:[#allocation39_spill] sm:$0xff] %v7282_v4  ;;  %v3056_v59 = vrot.slane %v7255_v19, 4  ;;  %v3011_v14 = vadd.f32 %v3010_v17, %v3009_v23  ;;  %v3022_v40 = vrot.slane %v3021_v28, 2  ;;  %v3033_v43 = vadd.f32 %v3032_v45, %v7200_v31 }
 0x2d8   : > { %v3074_v60 = vrot.slane %v2735_v0, 4  ;;  %v3018_v22 = vrot.slane %v3017_v26, 1  ;;  %v3051_v42 = vadd.f32 %v3050_v38, %v7226_v18  ;;  %v3068_v32 = vrot.slane %v2734_v36, 4 }
 0x2d9   : > { %v3045_v35 = vadd.f32 %v3044_v53, %v7229_v30  ;;  %v7305_v47 = vadd.f32 %v3000_v9, %v2999_v49  ;;  %v3040_v13 = vrot.slane %v3039_v15, 2  ;;  %v3057_v23 = vadd.f32 %v3056_v59, %v7255_v19 }
 0x2da   : > { %v3012_v31 = vrot.slane %v3011_v14, 1  ;;  %v3023_v17 = vadd.f32 %v3022_v40, %v3021_v28  ;;  %v3034_v45 = vrot.slane %v3033_v43, 2  ;;  %v7309_v18 = vadd.f32 %v3018_v22, %v3017_v26 }
 0x2db   : > { %v5314_v11 = vpop.f32.mrb[56].mxu1  ;;  %v5189_v16 = vpop.f32.mrb[58].mxu0  ;;  %v3052_v38 = vrot.slane %v3051_v42, 2  ;;  %v3046_v53 = vrot.slane %v3045_v35, 2  ;;  %v3058_v19 = vrot.slane %v3057_v23, 2 }
 0x2dc   : > { %v2737_v39 = vmul.f32 %v5314_v11, %v5186_v61  ;;  %v2641_v41 = vpop.f32.mrb[57].mxu1  ;;  %v1818_v1 = vpop.f32.mrb[59].mxu0  ;;  %v7302_v61 = vadd.f32 %v3006_v24, %v3005_v33  ;;  %v3029_v11 = vadd.f32 %v3028_v50, %v3027_v37  ;;  %v3069_v33 = vadd.f32 %v3068_v32, %v2734_v36 }
 0x2dd   : > { %v2736_v63 = vmul.f32 %v2641_v41, %v1808_v44  ;;  %v3063_v44 = vadd.f32 %v3062_v57, %v7253_v8  ;;  %v3075_v41 = vadd.f32 %v3074_v60, %v2735_v0  ;;  %v3041_v8 = vadd.f32 %v3040_v13, %v3039_v15 }
 0x2de   : > { %v3086_v27 = vrot.slane %v2737_v39, 4  ;;  %v3030_v30 = vrot.slane %v3029_v11, 1  ;;  %v3024_v28 = vrot.slane %v3023_v17, 1  ;;  %v3035_v40 = vadd.f32 %v3034_v45, %v3033_v43 }
 0x2df   : > { %v3080_v54 = vrot.slane %v2736_v63, 4  ;;  %v3064_v57 = vrot.slane %v3063_v44, 2  ;;  %v3076_v0 = vrot.slane %v3075_v41, 2  ;;  %v3053_v60 = vadd.f32 %v3052_v38, %v3051_v42 }
 0x2e0   : > { %v3087_v24 = vadd.f32 %v3086_v27, %v2737_v39  ;;  %v3070_v22 = vrot.slane %v3069_v33, 2  ;;  %v7311_v32 = vadd.f32 %v3012_v31, %v3011_v14  ;;  %v3047_v27 = vadd.f32 %v3046_v53, %v3045_v35 }
 0x2e1   : > { %v3081_v49 = vadd.f32 %v3080_v54, %v2736_v63  ;;  %v3065_v54 = vadd.f32 %v3064_v57, %v3063_v44  ;;  %v7313_v15 = vadd.f32 %v3030_v30, %v3029_v11  ;;  %v7315_v45 = vadd.f32 %v3024_v28, %v3023_v17 }
 0x2e2   : > { %v3088_v36 = vrot.slane %v3087_v24, 2  ;;  %v3054_v42 = vrot.slane %v3053_v60, 1  ;;  %v3071_v38 = vadd.f32 %v3070_v22, %v3069_v33  ;;  %v3048_v31 = vrot.slane %v3047_v27, 1 }
 0x2e3   : > { %v5317_v37 = vpop.f32.mrb[58].mxu1  ;;  %v5192_v50 = vpop.f32.mrb[60].mxu0  ;;  %v3082_v58 = vrot.slane %v3081_v49, 2  ;;  %v3066_v11 = vrot.slane %v3065_v54, 1 }
 0x2e4   : > { %v2739_v9 = vmul.f32 %v5317_v37, %v5189_v16  ;;  %v2651_v25 = vpop.f32.mrb[59].mxu1  ;;  %v1828_v4 = vpop.f32.mrb[61].mxu0  ;;  %v3042_v16 = vrot.slane %v3041_v8, 1  ;;  %v3059_v37 = vadd.f32 %v3058_v19, %v3057_v23  ;;  %v3089_v10 = vadd.f32 %v3088_v36, %v3087_v24 }
 0x2e5   : > { %v2738_v59 = vmul.f32 %v2651_v25, %v1818_v1  ;;  %v3036_v25 = vrot.slane %v3035_v40, 1  ;;  %v3077_v1 = vadd.f32 %v3076_v0, %v3075_v41  ;;  %v3083_v35 = vadd.f32 %v3082_v58, %v3081_v49 }
 0x2e6   : > { %v3098_v26 = vrot.slane %v2739_v9, 4  ;;  %v7317_v23 = vadd.f32 %v3042_v16, %v3041_v8  ;;  %v3060_v30 = vrot.slane %v3059_v37, 1  ;;  %v7321_v33 = vadd.f32 %v3054_v42, %v3053_v60 }
 0x2e7   : > { %v3092_v39 = vrot.slane %v2738_v59, 4  ;;  %v7319_v41 = vadd.f32 %v3036_v25, %v3035_v40  ;;  %v3078_v17 = vrot.slane %v3077_v1, 1  ;;  %v3072_v24 = vrot.slane %v3071_v38, 1 }
 0x2e8   : > { %v3099_v63 = vadd.f32 %v3098_v26, %v2739_v9  ;;  %8011 = vst [vmem:[#allocation42_spill] sm:$0xff] %v7317_v23  ;;  %8013 = vst [vmem:[#allocation44_spill] sm:$0xff] %v7321_v33  ;;  %v3090_v28 = vrot.slane %v3089_v10, 1  ;;  %v7323_v58 = vadd.f32 %v3048_v31, %v3047_v27  ;;  %v7325_v22 = vadd.f32 %v3066_v11, %v3065_v54  ;;  %v8034_v33 = vld [vmem:[#allocation25_spill] sm:$0xff] }
 0x2e9   : > { %v3093_v13 = vadd.f32 %v3092_v39, %v2738_v59  ;;  %8012 = vst [vmem:[#allocation43_spill] sm:$0xff] %v7319_v41  ;;  %v7327_v36 = vadd.f32 %v3060_v30, %v3059_v37 }
 0x2ea   : > { %v3100_v43 = vrot.slane %v3099_v63, 2  ;;  %8014 = vst [vmem:[#allocation45_spill] sm:$0xff] %v7323_v58  ;;  %8015 = vst [vmem:[#allocation46_spill] sm:$0xff] %v7325_v22  ;;  %v7333_v27 = vadd.f32 %v3090_v28, %v3089_v10  ;;  %v8033_v22 = vld [vmem:[#allocation24_spill] sm:$0xff] }
 0x2eb   : > { %v5320_v46 = vpop.f32.mrb[60].mxu1  ;;  %v5195_v14 = vpop.f32.mrb[62].mxu0  ;;  %v3094_v53 = vrot.slane %v3093_v13, 2  ;;  %8016 = vst [vmem:[#allocation47_spill] sm:$0xff] %v7327_v36 }
 0x2ec   : > { %v2741_v9 = vmul.f32 %v5320_v46, %v5192_v50  ;;  %v2661_v26 = vpop.f32.mrb[61].mxu1  ;;  %v1838_v44 = vpop.f32.mrb[63].mxu0  ;;  %v3101_v19 = vadd.f32 %v3100_v43, %v3099_v63  ;;  %v3084_v46 = vrot.slane %v3083_v35, 1  ;;  %v7329_v63 = vadd.f32 %v3078_v17, %v3077_v1  ;;  %8019 = vst [vmem:[#allocation50_spill] sm:$0xff] %v7333_v27 }
 0x2ed   : > { %v2740_v57 = vmul.f32 %v2661_v26, %v1828_v4  ;;  %v3095_v50 = vadd.f32 %v3094_v53, %v3093_v13  ;;  %v7331_v43 = vadd.f32 %v3072_v24, %v3071_v38 }
 0x2ee   : > { %v3110_v59 = vrot.slane %v2741_v9, 4  ;;  %8017 = vst [vmem:[#allocation48_spill] sm:$0xff] %v7329_v63  ;;  %v3102_v60 = vrot.slane %v3101_v19, 1  ;;  %v7335_v31 = vadd.f32 %v3084_v46, %v3083_v35 }
 0x2ef   : > { %v3104_v0 = vrot.slane %v2740_v57, 4  ;;  %8018 = vst [vmem:[#allocation49_spill] sm:$0xff] %v7331_v43  ;;  %v3096_v54 = vrot.slane %v3095_v50, 1 }
 0x2f0   : > { %v3111_v49 = vadd.f32 %v3110_v59, %v2741_v9  ;;  %v5323_v8 = vpop.f32.mrb[62].mxu1  ;;  %8020 = vst [vmem:[#allocation51_spill] sm:$0xff] %v7335_v31 }
 0x2f1   : > { %v3105_v4 = vadd.f32 %v3104_v0, %v2740_v57  ;;  %v2743_v40 = vmul.f32 %v5323_v8, %v5195_v14  ;;  %v2671_v39 = vpop.f32.mrb[63].mxu1  ;;  %v7337_v57 = vadd.f32 %v3102_v60, %v3101_v19 }
 0x2f2   : > { %v3112_v16 = vrot.slane %v3111_v49, 2  ;;  %v2742_v25 = vmul.f32 %v2671_v39, %v1838_v44 }
 0x2f3   : > { %v3106_v42 = vrot.slane %v3105_v4, 2  ;;  %v3122_v13 = vrot.slane %v2743_v40, 4  ;;  %8021 = vst [vmem:[#allocation52_spill] sm:$0xff] %v7337_v57 }
 0x2f4   : > { %v3113_v53 = vadd.f32 %v3112_v16, %v3111_v49  ;;  %v3116_v37 = vrot.slane %v2742_v25, 4  ;;  %v5358_v9 = vpop.f32.mrb[64].mxu0 }
 0x2f5   : > { %v3107_v26 = vadd.f32 %v3106_v42, %v3105_v4  ;;  %v3123_v14 = vadd.f32 %v3122_v13, %v2743_v40  ;;  %v3304_v11 = vrot.slane %v5358_v9, 1  ;;  %v3305_v1 = vrot.slane %v5358_v9, 2  ;;  %v3250_v30 = vpop.f32.mrb[65].mxu0  ;;  %v8023_v42 = vld [vmem:[#allocation26_spill] sm:$0xff] }
 0x2f6   : > { %v3117_v44 = vadd.f32 %v3116_v37, %v2742_v25  ;;  %v3306_v38 = vrot.slane %v5358_v9, 3  ;;  %v3307_v17 = vrot.slane %v5358_v9, 4  ;;  %v3114_v10 = vrot.slane %v3113_v53, 1  ;;  %v8024_v37 = vld [vmem:[#allocation27_spill] sm:$0xff] }
 0x2f7   : > { %v3124_v59 = vrot.slane %v3123_v14, 2  ;;  %v3308_v24 = vrot.slane %v5358_v9, 5  ;;  %v3309_v28 = vrot.slane %v5358_v9, 6  ;;  %v3108_v35 = vrot.slane %v3107_v26, 1 }
 0x2f8   : > { %v3118_v0 = vrot.slane %v3117_v44, 2  ;;  %v3310_v46 = vrot.slane %v5358_v9, 7  ;;  %v3425_v49 = vadd.f32 %v5358_v9, %v7147_v56  ;;  %v5402_v8 = vpop.f32.mrb[64].mxu1  ;;  %v7340_v4 = vadd.f32 %v3096_v54, %v3095_v50 }
 0x2f9   : > { %v3125_v40 = vadd.f32 %v3124_v59, %v3123_v14  ;;  %v3426_v39 = vadd.f32 %v3304_v11, %v7145_v62  ;;  %v3427_v19 = vadd.f32 %v3305_v1, %v7166_v21  ;;  %v7344_v60 = vpop.f32.mrb[65].mxu1  ;;  %v3428_v25 = vadd.f32 %v3306_v38, %v7162_v55  ;;  %v8028_v59 = vld [vmem:[#allocation15_spill] sm:$0xff] }
 0x2fa   : > { %8022 = vst [vmem:[#allocation53_spill] sm:$0xff] %v7340_v4  ;;  %v3119_v16 = vadd.f32 %v3118_v0, %v3117_v44  ;;  %v3429_v13 = vadd.f32 %v3307_v17, %v8023_v42  ;;  %v3430_v63 = vadd.f32 %v3308_v24, %v8024_v37  ;;  %v7349_v43 = vadd.f32 %v3114_v10, %v3113_v53  ;;  %v8027_v10 = vld [vmem:[#allocation14_spill] sm:$0xff]  ;;  %v8029_v24 = vld [vmem:[#allocation20_spill] sm:$0xff]  ;;  %v8032_v42 = vld [vmem:[#allocation23_spill] sm:$0xff] }
 0x2fb   : > { %v3431_v56 = vadd.f32 %v3309_v28, %v7187_v52  ;;  %v3432_v50 = vadd.f32 %v3310_v46, %v7184_v5  ;;  %v3297_v54 = vrot.slane %v3250_v30, 1  ;;  %v7353_v9 = vadd.f32 %v3108_v35, %v3107_v26  ;;  %v8030_v28 = vld [vmem:[#allocation18_spill] sm:$0xff] }
 0x2fc   : > { %8025 = vst [vmem:[#allocation26_spill] sm:$0xff] %v7349_v43  ;;  %v3298_v62 = vrot.slane %v3250_v30, 2  ;;  %v3299_v21 = vrot.slane %v3250_v30, 3  ;;  %v3300_v14 = vrot.slane %v3250_v30, 4  ;;  %v7355_v11 = vpop.f32.mrb[66].mxu0  ;;  %v3126_v1 = vrot.slane %v3125_v40, 1 }
 0x2fd   : > { %8026 = vst [vmem:[#allocation27_spill] sm:$0xff] %v7353_v9  ;;  %v3301_v55 = vrot.slane %v3250_v30, 5  ;;  %v3302_v44 = vrot.slane %v3250_v30, 6  ;;  %v3303_v38 = vrot.slane %v3250_v30, 7  ;;  %v7357_v17 = vpop.f32.mrb[67].mxu0  ;;  %v3120_v53 = vrot.slane %v3119_v16, 1 }
 0x2fe   : > { %v3417_v52 = vadd.f32 %v3250_v30, %v8027_v10  ;;  %v3418_v5 = vadd.f32 %v3297_v54, %v8028_v59  ;;  %v3419_v26 = vadd.f32 %v3298_v62, %v8029_v24  ;;  %v3420_v35 = vadd.f32 %v3299_v21, %v8030_v28  ;;  %v8031_v0 = vld [vmem:[#allocation22_spill] sm:$0xff] }
 0x2ff   : > { %v3421_v46 = vadd.f32 %v3300_v14, %v8031_v0  ;;  %v3422_v37 = vadd.f32 %v3301_v55, %v8032_v42  ;;  %v3423_v36 = vadd.f32 %v3302_v44, %v8033_v22  ;;  %v3424_v58 = vadd.f32 %v3303_v38, %v8034_v33  ;;  %v8035_v42 = vld [vmem:[#allocation6_spill] sm:$0xff] }
 0x300   : > { %v3657_v23 = vrot.slane %v5402_v8, 1  ;;  %v3658_v41 = vrot.slane %v5402_v8, 2  ;;  %v3659_v43 = vrot.slane %v5402_v8, 3  ;;  %v7367_v30 = vpop.f32.mrb[66].mxu1  ;;  %v3660_v54 = vrot.slane %v5402_v8, 4 }
 0x301   : > { %v3661_v62 = vrot.slane %v5402_v8, 5  ;;  %v3662_v10 = vrot.slane %v5402_v8, 6  ;;  %v3663_v59 = vrot.slane %v5402_v8, 7  ;;  %v7369_v21 = vpop.f32.mrb[67].mxu1  ;;  %v3778_v14 = vmul.f32 %v5402_v8, %v3425_v49 }
 0x302   : > { %v3779_v55 = vmul.f32 %v3657_v23, %v3426_v39  ;;  %v3780_v24 = vmul.f32 %v3658_v41, %v3427_v19  ;;  %v3781_v22 = vmul.f32 %v3659_v43, %v3428_v25  ;;  %v3782_v44 = vmul.f32 %v3660_v54, %v3429_v13 }
 0x303   : > { %v3783_v33 = vmul.f32 %v3661_v62, %v3430_v63  ;;  %v3784_v38 = vmul.f32 %v3662_v10, %v3431_v56  ;;  %v3785_v28 = vmul.f32 %v3663_v59, %v3432_v50  ;;  %v7371_v0 = vadd.f32 %v3126_v1, %v3125_v40 }
 0x304   : > { %v8036_v9 = vrot.slane %v8035_v42, 1  ;;  %v8037_v4 = vrot.slane %v8035_v42, 2  ;;  %v8038_v31 = vrot.slane %v8035_v42, 3  ;;  %v7379_v49 = vpop.f32.mrb[68].mxu0  ;;  %v7381_v23 = vadd.f32 %v3120_v53, %v3119_v16 }
 0x305   : > { %v8039_v41 = vrot.slane %v8035_v42, 4  ;;  %v8040_v43 = vrot.slane %v8035_v42, 5  ;;  %v8041_v40 = vrot.slane %v8035_v42, 6  ;;  %v7389_v19 = vpop.f32.mrb[69].mxu0  ;;  %v3651_v53 = vrot.slane %v7344_v60, 2 }
 0x306   : > { %v4003_v57 = vmul.f32 %v8036_v9, %v3779_v55  ;;  %v4004_v27 = vmul.f32 %v8037_v4, %v3780_v24  ;;  %v4005_v2 = vmul.f32 %v8038_v31, %v3781_v22  ;;  %v4002_v4 = vmul.f32 %v8035_v42, %v3778_v14 }
 0x307   : > { %v4006_v63 = vmul.f32 %v8039_v41, %v3782_v44  ;;  %v4007_v8 = vmul.f32 %v8040_v43, %v3783_v33  ;;  %v4008_v39 = vmul.f32 %v8041_v40, %v3784_v38  ;;  %v3650_v31 = vrot.slane %v7344_v60, 1 }
 0x308   : > { %v4143_v25 = vrot.slane %v4003_v57, 7  ;;  %v4145_v13 = vrot.slane %v4004_v27, 6  ;;  %v4147_v56 = vrot.slane %v4005_v2, 5  ;;  %v3652_v54 = vrot.slane %v7344_v60, 3  ;;  %v7397_v10 = vpop.f32.mrb[68].mxu1 }
 0x309   : > { %v4149_v16 = vrot.slane %v4006_v63, 4  ;;  %v4151_v50 = vrot.slane %v4007_v8, 3  ;;  %v4153_v9 = vrot.slane %v4008_v39, 2  ;;  %v3653_v62 = vrot.slane %v7344_v60, 4  ;;  %v7403_v14 = vpop.f32.mrb[69].mxu1 }
 0x30a   : > { %v4144_v1 = vsel %vm4123_vm2, %v4143_v25, %v4002_v4  ;;  %v3654_v27 = vrot.slane %v7344_v60, 5  ;;  %v3655_v57 = vrot.slane %v7344_v60, 6  ;;  %v3656_v2 = vrot.slane %v7344_v60, 7 }
 0x30b   : > { %v4146_v59 = vsel %vm4126_vm3, %v4145_v13, %v4144_v1  ;;  %v3770_v24 = vmul.f32 %v7344_v60, %v3417_v52  ;;  %v3771_v22 = vmul.f32 %v3650_v31, %v3418_v5  ;;  %v3772_v44 = vmul.f32 %v3651_v53, %v3419_v26  ;;  %v8043_v60 = vld [vmem:[#allocation7_spill] sm:$0xff] }
 0x30c   : > { %v4148_v55 = vsel %vm4129_vm4, %v4147_v56, %v4146_v59  ;;  %v3773_v38 = vmul.f32 %v3652_v54, %v3420_v35  ;;  %v3774_v41 = vmul.f32 %v3653_v62, %v3421_v46  ;;  %v3775_v63 = vmul.f32 %v3654_v27, %v3422_v37  ;;  %v7413_v25 = vpop.f32.mrb[70].mxu0 }
 0x30d   : > { %v4150_v33 = vsel %vm4132_vm5, %v4149_v16, %v4148_v55  ;;  %v8042_v43 = vrot.slane %v8035_v42, 7  ;;  %v3776_v39 = vmul.f32 %v3655_v57, %v3423_v36  ;;  %v3777_v4 = vmul.f32 %v3656_v2, %v3424_v58 }
 0x30e   : > { %v4152_v40 = vsel %vm4135_vm6, %v4151_v50, %v4150_v33  ;;  %v8044_v52 = vrot.slane %v8043_v60, 1  ;;  %v8045_v26 = vrot.slane %v8043_v60, 2  ;;  %v8046_v46 = vrot.slane %v8043_v60, 3 }
 0x30f   : > { %v7410_v8 = vmul.f32 %v8042_v43, %v3785_v28  ;;  %v7416_v13 = vsel %vm4138_vm7, %v4153_v9, %v4152_v40  ;;  %v7424_v28 = vpop.f32.mrb[71].mxu0  ;;  %v3994_v42 = vmul.f32 %v8043_v60, %v3770_v24  ;;  %v8047_v58 = vrot.slane %v8043_v60, 4 }
 0x310   : > { %v3995_v5 = vmul.f32 %v8044_v52, %v3771_v22  ;;  %v3996_v35 = vmul.f32 %v8045_v26, %v3772_v44  ;;  %v3997_v37 = vmul.f32 %v8046_v46, %v3773_v38  ;;  %v8048_v31 = vrot.slane %v8043_v60, 5  ;;  %v7438_v55 = vpop.f32.mrb[70].mxu1  ;;  %v8051_v46 = vld [vmem:[#allocation16_spill] sm:$0xff] }
 0x311   : > { %v3998_v36 = vmul.f32 %v8047_v58, %v3774_v41  ;;  %v8049_v16 = vrot.slane %v8043_v60, 6  ;;  %v8050_v9 = vrot.slane %v8043_v60, 7  ;;  %v3318_v62 = vrot.slane %v7355_v11, 1  ;;  %v7444_v38 = vpop.f32.mrb[71].mxu1 }
 0x312   : > { %v3999_v56 = vmul.f32 %v8048_v31, %v3775_v63  ;;  %v4122_v53 = vrot.slane %v3995_v5, 7  ;;  %v4125_v54 = vrot.slane %v3996_v35, 6  ;;  %v4128_v59 = vrot.slane %v3997_v37, 5 }
 0x313   : > { %v4000_v50 = vmul.f32 %v8049_v16, %v3776_v39  ;;  %v7435_v1 = vmul.f32 %v8050_v9, %v3777_v4  ;;  %v4131_v27 = vrot.slane %v3998_v36, 4  ;;  %v3319_v22 = vrot.slane %v7355_v11, 2  ;;  %v8053_v9 = vld [vmem:[#allocation29_spill] sm:$0xff] }
 0x314   : > { %v4134_v57 = vrot.slane %v3999_v56, 3  ;;  %v4124_v24 = vsel %vm4123_vm2, %v4122_v53, %v3994_v42  ;;  %v3320_v44 = vrot.slane %v7355_v11, 3  ;;  %v3321_v33 = vrot.slane %v7355_v11, 4  ;;  %v7459_v42 = vpop.f32.mrb[72].mxu0 }
 0x315   : > { %v4137_v2 = vrot.slane %v4000_v50, 2  ;;  %v4127_v41 = vsel %vm4126_vm3, %v4125_v54, %v4124_v24  ;;  %v3322_v63 = vrot.slane %v7355_v11, 5  ;;  %v3323_v43 = vrot.slane %v7355_v11, 6  ;;  %v8052_v50 = vld [vmem:[#allocation28_spill] sm:$0xff]  ;;  %v8054_v54 = vld [vmem:[#allocation30_spill] sm:$0xff]  ;;  %v8057_v24 = vld [vmem:[#allocation33_spill] sm:$0xff] }
 0x316   : > { %v3324_v40 = vrot.slane %v7355_v11, 7  ;;  %v4130_v39 = vsel %vm4129_vm4, %v4128_v59, %v4127_v41  ;;  %v3441_v4 = vadd.f32 %v7355_v11, %v7221_v48  ;;  %v3442_v60 = vadd.f32 %v3318_v62, %v7219_v12  ;;  %v5446_v11 = vpop.f32.mrb[73].mxu0  ;;  %v8055_v59 = vld [vmem:[#allocation31_spill] sm:$0xff]  ;;  %v8059_v41 = vld [vmem:[#allocation34_spill] sm:$0xff] }
 0x317   : > { %v3443_v52 = vadd.f32 %v3319_v22, %v7241_v20  ;;  %v4133_v5 = vsel %vm4132_vm5, %v4131_v27, %v4130_v39  ;;  %v3444_v26 = vadd.f32 %v3320_v44, %v7237_v51  ;;  %v3445_v35 = vadd.f32 %v3321_v33, %v7257_v34  ;;  %v8058_v44 = vld [vmem:[#allocation35_spill] sm:$0xff] }
 0x318   : > { %v3446_v37 = vadd.f32 %v3322_v63, %v8051_v46  ;;  %v4136_v58 = vsel %vm4135_vm6, %v4134_v57, %v4133_v5  ;;  %v3447_v36 = vadd.f32 %v3323_v43, %v7263_v3  ;;  %v3448_v48 = vadd.f32 %v3324_v40, %v7261_v6  ;;  %v8056_v57 = vld [vmem:[#allocation32_spill] sm:$0xff] }
 0x319   : > { %v3311_v12 = vrot.slane %v7357_v17, 1  ;;  %v7466_v20 = vsel %vm4138_vm7, %v4137_v2, %v4136_v58  ;;  %v3312_v51 = vrot.slane %v7357_v17, 2  ;;  %v3313_v34 = vrot.slane %v7357_v17, 3 }
 0x31a   : > { %v3314_v31 = vrot.slane %v7357_v17, 4  ;;  %v3315_v56 = vrot.slane %v7357_v17, 5  ;;  %v3316_v16 = vrot.slane %v7357_v17, 6  ;;  %v3317_v3 = vrot.slane %v7357_v17, 7 }
 0x31b   : > { %v3433_v6 = vadd.f32 %v7357_v17, %v8052_v50  ;;  %v3434_v53 = vadd.f32 %v3311_v12, %v8053_v9  ;;  %v3435_v62 = vadd.f32 %v3312_v51, %v8054_v54  ;;  %v3436_v27 = vadd.f32 %v3313_v34, %v8055_v59  ;;  %v8060_v9 = vld [vmem:[#allocation10_spill] sm:$0xff] }
 0x31c   : > { %v3437_v2 = vadd.f32 %v3314_v31, %v8056_v57  ;;  %v3438_v22 = vadd.f32 %v3315_v56, %v8057_v24  ;;  %v3439_v33 = vadd.f32 %v3316_v16, %v8058_v44  ;;  %v3440_v63 = vadd.f32 %v3317_v3, %v8059_v41 }
 0x31d   : > { %v3671_v43 = vrot.slane %v7367_v30, 1  ;;  %v3672_v40 = vrot.slane %v7367_v30, 2  ;;  %v3673_v17 = vrot.slane %v7367_v30, 3  ;;  %v3674_v39 = vrot.slane %v7367_v30, 4 }
 0x31e   : > { %v3675_v5 = vrot.slane %v7367_v30, 5  ;;  %v3676_v46 = vrot.slane %v7367_v30, 6  ;;  %v3677_v58 = vrot.slane %v7367_v30, 7  ;;  %v3794_v12 = vmul.f32 %v7367_v30, %v3441_v4 }
 0x31f   : > { %v3795_v11 = vmul.f32 %v3671_v43, %v3442_v60  ;;  %v3796_v51 = vmul.f32 %v3672_v40, %v3443_v52  ;;  %v3797_v34 = vmul.f32 %v3673_v17, %v3444_v26  ;;  %v3798_v31 = vmul.f32 %v3674_v39, %v3445_v35 }
 0x320   : > { %v3799_v56 = vmul.f32 %v3675_v5, %v3446_v37  ;;  %v4155_v16 = vrot.slane %v7410_v8, 1  ;;  %v3800_v3 = vmul.f32 %v3676_v46, %v3447_v36  ;;  %v3801_v50 = vmul.f32 %v3677_v58, %v3448_v48 }
 0x321   : > { %v8061_v54 = vrot.slane %v8060_v9, 1  ;;  %v8062_v57 = vrot.slane %v8060_v9, 2  ;;  %v8063_v44 = vrot.slane %v8060_v9, 3  ;;  %v8064_v30 = vrot.slane %v8060_v9, 4 }
 0x322   : > { %v8065_v60 = vrot.slane %v8060_v9, 5  ;;  %v4140_v26 = vrot.slane %v7435_v1, 1  ;;  %v4018_v35 = vmul.f32 %v8060_v9, %v3794_v12  ;;  %v8066_v37 = vrot.slane %v8060_v9, 6 }
 0x323   : > { %v4019_v59 = vmul.f32 %v8061_v54, %v3795_v11  ;;  %v4020_v24 = vmul.f32 %v8062_v57, %v3796_v51  ;;  %v4021_v41 = vmul.f32 %v8063_v44, %v3797_v34  ;;  %v4022_v4 = vmul.f32 %v8064_v30, %v3798_v31 }
 0x324   : > { %v4023_v52 = vmul.f32 %v8065_v60, %v3799_v56  ;;  %v4024_v36 = vmul.f32 %v8066_v37, %v3800_v3  ;;  %v3664_v39 = vrot.slane %v7369_v21, 1  ;;  %v3665_v11 = vrot.slane %v7369_v21, 2 }
 0x325   : > { %v4171_v48 = vrot.slane %v4019_v59, 7  ;;  %v4173_v43 = vrot.slane %v4020_v24, 6  ;;  %v4175_v40 = vrot.slane %v4021_v41, 5  ;;  %v4177_v17 = vrot.slane %v4022_v4, 4 }
 0x326   : > { %v4179_v46 = vrot.slane %v4023_v52, 3  ;;  %v4181_v58 = vrot.slane %v4024_v36, 2  ;;  %v3666_v34 = vrot.slane %v7369_v21, 3  ;;  %v3667_v12 = vrot.slane %v7369_v21, 4 }
 0x327   : > { %v4172_v5 = vsel %vm4123_vm2, %v4171_v48, %v4018_v35  ;;  %v3668_v31 = vrot.slane %v7369_v21, 5  ;;  %v3669_v3 = vrot.slane %v7369_v21, 6  ;;  %v3670_v54 = vrot.slane %v7369_v21, 7 }
 0x328   : > { %v4174_v51 = vsel %vm4126_vm3, %v4173_v43, %v4172_v5  ;;  %v3786_v59 = vmul.f32 %v7369_v21, %v3433_v6  ;;  %v3787_v24 = vmul.f32 %v3664_v39, %v3434_v53  ;;  %v3788_v44 = vmul.f32 %v3665_v11, %v3435_v62  ;;  %v8068_v43 = vld [vmem:[#allocation8_spill] sm:$0xff] }
 0x329   : > { %v4176_v56 = vsel %vm4129_vm4, %v4175_v40, %v4174_v51  ;;  %v3789_v41 = vmul.f32 %v3666_v34, %v3436_v27  ;;  %v3790_v4 = vmul.f32 %v3667_v12, %v3437_v2  ;;  %v3791_v60 = vmul.f32 %v3668_v31, %v3438_v22 }
 0x32a   : > { %v4178_v57 = vsel %vm4132_vm5, %v4177_v17, %v4176_v56  ;;  %v3792_v52 = vmul.f32 %v3669_v3, %v3439_v33  ;;  %v8067_v35 = vrot.slane %v8060_v9, 7  ;;  %v3793_v48 = vmul.f32 %v3670_v54, %v3440_v63 }
 0x32b   : > { %v4180_v30 = vsel %vm4135_vm6, %v4179_v46, %v4178_v57  ;;  %v8069_v21 = vrot.slane %v8068_v43, 1  ;;  %v8070_v53 = vrot.slane %v8068_v43, 2  ;;  %v8071_v27 = vrot.slane %v8068_v43, 3 }
 0x32c   : > { %v7521_v37 = vmul.f32 %v8067_v35, %v3801_v50  ;;  %v7524_v36 = vsel %vm4138_vm7, %v4181_v58, %v4180_v30  ;;  %v8072_v2 = vrot.slane %v8068_v43, 4  ;;  %v8073_v33 = vrot.slane %v8068_v43, 5 }
 0x32d   : > { %v4011_v6 = vmul.f32 %v8069_v21, %v3787_v24  ;;  %v4012_v62 = vmul.f32 %v8070_v53, %v3788_v44  ;;  %v4013_v40 = vmul.f32 %v8071_v27, %v3789_v41  ;;  %v4010_v9 = vmul.f32 %v8068_v43, %v3786_v59 }
 0x32e   : > { %v4014_v22 = vmul.f32 %v8072_v2, %v3790_v4  ;;  %v4015_v50 = vmul.f32 %v8073_v33, %v3791_v60  ;;  %v8074_v17 = vrot.slane %v8068_v43, 6  ;;  %v8075_v39 = vrot.slane %v8068_v43, 7  ;;  %v8077_v2 = vld [vmem:[#allocation19_spill] sm:$0xff] }
 0x32f   : > { %v4157_v46 = vrot.slane %v4011_v6, 7  ;;  %v4159_v58 = vrot.slane %v4012_v62, 6  ;;  %v4161_v11 = vrot.slane %v4013_v40, 5  ;;  %v3332_v34 = vrot.slane %v7379_v49, 1 }
 0x330   : > { %v4016_v63 = vmul.f32 %v8074_v17, %v3792_v52  ;;  %v7541_v5 = vmul.f32 %v8075_v39, %v3793_v48  ;;  %v4163_v51 = vrot.slane %v4014_v22, 4  ;;  %v4165_v31 = vrot.slane %v4015_v50, 3  ;;  %v8079_v50 = vld [vmem:[#allocation36_spill] sm:$0xff]  ;;  %v8080_v17 = vld [vmem:[#allocation39_spill] sm:$0xff]  ;;  %v8081_v39 = vld [vmem:[#allocation38_spill] sm:$0xff] }
 0x331   : > { %v4158_v12 = vsel %vm4123_vm2, %v4157_v46, %v4010_v9  ;;  %v3333_v3 = vrot.slane %v7379_v49, 2  ;;  %v3334_v59 = vrot.slane %v7379_v49, 3  ;;  %v3335_v57 = vrot.slane %v7379_v49, 4 }
 0x332   : > { %v4167_v56 = vrot.slane %v4016_v63, 2  ;;  %v4160_v54 = vsel %vm4126_vm3, %v4159_v58, %v4158_v12  ;;  %v3336_v24 = vrot.slane %v7379_v49, 5  ;;  %v3337_v41 = vrot.slane %v7379_v49, 6  ;;  %v8082_v58 = vld [vmem:[#allocation41_spill] sm:$0xff] }
 0x333   : > { %v4162_v44 = vsel %vm4129_vm4, %v4161_v11, %v4160_v54  ;;  %v3338_v30 = vrot.slane %v7379_v49, 7  ;;  %v3457_v4 = vadd.f32 %v7379_v49, %v7293_v29  ;;  %v3458_v52 = vadd.f32 %v3332_v34, %v7289_v7 }
 0x334   : > { %v4164_v60 = vsel %vm4132_vm5, %v4163_v51, %v4162_v44  ;;  %v3459_v35 = vadd.f32 %v3333_v3, %v7305_v47  ;;  %v3460_v48 = vadd.f32 %v3334_v59, %v7302_v61  ;;  %v3461_v21 = vadd.f32 %v3335_v57, %v7311_v32  ;;  %v8083_v51 = vld [vmem:[#allocation40_spill] sm:$0xff] }
 0x335   : > { %v4166_v43 = vsel %vm4135_vm6, %v4165_v31, %v4164_v60  ;;  %v3462_v6 = vadd.f32 %v3336_v24, %v7309_v18  ;;  %v3463_v53 = vadd.f32 %v3337_v41, %v7315_v45  ;;  %v3464_v29 = vadd.f32 %v3338_v30, %v7313_v15  ;;  %v8076_v45 = vld [vmem:[#allocation21_spill] sm:$0xff] }
 0x336   : > { %v7564_v62 = vsel %vm4138_vm7, %v4167_v56, %v4166_v43  ;;  %v3325_v49 = vrot.slane %v7389_v19, 1  ;;  %v3326_v7 = vrot.slane %v7389_v19, 2  ;;  %v3327_v47 = vrot.slane %v7389_v19, 3  ;;  %v8078_v15 = vld [vmem:[#allocation37_spill] sm:$0xff] }
 0x337   : > { %v3328_v61 = vrot.slane %v7389_v19, 4  ;;  %v3329_v27 = vrot.slane %v7389_v19, 5  ;;  %v3330_v32 = vrot.slane %v7389_v19, 6  ;;  %v3331_v18 = vrot.slane %v7389_v19, 7 }
 0x338   : > { %v3449_v40 = vadd.f32 %v7389_v19, %v8076_v45  ;;  %v3450_v22 = vadd.f32 %v3325_v49, %v8077_v2  ;;  %v3451_v33 = vadd.f32 %v3326_v7, %v8078_v15  ;;  %v3452_v9 = vadd.f32 %v3327_v47, %v8079_v50  ;;  %v8084_v47 = vld [vmem:[#allocation12_spill] sm:$0xff] }
 0x339   : > { %v3453_v63 = vadd.f32 %v3328_v61, %v8080_v17  ;;  %v3454_v46 = vadd.f32 %v3329_v27, %v8081_v39  ;;  %v3455_v11 = vadd.f32 %v3330_v32, %v8082_v58  ;;  %v3456_v34 = vadd.f32 %v3331_v18, %v8083_v51 }
 0x33a   : > { %v3685_v12 = vrot.slane %v7397_v10, 1  ;;  %v3686_v31 = vrot.slane %v7397_v10, 2  ;;  %v3687_v19 = vrot.slane %v7397_v10, 3  ;;  %v3688_v56 = vrot.slane %v7397_v10, 4 }
 0x33b   : > { %v3689_v3 = vrot.slane %v7397_v10, 5  ;;  %v3690_v54 = vrot.slane %v7397_v10, 6  ;;  %v3691_v59 = vrot.slane %v7397_v10, 7  ;;  %v3810_v57 = vmul.f32 %v7397_v10, %v3457_v4 }
 0x33c   : > { %v3811_v24 = vmul.f32 %v3685_v12, %v3458_v52  ;;  %v3812_v44 = vmul.f32 %v3686_v31, %v3459_v35  ;;  %v3813_v41 = vmul.f32 %v3687_v19, %v3460_v48  ;;  %v3814_v30 = vmul.f32 %v3688_v56, %v3461_v21 }
 0x33d   : > { %v3815_v60 = vmul.f32 %v3689_v3, %v3462_v6  ;;  %v3816_v43 = vmul.f32 %v3690_v54, %v3463_v53  ;;  %v3817_v49 = vmul.f32 %v3691_v59, %v3464_v29  ;;  %v4183_v7 = vrot.slane %v7521_v37, 1 }
 0x33e   : > { %v8085_v61 = vrot.slane %v8084_v47, 1  ;;  %v8086_v32 = vrot.slane %v8084_v47, 2  ;;  %v8087_v45 = vrot.slane %v8084_v47, 3  ;;  %v4169_v10 = vrot.slane %v7541_v5, 1 }
 0x33f   : > { %v4034_v4 = vmul.f32 %v8084_v47, %v3810_v57  ;;  %v8088_v52 = vrot.slane %v8084_v47, 4  ;;  %v8089_v48 = vrot.slane %v8084_v47, 5  ;;  %v8090_v6 = vrot.slane %v8084_v47, 6 }
 0x340   : > { %v4035_v27 = vmul.f32 %v8085_v61, %v3811_v24  ;;  %v4036_v18 = vmul.f32 %v8086_v32, %v3812_v44  ;;  %v4037_v2 = vmul.f32 %v8087_v45, %v3813_v41  ;;  %v3678_v50 = vrot.slane %v7403_v14, 1 }
 0x341   : > { %v4038_v35 = vmul.f32 %v8088_v52, %v3814_v30  ;;  %v4039_v21 = vmul.f32 %v8089_v48, %v3815_v60  ;;  %v7606_v53 = vmul.f32 %v8090_v6, %v3816_v43  ;;  %v8091_v17 = vrot.slane %v8084_v47, 7 }
 0x342   : > { %v4199_v29 = vrot.slane %v4035_v27, 7  ;;  %v4201_v15 = vrot.slane %v4036_v18, 6  ;;  %v4203_v58 = vrot.slane %v4037_v2, 5  ;;  %v3679_v19 = vrot.slane %v7403_v14, 2  ;;  %v8092_v2 = vld [vmem:[#allocation11_spill] sm:$0xff] }
 0x343   : > { %v7611_v39 = vmul.f32 %v8091_v17, %v3817_v49  ;;  %v4205_v51 = vrot.slane %v4038_v35, 4  ;;  %v4207_v12 = vrot.slane %v4039_v21, 3  ;;  %v3680_v56 = vrot.slane %v7403_v14, 3 }
 0x344   : > { %v4200_v31 = vsel %vm4123_vm2, %v4199_v29, %v4034_v4  ;;  %v3681_v3 = vrot.slane %v7403_v14, 4  ;;  %v3682_v59 = vrot.slane %v7403_v14, 5  ;;  %v3683_v57 = vrot.slane %v7403_v14, 6 }
 0x345   : > { %v4202_v54 = vsel %vm4126_vm3, %v4201_v15, %v4200_v31  ;;  %v3684_v24 = vrot.slane %v7403_v14, 7  ;;  %v3802_v41 = vmul.f32 %v7403_v14, %v3449_v40  ;;  %v3803_v30 = vmul.f32 %v3678_v50, %v3450_v22 }
 0x346   : > { %v4204_v44 = vsel %vm4129_vm4, %v4203_v58, %v4202_v54  ;;  %v3804_v60 = vmul.f32 %v3679_v19, %v3451_v33  ;;  %v3805_v49 = vmul.f32 %v3680_v56, %v3452_v9  ;;  %v3806_v47 = vmul.f32 %v3681_v3, %v3453_v63 }
 0x347   : > { %v4206_v43 = vsel %vm4132_vm5, %v4205_v51, %v4204_v44  ;;  %v3807_v61 = vmul.f32 %v3682_v59, %v3454_v46  ;;  %v4209_v32 = vrot.slane %v7606_v53, 2  ;;  %v3808_v18 = vmul.f32 %v3683_v57, %v3455_v11  ;;  %v8100_v44 = vld [vmem:[#allocation51_spill] sm:$0xff] }
 0x348   : > { %v7625_v27 = vsel %vm4135_vm6, %v4207_v12, %v4206_v43  ;;  %v3809_v45 = vmul.f32 %v3684_v24, %v3456_v34  ;;  %v8093_v4 = vrot.slane %v8092_v2, 1  ;;  %v8094_v35 = vrot.slane %v8092_v2, 2 }
 0x349   : > { %v8095_v40 = vrot.slane %v8092_v2, 3  ;;  %v8096_v33 = vrot.slane %v8092_v2, 4  ;;  %v4026_v63 = vmul.f32 %v8092_v2, %v3802_v41  ;;  %v8097_v46 = vrot.slane %v8092_v2, 5 }
 0x34a   : > { %v4027_v52 = vmul.f32 %v8093_v4, %v3803_v30  ;;  %v4028_v14 = vmul.f32 %v8094_v35, %v3804_v60  ;;  %v8098_v11 = vrot.slane %v8092_v2, 6  ;;  %v8099_v21 = vrot.slane %v8092_v2, 7  ;;  %v8101_v60 = vld [vmem:[#allocation50_spill] sm:$0xff]  ;;  %v8104_v2 = vld [vmem:[#allocation27_spill] sm:$0xff] }
 0x34b   : > { %v4029_v22 = vmul.f32 %v8095_v40, %v3805_v49  ;;  %v4030_v9 = vmul.f32 %v8096_v33, %v3806_v47  ;;  %v4031_v48 = vmul.f32 %v8097_v46, %v3807_v61  ;;  %v3346_v17 = vrot.slane %v7413_v25, 1  ;;  %v8102_v49 = vld [vmem:[#allocation53_spill] sm:$0xff]  ;;  %v8103_v61 = vld [vmem:[#allocation52_spill] sm:$0xff] }
 0x34c   : > { %v4032_v34 = vmul.f32 %v8098_v11, %v3808_v18  ;;  %v7643_v6 = vmul.f32 %v8099_v21, %v3809_v45  ;;  %v4185_v29 = vrot.slane %v4027_v52, 7  ;;  %v4187_v15 = vrot.slane %v4028_v14, 6  ;;  %v8105_v52 = vld [vmem:[#allocation26_spill] sm:$0xff] }
 0x34d   : > { %v4189_v50 = vrot.slane %v4029_v22, 5  ;;  %v4191_v58 = vrot.slane %v4030_v9, 4  ;;  %v4193_v51 = vrot.slane %v4031_v48, 3  ;;  %v3347_v31 = vrot.slane %v7413_v25, 2 }
 0x34e   : > { %v4195_v12 = vrot.slane %v4032_v34, 2  ;;  %v4186_v19 = vsel %vm4123_vm2, %v4185_v29, %v4026_v63  ;;  %v3348_v56 = vrot.slane %v7413_v25, 3  ;;  %v3349_v3 = vrot.slane %v7413_v25, 4 }
 0x34f   : > { %v3350_v54 = vrot.slane %v7413_v25, 5  ;;  %v4188_v59 = vsel %vm4126_vm3, %v4187_v15, %v4186_v19  ;;  %v3351_v57 = vrot.slane %v7413_v25, 6  ;;  %v3352_v24 = vrot.slane %v7413_v25, 7 }
 0x350   : > { %v3473_v41 = vadd.f32 %v7413_v25, %v8100_v44  ;;  %v4190_v30 = vsel %vm4129_vm4, %v4189_v50, %v4188_v59  ;;  %v3474_v43 = vadd.f32 %v3346_v17, %v8101_v60  ;;  %v3475_v47 = vadd.f32 %v3347_v31, %v8102_v49 }
 0x351   : > { %v3476_v18 = vadd.f32 %v3348_v56, %v8103_v61  ;;  %v4192_v45 = vsel %vm4132_vm5, %v4191_v58, %v4190_v30  ;;  %v3477_v4 = vadd.f32 %v3349_v3, %v8104_v2  ;;  %v3478_v35 = vadd.f32 %v3350_v54, %v8105_v52  ;;  %v8112_v52 = vld [vmem:[#allocation43_spill] sm:$0xff] }
 0x352   : > { %v3479_v14 = vadd.f32 %v3351_v57, %v7381_v23  ;;  %v4211_v40 = vrot.slane %v7611_v39, 1  ;;  %v4194_v25 = vsel %vm4135_vm6, %v4193_v51, %v4192_v45  ;;  %v4197_v22 = vrot.slane %v7643_v6, 1  ;;  %v8106_v57 = vld [vmem:[#allocation17_spill] sm:$0xff] }
 0x353   : > { %v3480_v33 = vadd.f32 %v3352_v24, %v7371_v0  ;;  %v7669_v9 = vsel %vm4138_vm7, %v4195_v12, %v4194_v25  ;;  %v3339_v63 = vrot.slane %v7424_v28, 1  ;;  %v3340_v46 = vrot.slane %v7424_v28, 2 }
 0x354   : > { %v3341_v48 = vrot.slane %v7424_v28, 3  ;;  %v3342_v11 = vrot.slane %v7424_v28, 4  ;;  %v3343_v23 = vrot.slane %v7424_v28, 5  ;;  %v3699_v34 = vrot.slane %v7438_v55, 1 }
 0x355   : > { %v3700_v21 = vrot.slane %v7438_v55, 2  ;;  %v3701_v29 = vrot.slane %v7438_v55, 3  ;;  %v3702_v0 = vrot.slane %v7438_v55, 4  ;;  %v3703_v15 = vrot.slane %v7438_v55, 5 }
 0x356   : > { %v3704_v50 = vrot.slane %v7438_v55, 6  ;;  %v3705_v17 = vrot.slane %v7438_v55, 7  ;;  %v3826_v58 = vmul.f32 %v7438_v55, %v3473_v41  ;;  %v3827_v51 = vmul.f32 %v3699_v34, %v3474_v43 }
 0x357   : > { %v3828_v12 = vmul.f32 %v3700_v21, %v3475_v47  ;;  %v3829_v31 = vmul.f32 %v3701_v29, %v3476_v18  ;;  %v3830_v19 = vmul.f32 %v3702_v0, %v3477_v4  ;;  %v3831_v56 = vmul.f32 %v3703_v15, %v3478_v35 }
 0x358   : > { %v3832_v3 = vmul.f32 %v3704_v50, %v3479_v14  ;;  %v3344_v54 = vrot.slane %v7424_v28, 6  ;;  %v3833_v59 = vmul.f32 %v3705_v17, %v3480_v33  ;;  %v8107_v24 = vrot.slane %v8106_v57, 1  ;;  %v8115_v50 = vld [vmem:[#allocation42_spill] sm:$0xff] }
 0x359   : > { %v8108_v30 = vrot.slane %v8106_v57, 2  ;;  %v3345_v49 = vrot.slane %v7424_v28, 7  ;;  %v8109_v61 = vrot.slane %v8106_v57, 3  ;;  %v8110_v41 = vrot.slane %v8106_v57, 4 }
 0x35a   : > { %v4051_v44 = vmul.f32 %v8107_v24, %v3827_v51  ;;  %v8111_v47 = vrot.slane %v8106_v57, 5  ;;  %v4050_v45 = vmul.f32 %v8106_v57, %v3826_v58  ;;  %v3465_v35 = vadd.f32 %v7424_v28, %v8112_v52  ;;  %v8116_v58 = vld [vmem:[#allocation45_spill] sm:$0xff] }
 0x35b   : > { %v4052_v60 = vmul.f32 %v8108_v30, %v3828_v12  ;;  %v4053_v55 = vmul.f32 %v8109_v61, %v3829_v31  ;;  %v7694_v43 = vmul.f32 %v8110_v41, %v3830_v19  ;;  %v8113_v14 = vrot.slane %v8106_v57, 6  ;;  %v8117_v12 = vld [vmem:[#allocation44_spill] sm:$0xff]  ;;  %v8118_v19 = vld [vmem:[#allocation47_spill] sm:$0xff]  ;;  %v8120_v24 = vld [vmem:[#allocation49_spill] sm:$0xff] }
 0x35c   : > { %v7698_v18 = vmul.f32 %v8111_v47, %v3831_v56  ;;  %v4227_v2 = vrot.slane %v4051_v44, 7  ;;  %v8114_v33 = vrot.slane %v8106_v57, 7  ;;  %v3466_v17 = vadd.f32 %v3339_v63, %v8115_v50  ;;  %v8121_v30 = vld [vmem:[#allocation48_spill] sm:$0xff] }
 0x35d   : > { %v4229_v4 = vrot.slane %v4052_v60, 6  ;;  %v7705_v25 = vmul.f32 %v8113_v14, %v3832_v3  ;;  %v4231_v21 = vrot.slane %v4053_v55, 5  ;;  %v4233_v29 = vrot.slane %v7694_v43, 4  ;;  %v8119_v3 = vld [vmem:[#allocation46_spill] sm:$0xff] }
 0x35e   : > { %v7709_v34 = vmul.f32 %v8114_v33, %v3833_v59  ;;  %v4228_v0 = vsel %vm4123_vm2, %v4227_v2, %v4050_v45  ;;  %v4235_v15 = vrot.slane %v7698_v18, 3  ;;  %v3467_v51 = vadd.f32 %v3340_v46, %v8116_v58  ;;  %v8122_v33 = vld [vmem:[#allocation13_spill] sm:$0xff] }
 0x35f   : > { %v4230_v28 = vsel %vm4126_vm3, %v4229_v4, %v4228_v0  ;;  %v3468_v31 = vadd.f32 %v3341_v48, %v8117_v12  ;;  %v3469_v56 = vadd.f32 %v3342_v11, %v8118_v19  ;;  %v3470_v59 = vadd.f32 %v3343_v23, %v8119_v3 }
 0x360   : > { %v7721_v57 = vsel %vm4129_vm4, %v4231_v21, %v4230_v28  ;;  %v3471_v44 = vadd.f32 %v3344_v54, %v8120_v24  ;;  %v3472_v60 = vadd.f32 %v3345_v49, %v8121_v30  ;;  %v3692_v61 = vrot.slane %v7444_v38, 1 }
 0x361   : > { %v3693_v63 = vrot.slane %v7444_v38, 2  ;;  %v3694_v46 = vrot.slane %v7444_v38, 3  ;;  %v3695_v55 = vrot.slane %v7444_v38, 4  ;;  %v3696_v48 = vrot.slane %v7444_v38, 5 }
 0x362   : > { %v3697_v11 = vrot.slane %v7444_v38, 6  ;;  %v3698_v23 = vrot.slane %v7444_v38, 7  ;;  %v3818_v41 = vmul.f32 %v7444_v38, %v3465_v35  ;;  %v3819_v47 = vmul.f32 %v3692_v61, %v3466_v17 }
 0x363   : > { %v3820_v54 = vmul.f32 %v3693_v63, %v3467_v51  ;;  %v3821_v45 = vmul.f32 %v3694_v46, %v3468_v31  ;;  %v3822_v49 = vmul.f32 %v3695_v55, %v3469_v56  ;;  %v3823_v2 = vmul.f32 %v3696_v48, %v3470_v59 }
 0x364   : > { %v4237_v4 = vrot.slane %v7705_v25, 2  ;;  %v3824_v52 = vmul.f32 %v3697_v11, %v3471_v44  ;;  %v3825_v14 = vmul.f32 %v3698_v23, %v3472_v60  ;;  %v8123_v21 = vrot.slane %v8122_v33, 1 }
 0x365   : > { %v8124_v50 = vrot.slane %v8122_v33, 2  ;;  %v8125_v28 = vrot.slane %v8122_v33, 3  ;;  %v8126_v38 = vrot.slane %v8122_v33, 4  ;;  %v8127_v17 = vrot.slane %v8122_v33, 5 }
 0x366   : > { %v4043_v0 = vmul.f32 %v8123_v21, %v3819_v47  ;;  %v4239_v31 = vrot.slane %v7709_v34, 1  ;;  %v4042_v25 = vmul.f32 %v8122_v33, %v3818_v41  ;;  %v4142_v56 = vsel %vm4141_vm8, %v4140_v26, %v7466_v20 }
 0x367   : > { %v4044_v58 = vmul.f32 %v8124_v50, %v3820_v54  ;;  %v4045_v12 = vmul.f32 %v8125_v28, %v3821_v45  ;;  %v4046_v35 = vmul.f32 %v8126_v38, %v3822_v49  ;;  %v4047_v51 = vmul.f32 %v8127_v17, %v3823_v2 }
 0x368   : > { %v4213_v19 = vrot.slane %v4043_v0, 7  ;;  %v8128_v3 = vrot.slane %v8122_v33, 6  ;;  %v8129_v24 = vrot.slane %v8122_v33, 7  ;;  %v4156_v46 = vsel %vm4141_vm8, %v4155_v16, %v7416_v13 }
 0x369   : > { %v4215_v30 = vrot.slane %v4044_v58, 6  ;;  %v4217_v60 = vrot.slane %v4045_v12, 5  ;;  %v4219_v63 = vrot.slane %v4046_v35, 4  ;;  %v4221_v34 = vrot.slane %v4047_v51, 3 }
 0x36a   : > { %v4048_v59 = vmul.f32 %v8128_v3, %v3824_v52  ;;  %v4049_v44 = vmul.f32 %v8129_v24, %v3825_v14  ;;  %v4214_v61 = vsel %vm4123_vm2, %v4213_v19, %v4042_v25  ;;  %v4170_v20 = vsel %vm4141_vm8, %v4169_v10, %v7564_v62 }
 0x36b   : > { %v4216_v1 = vsel %vm4126_vm3, %v4215_v30, %v4214_v61  ;;  %v4184_v26 = vsel %vm4141_vm8, %v4183_v7, %v7524_v36  ;;  %v4249_v55 = vrot.slane %v4142_v56, 4  ;;  %v4255_v11 = vrot.slane %v4156_v46, 4 }
 0x36c   : > { %v4218_v48 = vsel %vm4129_vm4, %v4217_v60, %v4216_v1  ;;  %v4261_v23 = vrot.slane %v4170_v20, 4  ;;  %v4267_v8 = vrot.slane %v4184_v26, 4  ;;  %v4223_v16 = vrot.slane %v4048_v59, 2 }
 0x36d   : > { %v4220_v13 = vsel %vm4132_vm5, %v4219_v63, %v4218_v48  ;;  %v4225_v41 = vrot.slane %v4049_v44, 1  ;;  %v4250_v47 = vadd.f32 %v4249_v55, %v4142_v56  ;;  %v4256_v54 = vadd.f32 %v4255_v11, %v4156_v46  ;;  %v8130_v46 = vld [vmem:[#allocation9_spill] sm:$0xff] }
 0x36e   : > { %v4222_v5 = vsel %vm4135_vm6, %v4221_v34, %v4220_v13  ;;  %v4262_v62 = vadd.f32 %v4261_v23, %v4170_v20  ;;  %v4268_v10 = vadd.f32 %v4267_v8, %v4184_v26  ;;  %v4379_v36 = vrot.slane %v7459_v42, 1 }
 0x36f   : > { %v4224_v37 = vsel %vm4138_vm7, %v4223_v16, %v4222_v5  ;;  %v4251_v45 = vrot.slane %v4250_v47, 2  ;;  %v4380_v7 = vrot.slane %v7459_v42, 2  ;;  %v4257_v49 = vrot.slane %v4256_v54, 2 }
 0x370   : > { %v4263_v2 = vrot.slane %v4262_v62, 2  ;;  %v4269_v52 = vrot.slane %v4268_v10, 2  ;;  %v4381_v14 = vrot.slane %v7459_v42, 3  ;;  %v4198_v21 = vsel %vm4141_vm8, %v4197_v22, %v7669_v9 }
 0x371   : > { %v4252_v33 = vadd.f32 %v4251_v45, %v4250_v47  ;;  %v4210_v0 = vsel %vm4138_vm7, %v4209_v32, %v7625_v27  ;;  %v4226_v50 = vsel %vm4141_vm8, %v4225_v41, %v4224_v37  ;;  %v4258_v58 = vadd.f32 %v4257_v49, %v4256_v54 }
 0x372   : > { %v4264_v28 = vadd.f32 %v4263_v2, %v4262_v62  ;;  %v4270_v12 = vadd.f32 %v4269_v52, %v4268_v10  ;;  %v4212_v38 = vsel %vm4141_vm8, %v4211_v40, %v4210_v0  ;;  %v4234_v6 = vsel %vm4132_vm5, %v4233_v29, %v7721_v57 }
 0x373   : > { %v4253_v35 = vrot.slane %v4252_v33, 1  ;;  %v4273_v22 = vrot.slane %v4198_v21, 4  ;;  %v4279_v9 = vrot.slane %v4212_v38, 4  ;;  %v4259_v53 = vrot.slane %v4258_v58, 1 }
 0x374   : > { %v4265_v17 = vrot.slane %v4264_v28, 1  ;;  %v4271_v27 = vrot.slane %v4270_v12, 1  ;;  %v4236_v32 = vsel %vm4135_vm6, %v4235_v15, %v4234_v6  ;;  %v4285_v24 = vrot.slane %v4226_v50, 4 }
 0x375   : > { %v4254_v51 = vadd.f32 %v4253_v35, %v4252_v33  ;;  %v4238_v39 = vsel %vm4138_vm7, %v4237_v4, %v4236_v32  ;;  %v4274_v25 = vadd.f32 %v4273_v22, %v4198_v21  ;;  %v4280_v40 = vadd.f32 %v4279_v9, %v4212_v38 }
 0x376   : > { %v4260_v19 = vadd.f32 %v4259_v53, %v4258_v58  ;;  %v4266_v56 = vadd.f32 %v4265_v17, %v4264_v28  ;;  %v4272_v3 = vadd.f32 %v4271_v27, %v4270_v12  ;;  %v4240_v43 = vsel %vm4141_vm8, %v4239_v31, %v4238_v39  ;;  %v4375_v12 = vld [vmem:[%s531_s23] sm:$0xff]  ;;  %s5649_s23 = sshll.u32 %s5714_s15, 4  ;;  %s5650_s23 = int_to_ptr.vmem [resolvable:$false] %s5649_s23 }
 0x377   : > { %v4394_v29 = vadd.f32 %v7459_v42, %v4254_v51  ;;  %v4275_v57 = vrot.slane %v4274_v25, 2  ;;  %v4281_v59 = vrot.slane %v4280_v40, 2  ;;  %v4291_v60 = vrot.slane %v4240_v43, 4  ;;  %s5651_s14 = scalar_lea.vmem %s5650_s23, 256  ;;  %p5652_p2 = scmp.lt.s32.totalorder %s7831_s16, %s5650_s23 }
 0x378   : > { %v4395_v44 = vadd.f32 %v4379_v36, %v4260_v19  ;;  %v4396_v30 = vadd.f32 %v4380_v7, %v4266_v56  ;;  %v4397_v18 = vadd.f32 %v4381_v14, %v4272_v3  ;;  %v4286_v63 = vadd.f32 %v4285_v24, %v4226_v50  ;;  %p5653_p3 = scmp.lt.s32.totalorder %s5651_s14, %s5645_s26 }
 0x379   : > { %v4276_v15 = vadd.f32 %v4275_v57, %v4274_v25  ;;  %v4282_v61 = vadd.f32 %v4281_v59, %v4280_v40  ;;  %v4382_v4 = vrot.slane %v7459_v42, 4  ;;  %v4383_v34 = vrot.slane %v7459_v42, 5 }
 0x37a   : > { %v4405_v1 = vmul.f32 %v8130_v46, %v4395_v44  ;;  %v4292_v20 = vadd.f32 %v4291_v60, %v4240_v43  ;;  %v4287_v55 = vrot.slane %v4286_v63, 2  ;;  %v4406_v48 = vmul.f32 %v8130_v46, %v4396_v30  ;;  %p5654_p4 = por %p5653_p3, %p5652_p2 }
 0x37b   : > { %v4277_v31 = vrot.slane %v4276_v15, 1  ;;  %v4283_v26 = vrot.slane %v4282_v61, 1  ;;  %v4404_v11 = vmul.f32 %v8130_v46, %v4394_v29  ;;  %v4407_v13 = vmul.f32 %v8130_v46, %v4397_v18 }
 0x37c   : > { %v4420_v23 = vrot.slane %v4405_v1, 7  ;;  %v4293_v8 = vrot.slane %v4292_v20, 2  ;;  %v4288_v47 = vadd.f32 %v4287_v55, %v4286_v63  ;;  %v4422_v5 = vrot.slane %v4406_v48, 6  ;;  %p5655_p7 = pnand %p5654_p4, %p5648_p1 }
 0x37d   : > { %v4278_v16 = vadd.f32 %v4277_v31, %v4276_v15  ;;  %v4284_v41 = vadd.f32 %v4283_v26, %v4282_v61  ;;  %v4424_v10 = vrot.slane %v4407_v13, 5  ;;  %v4384_v14 = vrot.slane %v7459_v42, 6 }
 0x37e   : > { %v4294_v54 = vadd.f32 %v4293_v8, %v4292_v20  ;;  %v4421_v62 = vsel %vm4123_vm2, %v4420_v23, %v4404_v11  ;;  %v4289_v37 = vrot.slane %v4288_v47, 1  ;;  %v4385_v50 = vrot.slane %v7459_v42, 7 }
 0x37f   : > { %v4398_v45 = vadd.f32 %v4382_v4, %v4278_v16  ;;  %v4399_v36 = vadd.f32 %v4383_v34, %v4284_v41  ;;  %v4423_v7 = vsel %vm4126_vm3, %v4422_v5, %v4421_v62  ;;  %v4376_v38 = vstv %s6968_s13 }
 0x380   : > { %v4295_v49 = vrot.slane %v4294_v54, 1  ;;  %v4425_v2 = vsel %vm4129_vm4, %v4424_v10, %v4423_v7  ;;  %v4290_v52 = vadd.f32 %v4289_v37, %v4288_v47  ;;  %v4377_v27 = vmul.f32 %v4376_v38, %v4375_v12 }
 0x381   : > { %v4408_v33 = vmul.f32 %v8130_v46, %v4398_v45  ;;  %v4409_v21 = vmul.f32 %v8130_v46, %v4399_v36 }
 0x382   : > { %v4296_v0 = vadd.f32 %v4295_v49, %v4294_v54  ;;  %v4400_v58 = vadd.f32 %v4384_v14, %v4290_v52 }
 0x383   : > { %v4426_v28 = vrot.slane %v4408_v33, 4  ;;  %v4428_v6 = vrot.slane %v4409_v21, 3 }
 0x384   : > { %v4401_v35 = vadd.f32 %v4385_v50, %v4296_v0  ;;  %v4410_v22 = vmul.f32 %v8130_v46, %v4400_v58 }
 0x385   : > { %v4427_v9 = vsel %vm4132_vm5, %v4426_v28, %v4425_v2 }
 0x386   : > { %v4411_v53 = vmul.f32 %v8130_v46, %v4401_v35  ;;  %v4429_v17 = vsel %vm4135_vm6, %v4428_v6, %v4427_v9  ;;  %v4430_v32 = vrot.slane %v4410_v22, 2 }
 0x388   : > { %v4432_v51 = vrot.slane %v4411_v53, 1  ;;  %v4431_v42 = vsel %vm4138_vm7, %v4430_v32, %v4429_v17 }
 0x38a   : > { %v4433_v39 = vsel %vm4141_vm8, %v4432_v51, %v4431_v42 }
 0x38b   : > { %v4435_v25 = vadd.f32 %v4433_v39, %v4377_v27 }
 0x38d   : > { %4436 = vst [vmem:[%s487_s25] sm:$0xff] %v4435_v25 }
 0x38e   : > { %5658 = shalt.err (!%p5655_p7)
}
 0x38f   : > { %s5659_s12 = scalar_lea.hbm %s7829_s17, 128  ;;  %s5663_s30 = scalar_lea.hbm %s7884_s11, 256 }
 0x390   : > { %p5660_p8 = scmp.ne.s32.totalorder %s7829_s17, %s5659_s12  ;;  %p5664_p11 = scmp.lt.u32.totalorder %s7829_s17, %s7884_s11 }
 0x391   : > { %p5665_p12 = scmp.lt.u32.totalorder %s5663_s30, %s5659_s12  ;;  %p5667_p0 = scmp.lt.u32.totalorder %s5659_s12, %s7829_s17 }
 0x392   : > { %p5661_p9 = pnand %p5660_p8, %p5816_p5 }
 0x393   : > { %p5666_p13 = por %p5665_p12, %p5664_p11 }
 0x394   : > { %p5662_p10 = pneg %p5661_p9 }
 0x395   : > { %p5668_p1 = por %p5667_p0, %p5666_p13 }
 0x397   : > { %p5669_p2 = pnand %p5668_p1, %p5662_p10 }
 0x399   : > { %5672 = shalt.err (!%p5669_p2)
}
 0x39a   : > { %5599 = dma.vmem_to_hbm [thread:$0]  (%p5816_p5), %s7831_s16, 128, %s7829_s17, %s4438_s0  }
 0x39b PF: > { %p5605_p3 = scmp.ge.s32.totalorder %s5707_s22, 2  ;;  %s4463_s26 = sand.u32 1, %s5695_s19  }
 0x39c   : > { %s4464_s23 = scalar_lea.sflag [#allocation4], %s4463_s26 }
 0x39d   : > { %p5602_p4 = pnand %p5605_p3, %p5820_p6 }
 0x39f   : > { %5690 = dma.done.wait (!%p5602_p4), %s4464_s23, 128  }
 0x3a0   : > { %5692 = vsyncadd (!%p5602_p4), %s4464_s23, 4294967168  ;;  %p22_p7 = scmp.ge.s32.totalorder %s5803_s24, 4   ;;  %s8131_s19 = smov %s5699_s20 }
 0x3a1   : > { %s8132_s20 = smov %s5703_s21  ;;  %s8133_s21 = smov %s5814_s27 }
 0x3a2   : > { %s8134_s22 = smov %s5803_s24  ;;  %24 = sbr.rel (!%p22_p7) target bundleno = 5 (0x5), region = 120 }
 0x3a9   :  { %4469 = vsyncpa [#allocation4], 1 }
 0x3aa   :  { %4471 = vsyncpa [#allocation4 + $0x1], 1 }

</bundles_post_ra>
